<compile_context>
chip_gen: v6e
topology: v6e:2x2x1
jax: 0.10.0
libtpu: 0.0.40
codegen_flags: <defaults>
</compile_context>

<pallas_src>
import functools
import math

import numpy as np
import jax
import jax.numpy as jnp
from jax.experimental import pallas as pl
from jax.experimental.pallas import tpu as pltpu

# ----------------------------------------------------------------------------
# Config
# ----------------------------------------------------------------------------
FEATURE_DIMS = {"layer1": 16, "layer2": 32, "layer3": 64, "layer4": 64}
FPN_CHANNELS = 64
NUM_CLASSES = 5
POOL_SCALES = (1, 2, 3, 6)
BN_EPS = 1e-5

COMPUTE_DTYPE = jnp.bfloat16      # MXU operand dtype (accumulate in f32)
FEATURE_DTYPE = jnp.bfloat16      # intermediate feature maps written to HBM
PALLAS_MIN_ROWS = 256             # below this a pallas_call is pure launch overhead
MAX_TM = 1024                     # row-tile cap (keeps blocks well under scoped VMEM)
VMEM_LIMIT_BYTES = 32 * 1024 * 1024  # explicit scoped-VMEM limit (v7x-safe)


def _round_up(x, m):
    return ((x + m - 1) // m) * m


def _affine(y, scale, bias, relu):
    y = y * scale + bias
    return jnp.maximum(y, 0.0) if relu else y


# ----------------------------------------------------------------------------
# Pallas kernel 1: fused matmul + folded-BN affine + optional ReLU
# ----------------------------------------------------------------------------
def _mm_affine_kernel(relu, x_ref, w_ref, s_ref, b_ref, o_ref):
    acc = jnp.dot(x_ref[...], w_ref[...], preferred_element_type=jnp.float32)
    y = acc * s_ref[...] + b_ref[...]
    if relu:
        y = jnp.maximum(y, 0.0)
    o_ref[...] = y.astype(o_ref.dtype)


def matmul_affine(x2d, w, scale, bias, relu=True, out_dtype=FEATURE_DTYPE):
    """y = act((x2d @ w) * scale + bias).  Pallas kernel for big M, XLA otherwise."""
    M, K = x2d.shape
    N = w.shape[1]
    s2 = scale.reshape(1, N).astype(jnp.float32)
    b2 = bias.reshape(1, N).astype(jnp.float32)
    if M < PALLAS_MIN_ROWS:
        # micro-matmul: XLA fuses it with surrounding glue; a kernel launch would
        # cost more than the compute.
        y = _affine(jnp.dot(x2d.astype(jnp.float32), w.astype(jnp.float32)),
                    s2, b2, relu)
        return y.astype(out_dtype)

    xb = x2d.astype(COMPUTE_DTYPE)
    wb = w.astype(COMPUTE_DTYPE)
    # whole-M block at these sizes; only tile when M is genuinely large
    TM = min(_round_up(M, 16), MAX_TM)
    Mp = _round_up(M, TM)
    if Mp != M:
        xb = jnp.pad(xb, ((0, Mp - M), (0, 0)))
    grid = (Mp // TM,)
    cost = pl.CostEstimate(
        flops=2 * Mp * K * N, transcendentals=0,
        bytes_accessed=Mp * K * 2 + K * N * 2 + Mp * N * 2)
    out = pl.pallas_call(
        functools.partial(_mm_affine_kernel, relu),
        out_shape=jax.ShapeDtypeStruct((Mp, N), out_dtype),
        grid=grid,
        in_specs=[
            pl.BlockSpec((TM, K), lambda i: (i, 0)),
            pl.BlockSpec((K, N), lambda i: (0, 0)),
            pl.BlockSpec((1, N), lambda i: (0, 0)),
            pl.BlockSpec((1, N), lambda i: (0, 0)),
        ],
        out_specs=pl.BlockSpec((TM, N), lambda i: (i, 0)),
        compiler_params=pltpu.CompilerParams(
            dimension_semantics=("parallel",),
            vmem_limit_bytes=VMEM_LIMIT_BYTES),
        cost_estimate=cost,
    )(xb, wb, s2, b2)
    return out[:M]


def conv1x1_bn_relu(x, w, scale, bias, relu=True, out_dtype=FEATURE_DTYPE):
    N, H, W, C = x.shape
    Cout = w.shape[1]
    y = matmul_affine(x.reshape(N * H * W, C), w, scale, bias, relu, out_dtype)
    return y.reshape(N, H, W, Cout)


# ----------------------------------------------------------------------------
# Pallas kernel 2: 3x3 conv with im2col fused in-kernel (9 shifted dots)
# ----------------------------------------------------------------------------
def _conv3x3_kernel(H, W, relu, x_ref, w_ref, s_ref, b_ref, o_ref):
    # x_ref: (1, H+2, W+2, C) zero-padded sample; w_ref: (9, C, Cout)
    C = x_ref.shape[-1]
    Cout = o_ref.shape[-1]
    acc = jnp.zeros((H * W, Cout), jnp.float32)
    for dh in range(3):
        for dw in range(3):
            xs = x_ref[:, dh:dh + H, dw:dw + W, :].reshape(H * W, C)
            acc = acc + jnp.dot(xs, w_ref[dh * 3 + dw],
                                preferred_element_type=jnp.float32)
    y = acc * s_ref[...] + b_ref[...]
    if relu:
        y = jnp.maximum(y, 0.0)
    o_ref[...] = y.astype(o_ref.dtype)


def conv3x3_bn_relu(x, w, scale, bias, relu=True, out_dtype=FEATURE_DTYPE):
    # w: (9*C, Cout), im2col ordering (kh, kw, C)
    N, H, W, C = x.shape
    Cout = w.shape[1]
    M = N * H * W
    if M < PALLAS_MIN_ROWS or W % 16 != 0:
        # tiny / oddly-tiled map: im2col + XLA dot (launch overhead dominates)
        xp = jnp.pad(x, ((0, 0), (1, 1), (1, 1), (0, 0))).astype(jnp.float32)
        cols = jnp.concatenate(
            [xp[:, dh:dh + H, dw:dw + W, :] for dh in range(3) for dw in range(3)],
            axis=-1)
        y = _affine(jnp.dot(cols.reshape(M, 9 * C), w.astype(jnp.float32)),
                    scale.reshape(1, Cout), bias.reshape(1, Cout), relu)
        return y.astype(out_dtype).reshape(N, H, W, Cout)

    xp = jnp.pad(x.astype(COMPUTE_DTYPE), ((0, 0), (1, 1), (1, 1), (0, 0)))
    wb = w.reshape(9, C, Cout).astype(COMPUTE_DTYPE)
    cost = pl.CostEstimate(
        flops=2 * M * 9 * C * Cout, transcendentals=0,
        bytes_accessed=xp.size * 2 + 9 * C * Cout * 2 + M * Cout * 2)
    out = pl.pallas_call(
        functools.partial(_conv3x3_kernel, H, W, relu),
        out_shape=jax.ShapeDtypeStruct((M, Cout), out_dtype),
        grid=(N,),  # one sample per step; "parallel" -> both v7x TensorCores
        in_specs=[
            pl.BlockSpec((1, H + 2, W + 2, C), lambda n: (n, 0, 0, 0)),
            pl.BlockSpec((9, C, Cout), lambda n: (0, 0, 0)),
            pl.BlockSpec((1, Cout), lambda n: (0, 0)),
            pl.BlockSpec((1, Cout), lambda n: (0, 0)),
        ],
        out_specs=pl.BlockSpec((H * W, Cout), lambda n: (n, 0)),
        compiler_params=pltpu.CompilerParams(
            dimension_semantics=("parallel",),
            vmem_limit_bytes=VMEM_LIMIT_BYTES),
        cost_estimate=cost,
    )(xp, wb, scale.reshape(1, Cout).astype(jnp.float32),
      bias.reshape(1, Cout).astype(jnp.float32))
    return out.reshape(N, H, W, Cout)


# ----------------------------------------------------------------------------
# Pallas kernel 3: patchify conv (kernel=s, stride=s) with in-kernel
# space-to-depth (no HBM transpose of the activation)
# ----------------------------------------------------------------------------
def _patchify_kernel(s, relu, x_ref, w_ref, s_ref, b_ref, o_ref):
    # x_ref: (R, s, Wo, s*C)  -- a pure-metadata reshape of the NHWC map
    R, _, Wo, sC = x_ref.shape
    Cout = o_ref.shape[-1]
    acc = jnp.zeros((R * Wo, Cout), jnp.float32)
    for kh in range(s):
        xs = x_ref[:, kh:kh + 1, :, :].reshape(R * Wo, sC)
        acc = acc + jnp.dot(xs, w_ref[kh], preferred_element_type=jnp.float32)
    y = acc * s_ref[...] + b_ref[...]
    if relu:
        y = jnp.maximum(y, 0.0)
    o_ref[...] = y.astype(o_ref.dtype)


def patchify_conv_bn_relu(x, s, w, scale, bias, relu=True, out_dtype=FEATURE_DTYPE):
    # Conv2d(kernel=s, stride=s); w: (s*s*C, Cout), im2col ordering (kh, kw, C)
    N, H, W, C = x.shape
    Ho, Wo = H // s, W // s
    Cout = w.shape[1]
    M = N * Ho * Wo
    if M < PALLAS_MIN_ROWS or Wo % 16 != 0:
        xr = x.reshape(N, Ho, s, Wo, s, C).transpose(0, 1, 3, 2, 4, 5)
        xr = xr.reshape(M, s * s * C).astype(jnp.float32)
        y = _affine(jnp.dot(xr, w.astype(jnp.float32)),
                    scale.reshape(1, Cout), bias.reshape(1, Cout), relu)
        return y.astype(out_dtype).reshape(N, Ho, Wo, Cout)

    # (N,H,W,C) -> (N*Ho, s, Wo, s*C) only splits/merges adjacent dims: no copy.
    x4 = x.astype(COMPUTE_DTYPE).reshape(N * Ho, s, Wo, s * C)
    wb = w.reshape(s, s * C, Cout).astype(COMPUTE_DTYPE)
    cost = pl.CostEstimate(
        flops=2 * M * s * s * C * Cout, transcendentals=0,
        bytes_accessed=x4.size * 2 + wb.size * 2 + M * Cout * 2)
    out = pl.pallas_call(
        functools.partial(_patchify_kernel, s, relu),
        out_shape=jax.ShapeDtypeStruct((M, Cout), out_dtype),
        grid=(1,),  # single whole-M block at these sizes (per perf review)
        in_specs=[
            pl.BlockSpec((N * Ho, s, Wo, s * C), lambda i: (0, 0, 0, 0)),
            pl.BlockSpec((s, s * C, Cout), lambda i: (0, 0, 0)),
            pl.BlockSpec((1, Cout), lambda i: (0, 0)),
            pl.BlockSpec((1, Cout), lambda i: (0, 0)),
        ],
        out_specs=pl.BlockSpec((M, Cout), lambda i: (0, 0)),
        compiler_params=pltpu.CompilerParams(
            dimension_semantics=("parallel",),
            vmem_limit_bytes=VMEM_LIMIT_BYTES),
        cost_estimate=cost,
    )(x4, wb, scale.reshape(1, Cout).astype(jnp.float32),
      bias.reshape(1, Cout).astype(jnp.float32))
    return out.reshape(N, Ho, Wo, Cout)


# ----------------------------------------------------------------------------
# Pallas kernel 4: fusion 1x1 conv (+BN+ReLU) chained with the classifier
# (intermediate never leaves VMEM; classifier output padded to 128 lanes)
# ----------------------------------------------------------------------------
def _fusion_cls_kernel(x_ref, w1_ref, s1_ref, b1_ref, w2_ref, b2_ref, o_ref):
    h = jnp.dot(x_ref[...], w1_ref[...], preferred_element_type=jnp.float32)
    h = jnp.maximum(h * s1_ref[...] + b1_ref[...], 0.0)
    y = jnp.dot(h.astype(w2_ref.dtype), w2_ref[...],
                preferred_element_type=jnp.float32) + b2_ref[...]
    o_ref[...] = y


def fusion_classifier(x, fusion_params, cls_w, cls_b):
    """fusion conv -> Dropout2d(identity, eval) -> classifier, as one kernel."""
    w1, s1, b1 = fusion_params
    N, H, W, C = x.shape
    F = w1.shape[1]
    NC = cls_w.shape[1]
    M = N * H * W
    x2d = x.reshape(M, C)
    s1r = s1.reshape(1, F).astype(jnp.float32)
    b1r = b1.reshape(1, F).astype(jnp.float32)
    if M < PALLAS_MIN_ROWS:
        h = _affine(jnp.dot(x2d.astype(jnp.float32), w1.astype(jnp.float32)),
                    s1r, b1r, True)
        y = jnp.dot(h, cls_w) + cls_b.reshape(1, NC)
        return y.reshape(N, H, W, NC)

    NCp = _round_up(max(NC, 128), 128)  # lane-dense output slab, sliced outside
    w2p = jnp.zeros((F, NCp), jnp.float32).at[:, :NC].set(cls_w).astype(COMPUTE_DTYPE)
    b2p = jnp.zeros((1, NCp), jnp.float32).at[:, :NC].set(cls_b.reshape(1, NC))

    xb = x2d.astype(COMPUTE_DTYPE)
    TM = min(_round_up(M, 16), MAX_TM)
    Mp = _round_up(M, TM)
    if Mp != M:
        xb = jnp.pad(xb, ((0, Mp - M), (0, 0)))
    grid = (Mp // TM,)
    cost = pl.CostEstimate(
        flops=2 * Mp * C * F + 2 * Mp * F * NCp, transcendentals=0,
        bytes_accessed=Mp * C * 2 + C * F * 2 + F * NCp * 2 + Mp * NCp * 4)
    out = pl.pallas_call(
        _fusion_cls_kernel,
        out_shape=jax.ShapeDtypeStruct((Mp, NCp), jnp.float32),
        grid=grid,
        in_specs=[
            pl.BlockSpec((TM, C), lambda i: (i, 0)),
            pl.BlockSpec((C, F), lambda i: (0, 0)),
            pl.BlockSpec((1, F), lambda i: (0, 0)),
            pl.BlockSpec((1, F), lambda i: (0, 0)),
            pl.BlockSpec((F, NCp), lambda i: (0, 0)),
            pl.BlockSpec((1, NCp), lambda i: (0, 0)),
        ],
        out_specs=pl.BlockSpec((TM, NCp), lambda i: (i, 0)),
        compiler_params=pltpu.CompilerParams(
            dimension_semantics=("parallel",),
            vmem_limit_bytes=VMEM_LIMIT_BYTES),
        cost_estimate=cost,
    )(xb, w1.astype(COMPUTE_DTYPE), s1r, b1r, w2p, b2p)
    return out[:M, :NC].reshape(N, H, W, NC)


# ----------------------------------------------------------------------------
# Glue ops: adaptive average pooling + bilinear (align_corners=True) resize
# (tiny reductions / gathers on <=6x6 grids -> left to XLA)
# ----------------------------------------------------------------------------
def adaptive_avg_pool(x, out_h, out_w):
    """PyTorch AdaptiveAvgPool2d semantics (floor/ceil bin edges), NHWC."""
    N, H, W, C = x.shape
    rows = []
    for i in range(out_h):
        hs = (i * H) // out_h
        he = -((-(i + 1) * H) // out_h)
        cols = []
        for j in range(out_w):
            ws = (j * W) // out_w
            we = -((-(j + 1) * W) // out_w)
            cols.append(jnp.mean(x[:, hs:he, ws:we, :], axis=(1, 2)))
        rows.append(jnp.stack(cols, axis=1))
    return jnp.stack(rows, axis=1)  # N, out_h, out_w, C


@functools.lru_cache(maxsize=None)
def _interp_matrix_np(in_size, out_size):
    m = np.zeros((out_size, in_size), np.float32)
    scale = 0.0 if out_size == 1 else (in_size - 1) / (out_size - 1)
    for i in range(out_size):
        src = i * scale
        i0 = int(math.floor(src))
        i1 = min(i0 + 1, in_size - 1)
        w1 = src - i0
        m[i, i0] += 1.0 - w1
        m[i, i1] += w1
    return m


def bilinear_resize(x, out_h, out_w):
    """F.interpolate(..., mode='bilinear', align_corners=True) on NHWC."""
    N, H, W, C = x.shape
    if (H, W) == (out_h, out_w):
        return x
    Mh = jnp.asarray(_interp_matrix_np(H, out_h))
    Mw = jnp.asarray(_interp_matrix_np(W, out_w))
    return jnp.einsum('oh,nhwc,pw->nopc', Mh, x, Mw)


# ----------------------------------------------------------------------------
# Parameter construction (deterministic, synthetic)
# ----------------------------------------------------------------------------
def _bn_fold(c):
    # eval-mode BN with init stats: gamma=1, beta=0, mean=0, var=1
    scale = jnp.full((c,), 1.0 / np.sqrt(1.0 + BN_EPS), jnp.float32)
    bias = jnp.zeros((c,), jnp.float32)
    return scale, bias


def _conv_w(key, k_in, c_out):
    return jax.random.normal(key, (k_in, c_out), jnp.float32) * 0.05


def init_params(key):
    dims = list(FEATURE_DIMS.values())
    keys = iter(jax.random.split(key, 64))
    p = {}

    # --- backbone (patchify stem + 3 downsample stages) ---
    p["stem"] = (_conv_w(next(keys), 4 * 4 * 3, dims[0]), *_bn_fold(dims[0]))
    p["down2"] = (_conv_w(next(keys), 2 * 2 * dims[0], dims[1]), *_bn_fold(dims[1]))
    p["down3"] = (_conv_w(next(keys), 2 * 2 * dims[1], dims[2]), *_bn_fold(dims[2]))
    p["down4"] = (_conv_w(next(keys), 2 * 2 * dims[2], dims[3]), *_bn_fold(dims[3]))

    # --- PPM ---
    c4 = dims[-1]
    ppm_out_c = c4 // len(POOL_SCALES)
    p["ppm"] = [(_conv_w(next(keys), c4, ppm_out_c), *_bn_fold(ppm_out_c))
                for _ in POOL_SCALES]
    ppm_channels = c4 + ppm_out_c * len(POOL_SCALES)
    p["ppm_bottleneck"] = (_conv_w(next(keys), ppm_channels, FPN_CHANNELS),
                           *_bn_fold(FPN_CHANNELS))

    # --- FPN ---
    fpn_in_channels = dims[:-1] + [FPN_CHANNELS]
    p["lateral"] = [(_conv_w(next(keys), cin, FPN_CHANNELS), *_bn_fold(FPN_CHANNELS))
                    for cin in fpn_in_channels]
    p["fpn"] = [(_conv_w(next(keys), 9 * FPN_CHANNELS, FPN_CHANNELS),
                 *_bn_fold(FPN_CHANNELS)) for _ in fpn_in_channels]
    p["fusion"] = (_conv_w(next(keys), FPN_CHANNELS * len(fpn_in_channels),
                           FPN_CHANNELS), *_bn_fold(FPN_CHANNELS))

    # --- classifier (1x1 conv with bias) ---
    p["cls_w"] = _conv_w(next(keys), FPN_CHANNELS, NUM_CLASSES)
    p["cls_b"] = jax.random.normal(next(keys), (NUM_CLASSES,), jnp.float32) * 0.01
    return p


# ----------------------------------------------------------------------------
# Forward passes
# ----------------------------------------------------------------------------
def backbone_forward(p, x_nhwc):
    feats = {}
    x = patchify_conv_bn_relu(x_nhwc, 4, *p["stem"])     # Pallas (512 rows)
    feats["layer1"] = x
    x = patchify_conv_bn_relu(x, 2, *p["down2"])          # tiny -> XLA
    feats["layer2"] = x
    x = patchify_conv_bn_relu(x, 2, *p["down3"])          # tiny -> XLA
    feats["layer3"] = x
    x = patchify_conv_bn_relu(x, 2, *p["down4"])          # tiny -> XLA
    feats["layer4"] = x
    return feats


def head_forward(p, feats):
    feat_list = [feats[f"layer{i + 1}"] for i in range(len(FEATURE_DIMS))]

    # --- PPM on the last level (2x2 here -> all micro ops stay in XLA) ---
    x4 = feat_list[-1]
    _, h4, w4, _ = x4.shape
    ppm_feats = [x4]
    for si, ps in enumerate(POOL_SCALES):
        pooled = adaptive_avg_pool(x4, ps, ps)
        y = conv1x1_bn_relu(pooled, *p["ppm"][si])
        ppm_feats.append(bilinear_resize(y, h4, w4))
    ppm_out = conv1x1_bn_relu(jnp.concatenate(ppm_feats, axis=-1),
                              *p["ppm_bottleneck"])

    # --- FPN laterals + top-down pathway ---
    fpn_in = feat_list[:-1] + [ppm_out]
    laterals = [conv1x1_bn_relu(xi, *p["lateral"][i]) for i, xi in enumerate(fpn_in)]
    for i in range(len(laterals) - 1, 0, -1):
        th, tw = laterals[i - 1].shape[1:3]
        laterals[i - 1] = laterals[i - 1] + bilinear_resize(laterals[i], th, tw)
    outs = [conv3x3_bn_relu(lat, *p["fpn"][i]) for i, lat in enumerate(laterals)]

    # --- fuse at the finest resolution ---
    th, tw = outs[0].shape[1:3]
    cat = [o if o.shape[1:3] == (th, tw) else bilinear_resize(o, th, tw)
           for o in outs]
    cat = jnp.concatenate(cat, axis=-1)

    # fusion conv (+BN+ReLU) -> Dropout2d(identity, eval) -> classifier:
    # one fused Pallas kernel, intermediate kept in VMEM.
    logits = fusion_classifier(cat, p["fusion"], p["cls_w"], p["cls_b"])
    return logits


def upernet_forward(p, rgb_nchw):
    # NCHW -> NHWC
    x = jnp.transpose(rgb_nchw, (0, 2, 3, 1)).astype(jnp.float32)
    in_h, in_w = x.shape[1], x.shape[2]
    feats = backbone_forward(p, x)
    logits = head_forward(p, feats)
    # upsample_output=True: bilinear align_corners back to input resolution
    logits = bilinear_resize(logits, in_h, in_w)
    # NHWC -> NCHW to match the PyTorch module's output convention
    return jnp.transpose(logits, (0, 3, 1, 2))


# ----------------------------------------------------------------------------
# Main
# ----------------------------------------------------------------------------
if __name__ == "__main__":
    key = jax.random.PRNGKey(0)
    k_param, k_data = jax.random.split(key)
    params = init_params(k_param)
    rgb = jax.random.normal(k_data, (2, 3, 64, 64), jnp.float32)  # NCHW input

    fwd = jax.jit(functools.partial(upernet_forward, params))
    out = fwd(rgb)
    out = jax.block_until_ready(out)

    assert out.shape == (2, NUM_CLASSES, 64, 64), out.shape
    assert bool(jnp.all(jnp.isfinite(out)))
    print("KERNEL_OK")
</pallas_src>

<mosaic_0001>
module attributes {stable_mosaic.version = 11 : i64} {
  func.func @_patchify_kernel(%arg0: i32, %arg1: memref<32x4x16x12xbf16, #tpu.memory_space<vmem>>, %arg2: memref<4x12x16xbf16, #tpu.memory_space<vmem>>, %arg3: memref<1x16xf32, #tpu.memory_space<vmem>>, %arg4: memref<1x16xf32, #tpu.memory_space<vmem>>, %arg5: memref<512x16xbf16, #tpu.memory_space<vmem>>) attributes {dimension_semantics = [#tpu.dimension_semantics<parallel>], iteration_bounds = array<i64: 1>, scalar_prefetch = 0 : i64, scratch_operands = 0 : i64, tpu.core_type = #tpu.core_type<tc>, window_params = [{pipeline_mode = #tpu.pipeline_mode<synchronous>, transform_indices = @transform_0, window_bounds = array<i64: 32, 4, 16, 12>}, {pipeline_mode = #tpu.pipeline_mode<synchronous>, transform_indices = @transform_1, window_bounds = array<i64: 4, 12, 16>}, {pipeline_mode = #tpu.pipeline_mode<synchronous>, transform_indices = @transform_2, window_bounds = array<i64: 1, 16>}, {pipeline_mode = #tpu.pipeline_mode<synchronous>, transform_indices = @transform_3, window_bounds = array<i64: 1, 16>}, {pipeline_mode = #tpu.pipeline_mode<synchronous>, transform_indices = @transform_4, window_bounds = array<i64: 512, 16>}]} {
    %cst = arith.constant 0.000000e+00 : f32
    %0 = vector.broadcast %cst : f32 to vector<512x16xf32>
    %c0 = arith.constant 0 : index
    %c0_0 = arith.constant 0 : index
    %c0_1 = arith.constant 0 : index
    %c0_2 = arith.constant 0 : index
    %1 = vector.load %arg1[%c0, %c0_0, %c0_1, %c0_2] : memref<32x4x16x12xbf16, #tpu.memory_space<vmem>>, vector<32x1x16x12xbf16>
    %2 = vector.shape_cast %1 : vector<32x1x16x12xbf16> to vector<512x12xbf16>
    %c0_3 = arith.constant 0 : index
    %c0_4 = arith.constant 0 : index
    %c0_5 = arith.constant 0 : index
    %3 = vector.load %arg2[%c0_3, %c0_4, %c0_5] : memref<4x12x16xbf16, #tpu.memory_space<vmem>>, vector<1x12x16xbf16>
    %4 = vector.shape_cast %3 : vector<1x12x16xbf16> to vector<12x16xbf16>
    %cst_6 = arith.constant dense<0.000000e+00> : vector<512x16xf32>
    %5 = tpu.matmul %2, %4, %cst_6 {dimension_numbers = #tpu.dot_dimension_numbers<[1], [0], [0], [1], [0, 0, 1, 1], [], []>} : vector<512x12xbf16>, vector<12x16xbf16>, vector<512x16xf32> -> vector<512x16xf32>
    %6 = arith.addf %0, %5 : vector<512x16xf32>
    %c0_7 = arith.constant 0 : index
    %c1 = arith.constant 1 : index
    %c0_8 = arith.constant 0 : index
    %c0_9 = arith.constant 0 : index
    %7 = vector.load %arg1[%c0_7, %c1, %c0_8, %c0_9] : memref<32x4x16x12xbf16, #tpu.memory_space<vmem>>, vector<32x1x16x12xbf16>
    %8 = vector.shape_cast %7 : vector<32x1x16x12xbf16> to vector<512x12xbf16>
    %c1_10 = arith.constant 1 : index
    %c0_11 = arith.constant 0 : index
    %c0_12 = arith.constant 0 : index
    %9 = vector.load %arg2[%c1_10, %c0_11, %c0_12] : memref<4x12x16xbf16, #tpu.memory_space<vmem>>, vector<1x12x16xbf16>
    %10 = vector.shape_cast %9 : vector<1x12x16xbf16> to vector<12x16xbf16>
    %cst_13 = arith.constant dense<0.000000e+00> : vector<512x16xf32>
    %11 = tpu.matmul %8, %10, %cst_13 {dimension_numbers = #tpu.dot_dimension_numbers<[1], [0], [0], [1], [0, 0, 1, 1], [], []>} : vector<512x12xbf16>, vector<12x16xbf16>, vector<512x16xf32> -> vector<512x16xf32>
    %12 = arith.addf %6, %11 : vector<512x16xf32>
    %c0_14 = arith.constant 0 : index
    %c2 = arith.constant 2 : index
    %c0_15 = arith.constant 0 : index
    %c0_16 = arith.constant 0 : index
    %13 = vector.load %arg1[%c0_14, %c2, %c0_15, %c0_16] : memref<32x4x16x12xbf16, #tpu.memory_space<vmem>>, vector<32x1x16x12xbf16>
    %14 = vector.shape_cast %13 : vector<32x1x16x12xbf16> to vector<512x12xbf16>
    %c2_17 = arith.constant 2 : index
    %c0_18 = arith.constant 0 : index
    %c0_19 = arith.constant 0 : index
    %15 = vector.load %arg2[%c2_17, %c0_18, %c0_19] : memref<4x12x16xbf16, #tpu.memory_space<vmem>>, vector<1x12x16xbf16>
    %16 = vector.shape_cast %15 : vector<1x12x16xbf16> to vector<12x16xbf16>
    %cst_20 = arith.constant dense<0.000000e+00> : vector<512x16xf32>
    %17 = tpu.matmul %14, %16, %cst_20 {dimension_numbers = #tpu.dot_dimension_numbers<[1], [0], [0], [1], [0, 0, 1, 1], [], []>} : vector<512x12xbf16>, vector<12x16xbf16>, vector<512x16xf32> -> vector<512x16xf32>
    %18 = arith.addf %12, %17 : vector<512x16xf32>
    %c0_21 = arith.constant 0 : index
    %c3 = arith.constant 3 : index
    %c0_22 = arith.constant 0 : index
    %c0_23 = arith.constant 0 : index
    %19 = vector.load %arg1[%c0_21, %c3, %c0_22, %c0_23] : memref<32x4x16x12xbf16, #tpu.memory_space<vmem>>, vector<32x1x16x12xbf16>
    %20 = vector.shape_cast %19 : vector<32x1x16x12xbf16> to vector<512x12xbf16>
    %c3_24 = arith.constant 3 : index
    %c0_25 = arith.constant 0 : index
    %c0_26 = arith.constant 0 : index
    %21 = vector.load %arg2[%c3_24, %c0_25, %c0_26] : memref<4x12x16xbf16, #tpu.memory_space<vmem>>, vector<1x12x16xbf16>
    %22 = vector.shape_cast %21 : vector<1x12x16xbf16> to vector<12x16xbf16>
    %cst_27 = arith.constant dense<0.000000e+00> : vector<512x16xf32>
    %23 = tpu.matmul %20, %22, %cst_27 {dimension_numbers = #tpu.dot_dimension_numbers<[1], [0], [0], [1], [0, 0, 1, 1], [], []>} : vector<512x12xbf16>, vector<12x16xbf16>, vector<512x16xf32> -> vector<512x16xf32>
    %24 = arith.addf %18, %23 : vector<512x16xf32>
    %c0_28 = arith.constant 0 : index
    %c0_29 = arith.constant 0 : index
    %25 = vector.load %arg3[%c0_28, %c0_29] : memref<1x16xf32, #tpu.memory_space<vmem>>, vector<1x16xf32>
    %26 = vector.broadcast %25 : vector<1x16xf32> to vector<512x16xf32>
    %27 = arith.mulf %24, %26 : vector<512x16xf32>
    %c0_30 = arith.constant 0 : index
    %c0_31 = arith.constant 0 : index
    %28 = vector.load %arg4[%c0_30, %c0_31] : memref<1x16xf32, #tpu.memory_space<vmem>>, vector<1x16xf32>
    %29 = vector.broadcast %28 : vector<1x16xf32> to vector<512x16xf32>
    %30 = arith.addf %27, %29 : vector<512x16xf32>
    %cst_32 = arith.constant 0.000000e+00 : f32
    %31 = vector.broadcast %cst_32 : f32 to vector<512x16xf32>
    %32 = arith.maximumf %30, %31 : vector<512x16xf32>
    %33 = arith.truncf %32 : vector<512x16xf32> to vector<512x16xbf16>
    %c0_33 = arith.constant 0 : index
    %c0_34 = arith.constant 0 : index
    %34 = vector.load %arg5[%c0_33, %c0_34] : memref<512x16xbf16, #tpu.memory_space<vmem>>, vector<512x16xbf16>
    tpu.vector_store %arg5[%c0_33, %c0_34], %33 {strides = array<i32>} : memref<512x16xbf16, #tpu.memory_space<vmem>>, vector<512x16xbf16>,
    return
  }
  func.func @transform_0(%arg0: i32) -> (i32, i32, i32, i32) {
    %c0_i32 = arith.constant 0 : i32
    %c0_i32_0 = arith.constant 0 : i32
    %c0_i32_1 = arith.constant 0 : i32
    %c0_i32_2 = arith.constant 0 : i32
    %c0_i32_3 = arith.constant 0 : i32
    return %c0_i32, %c0_i32_0, %c0_i32_1, %c0_i32_2 : i32, i32, i32, i32
  }
  func.func @transform_1(%arg0: i32) -> (i32, i32, i32) {
    %c0_i32 = arith.constant 0 : i32
    %c0_i32_0 = arith.constant 0 : i32
    %c0_i32_1 = arith.constant 0 : i32
    %c0_i32_2 = arith.constant 0 : i32
    return %c0_i32, %c0_i32_0, %c0_i32_1 : i32, i32, i32
  }
  func.func @transform_2(%arg0: i32) -> (i32, i32) {
    %c0_i32 = arith.constant 0 : i32
    %c0_i32_0 = arith.constant 0 : i32
    %c0_i32_1 = arith.constant 0 : i32
    return %c0_i32, %c0_i32_0 : i32, i32
  }
  func.func @transform_3(%arg0: i32) -> (i32, i32) {
    %c0_i32 = arith.constant 0 : i32
    %c0_i32_0 = arith.constant 0 : i32
    %c0_i32_1 = arith.constant 0 : i32
    return %c0_i32, %c0_i32_0 : i32, i32
  }
  func.func @transform_4(%arg0: i32) -> (i32, i32) {
    %c0_i32 = arith.constant 0 : i32
    %c0_i32_0 = arith.constant 0 : i32
    %c0_i32_1 = arith.constant 0 : i32
    return %c0_i32, %c0_i32_0 : i32, i32
  }
}

module attributes {stable_mosaic.version = 11 : i64} {
  func.func @_mm_affine_kernel(%arg0: i32, %arg1: memref<512x16xbf16, #tpu.memory_space<vmem>>, %arg2: memref<16x64xbf16, #tpu.memory_space<vmem>>, %arg3: memref<1x64xf32, #tpu.memory_space<vmem>>, %arg4: memref<1x64xf32, #tpu.memory_space<vmem>>, %arg5: memref<512x64xbf16, #tpu.memory_space<vmem>>) attributes {dimension_semantics = [#tpu.dimension_semantics<parallel>], iteration_bounds = array<i64: 1>, scalar_prefetch = 0 : i64, scratch_operands = 0 : i64, tpu.core_type = #tpu.core_type<tc>, window_params = [{transform_indices = @transform_0, window_bounds = array<i64: 512, 16>}, {pipeline_mode = #tpu.pipeline_mode<synchronous>, transform_indices = @transform_1, window_bounds = array<i64: 16, 64>}, {pipeline_mode = #tpu.pipeline_mode<synchronous>, transform_indices = @transform_2, window_bounds = array<i64: 1, 64>}, {pipeline_mode = #tpu.pipeline_mode<synchronous>, transform_indices = @transform_3, window_bounds = array<i64: 1, 64>}, {transform_indices = @transform_4, window_bounds = array<i64: 512, 64>}]} {
    %c0 = arith.constant 0 : index
    %c0_0 = arith.constant 0 : index
    %0 = vector.load %arg1[%c0, %c0_0] : memref<512x16xbf16, #tpu.memory_space<vmem>>, vector<512x16xbf16>
    %c0_1 = arith.constant 0 : index
    %c0_2 = arith.constant 0 : index
    %1 = vector.load %arg2[%c0_1, %c0_2] : memref<16x64xbf16, #tpu.memory_space<vmem>>, vector<16x64xbf16>
    %cst = arith.constant dense<0.000000e+00> : vector<512x64xf32>
    %2 = tpu.matmul %0, %1, %cst {dimension_numbers = #tpu.dot_dimension_numbers<[1], [0], [0], [1], [0, 0, 1, 1], [], []>} : vector<512x16xbf16>, vector<16x64xbf16>, vector<512x64xf32> -> vector<512x64xf32>
    %c0_3 = arith.constant 0 : index
    %c0_4 = arith.constant 0 : index
    %3 = vector.load %arg3[%c0_3, %c0_4] : memref<1x64xf32, #tpu.memory_space<vmem>>, vector<1x64xf32>
    %4 = vector.broadcast %3 : vector<1x64xf32> to vector<512x64xf32>
    %5 = arith.mulf %2, %4 : vector<512x64xf32>
    %c0_5 = arith.constant 0 : index
    %c0_6 = arith.constant 0 : index
    %6 = vector.load %arg4[%c0_5, %c0_6] : memref<1x64xf32, #tpu.memory_space<vmem>>, vector<1x64xf32>
    %7 = vector.broadcast %6 : vector<1x64xf32> to vector<512x64xf32>
    %8 = arith.addf %5, %7 : vector<512x64xf32>
    %cst_7 = arith.constant 0.000000e+00 : f32
    %9 = vector.broadcast %cst_7 : f32 to vector<512x64xf32>
    %10 = arith.maximumf %8, %9 : vector<512x64xf32>
    %11 = arith.truncf %10 : vector<512x64xf32> to vector<512x64xbf16>
    %c0_8 = arith.constant 0 : index
    %c0_9 = arith.constant 0 : index
    %12 = vector.load %arg5[%c0_8, %c0_9] : memref<512x64xbf16, #tpu.memory_space<vmem>>, vector<512x64xbf16>
    tpu.vector_store %arg5[%c0_8, %c0_9], %11 {strides = array<i32>} : memref<512x64xbf16, #tpu.memory_space<vmem>>, vector<512x64xbf16>,
    return
  }
  func.func @transform_0(%arg0: i32) -> (i32, i32) {
    %c0_i32 = arith.constant 0 : i32
    %c0_i32_0 = arith.constant 0 : i32
    return %arg0, %c0_i32 : i32, i32
  }
  func.func @transform_1(%arg0: i32) -> (i32, i32) {
    %c0_i32 = arith.constant 0 : i32
    %c0_i32_0 = arith.constant 0 : i32
    %c0_i32_1 = arith.constant 0 : i32
    return %c0_i32, %c0_i32_0 : i32, i32
  }
  func.func @transform_2(%arg0: i32) -> (i32, i32) {
    %c0_i32 = arith.constant 0 : i32
    %c0_i32_0 = arith.constant 0 : i32
    %c0_i32_1 = arith.constant 0 : i32
    return %c0_i32, %c0_i32_0 : i32, i32
  }
  func.func @transform_3(%arg0: i32) -> (i32, i32) {
    %c0_i32 = arith.constant 0 : i32
    %c0_i32_0 = arith.constant 0 : i32
    %c0_i32_1 = arith.constant 0 : i32
    return %c0_i32, %c0_i32_0 : i32, i32
  }
  func.func @transform_4(%arg0: i32) -> (i32, i32) {
    %c0_i32 = arith.constant 0 : i32
    %c0_i32_0 = arith.constant 0 : i32
    return %arg0, %c0_i32 : i32, i32
  }
}

module attributes {stable_mosaic.version = 11 : i64} {
  func.func @_conv3x3_kernel(%arg0: i32, %arg1: memref<1x18x18x64xbf16, #tpu.memory_space<vmem>>, %arg2: memref<9x64x64xbf16, #tpu.memory_space<vmem>>, %arg3: memref<1x64xf32, #tpu.memory_space<vmem>>, %arg4: memref<1x64xf32, #tpu.memory_space<vmem>>, %arg5: memref<256x64xbf16, #tpu.memory_space<vmem>>) attributes {dimension_semantics = [#tpu.dimension_semantics<parallel>], iteration_bounds = array<i64: 2>, scalar_prefetch = 0 : i64, scratch_operands = 0 : i64, tpu.core_type = #tpu.core_type<tc>, window_params = [{transform_indices = @transform_0, window_bounds = array<i64: 1, 18, 18, 64>}, {pipeline_mode = #tpu.pipeline_mode<synchronous>, transform_indices = @transform_1, window_bounds = array<i64: 9, 64, 64>}, {pipeline_mode = #tpu.pipeline_mode<synchronous>, transform_indices = @transform_2, window_bounds = array<i64: 1, 64>}, {pipeline_mode = #tpu.pipeline_mode<synchronous>, transform_indices = @transform_3, window_bounds = array<i64: 1, 64>}, {transform_indices = @transform_4, window_bounds = array<i64: 256, 64>}]} {
    %cst = arith.constant 0.000000e+00 : f32
    %0 = vector.broadcast %cst : f32 to vector<256x64xf32>
    %c0 = arith.constant 0 : index
    %c0_0 = arith.constant 0 : index
    %c0_1 = arith.constant 0 : index
    %c0_2 = arith.constant 0 : index
    %1 = vector.load %arg1[%c0, %c0_0, %c0_1, %c0_2] : memref<1x18x18x64xbf16, #tpu.memory_space<vmem>>, vector<1x16x16x64xbf16>
    %2 = vector.shape_cast %1 : vector<1x16x16x64xbf16> to vector<256x64xbf16>
    %c0_3 = arith.constant 0 : index
    %c0_4 = arith.constant 0 : index
    %c0_5 = arith.constant 0 : index
    %3 = vector.load %arg2[%c0_3, %c0_4, %c0_5] : memref<9x64x64xbf16, #tpu.memory_space<vmem>>, vector<1x64x64xbf16>
    %4 = vector.shape_cast %3 : vector<1x64x64xbf16> to vector<64x64xbf16>
    %cst_6 = arith.constant dense<0.000000e+00> : vector<256x64xf32>
    %5 = tpu.matmul %2, %4, %cst_6 {dimension_numbers = #tpu.dot_dimension_numbers<[1], [0], [0], [1], [0, 0, 1, 1], [], []>} : vector<256x64xbf16>, vector<64x64xbf16>, vector<256x64xf32> -> vector<256x64xf32>
    %6 = arith.addf %0, %5 : vector<256x64xf32>
    %c0_7 = arith.constant 0 : index
    %c0_8 = arith.constant 0 : index
    %c1 = arith.constant 1 : index
    %c0_9 = arith.constant 0 : index
    %7 = vector.load %arg1[%c0_7, %c0_8, %c1, %c0_9] : memref<1x18x18x64xbf16, #tpu.memory_space<vmem>>, vector<1x16x16x64xbf16>
    %8 = vector.shape_cast %7 : vector<1x16x16x64xbf16> to vector<256x64xbf16>
    %c1_10 = arith.constant 1 : index
    %c0_11 = arith.constant 0 : index
    %c0_12 = arith.constant 0 : index
    %9 = vector.load %arg2[%c1_10, %c0_11, %c0_12] : memref<9x64x64xbf16, #tpu.memory_space<vmem>>, vector<1x64x64xbf16>
    %10 = vector.shape_cast %9 : vector<1x64x64xbf16> to vector<64x64xbf16>
    %cst_13 = arith.constant dense<0.000000e+00> : vector<256x64xf32>
    %11 = tpu.matmul %8, %10, %cst_13 {dimension_numbers = #tpu.dot_dimension_numbers<[1], [0], [0], [1], [0, 0, 1, 1], [], []>} : vector<256x64xbf16>, vector<64x64xbf16>, vector<256x64xf32> -> vector<256x64xf32>
    %12 = arith.addf %6, %11 : vector<256x64xf32>
    %c0_14 = arith.constant 0 : index
    %c0_15 = arith.constant 0 : index
    %c2 = arith.constant 2 : index
    %c0_16 = arith.constant 0 : index
    %13 = vector.load %arg1[%c0_14, %c0_15, %c2, %c0_16] : memref<1x18x18x64xbf16, #tpu.memory_space<vmem>>, vector<1x16x16x64xbf16>
    %14 = vector.shape_cast %13 : vector<1x16x16x64xbf16> to vector<256x64xbf16>
    %c2_17 = arith.constant 2 : index
    %c0_18 = arith.constant 0 : index
    %c0_19 = arith.constant 0 : index
    %15 = vector.load %arg2[%c2_17, %c0_18, %c0_19] : memref<9x64x64xbf16, #tpu.memory_space<vmem>>, vector<1x64x64xbf16>
    %16 = vector.shape_cast %15 : vector<1x64x64xbf16> to vector<64x64xbf16>
    %cst_20 = arith.constant dense<0.000000e+00> : vector<256x64xf32>
    %17 = tpu.matmul %14, %16, %cst_20 {dimension_numbers = #tpu.dot_dimension_numbers<[1], [0], [0], [1], [0, 0, 1, 1], [], []>} : vector<256x64xbf16>, vector<64x64xbf16>, vector<256x64xf32> -> vector<256x64xf32>
    %18 = arith.addf %12, %17 : vector<256x64xf32>
    %c0_21 = arith.constant 0 : index
    %c1_22 = arith.constant 1 : index
    %c0_23 = arith.constant 0 : index
    %c0_24 = arith.constant 0 : index
    %19 = vector.load %arg1[%c0_21, %c1_22, %c0_23, %c0_24] : memref<1x18x18x64xbf16, #tpu.memory_space<vmem>>, vector<1x16x16x64xbf16>
    %20 = vector.shape_cast %19 : vector<1x16x16x64xbf16> to vector<256x64xbf16>
    %c3 = arith.constant 3 : index
    %c0_25 = arith.constant 0 : index
    %c0_26 = arith.constant 0 : index
    %21 = vector.load %arg2[%c3, %c0_25, %c0_26] : memref<9x64x64xbf16, #tpu.memory_space<vmem>>, vector<1x64x64xbf16>
    %22 = vector.shape_cast %21 : vector<1x64x64xbf16> to vector<64x64xbf16>
    %cst_27 = arith.constant dense<0.000000e+00> : vector<256x64xf32>
    %23 = tpu.matmul %20, %22, %cst_27 {dimension_numbers = #tpu.dot_dimension_numbers<[1], [0], [0], [1], [0, 0, 1, 1], [], []>} : vector<256x64xbf16>, vector<64x64xbf16>, vector<256x64xf32> -> vector<256x64xf32>
    %24 = arith.addf %18, %23 : vector<256x64xf32>
    %c0_28 = arith.constant 0 : index
    %c1_29 = arith.constant 1 : index
    %c1_30 = arith.constant 1 : index
    %c0_31 = arith.constant 0 : index
    %25 = vector.load %arg1[%c0_28, %c1_29, %c1_30, %c0_31] : memref<1x18x18x64xbf16, #tpu.memory_space<vmem>>, vector<1x16x16x64xbf16>
    %26 = vector.shape_cast %25 : vector<1x16x16x64xbf16> to vector<256x64xbf16>
    %c4 = arith.constant 4 : index
    %c0_32 = arith.constant 0 : index
    %c0_33 = arith.constant 0 : index
    %27 = vector.load %arg2[%c4, %c0_32, %c0_33] : memref<9x64x64xbf16, #tpu.memory_space<vmem>>, vector<1x64x64xbf16>
    %28 = vector.shape_cast %27 : vector<1x64x64xbf16> to vector<64x64xbf16>
    %cst_34 = arith.constant dense<0.000000e+00> : vector<256x64xf32>
    %29 = tpu.matmul %26, %28, %cst_34 {dimension_numbers = #tpu.dot_dimension_numbers<[1], [0], [0], [1], [0, 0, 1, 1], [], []>} : vector<256x64xbf16>, vector<64x64xbf16>, vector<256x64xf32> -> vector<256x64xf32>
    %30 = arith.addf %24, %29 : vector<256x64xf32>
    %c0_35 = arith.constant 0 : index
    %c1_36 = arith.constant 1 : index
    %c2_37 = arith.constant 2 : index
    %c0_38 = arith.constant 0 : index
    %31 = vector.load %arg1[%c0_35, %c1_36, %c2_37, %c0_38] : memref<1x18x18x64xbf16, #tpu.memory_space<vmem>>, vector<1x16x16x64xbf16>
    %32 = vector.shape_cast %31 : vector<1x16x16x64xbf16> to vector<256x64xbf16>
    %c5 = arith.constant 5 : index
    %c0_39 = arith.constant 0 : index
    %c0_40 = arith.constant 0 : index
    %33 = vector.load %arg2[%c5, %c0_39, %c0_40] : memref<9x64x64xbf16, #tpu.memory_space<vmem>>, vector<1x64x64xbf16>
    %34 = vector.shape_cast %33 : vector<1x64x64xbf16> to vector<64x64xbf16>
    %cst_41 = arith.constant dense<0.000000e+00> : vector<256x64xf32>
    %35 = tpu.matmul %32, %34, %cst_41 {dimension_numbers = #tpu.dot_dimension_numbers<[1], [0], [0], [1], [0, 0, 1, 1], [], []>} : vector<256x64xbf16>, vector<64x64xbf16>, vector<256x64xf32> -> vector<256x64xf32>
    %36 = arith.addf %30, %35 : vector<256x64xf32>
    %c0_42 = arith.constant 0 : index
    %c2_43 = arith.constant 2 : index
    %c0_44 = arith.constant 0 : index
    %c0_45 = arith.constant 0 : index
    %37 = vector.load %arg1[%c0_42, %c2_43, %c0_44, %c0_45] : memref<1x18x18x64xbf16, #tpu.memory_space<vmem>>, vector<1x16x16x64xbf16>
    %38 = vector.shape_cast %37 : vector<1x16x16x64xbf16> to vector<256x64xbf16>
    %c6 = arith.constant 6 : index
    %c0_46 = arith.constant 0 : index
    %c0_47 = arith.constant 0 : index
    %39 = vector.load %arg2[%c6, %c0_46, %c0_47] : memref<9x64x64xbf16, #tpu.memory_space<vmem>>, vector<1x64x64xbf16>
    %40 = vector.shape_cast %39 : vector<1x64x64xbf16> to vector<64x64xbf16>
    %cst_48 = arith.constant dense<0.000000e+00> : vector<256x64xf32>
    %41 = tpu.matmul %38, %40, %cst_48 {dimension_numbers = #tpu.dot_dimension_numbers<[1], [0], [0], [1], [0, 0, 1, 1], [], []>} : vector<256x64xbf16>, vector<64x64xbf16>, vector<256x64xf32> -> vector<256x64xf32>
    %42 = arith.addf %36, %41 : vector<256x64xf32>
    %c0_49 = arith.constant 0 : index
    %c2_50 = arith.constant 2 : index
    %c1_51 = arith.constant 1 : index
    %c0_52 = arith.constant 0 : index
    %43 = vector.load %arg1[%c0_49, %c2_50, %c1_51, %c0_52] : memref<1x18x18x64xbf16, #tpu.memory_space<vmem>>, vector<1x16x16x64xbf16>
    %44 = vector.shape_cast %43 : vector<1x16x16x64xbf16> to vector<256x64xbf16>
    %c7 = arith.constant 7 : index
    %c0_53 = arith.constant 0 : index
    %c0_54 = arith.constant 0 : index
    %45 = vector.load %arg2[%c7, %c0_53, %c0_54] : memref<9x64x64xbf16, #tpu.memory_space<vmem>>, vector<1x64x64xbf16>
    %46 = vector.shape_cast %45 : vector<1x64x64xbf16> to vector<64x64xbf16>
    %cst_55 = arith.constant dense<0.000000e+00> : vector<256x64xf32>
    %47 = tpu.matmul %44, %46, %cst_55 {dimension_numbers = #tpu.dot_dimension_numbers<[1], [0], [0], [1], [0, 0, 1, 1], [], []>} : vector<256x64xbf16>, vector<64x64xbf16>, vector<256x64xf32> -> vector<256x64xf32>
    %48 = arith.addf %42, %47 : vector<256x64xf32>
    %c0_56 = arith.constant 0 : index
    %c2_57 = arith.constant 2 : index
    %c2_58 = arith.constant 2 : index
    %c0_59 = arith.constant 0 : index
    %49 = vector.load %arg1[%c0_56, %c2_57, %c2_58, %c0_59] : memref<1x18x18x64xbf16, #tpu.memory_space<vmem>>, vector<1x16x16x64xbf16>
    %50 = vector.shape_cast %49 : vector<1x16x16x64xbf16> to vector<256x64xbf16>
    %c8 = arith.constant 8 : index
    %c0_60 = arith.constant 0 : index
    %c0_61 = arith.constant 0 : index
    %51 = vector.load %arg2[%c8, %c0_60, %c0_61] : memref<9x64x64xbf16, #tpu.memory_space<vmem>>, vector<1x64x64xbf16>
    %52 = vector.shape_cast %51 : vector<1x64x64xbf16> to vector<64x64xbf16>
    %cst_62 = arith.constant dense<0.000000e+00> : vector<256x64xf32>
    %53 = tpu.matmul %50, %52, %cst_62 {dimension_numbers = #tpu.dot_dimension_numbers<[1], [0], [0], [1], [0, 0, 1, 1], [], []>} : vector<256x64xbf16>, vector<64x64xbf16>, vector<256x64xf32> -> vector<256x64xf32>
    %54 = arith.addf %48, %53 : vector<256x64xf32>
    %c0_63 = arith.constant 0 : index
    %c0_64 = arith.constant 0 : index
    %55 = vector.load %arg3[%c0_63, %c0_64] : memref<1x64xf32, #tpu.memory_space<vmem>>, vector<1x64xf32>
    %56 = vector.broadcast %55 : vector<1x64xf32> to vector<256x64xf32>
    %57 = arith.mulf %54, %56 : vector<256x64xf32>
    %c0_65 = arith.constant 0 : index
    %c0_66 = arith.constant 0 : index
    %58 = vector.load %arg4[%c0_65, %c0_66] : memref<1x64xf32, #tpu.memory_space<vmem>>, vector<1x64xf32>
    %59 = vector.broadcast %58 : vector<1x64xf32> to vector<256x64xf32>
    %60 = arith.addf %57, %59 : vector<256x64xf32>
    %cst_67 = arith.constant 0.000000e+00 : f32
    %61 = vector.broadcast %cst_67 : f32 to vector<256x64xf32>
    %62 = arith.maximumf %60, %61 : vector<256x64xf32>
    %63 = arith.truncf %62 : vector<256x64xf32> to vector<256x64xbf16>
    %c0_68 = arith.constant 0 : index
    %c0_69 = arith.constant 0 : index
    %64 = vector.load %arg5[%c0_68, %c0_69] : memref<256x64xbf16, #tpu.memory_space<vmem>>, vector<256x64xbf16>
    tpu.vector_store %arg5[%c0_68, %c0_69], %63 {strides = array<i32>} : memref<256x64xbf16, #tpu.memory_space<vmem>>, vector<256x64xbf16>,
    return
  }
  func.func @transform_0(%arg0: i32) -> (i32, i32, i32, i32) {
    %c0_i32 = arith.constant 0 : i32
    %c0_i32_0 = arith.constant 0 : i32
    %c0_i32_1 = arith.constant 0 : i32
    %c0_i32_2 = arith.constant 0 : i32
    return %arg0, %c0_i32, %c0_i32_0, %c0_i32_1 : i32, i32, i32, i32
  }
  func.func @transform_1(%arg0: i32) -> (i32, i32, i32) {
    %c0_i32 = arith.constant 0 : i32
    %c0_i32_0 = arith.constant 0 : i32
    %c0_i32_1 = arith.constant 0 : i32
    %c0_i32_2 = arith.constant 0 : i32
    return %c0_i32, %c0_i32_0, %c0_i32_1 : i32, i32, i32
  }
  func.func @transform_2(%arg0: i32) -> (i32, i32) {
    %c0_i32 = arith.constant 0 : i32
    %c0_i32_0 = arith.constant 0 : i32
    %c0_i32_1 = arith.constant 0 : i32
    return %c0_i32, %c0_i32_0 : i32, i32
  }
  func.func @transform_3(%arg0: i32) -> (i32, i32) {
    %c0_i32 = arith.constant 0 : i32
    %c0_i32_0 = arith.constant 0 : i32
    %c0_i32_1 = arith.constant 0 : i32
    return %c0_i32, %c0_i32_0 : i32, i32
  }
  func.func @transform_4(%arg0: i32) -> (i32, i32) {
    %c0_i32 = arith.constant 0 : i32
    %c0_i32_0 = arith.constant 0 : i32
    return %arg0, %c0_i32 : i32, i32
  }
}

module attributes {stable_mosaic.version = 11 : i64} {
  func.func @_fusion_cls_kernel(%arg0: i32, %arg1: memref<512x256xbf16, #tpu.memory_space<vmem>>, %arg2: memref<256x64xbf16, #tpu.memory_space<vmem>>, %arg3: memref<1x64xf32, #tpu.memory_space<vmem>>, %arg4: memref<1x64xf32, #tpu.memory_space<vmem>>, %arg5: memref<64x128xbf16, #tpu.memory_space<vmem>>, %arg6: memref<1x128xf32, #tpu.memory_space<vmem>>, %arg7: memref<512x128xf32, #tpu.memory_space<vmem>>) attributes {dimension_semantics = [#tpu.dimension_semantics<parallel>], iteration_bounds = array<i64: 1>, scalar_prefetch = 0 : i64, scratch_operands = 0 : i64, tpu.core_type = #tpu.core_type<tc>, window_params = [{transform_indices = @transform_0, window_bounds = array<i64: 512, 256>}, {pipeline_mode = #tpu.pipeline_mode<synchronous>, transform_indices = @transform_1, window_bounds = array<i64: 256, 64>}, {pipeline_mode = #tpu.pipeline_mode<synchronous>, transform_indices = @transform_2, window_bounds = array<i64: 1, 64>}, {pipeline_mode = #tpu.pipeline_mode<synchronous>, transform_indices = @transform_3, window_bounds = array<i64: 1, 64>}, {pipeline_mode = #tpu.pipeline_mode<synchronous>, transform_indices = @transform_4, window_bounds = array<i64: 64, 128>}, {pipeline_mode = #tpu.pipeline_mode<synchronous>, transform_indices = @transform_5, window_bounds = array<i64: 1, 128>}, {transform_indices = @transform_6, window_bounds = array<i64: 512, 128>}]} {
    %c0 = arith.constant 0 : index
    %c0_0 = arith.constant 0 : index
    %0 = vector.load %arg1[%c0, %c0_0] : memref<512x256xbf16, #tpu.memory_space<vmem>>, vector<512x256xbf16>
    %c0_1 = arith.constant 0 : index
    %c0_2 = arith.constant 0 : index
    %1 = vector.load %arg2[%c0_1, %c0_2] : memref<256x64xbf16, #tpu.memory_space<vmem>>, vector<256x64xbf16>
    %cst = arith.constant dense<0.000000e+00> : vector<512x64xf32>
    %2 = tpu.matmul %0, %1, %cst {dimension_numbers = #tpu.dot_dimension_numbers<[1], [0], [0], [1], [0, 0, 1, 1], [], []>} : vector<512x256xbf16>, vector<256x64xbf16>, vector<512x64xf32> -> vector<512x64xf32>
    %c0_3 = arith.constant 0 : index
    %c0_4 = arith.constant 0 : index
    %3 = vector.load %arg3[%c0_3, %c0_4] : memref<1x64xf32, #tpu.memory_space<vmem>>, vector<1x64xf32>
    %4 = vector.broadcast %3 : vector<1x64xf32> to vector<512x64xf32>
    %5 = arith.mulf %2, %4 : vector<512x64xf32>
    %c0_5 = arith.constant 0 : index
    %c0_6 = arith.constant 0 : index
    %6 = vector.load %arg4[%c0_5, %c0_6] : memref<1x64xf32, #tpu.memory_space<vmem>>, vector<1x64xf32>
    %7 = vector.broadcast %6 : vector<1x64xf32> to vector<512x64xf32>
    %8 = arith.addf %5, %7 : vector<512x64xf32>
    %cst_7 = arith.constant 0.000000e+00 : f32
    %9 = vector.broadcast %cst_7 : f32 to vector<512x64xf32>
    %10 = arith.maximumf %8, %9 : vector<512x64xf32>
    %11 = arith.truncf %10 : vector<512x64xf32> to vector<512x64xbf16>
    %c0_8 = arith.constant 0 : index
    %c0_9 = arith.constant 0 : index
    %12 = vector.load %arg5[%c0_8, %c0_9] : memref<64x128xbf16, #tpu.memory_space<vmem>>, vector<64x128xbf16>
    %cst_10 = arith.constant dense<0.000000e+00> : vector<512x128xf32>
    %13 = tpu.matmul %11, %12, %cst_10 {dimension_numbers = #tpu.dot_dimension_numbers<[1], [0], [0], [1], [0, 0, 1, 1], [], []>} : vector<512x64xbf16>, vector<64x128xbf16>, vector<512x128xf32> -> vector<512x128xf32>
    %c0_11 = arith.constant 0 : index
    %c0_12 = arith.constant 0 : index
    %14 = vector.load %arg6[%c0_11, %c0_12] : memref<1x128xf32, #tpu.memory_space<vmem>>, vector<1x128xf32>
    %15 = vector.broadcast %14 : vector<1x128xf32> to vector<512x128xf32>
    %16 = arith.addf %13, %15 : vector<512x128xf32>
    %c0_13 = arith.constant 0 : index
    %c0_14 = arith.constant 0 : index
    %17 = vector.load %arg7[%c0_13, %c0_14] : memref<512x128xf32, #tpu.memory_space<vmem>>, vector<512x128xf32>
    tpu.vector_store %arg7[%c0_13, %c0_14], %16 {strides = array<i32>} : memref<512x128xf32, #tpu.memory_space<vmem>>, vector<512x128xf32>,
    return
  }
  func.func @transform_0(%arg0: i32) -> (i32, i32) {
    %c0_i32 = arith.constant 0 : i32
    %c0_i32_0 = arith.constant 0 : i32
    return %arg0, %c0_i32 : i32, i32
  }
  func.func @transform_1(%arg0: i32) -> (i32, i32) {
    %c0_i32 = arith.constant 0 : i32
    %c0_i32_0 = arith.constant 0 : i32
    %c0_i32_1 = arith.constant 0 : i32
    return %c0_i32, %c0_i32_0 : i32, i32
  }
  func.func @transform_2(%arg0: i32) -> (i32, i32) {
    %c0_i32 = arith.constant 0 : i32
    %c0_i32_0 = arith.constant 0 : i32
    %c0_i32_1 = arith.constant 0 : i32
    return %c0_i32, %c0_i32_0 : i32, i32
  }
  func.func @transform_3(%arg0: i32) -> (i32, i32) {
    %c0_i32 = arith.constant 0 : i32
    %c0_i32_0 = arith.constant 0 : i32
    %c0_i32_1 = arith.constant 0 : i32
    return %c0_i32, %c0_i32_0 : i32, i32
  }
  func.func @transform_4(%arg0: i32) -> (i32, i32) {
    %c0_i32 = arith.constant 0 : i32
    %c0_i32_0 = arith.constant 0 : i32
    %c0_i32_1 = arith.constant 0 : i32
    return %c0_i32, %c0_i32_0 : i32, i32
  }
  func.func @transform_5(%arg0: i32) -> (i32, i32) {
    %c0_i32 = arith.constant 0 : i32
    %c0_i32_0 = arith.constant 0 : i32
    %c0_i32_1 = arith.constant 0 : i32
    return %c0_i32, %c0_i32_0 : i32, i32
  }
  func.func @transform_6(%arg0: i32) -> (i32, i32) {
    %c0_i32 = arith.constant 0 : i32
    %c0_i32_0 = arith.constant 0 : i32
    return %arg0, %c0_i32 : i32, i32
  }
}

</mosaic_0001>

<bundles_post_ra>
// kernel: upernet_forward.4
= control target key start
LH: loop header
LB: loop body
LE: loop exit
PB: predicated region body
PF: predicated region fallthrough
CT: control target
= control target key end

     0   :  { %vm414_vm0 = vcmask 1045504   ;;  %vm317_vm1 = vcmask 97280   ;;  %vm3092_vm2 = vcmask 125952   ;;  %s5418_s1 = inlined_call_operand.vmem [shape: bf16[4,12,16], index: 1, kind: input, shape index: {}]   ;;  %s5419_s0 = inlined_call_operand.vmem [shape: bf16[32,4,16,12], index: 0, kind: input, shape index: {}]   ;;  %s5420_s2 = inlined_call_operand.vmem [shape: f32[1,16], index: 2, kind: input, shape index: {}]   ;;  %s5421_s3 = inlined_call_operand.vmem [shape: f32[1,16], index: 3, kind: input, shape index: {}]   ;;  %s5422_s4 = inlined_call_operand.vmem [shape: bf16[512,16], index: 4, kind: output, shape index: {}]  }
   0x1   :  { %v4149_v0 = vld [vmem:[%s5418_s1 + $0x8] sm:$0x3f]   ;;  %v4150_v1 = vld [vmem:[%s5418_s1] sm:$0x3f]   ;;  %v4155_v8 = vld [vmem:[%s5418_s1 + $0x10] sm:$0x3f]  }
   0x2   :  { %4145 = vmatprep.subr.msk.bf16.mxu0 %vm414_vm0, %v4149_v0  ;;  %v416_v2 = vsel %vm414_vm0, %v4149_v0, 0  ;;  %v4151_v3 = vld [vmem:[%s5419_s0 + $0x8] sm:$0xff]   ;;  %4146 = vmatprep.subr.msk.bf16.mxu1 %vm414_vm0, %v4150_v1  ;;  %v969_v4 = vsel %vm414_vm0, %v4150_v1, 0  ;;  %v4152_v5 = vld [vmem:[%s5419_s0] sm:$0xff]   ;;  %v4156_v9 = vld [vmem:[%s5418_s1 + $0x18] sm:$0x3f]  }
   0x3   :  { %3882 = vmatpush3.bf16.msra.mxu0 %v416_v2  ;;  %3948 = vmatpush3.bf16.msra.mxu1 %v969_v4  ;;  %v4153_v6 = vld [vmem:[%s5419_s0 + $0x28] sm:$0xff]   ;;  %v4154_v7 = vld [vmem:[%s5419_s0 + $0x20] sm:$0xff]   ;;  %v1590_v10 = vsel %vm414_vm0, %v4155_v8, 0  ;;  %v2275_v12 = vsel %vm414_vm0, %v4156_v9, 0 }
   0x4   :  { %3883 = vmatprep.mubr.msk.bf16.mxu0 %vm317_vm1, %v4151_v3  ;;  %3949 = vmatprep.mubr.msk.bf16.mxu1 %vm317_vm1, %v4152_v5  ;;  %v4157_v11 = vld [vmem:[%s5419_s0 + $0x48] sm:$0xff]   ;;  %v4158_v13 = vld [vmem:[%s5419_s0 + $0x40] sm:$0xff]  }
   0x5   :  { %4147 = vmatprep.subr.msk.bf16.mxu0 %vm414_vm0, %v4155_v8  ;;  %4148 = vmatprep.subr.msk.bf16.mxu1 %vm414_vm0, %v4156_v9  ;;  %v4159_v14 = vld [vmem:[%s5419_s0 + $0x68] sm:$0xff]   ;;  %v4160_v15 = vld [vmem:[%s5419_s0 + $0x60] sm:$0xff]   ;;  %v4217_v8 = vld [vmem:[%s5419_s0 + $0x10] sm:$0xff]  }
   0x6   :  { %3884 = vmatmul.mubr.msk.bf16.vlgmr.msra.gmra.mxu0 %vm317_vm1, %v4153_v6  ;;  %3950 = vmatmul.mubr.msk.bf16.vlgmr.msra.gmra.mxu1 %vm317_vm1, %v4154_v7  ;;  %v4161_v16 = vld [vmem:[%s5419_s0 + $0x88] sm:$0xff]   ;;  %v4162_v17 = vld [vmem:[%s5419_s0 + $0x80] sm:$0xff]   ;;  %v4218_v9 = vld [vmem:[%s5419_s0 + $0x18] sm:$0xff]  }
   0x7   :  { %4014 = vmatpush3.bf16.msra.mxu0 %v1590_v10  ;;  %4080 = vmatpush3.bf16.msra.mxu1 %v2275_v12  ;;  %v4163_v18 = vld [vmem:[%s5419_s0 + $0xa8] sm:$0xff]   ;;  %v4164_v19 = vld [vmem:[%s5419_s0 + $0xa0] sm:$0xff]   ;;  %v4219_v10 = vld [vmem:[%s5419_s0 + $0x30] sm:$0xff]  }
   0x8   :  { %3887 = vmatprep.mubr.msk.bf16.mxu0 %vm317_vm1, %v4157_v11  ;;  %3953 = vmatprep.mubr.msk.bf16.mxu1 %vm317_vm1, %v4158_v13  ;;  %v4165_v20 = vld [vmem:[%s5419_s0 + $0xc8] sm:$0xff]   ;;  %v4166_v21 = vld [vmem:[%s5419_s0 + $0xc0] sm:$0xff]   ;;  %v4220_v11 = vld [vmem:[%s5419_s0 + $0x38] sm:$0xff]  }
   0x9   :  { %v4167_v22 = vld [vmem:[%s5419_s0 + $0xe8] sm:$0xff]   ;;  %v4168_v23 = vld [vmem:[%s5419_s0 + $0xe0] sm:$0xff]   ;;  %v4221_v12 = vld [vmem:[%s5419_s0 + $0x50] sm:$0xff]  }
   0xa   :  { %v4169_v24 = vld [vmem:[%s5419_s0 + $0x108] sm:$0xff]   ;;  %v4170_v25 = vld [vmem:[%s5419_s0 + $0x100] sm:$0xff]   ;;  %v4222_v13 = vld [vmem:[%s5419_s0 + $0x58] sm:$0xff]  }
   0xb   :  { %v4171_v26 = vld [vmem:[%s5419_s0 + $0x128] sm:$0xff]   ;;  %v4172_v27 = vld [vmem:[%s5419_s0 + $0x120] sm:$0xff]  }
   0xc   :  { %v4173_v28 = vld [vmem:[%s5419_s0 + $0x148] sm:$0xff]   ;;  %v4174_v29 = vld [vmem:[%s5419_s0 + $0x140] sm:$0xff]  }
   0xd   :  { %v4175_v30 = vld [vmem:[%s5419_s0 + $0x168] sm:$0xff]   ;;  %v4176_v31 = vld [vmem:[%s5419_s0 + $0x160] sm:$0xff]  }
   0xe   :  { %3888 = vmatmul.mubr.msk.bf16.gmra.mxu0 %vm317_vm1, %v4159_v14  ;;  %3954 = vmatmul.mubr.msk.bf16.gmra.mxu1 %vm317_vm1, %v4160_v15  ;;  %v4177_v32 = vld [vmem:[%s5419_s0 + $0x188] sm:$0xff]   ;;  %v4178_v33 = vld [vmem:[%s5419_s0 + $0x180] sm:$0xff]   ;;  %v4223_v14 = vld [vmem:[%s5419_s0 + $0x70] sm:$0xff]  }
   0xf   :  { %3891 = vmatprep.mubr.msk.bf16.mxu0 %vm317_vm1, %v4161_v16  ;;  %3957 = vmatprep.mubr.msk.bf16.mxu1 %vm317_vm1, %v4162_v17  ;;  %v4179_v34 = vld [vmem:[%s5419_s0 + $0x1a8] sm:$0xff]   ;;  %v4180_v35 = vld [vmem:[%s5419_s0 + $0x1a0] sm:$0xff]   ;;  %v4224_v15 = vld [vmem:[%s5419_s0 + $0x78] sm:$0xff]  }
  0x10   :  { %v4181_v36 = vld [vmem:[%s5419_s0 + $0x1c8] sm:$0xff]   ;;  %v4182_v37 = vld [vmem:[%s5419_s0 + $0x1c0] sm:$0xff]   ;;  %v4225_v16 = vld [vmem:[%s5419_s0 + $0x90] sm:$0xff]  }
  0x11   :  { %v4183_v38 = vld [vmem:[%s5419_s0 + $0x1e8] sm:$0xff]   ;;  %v4184_v39 = vld [vmem:[%s5419_s0 + $0x1e0] sm:$0xff]   ;;  %v4226_v17 = vld [vmem:[%s5419_s0 + $0x98] sm:$0xff]  }
  0x12   :  { %v4185_v40 = vld [vmem:[%s5419_s0 + $0x208] sm:$0xff]   ;;  %v4186_v41 = vld [vmem:[%s5419_s0 + $0x200] sm:$0xff]  }
  0x13   :  { %v4187_v42 = vld [vmem:[%s5419_s0 + $0x228] sm:$0xff]   ;;  %v4188_v43 = vld [vmem:[%s5419_s0 + $0x220] sm:$0xff]  }
  0x14   :  { %v4189_v44 = vld [vmem:[%s5419_s0 + $0x248] sm:$0xff]   ;;  %v4190_v45 = vld [vmem:[%s5419_s0 + $0x240] sm:$0xff]  }
  0x15   :  { %v4191_v46 = vld [vmem:[%s5419_s0 + $0x268] sm:$0xff]   ;;  %v4192_v47 = vld [vmem:[%s5419_s0 + $0x260] sm:$0xff]  }
  0x16   :  { %3892 = vmatmul.mubr.msk.bf16.gmra.mxu0 %vm317_vm1, %v4163_v18  ;;  %3958 = vmatmul.mubr.msk.bf16.gmra.mxu1 %vm317_vm1, %v4164_v19  ;;  %v4193_v48 = vld [vmem:[%s5419_s0 + $0x288] sm:$0xff]   ;;  %v4194_v49 = vld [vmem:[%s5419_s0 + $0x280] sm:$0xff]   ;;  %v4227_v18 = vld [vmem:[%s5419_s0 + $0xb0] sm:$0xff]  }
  0x17   :  { %3895 = vmatprep.mubr.msk.bf16.mxu0 %vm317_vm1, %v4165_v20  ;;  %3961 = vmatprep.mubr.msk.bf16.mxu1 %vm317_vm1, %v4166_v21  ;;  %v4195_v50 = vld [vmem:[%s5419_s0 + $0x2a8] sm:$0xff]   ;;  %v4196_v51 = vld [vmem:[%s5419_s0 + $0x2a0] sm:$0xff]   ;;  %v4228_v19 = vld [vmem:[%s5419_s0 + $0xb8] sm:$0xff]  }
  0x18   :  { %v4197_v52 = vld [vmem:[%s5419_s0 + $0x2c8] sm:$0xff]   ;;  %v4198_v53 = vld [vmem:[%s5419_s0 + $0x2c0] sm:$0xff]   ;;  %v4229_v20 = vld [vmem:[%s5419_s0 + $0xd0] sm:$0xff]  }
  0x19   :  { %v4199_v54 = vld [vmem:[%s5419_s0 + $0x2e8] sm:$0xff]   ;;  %v4200_v55 = vld [vmem:[%s5419_s0 + $0x2e0] sm:$0xff]   ;;  %v4230_v21 = vld [vmem:[%s5419_s0 + $0xd8] sm:$0xff]  }
  0x1a   :  { %v4201_v56 = vld [vmem:[%s5419_s0 + $0x308] sm:$0xff]   ;;  %v4202_v57 = vld [vmem:[%s5419_s0 + $0x300] sm:$0xff]  }
  0x1b   :  { %v4203_v58 = vld [vmem:[%s5419_s0 + $0x328] sm:$0xff]   ;;  %v4204_v59 = vld [vmem:[%s5419_s0 + $0x320] sm:$0xff]  }
  0x1c   :  { %v4205_v60 = vld [vmem:[%s5419_s0 + $0x348] sm:$0xff]   ;;  %v4206_v61 = vld [vmem:[%s5419_s0 + $0x340] sm:$0xff]  }
  0x1d   :  { %v4207_v62 = vld [vmem:[%s5419_s0 + $0x368] sm:$0xff]   ;;  %v4208_v63 = vld [vmem:[%s5419_s0 + $0x360] sm:$0xff]  }
  0x1e   :  { %3896 = vmatmul.mubr.msk.bf16.gmra.mxu0 %vm317_vm1, %v4167_v22  ;;  %3962 = vmatmul.mubr.msk.bf16.gmra.mxu1 %vm317_vm1, %v4168_v23  ;;  %v4209_v0 = vld [vmem:[%s5419_s0 + $0x388] sm:$0xff]   ;;  %v4210_v1 = vld [vmem:[%s5419_s0 + $0x380] sm:$0xff]   ;;  %v4231_v22 = vld [vmem:[%s5419_s0 + $0xf0] sm:$0xff]  }
  0x1f   :  { %3899 = vmatprep.mubr.msk.bf16.mxu0 %vm317_vm1, %v4169_v24  ;;  %3965 = vmatprep.mubr.msk.bf16.mxu1 %vm317_vm1, %v4170_v25  ;;  %v4211_v2 = vld [vmem:[%s5419_s0 + $0x3a8] sm:$0xff]   ;;  %v4212_v3 = vld [vmem:[%s5419_s0 + $0x3a0] sm:$0xff]   ;;  %v4232_v23 = vld [vmem:[%s5419_s0 + $0xf8] sm:$0xff]  }
  0x20   :  { %v4213_v4 = vld [vmem:[%s5419_s0 + $0x3c8] sm:$0xff]   ;;  %v4214_v5 = vld [vmem:[%s5419_s0 + $0x3c0] sm:$0xff]   ;;  %v4233_v24 = vld [vmem:[%s5419_s0 + $0x110] sm:$0xff]  }
  0x21   :  { %v4215_v6 = vld [vmem:[%s5419_s0 + $0x3e8] sm:$0xff]   ;;  %v4216_v7 = vld [vmem:[%s5419_s0 + $0x3e0] sm:$0xff]   ;;  %v4234_v25 = vld [vmem:[%s5419_s0 + $0x118] sm:$0xff]  }
  0x26   :  { %3900 = vmatmul.mubr.msk.bf16.gmra.mxu0 %vm317_vm1, %v4171_v26  ;;  %3966 = vmatmul.mubr.msk.bf16.gmra.mxu1 %vm317_vm1, %v4172_v27  ;;  %v4235_v26 = vld [vmem:[%s5419_s0 + $0x130] sm:$0xff]   ;;  %v4236_v27 = vld [vmem:[%s5419_s0 + $0x138] sm:$0xff]  }
  0x27   :  { %3903 = vmatprep.mubr.msk.bf16.mxu0 %vm317_vm1, %v4173_v28  ;;  %3969 = vmatprep.mubr.msk.bf16.mxu1 %vm317_vm1, %v4174_v29  ;;  %v4237_v28 = vld [vmem:[%s5419_s0 + $0x150] sm:$0xff]   ;;  %v4238_v29 = vld [vmem:[%s5419_s0 + $0x158] sm:$0xff]  }
  0x2e   :  { %3904 = vmatmul.mubr.msk.bf16.gmra.mxu0 %vm317_vm1, %v4175_v30  ;;  %3970 = vmatmul.mubr.msk.bf16.gmra.mxu1 %vm317_vm1, %v4176_v31  ;;  %v4239_v30 = vld [vmem:[%s5419_s0 + $0x170] sm:$0xff]   ;;  %v4240_v31 = vld [vmem:[%s5419_s0 + $0x178] sm:$0xff]  }
  0x2f   :  { %3907 = vmatprep.mubr.msk.bf16.mxu0 %vm317_vm1, %v4177_v32  ;;  %3973 = vmatprep.mubr.msk.bf16.mxu1 %vm317_vm1, %v4178_v33  ;;  %v4241_v32 = vld [vmem:[%s5419_s0 + $0x190] sm:$0xff]   ;;  %v4242_v33 = vld [vmem:[%s5419_s0 + $0x198] sm:$0xff]  }
  0x36   :  { %3908 = vmatmul.mubr.msk.bf16.gmra.mxu0 %vm317_vm1, %v4179_v34  ;;  %3974 = vmatmul.mubr.msk.bf16.gmra.mxu1 %vm317_vm1, %v4180_v35  ;;  %v4243_v34 = vld [vmem:[%s5419_s0 + $0x1b0] sm:$0xff]   ;;  %v4244_v35 = vld [vmem:[%s5419_s0 + $0x1b8] sm:$0xff]  }
  0x37   :  { %3911 = vmatprep.mubr.msk.bf16.mxu0 %vm317_vm1, %v4181_v36  ;;  %3977 = vmatprep.mubr.msk.bf16.mxu1 %vm317_vm1, %v4182_v37  ;;  %v4245_v36 = vld [vmem:[%s5419_s0 + $0x1d0] sm:$0xff]   ;;  %v4246_v37 = vld [vmem:[%s5419_s0 + $0x1d8] sm:$0xff]  }
  0x3e   :  { %3912 = vmatmul.mubr.msk.bf16.gmra.mxu0 %vm317_vm1, %v4183_v38  ;;  %3978 = vmatmul.mubr.msk.bf16.gmra.mxu1 %vm317_vm1, %v4184_v39  ;;  %v4247_v38 = vld [vmem:[%s5419_s0 + $0x1f0] sm:$0xff]   ;;  %v4248_v39 = vld [vmem:[%s5419_s0 + $0x1f8] sm:$0xff]  }
  0x3f   :  { %3915 = vmatprep.mubr.msk.bf16.mxu0 %vm317_vm1, %v4185_v40  ;;  %3981 = vmatprep.mubr.msk.bf16.mxu1 %vm317_vm1, %v4186_v41  ;;  %v4249_v40 = vld [vmem:[%s5419_s0 + $0x210] sm:$0xff]   ;;  %v4250_v41 = vld [vmem:[%s5419_s0 + $0x218] sm:$0xff]  }
  0x46   :  { %3916 = vmatmul.mubr.msk.bf16.gmra.mxu0 %vm317_vm1, %v4187_v42  ;;  %3982 = vmatmul.mubr.msk.bf16.gmra.mxu1 %vm317_vm1, %v4188_v43  ;;  %v4251_v42 = vld [vmem:[%s5419_s0 + $0x230] sm:$0xff]   ;;  %v4252_v43 = vld [vmem:[%s5419_s0 + $0x238] sm:$0xff]  }
  0x47   :  { %3919 = vmatprep.mubr.msk.bf16.mxu0 %vm317_vm1, %v4189_v44  ;;  %3985 = vmatprep.mubr.msk.bf16.mxu1 %vm317_vm1, %v4190_v45  ;;  %v4253_v44 = vld [vmem:[%s5419_s0 + $0x250] sm:$0xff]   ;;  %v4254_v45 = vld [vmem:[%s5419_s0 + $0x258] sm:$0xff]  }
  0x4e   :  { %3920 = vmatmul.mubr.msk.bf16.gmra.mxu0 %vm317_vm1, %v4191_v46  ;;  %3986 = vmatmul.mubr.msk.bf16.gmra.mxu1 %vm317_vm1, %v4192_v47 }
  0x4f   :  { %3923 = vmatprep.mubr.msk.bf16.mxu0 %vm317_vm1, %v4193_v48  ;;  %3989 = vmatprep.mubr.msk.bf16.mxu1 %vm317_vm1, %v4194_v49 }
  0x56   :  { %3924 = vmatmul.mubr.msk.bf16.gmra.mxu0 %vm317_vm1, %v4195_v50  ;;  %3990 = vmatmul.mubr.msk.bf16.gmra.mxu1 %vm317_vm1, %v4196_v51 }
  0x57   :  { %3927 = vmatprep.mubr.msk.bf16.mxu0 %vm317_vm1, %v4197_v52  ;;  %3993 = vmatprep.mubr.msk.bf16.mxu1 %vm317_vm1, %v4198_v53  ;;  %v4255_v53 = vld [vmem:[%s5419_s0 + $0x270] sm:$0xff]  }
  0x5e   :  { %3928 = vmatmul.mubr.msk.bf16.gmra.mxu0 %vm317_vm1, %v4199_v54  ;;  %3994 = vmatmul.mubr.msk.bf16.gmra.mxu1 %vm317_vm1, %v4200_v55  ;;  %v4256_v55 = vld [vmem:[%s5419_s0 + $0x278] sm:$0xff]  }
  0x5f   :  { %3931 = vmatprep.mubr.msk.bf16.mxu0 %vm317_vm1, %v4201_v56  ;;  %3997 = vmatprep.mubr.msk.bf16.mxu1 %vm317_vm1, %v4202_v57  ;;  %v4257_v56 = vld [vmem:[%s5419_s0 + $0x290] sm:$0xff]  }
  0x66   :  { %3932 = vmatmul.mubr.msk.bf16.gmra.mxu0 %vm317_vm1, %v4203_v58  ;;  %3998 = vmatmul.mubr.msk.bf16.gmra.mxu1 %vm317_vm1, %v4204_v59  ;;  %v4258_v59 = vld [vmem:[%s5419_s0 + $0x298] sm:$0xff]  }
  0x67   :  { %3935 = vmatprep.mubr.msk.bf16.mxu0 %vm317_vm1, %v4205_v60  ;;  %4001 = vmatprep.mubr.msk.bf16.mxu1 %vm317_vm1, %v4206_v61 }
  0x6e   :  { %3936 = vmatmul.mubr.msk.bf16.gmra.mxu0 %vm317_vm1, %v4207_v62  ;;  %4002 = vmatmul.mubr.msk.bf16.gmra.mxu1 %vm317_vm1, %v4208_v63 }
  0x6f   :  { %3939 = vmatprep.mubr.msk.bf16.mxu0 %vm317_vm1, %v4209_v0  ;;  %4005 = vmatprep.mubr.msk.bf16.mxu1 %vm317_vm1, %v4210_v1 }
  0x76   :  { %3940 = vmatmul.mubr.msk.bf16.gmra.mxu0 %vm317_vm1, %v4211_v2  ;;  %4006 = vmatmul.mubr.msk.bf16.gmra.mxu1 %vm317_vm1, %v4212_v3 }
  0x77   :  { %3943 = vmatprep.mubr.msk.bf16.mxu0 %vm317_vm1, %v4213_v4  ;;  %4009 = vmatprep.mubr.msk.bf16.mxu1 %vm317_vm1, %v4214_v5  ;;  %v4259_v5 = vld [vmem:[%s5419_s0 + $0x2b0] sm:$0xff]  }
  0x7e   :  { %3944 = vmatmul.mubr.msk.bf16.gmra.mxu0 %vm317_vm1, %v4215_v6  ;;  %4010 = vmatmul.mubr.msk.bf16.gmra.mxu1 %vm317_vm1, %v4216_v7  ;;  %v4260_v7 = vld [vmem:[%s5419_s0 + $0x2b8] sm:$0xff]  }
  0x7f   :  { %4015 = vmatprep.mubr.msk.bf16.mxu0 %vm317_vm1, %v4217_v8  ;;  %4081 = vmatprep.mubr.msk.bf16.mxu1 %vm317_vm1, %v4218_v9  ;;  %v4261_v8 = vld [vmem:[%s5419_s0 + $0x2d0] sm:$0xff]  }
  0x86   :  { %4016 = vmatmul.mubr.msk.bf16.vlgmr.msra.gmra.mxu0 %vm317_vm1, %v4219_v10  ;;  %4082 = vmatmul.mubr.msk.bf16.vlgmr.msra.gmra.mxu1 %vm317_vm1, %v4220_v11  ;;  %v4262_v11 = vld [vmem:[%s5419_s0 + $0x2d8] sm:$0xff]  }
  0x87   :  { %4019 = vmatprep.mubr.msk.bf16.mxu0 %vm317_vm1, %v4221_v12  ;;  %4085 = vmatprep.mubr.msk.bf16.mxu1 %vm317_vm1, %v4222_v13 }
  0x8e   :  { %4020 = vmatmul.mubr.msk.bf16.gmra.mxu0 %vm317_vm1, %v4223_v14  ;;  %4086 = vmatmul.mubr.msk.bf16.gmra.mxu1 %vm317_vm1, %v4224_v15 }
  0x8f   :  { %4023 = vmatprep.mubr.msk.bf16.mxu0 %vm317_vm1, %v4225_v16  ;;  %4089 = vmatprep.mubr.msk.bf16.mxu1 %vm317_vm1, %v4226_v17 }
  0x96   :  { %4024 = vmatmul.mubr.msk.bf16.gmra.mxu0 %vm317_vm1, %v4227_v18  ;;  %4090 = vmatmul.mubr.msk.bf16.gmra.mxu1 %vm317_vm1, %v4228_v19 }
  0x97   :  { %4027 = vmatprep.mubr.msk.bf16.mxu0 %vm317_vm1, %v4229_v20  ;;  %4093 = vmatprep.mubr.msk.bf16.mxu1 %vm317_vm1, %v4230_v21  ;;  %v4263_v21 = vld [vmem:[%s5419_s0 + $0x2f0] sm:$0xff]  }
  0x9e   :  { %4028 = vmatmul.mubr.msk.bf16.gmra.mxu0 %vm317_vm1, %v4231_v22  ;;  %4094 = vmatmul.mubr.msk.bf16.gmra.mxu1 %vm317_vm1, %v4232_v23  ;;  %v4264_v23 = vld [vmem:[%s5419_s0 + $0x2f8] sm:$0xff]  }
  0x9f   :  { %4031 = vmatprep.mubr.msk.bf16.mxu0 %vm317_vm1, %v4233_v24  ;;  %4097 = vmatprep.mubr.msk.bf16.mxu1 %vm317_vm1, %v4234_v25  ;;  %v4265_v24 = vld [vmem:[%s5419_s0 + $0x310] sm:$0xff]  }
  0xa6   :  { %4032 = vmatmul.mubr.msk.bf16.gmra.mxu0 %vm317_vm1, %v4235_v26  ;;  %4098 = vmatmul.mubr.msk.bf16.gmra.mxu1 %vm317_vm1, %v4236_v27  ;;  %v4266_v27 = vld [vmem:[%s5419_s0 + $0x318] sm:$0xff]  }
  0xa7   :  { %4035 = vmatprep.mubr.msk.bf16.mxu0 %vm317_vm1, %v4237_v28  ;;  %4101 = vmatprep.mubr.msk.bf16.mxu1 %vm317_vm1, %v4238_v29 }
  0xae   :  { %4036 = vmatmul.mubr.msk.bf16.gmra.mxu0 %vm317_vm1, %v4239_v30  ;;  %4102 = vmatmul.mubr.msk.bf16.gmra.mxu1 %vm317_vm1, %v4240_v31 }
  0xaf   :  { %4039 = vmatprep.mubr.msk.bf16.mxu0 %vm317_vm1, %v4241_v32  ;;  %4105 = vmatprep.mubr.msk.bf16.mxu1 %vm317_vm1, %v4242_v33 }
  0xb6   :  { %4040 = vmatmul.mubr.msk.bf16.gmra.mxu0 %vm317_vm1, %v4243_v34  ;;  %4106 = vmatmul.mubr.msk.bf16.gmra.mxu1 %vm317_vm1, %v4244_v35 }
  0xb7   :  { %4043 = vmatprep.mubr.msk.bf16.mxu0 %vm317_vm1, %v4245_v36  ;;  %4109 = vmatprep.mubr.msk.bf16.mxu1 %vm317_vm1, %v4246_v37  ;;  %v4267_v37 = vld [vmem:[%s5419_s0 + $0x330] sm:$0xff]  }
  0xbe   :  { %4044 = vmatmul.mubr.msk.bf16.gmra.mxu0 %vm317_vm1, %v4247_v38  ;;  %4110 = vmatmul.mubr.msk.bf16.gmra.mxu1 %vm317_vm1, %v4248_v39  ;;  %v4268_v39 = vld [vmem:[%s5419_s0 + $0x338] sm:$0xff]  }
  0xbf   :  { %4047 = vmatprep.mubr.msk.bf16.mxu0 %vm317_vm1, %v4249_v40  ;;  %4113 = vmatprep.mubr.msk.bf16.mxu1 %vm317_vm1, %v4250_v41  ;;  %v4269_v40 = vld [vmem:[%s5419_s0 + $0x350] sm:$0xff]  }
  0xc6   :  { %v3885_v46 = vpop.f32.mrf.mxu0  ;;  %4048 = vmatmul.mubr.msk.bf16.gmra.mxu0 %vm317_vm1, %v4251_v42  ;;  %v3951_v47 = vpop.f32.mrf.mxu1  ;;  %4114 = vmatmul.mubr.msk.bf16.gmra.mxu1 %vm317_vm1, %v4252_v43  ;;  %v4270_v43 = vld [vmem:[%s5419_s0 + $0x358] sm:$0xff]  }
  0xc7   :  { %4051 = vmatprep.mubr.msk.bf16.mxu0 %vm317_vm1, %v4253_v44  ;;  %v4735_v48 = vadd.f32 %v3951_v47, %v3885_v46  ;;  %4117 = vmatprep.mubr.msk.bf16.mxu1 %vm317_vm1, %v4254_v45 }
  0xc8   :  { %v452_v49 = vpop.f32.mrf.mxu0  ;;  %v1005_v50 = vpop.f32.mrf.mxu1 }
  0xc9   :  { %v4738_v51 = vadd.f32 %v1005_v50, %v452_v49 }
  0xca   :  { %v3886_v52 = vpop.f32.mrf.mxu0  ;;  %v3952_v54 = vpop.f32.mrf.mxu1 }
  0xcb   :  { %v4749_v57 = vadd.f32 %v3952_v54, %v3886_v52 }
  0xcc   :  { %v455_v58 = vpop.f32.mrf.mxu0  ;;  %v1008_v60 = vpop.f32.mrf.mxu1 }
  0xcd   :  { %v4754_v61 = vadd.f32 %v1008_v60, %v455_v58  ;;  %v4272_v58 = vld [vmem:[%s5419_s0 + $0x378] sm:$0xff]  }
  0xce   :  { %v3889_v62 = vpop.f32.mrf.mxu0  ;;  %4052 = vmatmul.mubr.msk.bf16.gmra.mxu0 %vm317_vm1, %v4255_v53  ;;  %v3955_v63 = vpop.f32.mrf.mxu1  ;;  %4118 = vmatmul.mubr.msk.bf16.gmra.mxu1 %vm317_vm1, %v4256_v55  ;;  %v4271_v55 = vld [vmem:[%s5419_s0 + $0x370] sm:$0xff]  }
  0xcf   :  { %4055 = vmatprep.mubr.msk.bf16.mxu0 %vm317_vm1, %v4257_v56  ;;  %v4759_v0 = vadd.f32 %v3955_v63, %v3889_v62  ;;  %4121 = vmatprep.mubr.msk.bf16.mxu1 %vm317_vm1, %v4258_v59  ;;  %v4273_v59 = vld [vmem:[%s5419_s0 + $0x390] sm:$0xff]   ;;  %v4274_v63 = vld [vmem:[%s5419_s0 + $0x398] sm:$0xff]  }
  0xd0   :  { %v468_v1 = vpop.f32.mrf.mxu0  ;;  %v1021_v2 = vpop.f32.mrf.mxu1 }
  0xd1   :  { %v4762_v3 = vadd.f32 %v1021_v2, %v468_v1 }
  0xd2   :  { %v3890_v4 = vpop.f32.mrf.mxu0  ;;  %v3956_v6 = vpop.f32.mrf.mxu1 }
  0xd3   :  { %v4773_v9 = vadd.f32 %v3956_v6, %v3890_v4 }
  0xd4   :  { %v471_v10 = vpop.f32.mrf.mxu0  ;;  %v1024_v12 = vpop.f32.mrf.mxu1 }
  0xd5   :  { %v4778_v13 = vadd.f32 %v1024_v12, %v471_v10  ;;  %v4275_v12 = vld [vmem:[%s5419_s0 + $0x3b0] sm:$0xff]  }
  0xd6   :  { %v3893_v14 = vpop.f32.mrf.mxu0  ;;  %4056 = vmatmul.mubr.msk.bf16.gmra.mxu0 %vm317_vm1, %v4259_v5  ;;  %v3959_v15 = vpop.f32.mrf.mxu1  ;;  %4122 = vmatmul.mubr.msk.bf16.gmra.mxu1 %vm317_vm1, %v4260_v7 }
  0xd7   :  { %4059 = vmatprep.mubr.msk.bf16.mxu0 %vm317_vm1, %v4261_v8  ;;  %v4783_v16 = vadd.f32 %v3959_v15, %v3893_v14  ;;  %4125 = vmatprep.mubr.msk.bf16.mxu1 %vm317_vm1, %v4262_v11  ;;  %v4276_v15 = vld [vmem:[%s5419_s0 + $0x3b8] sm:$0xff]  }
  0xd8   :  { %v484_v17 = vpop.f32.mrf.mxu0  ;;  %v1037_v18 = vpop.f32.mrf.mxu1 }
  0xd9   :  { %v4786_v19 = vadd.f32 %v1037_v18, %v484_v17  ;;  %v4277_v17 = vld [vmem:[%s5419_s0 + $0x3d0] sm:$0xff]  }
  0xda   :  { %v3894_v20 = vpop.f32.mrf.mxu0  ;;  %v3960_v22 = vpop.f32.mrf.mxu1 }
  0xdb   :  { %v4797_v25 = vadd.f32 %v3960_v22, %v3894_v20 }
  0xdc   :  { %v487_v26 = vpop.f32.mrf.mxu0  ;;  %v1040_v28 = vpop.f32.mrf.mxu1 }
  0xdd   :  { %v4802_v29 = vadd.f32 %v1040_v28, %v487_v26 }
  0xde   :  { %v3897_v30 = vpop.f32.mrf.mxu0  ;;  %4060 = vmatmul.mubr.msk.bf16.gmra.mxu0 %vm317_vm1, %v4263_v21  ;;  %v3963_v31 = vpop.f32.mrf.mxu1  ;;  %4126 = vmatmul.mubr.msk.bf16.gmra.mxu1 %vm317_vm1, %v4264_v23  ;;  %v4278_v21 = vld [vmem:[%s5419_s0 + $0x3d8] sm:$0xff]  }
  0xdf   :  { %4063 = vmatprep.mubr.msk.bf16.mxu0 %vm317_vm1, %v4265_v24  ;;  %v4807_v32 = vadd.f32 %v3963_v31, %v3897_v30  ;;  %4129 = vmatprep.mubr.msk.bf16.mxu1 %vm317_vm1, %v4266_v27 }
  0xe0   :  { %v500_v33 = vpop.f32.mrf.mxu0  ;;  %v1053_v34 = vpop.f32.mrf.mxu1 }
  0xe1   :  { %v4810_v35 = vadd.f32 %v1053_v34, %v500_v33  ;;  %v4279_v34 = vld [vmem:[%s5419_s0 + $0x3f0] sm:$0xff]  }
  0xe2   :  { %v3898_v36 = vpop.f32.mrf.mxu0  ;;  %v3964_v38 = vpop.f32.mrf.mxu1 }
  0xe3   :  { %v4821_v41 = vadd.f32 %v3964_v38, %v3898_v36 }
  0xe4   :  { %v503_v42 = vpop.f32.mrf.mxu0  ;;  %v1056_v44 = vpop.f32.mrf.mxu1 }
  0xe5   :  { %v4826_v45 = vadd.f32 %v1056_v44, %v503_v42 }
  0xe6   :  { %v3901_v46 = vpop.f32.mrf.mxu0  ;;  %4064 = vmatmul.mubr.msk.bf16.gmra.mxu0 %vm317_vm1, %v4267_v37  ;;  %v3967_v47 = vpop.f32.mrf.mxu1  ;;  %4130 = vmatmul.mubr.msk.bf16.gmra.mxu1 %vm317_vm1, %v4268_v39  ;;  %v4280_v37 = vld [vmem:[%s5419_s0 + $0x3f8] sm:$0xff]  }
  0xe7   :  { %4067 = vmatprep.mubr.msk.bf16.mxu0 %vm317_vm1, %v4269_v40  ;;  %v4831_v49 = vadd.f32 %v3967_v47, %v3901_v46  ;;  %4133 = vmatprep.mubr.msk.bf16.mxu1 %vm317_vm1, %v4270_v43 }
  0xe8   :  { %v516_v50 = vpop.f32.mrf.mxu0  ;;  %v1069_v52 = vpop.f32.mrf.mxu1 }
  0xe9   :  { %v4834_v53 = vadd.f32 %v1069_v52, %v516_v50 }
  0xea   :  { %v3902_v54 = vpop.f32.mrf.mxu0  ;;  %v3968_v56 = vpop.f32.mrf.mxu1 }
  0xeb   :  { %v4845_v60 = vadd.f32 %v3968_v56, %v3902_v54 }
  0xec   :  { %v519_v62 = vpop.f32.mrf.mxu0  ;;  %v1072_v1 = vpop.f32.mrf.mxu1 }
  0xed   :  { %v4850_v2 = vadd.f32 %v1072_v1, %v519_v62 }
  0xee   :  { %v3905_v4 = vpop.f32.mrf.mxu0  ;;  %4068 = vmatmul.mubr.msk.bf16.gmra.mxu0 %vm317_vm1, %v4271_v55  ;;  %v3971_v5 = vpop.f32.mrf.mxu1  ;;  %4134 = vmatmul.mubr.msk.bf16.gmra.mxu1 %vm317_vm1, %v4272_v58 }
  0xef   :  { %4071 = vmatprep.mubr.msk.bf16.mxu0 %vm317_vm1, %v4273_v59  ;;  %v4855_v6 = vadd.f32 %v3971_v5, %v3905_v4  ;;  %4137 = vmatprep.mubr.msk.bf16.mxu1 %vm317_vm1, %v4274_v63 }
  0xf0   :  { %v532_v7 = vpop.f32.mrf.mxu0  ;;  %v1085_v8 = vpop.f32.mrf.mxu1 }
  0xf1   :  { %v4858_v10 = vadd.f32 %v1085_v8, %v532_v7 }
  0xf2   :  { %v3906_v11 = vpop.f32.mrf.mxu0  ;;  %v3972_v14 = vpop.f32.mrf.mxu1 }
  0xf3   :  { %v4869_v18 = vadd.f32 %v3972_v14, %v3906_v11 }
  0xf4   :  { %v535_v20 = vpop.f32.mrf.mxu0  ;;  %v1088_v22 = vpop.f32.mrf.mxu1 }
  0xf5   :  { %v4874_v23 = vadd.f32 %v1088_v22, %v535_v20 }
  0xf6   :  { %v3909_v24 = vpop.f32.mrf.mxu0  ;;  %4072 = vmatmul.mubr.msk.bf16.gmra.mxu0 %vm317_vm1, %v4275_v12  ;;  %v3975_v26 = vpop.f32.mrf.mxu1  ;;  %4138 = vmatmul.mubr.msk.bf16.gmra.mxu1 %vm317_vm1, %v4276_v15 }
  0xf7   :  { %4075 = vmatprep.mubr.msk.bf16.mxu0 %vm317_vm1, %v4277_v17  ;;  %v4879_v27 = vadd.f32 %v3975_v26, %v3909_v24  ;;  %4141 = vmatprep.mubr.msk.bf16.mxu1 %vm317_vm1, %v4278_v21 }
  0xf8   :  { %v548_v28 = vpop.f32.mrf.mxu0  ;;  %v1101_v30 = vpop.f32.mrf.mxu1 }
  0xf9   :  { %v4882_v31 = vadd.f32 %v1101_v30, %v548_v28 }
  0xfa   :  { %v3910_v33 = vpop.f32.mrf.mxu0  ;;  %v3976_v36 = vpop.f32.mrf.mxu1 }
  0xfb   :  { %v4890_v38 = vadd.f32 %v3976_v36, %v3910_v33 }
  0xfc   :  { %v551_v39 = vpop.f32.mrf.mxu0  ;;  %v1104_v40 = vpop.f32.mrf.mxu1 }
  0xfd   :  { %v4892_v42 = vadd.f32 %v1104_v40, %v551_v39 }
  0xfe   :  { %v3913_v43 = vpop.f32.mrf.mxu0  ;;  %4076 = vmatmul.mubr.msk.bf16.gmra.mxu0 %vm317_vm1, %v4279_v34  ;;  %v3979_v44 = vpop.f32.mrf.mxu1  ;;  %4142 = vmatmul.mubr.msk.bf16.gmra.mxu1 %vm317_vm1, %v4280_v37 }
  0xff   :  { %v4896_v46 = vadd.f32 %v3979_v44, %v3913_v43 }
 0x100   :  { %v564_v47 = vpop.f32.mrf.mxu0  ;;  %v1117_v50 = vpop.f32.mrf.mxu1 }
 0x101   :  { %v4898_v52 = vadd.f32 %v1117_v50, %v564_v47 }
 0x102   :  { %v3914_v54 = vpop.f32.mrf.mxu0  ;;  %v3980_v55 = vpop.f32.mrf.mxu1 }
 0x103   :  { %v4900_v56 = vadd.f32 %v3980_v55, %v3914_v54 }
 0x104   :  { %v567_v58 = vpop.f32.mrf.mxu0  ;;  %v1120_v59 = vpop.f32.mrf.mxu1 }
 0x105   :  { %v4902_v62 = vadd.f32 %v1120_v59, %v567_v58 }
 0x106   :  { %v3917_v63 = vpop.f32.mrf.mxu0  ;;  %v3983_v1 = vpop.f32.mrf.mxu1 }
 0x107   :  { %v4904_v4 = vadd.f32 %v3983_v1, %v3917_v63 }
 0x108   :  { %v580_v5 = vpop.f32.mrf.mxu0  ;;  %v1133_v7 = vpop.f32.mrf.mxu1 }
 0x109   :  { %v4906_v8 = vadd.f32 %v1133_v7, %v580_v5 }
 0x10a   :  { %v3918_v11 = vpop.f32.mrf.mxu0  ;;  %v3984_v12 = vpop.f32.mrf.mxu1 }
 0x10b   :  { %v4908_v14 = vadd.f32 %v3984_v12, %v3918_v11 }
 0x10c   :  { %v583_v15 = vpop.f32.mrf.mxu0  ;;  %v1136_v17 = vpop.f32.mrf.mxu1 }
 0x10d   :  { %v4910_v20 = vadd.f32 %v1136_v17, %v583_v15 }
 0x10e   :  { %v3921_v21 = vpop.f32.mrf.mxu0  ;;  %v3987_v22 = vpop.f32.mrf.mxu1 }
 0x10f   :  { %v4912_v24 = vadd.f32 %v3987_v22, %v3921_v21 }
 0x110   :  { %v596_v26 = vpop.f32.mrf.mxu0  ;;  %v1149_v28 = vpop.f32.mrf.mxu1 }
 0x111   :  { %v4914_v30 = vadd.f32 %v1149_v28, %v596_v26 }
 0x112   :  { %v3922_v33 = vpop.f32.mrf.mxu0  ;;  %v3988_v34 = vpop.f32.mrf.mxu1 }
 0x113   :  { %v4916_v36 = vadd.f32 %v3988_v34, %v3922_v33 }
 0x114   :  { %v599_v37 = vpop.f32.mrf.mxu0  ;;  %v1152_v39 = vpop.f32.mrf.mxu1 }
 0x115   :  { %v4918_v40 = vadd.f32 %v1152_v39, %v599_v37 }
 0x116   :  { %v3925_v43 = vpop.f32.mrf.mxu0  ;;  %v3991_v44 = vpop.f32.mrf.mxu1 }
 0x117   :  { %v4920_v47 = vadd.f32 %v3991_v44, %v3925_v43 }
 0x118   :  { %v612_v50 = vpop.f32.mrf.mxu0  ;;  %v1165_v54 = vpop.f32.mrf.mxu1 }
 0x119   :  { %v4922_v55 = vadd.f32 %v1165_v54, %v612_v50 }
 0x11a   :  { %v3926_v58 = vpop.f32.mrf.mxu0  ;;  %v3992_v59 = vpop.f32.mrf.mxu1 }
 0x11b   :  { %v4924_v63 = vadd.f32 %v3992_v59, %v3926_v58 }
 0x11c   :  { %v615_v1 = vpop.f32.mrf.mxu0  ;;  %v1168_v5 = vpop.f32.mrf.mxu1 }
 0x11d   :  { %v4926_v7 = vadd.f32 %v1168_v5, %v615_v1 }
 0x11e   :  { %v3929_v11 = vpop.f32.mrf.mxu0  ;;  %v3995_v12 = vpop.f32.mrf.mxu1 }
 0x11f   :  { %v4928_v15 = vadd.f32 %v3995_v12, %v3929_v11 }
 0x120   :  { %v628_v17 = vpop.f32.mrf.mxu0  ;;  %v1181_v21 = vpop.f32.mrf.mxu1 }
 0x121   :  { %v4930_v22 = vadd.f32 %v1181_v21, %v628_v17 }
 0x122   :  { %v3930_v26 = vpop.f32.mrf.mxu0  ;;  %v3996_v28 = vpop.f32.mrf.mxu1 }
 0x123   :  { %v4932_v33 = vadd.f32 %v3996_v28, %v3930_v26 }
 0x124   :  { %v631_v34 = vpop.f32.mrf.mxu0  ;;  %v1184_v37 = vpop.f32.mrf.mxu1 }
 0x125   :  { %5423 = vst [vmem:[#allocation2_spill] sm:$0xff] %v4932_v33  ;;  %v4934_v39 = vadd.f32 %v1184_v37, %v631_v34 }
 0x126   :  { %v3933_v43 = vpop.f32.mrf.mxu0  ;;  %v3999_v44 = vpop.f32.mrf.mxu1 }
 0x127   :  { %5424 = vst [vmem:[#allocation3_spill] sm:$0xff] %v4934_v39  ;;  %v4936_v50 = vadd.f32 %v3999_v44, %v3933_v43 }
 0x128   :  { %v644_v54 = vpop.f32.mrf.mxu0  ;;  %v1197_v58 = vpop.f32.mrf.mxu1 }
 0x129   :  { %5425 = vst [vmem:[#allocation4_spill] sm:$0xff] %v4936_v50  ;;  %v4938_v59 = vadd.f32 %v1197_v58, %v644_v54 }
 0x12a   :  { %v3934_v1 = vpop.f32.mrf.mxu0  ;;  %v4000_v5 = vpop.f32.mrf.mxu1 }
 0x12b   :  { %5426 = vst [vmem:[#allocation5_spill] sm:$0xff] %v4938_v59  ;;  %v4940_v11 = vadd.f32 %v4000_v5, %v3934_v1 }
 0x12c   :  { %v647_v12 = vpop.f32.mrf.mxu0  ;;  %v1200_v17 = vpop.f32.mrf.mxu1 }
 0x12d   :  { %5427 = vst [vmem:[#allocation6_spill] sm:$0xff] %v4940_v11  ;;  %v4942_v21 = vadd.f32 %v1200_v17, %v647_v12 }
 0x12e   :  { %v3937_v26 = vpop.f32.mrf.mxu0  ;;  %v4003_v28 = vpop.f32.mrf.mxu1 }
 0x12f   :  { %5428 = vst [vmem:[#allocation7_spill] sm:$0xff] %v4942_v21  ;;  %v4944_v34 = vadd.f32 %v4003_v28, %v3937_v26 }
 0x130   :  { %v660_v37 = vpop.f32.mrf.mxu0  ;;  %v1213_v39 = vpop.f32.mrf.mxu1 }
 0x131   :  { %5429 = vst [vmem:[#allocation8_spill] sm:$0xff] %v4944_v34  ;;  %v4946_v43 = vadd.f32 %v1213_v39, %v660_v37 }
 0x132   :  { %v3938_v44 = vpop.f32.mrf.mxu0  ;;  %v4004_v50 = vpop.f32.mrf.mxu1 }
 0x133   :  { %5430 = vst [vmem:[#allocation9_spill] sm:$0xff] %v4946_v43  ;;  %v4948_v54 = vadd.f32 %v4004_v50, %v3938_v44 }
 0x134   :  { %v663_v58 = vpop.f32.mrf.mxu0  ;;  %v1216_v59 = vpop.f32.mrf.mxu1 }
 0x135   :  { %5431 = vst [vmem:[#allocation10_spill] sm:$0xff] %v4948_v54  ;;  %v4950_v1 = vadd.f32 %v1216_v59, %v663_v58 }
 0x136   :  { %v3941_v5 = vpop.f32.mrf.mxu0  ;;  %v4007_v11 = vpop.f32.mrf.mxu1 }
 0x137   :  { %5432 = vst [vmem:[#allocation11_spill] sm:$0xff] %v4950_v1  ;;  %v4952_v12 = vadd.f32 %v4007_v11, %v3941_v5 }
 0x138   :  { %v676_v17 = vpop.f32.mrf.mxu0  ;;  %v1229_v21 = vpop.f32.mrf.mxu1 }
 0x139   :  { %5433 = vst [vmem:[#allocation12_spill] sm:$0xff] %v4952_v12  ;;  %v4954_v26 = vadd.f32 %v1229_v21, %v676_v17 }
 0x13a   :  { %v3942_v28 = vpop.f32.mrf.mxu0  ;;  %v4008_v34 = vpop.f32.mrf.mxu1 }
 0x13b   :  { %5434 = vst [vmem:[#allocation13_spill] sm:$0xff] %v4954_v26  ;;  %v4956_v39 = vadd.f32 %v4008_v34, %v3942_v28 }
 0x13c   :  { %v679_v37 = vpop.f32.mrf.mxu0  ;;  %v1232_v43 = vpop.f32.mrf.mxu1 }
 0x13d   :  { %5435 = vst [vmem:[#allocation14_spill] sm:$0xff] %v4956_v39  ;;  %v4958_v50 = vadd.f32 %v1232_v43, %v679_v37 }
 0x13e   :  { %v3945_v44 = vpop.f32.mrf.mxu0  ;;  %v4011_v54 = vpop.f32.mrf.mxu1 }
 0x13f   :  { %5436 = vst [vmem:[#allocation15_spill] sm:$0xff] %v4958_v50  ;;  %v4960_v59 = vadd.f32 %v4011_v54, %v3945_v44  ;;  %v4972_v54 = vld [vmem:[%s5420_s2] ss:$0 sm:$0xff] }
 0x140   :  { %v692_v58 = vpop.f32.mrf.mxu0  ;;  %v1245_v1 = vpop.f32.mrf.mxu1 }
 0x141   :  { %5437 = vst [vmem:[#allocation16_spill] sm:$0xff] %v4960_v59  ;;  %v4962_v11 = vadd.f32 %v1245_v1, %v692_v58 }
 0x142   :  { %v3946_v5 = vpop.f32.mrf.mxu0  ;;  %v4012_v12 = vpop.f32.mrf.mxu1 }
 0x143   :  { %5438 = vst [vmem:[#allocation17_spill] sm:$0xff] %v4962_v11  ;;  %v4964_v21 = vadd.f32 %v4012_v12, %v3946_v5  ;;  %v4978_v12 = vld [vmem:[%s5421_s3] ss:$0 sm:$0xff] }
 0x144   :  { %v695_v17 = vpop.f32.mrf.mxu0  ;;  %v1248_v26 = vpop.f32.mrf.mxu1 }
 0x145   :  { %5439 = vst [vmem:[#allocation18_spill] sm:$0xff] %v4964_v21  ;;  %v4966_v34 = vadd.f32 %v1248_v26, %v695_v17 }
 0x146   :  { %v4017_v28 = vpop.f32.mrf.mxu0  ;;  %v4083_v37 = vpop.f32.mrf.mxu1 }
 0x147   :  { %5440 = vst [vmem:[#allocation19_spill] sm:$0xff] %v4966_v34  ;;  %v1883_v43 = vadd.f32 %v4017_v28, %v4735_v48 }
 0x148   :  { %v1626_v44 = vpop.f32.mrf.mxu0  ;;  %v2311_v11 = vpop.f32.mrf.mxu1 }
 0x149   :  { %v2568_v1 = vadd.f32 %v4083_v37, %v1883_v43  ;;  %v1881_v58 = vadd.f32 %v1626_v44, %v4738_v51 }
 0x14a   :  { %v4018_v26 = vpop.f32.mrf.mxu0  ;;  %v4084_v28 = vpop.f32.mrf.mxu1 }
 0x14b   :  { %v2639_v5 = vmul.f32 %v4972_v54, %v2568_v1  ;;  %v2566_v48 = vadd.f32 %v2311_v11, %v1881_v58  ;;  %v1884_v17 = vadd.f32 %v4018_v26, %v4749_v57 }
 0x14c   :  { %v1629_v34 = vpop.f32.mrf.mxu0  ;;  %v2314_v44 = vpop.f32.mrf.mxu1 }
 0x14d   :  { %v2710_v21 = vadd.f32 %v4978_v12, %v2639_v5  ;;  %v2637_v43 = vmul.f32 %v4972_v54, %v2566_v48  ;;  %v2569_v37 = vadd.f32 %v4084_v28, %v1884_v17  ;;  %v1882_v51 = vadd.f32 %v1629_v34, %v4754_v61 }
 0x14e   :  { %v4021_v59 = vpop.f32.mrf.mxu0  ;;  %v4087_v11 = vpop.f32.mrf.mxu1 }
 0x14f   :  { %v2774_v50 = vmax.f32 %v2710_v21, 0.0  ;;  %v2708_v39 = vadd.f32 %v4978_v12, %v2637_v43  ;;  %v2640_v33 = vmul.f32 %v4972_v54, %v2569_v37  ;;  %v2567_v1 = vadd.f32 %v2314_v44, %v1882_v51 }
 0x150   :  { %v1887_v57 = vadd.f32 %v4021_v59, %v4759_v0  ;;  %v1642_v58 = vpop.f32.mrf.mxu0  ;;  %v2327_v61 = vpop.f32.mrf.mxu1 }
 0x151   :  { %v3687_v26 = vpack.c.bf16 %v2774_v50, %v2774_v50  ;;  %v2772_v5 = vmax.f32 %v2708_v39, 0.0  ;;  %v2711_v48 = vadd.f32 %v4978_v12, %v2640_v33  ;;  %v2638_v17 = vmul.f32 %v4972_v54, %v2567_v1 }
 0x152   :  { %v2572_v34 = vadd.f32 %v4087_v11, %v1887_v57  ;;  %v1885_v21 = vadd.f32 %v1642_v58, %v4762_v3  ;;  %v4022_v28 = vpop.f32.mrf.mxu0  ;;  %v4088_v50 = vpop.f32.mrf.mxu1 }
 0x153   :  { %3095 = vst.msk [vmem:[%s5422_s4 + $0x8] sm:$0xf] %vm3092_vm2, %v3687_v26  ;;  %v3685_v43 = vpack.c.bf16 %v2772_v5, %v2772_v5  ;;  %v2775_v37 = vmax.f32 %v2711_v48, 0.0  ;;  %v2709_v0 = vadd.f32 %v4978_v12, %v2638_v17  ;;  %v1888_v39 = vadd.f32 %v4022_v28, %v4773_v9 }
 0x154   :  { %v2643_v33 = vmul.f32 %v4972_v54, %v2572_v34  ;;  %v2570_v59 = vadd.f32 %v2327_v61, %v1885_v21  ;;  %v1645_v51 = vpop.f32.mrf.mxu0  ;;  %v2330_v57 = vpop.f32.mrf.mxu1 }
 0x155   :  { %3093 = vst.msk [vmem:[%s5422_s4] sm:$0xf] %vm3092_vm2, %v3685_v43  ;;  %v3688_v3 = vpack.c.bf16 %v2775_v37, %v2775_v37  ;;  %v2773_v44 = vmax.f32 %v2709_v0, 0.0  ;;  %v2573_v1 = vadd.f32 %v4088_v50, %v1888_v39  ;;  %v1886_v11 = vadd.f32 %v1645_v51, %v4778_v13 }
 0x156   :  { %v2714_v58 = vadd.f32 %v4978_v12, %v2643_v33  ;;  %v2641_v9 = vmul.f32 %v4972_v54, %v2570_v59  ;;  %v4025_v26 = vpop.f32.mrf.mxu0  ;;  %v4091_v34 = vpop.f32.mrf.mxu1 }
 0x157   :  { %3096 = vst.msk [vmem:[%s5422_s4 + $0xc] sm:$0xf] %vm3092_vm2, %v3688_v3  ;;  %v3686_v5 = vpack.c.bf16 %v2773_v44, %v2773_v44  ;;  %v2644_v48 = vmul.f32 %v4972_v54, %v2573_v1  ;;  %v2571_v17 = vadd.f32 %v2330_v57, %v1886_v11  ;;  %v1891_v61 = vadd.f32 %v4025_v26, %v4783_v16 }
 0x158   :  { %v2778_v21 = vmax.f32 %v2714_v58, 0.0  ;;  %v2712_v13 = vadd.f32 %v4978_v12, %v2641_v9  ;;  %v1658_v28 = vpop.f32.mrf.mxu0  ;;  %v2343_v50 = vpop.f32.mrf.mxu1 }
 0x159   :  { %3094 = vst.msk [vmem:[%s5422_s4 + $0x4] sm:$0xf] %vm3092_vm2, %v3686_v5  ;;  %v2715_v43 = vadd.f32 %v4978_v12, %v2644_v48  ;;  %v2642_v37 = vmul.f32 %v4972_v54, %v2571_v17  ;;  %v2576_v0 = vadd.f32 %v4091_v34, %v1891_v61  ;;  %v1889_v39 = vadd.f32 %v1658_v28, %v4786_v19 }
 0x15a   :  { %v3691_v33 = vpack.c.bf16 %v2778_v21, %v2778_v21  ;;  %v2776_v16 = vmax.f32 %v2712_v13, 0.0  ;;  %v4026_v59 = vpop.f32.mrf.mxu0  ;;  %v4092_v11 = vpop.f32.mrf.mxu1 }
 0x15b   :  { %v2779_v51 = vmax.f32 %v2715_v43, 0.0  ;;  %v2713_v3 = vadd.f32 %v4978_v12, %v2642_v37  ;;  %v2647_v44 = vmul.f32 %v4972_v54, %v2576_v0  ;;  %v2574_v1 = vadd.f32 %v2343_v50, %v1889_v39 }
 0x15c   :  { %3099 = vst.msk [vmem:[%s5422_s4 + $0x18] sm:$0xf] %vm3092_vm2, %v3691_v33  ;;  %v3689_v57 = vpack.c.bf16 %v2776_v16, %v2776_v16  ;;  %v1892_v58 = vadd.f32 %v4026_v59, %v4797_v25  ;;  %v1661_v19 = vpop.f32.mrf.mxu0  ;;  %v2346_v17 = vpop.f32.mrf.mxu1 }
 0x15d   :  { %v3692_v9 = vpack.c.bf16 %v2779_v51, %v2779_v51  ;;  %v2777_v26 = vmax.f32 %v2713_v3, 0.0  ;;  %v2718_v5 = vadd.f32 %v4978_v12, %v2647_v44  ;;  %v2645_v48 = vmul.f32 %v4972_v54, %v2574_v1 }
 0x15e   :  { %3097 = vst.msk [vmem:[%s5422_s4 + $0x10] sm:$0xf] %vm3092_vm2, %v3689_v57  ;;  %v2577_v61 = vadd.f32 %v4092_v11, %v1892_v58  ;;  %v1890_v34 = vadd.f32 %v1661_v19, %v4802_v29  ;;  %v4029_v21 = vpop.f32.mrf.mxu0  ;;  %v4095_v37 = vpop.f32.mrf.mxu1 }
 0x15f   :  { %3100 = vst.msk [vmem:[%s5422_s4 + $0x1c] sm:$0xf] %vm3092_vm2, %v3692_v9  ;;  %v3690_v25 = vpack.c.bf16 %v2777_v26, %v2777_v26  ;;  %v2782_v13 = vmax.f32 %v2718_v5, 0.0  ;;  %v2716_v28 = vadd.f32 %v4978_v12, %v2645_v48  ;;  %v1895_v43 = vadd.f32 %v4029_v21, %v4807_v32 }
 0x160   :  { %v2648_v0 = vmul.f32 %v4972_v54, %v2577_v61  ;;  %v2575_v39 = vadd.f32 %v2346_v17, %v1890_v34  ;;  %v1674_v50 = vpop.f32.mrf.mxu0  ;;  %v2359_v51 = vpop.f32.mrf.mxu1 }
 0x161   :  { %3098 = vst.msk [vmem:[%s5422_s4 + $0x14] sm:$0xf] %vm3092_vm2, %v3690_v25  ;;  %v3695_v29 = vpack.c.bf16 %v2782_v13, %v2782_v13  ;;  %v2780_v33 = vmax.f32 %v2716_v28, 0.0  ;;  %v2580_v16 = vadd.f32 %v4095_v37, %v1895_v43  ;;  %v1893_v59 = vadd.f32 %v1674_v50, %v4810_v35 }
 0x162   :  { %v2719_v3 = vadd.f32 %v4978_v12, %v2648_v0  ;;  %v2646_v32 = vmul.f32 %v4972_v54, %v2575_v39  ;;  %v4030_v44 = vpop.f32.mrf.mxu0  ;;  %v4096_v19 = vpop.f32.mrf.mxu1 }
 0x163   :  { %3103 = vst.msk [vmem:[%s5422_s4 + $0x28] sm:$0xf] %vm3092_vm2, %v3695_v29  ;;  %v3693_v1 = vpack.c.bf16 %v2780_v33, %v2780_v33  ;;  %v2651_v11 = vmul.f32 %v4972_v54, %v2580_v16  ;;  %v2578_v57 = vadd.f32 %v2359_v51, %v1893_v59  ;;  %v1896_v58 = vadd.f32 %v4030_v44, %v4821_v41 }
 0x164   :  { %v2783_v9 = vmax.f32 %v2719_v3, 0.0  ;;  %v2717_v35 = vadd.f32 %v4978_v12, %v2646_v32  ;;  %v1677_v26 = vpop.f32.mrf.mxu0  ;;  %v2362_v34 = vpop.f32.mrf.mxu1 }
 0x165   :  { %3101 = vst.msk [vmem:[%s5422_s4 + $0x20] sm:$0xf] %vm3092_vm2, %v3693_v1  ;;  %v2722_v5 = vadd.f32 %v4978_v12, %v2651_v11  ;;  %v2649_v48 = vmul.f32 %v4972_v54, %v2578_v57  ;;  %v2581_v17 = vadd.f32 %v4096_v19, %v1896_v58  ;;  %v1894_v61 = vadd.f32 %v1677_v26, %v4826_v45 }
 0x166   :  { %v3696_v21 = vpack.c.bf16 %v2783_v9, %v2783_v9  ;;  %v2781_v41 = vmax.f32 %v2717_v35, 0.0  ;;  %v4033_v25 = vpop.f32.mrf.mxu0  ;;  %v4099_v0 = vpop.f32.mrf.mxu1 }
 0x167   :  { %v2786_v13 = vmax.f32 %v2722_v5, 0.0  ;;  %v2720_v28 = vadd.f32 %v4978_v12, %v2649_v48  ;;  %v2652_v43 = vmul.f32 %v4972_v54, %v2581_v17  ;;  %v2579_v37 = vadd.f32 %v2362_v34, %v1894_v61 }
 0x168   :  { %3104 = vst.msk [vmem:[%s5422_s4 + $0x2c] sm:$0xf] %vm3092_vm2, %v3696_v21  ;;  %v3694_v39 = vpack.c.bf16 %v2781_v41, %v2781_v41  ;;  %v1899_v50 = vadd.f32 %v4033_v25, %v4831_v49  ;;  %v1690_v45 = vpop.f32.mrf.mxu0  ;;  %v2375_v51 = vpop.f32.mrf.mxu1 }
 0x169   :  { %v3699_v29 = vpack.c.bf16 %v2786_v13, %v2786_v13  ;;  %v2784_v33 = vmax.f32 %v2720_v28, 0.0  ;;  %v2723_v16 = vadd.f32 %v4978_v12, %v2652_v43  ;;  %v2650_v59 = vmul.f32 %v4972_v54, %v2579_v37 }
 0x16a   :  { %3102 = vst.msk [vmem:[%s5422_s4 + $0x24] sm:$0xf] %vm3092_vm2, %v3694_v39  ;;  %v2584_v3 = vadd.f32 %v4099_v0, %v1899_v50  ;;  %v1897_v32 = vadd.f32 %v1690_v45, %v4834_v53  ;;  %v4034_v44 = vpop.f32.mrf.mxu0  ;;  %v4100_v58 = vpop.f32.mrf.mxu1 }
 0x16b   :  { %3107 = vst.msk [vmem:[%s5422_s4 + $0x38] sm:$0xf] %vm3092_vm2, %v3699_v29  ;;  %v3697_v49 = vpack.c.bf16 %v2784_v33, %v2784_v33  ;;  %v2787_v1 = vmax.f32 %v2723_v16, 0.0  ;;  %v2721_v11 = vadd.f32 %v4978_v12, %v2650_v59  ;;  %v1900_v57 = vadd.f32 %v4034_v44, %v4845_v60 }
 0x16c   :  { %v2655_v19 = vmul.f32 %v4972_v54, %v2584_v3  ;;  %v2582_v9 = vadd.f32 %v2375_v51, %v1897_v32  ;;  %v1693_v35 = vpop.f32.mrf.mxu0  ;;  %v2378_v17 = vpop.f32.mrf.mxu1 }
 0x16d   :  { %3105 = vst.msk [vmem:[%s5422_s4 + $0x30] sm:$0xf] %vm3092_vm2, %v3697_v49  ;;  %v3700_v53 = vpack.c.bf16 %v2787_v1, %v2787_v1  ;;  %v2785_v26 = vmax.f32 %v2721_v11, 0.0  ;;  %v2585_v5 = vadd.f32 %v4100_v58, %v1900_v57  ;;  %v1898_v48 = vadd.f32 %v1693_v35, %v4850_v2 }
 0x16e   :  { %v2726_v61 = vadd.f32 %v4978_v12, %v2655_v19  ;;  %v2653_v60 = vmul.f32 %v4972_v54, %v2582_v9  ;;  %v4037_v34 = vpop.f32.mrf.mxu0  ;;  %v4103_v28 = vpop.f32.mrf.mxu1 }
 0x16f   :  { %3108 = vst.msk [vmem:[%s5422_s4 + $0x3c] sm:$0xf] %vm3092_vm2, %v3700_v53  ;;  %v3698_v21 = vpack.c.bf16 %v2785_v26, %v2785_v26  ;;  %v2656_v41 = vmul.f32 %v4972_v54, %v2585_v5  ;;  %v2583_v25 = vadd.f32 %v2378_v17, %v1898_v48  ;;  %v1903_v13 = vadd.f32 %v4037_v34, %v4855_v6 }
 0x170   :  { %v2790_v43 = vmax.f32 %v2726_v61, 0.0  ;;  %v2724_v2 = vadd.f32 %v4978_v12, %v2653_v60  ;;  %v1706_v37 = vpop.f32.mrf.mxu0  ;;  %v2391_v29 = vpop.f32.mrf.mxu1 }
 0x171   :  { %3106 = vst.msk [vmem:[%s5422_s4 + $0x34] sm:$0xf] %vm3092_vm2, %v3698_v21  ;;  %v2727_v0 = vadd.f32 %v4978_v12, %v2656_v41  ;;  %v2654_v39 = vmul.f32 %v4972_v54, %v2583_v25  ;;  %v2588_v50 = vadd.f32 %v4103_v28, %v1903_v13  ;;  %v1901_v45 = vadd.f32 %v1706_v37, %v4858_v10 }
 0x172   :  { %v3703_v33 = vpack.c.bf16 %v2790_v43, %v2790_v43  ;;  %v2788_v6 = vmax.f32 %v2724_v2, 0.0  ;;  %v4038_v16 = vpop.f32.mrf.mxu0  ;;  %v4104_v44 = vpop.f32.mrf.mxu1 }
 0x173   :  { %v2791_v59 = vmax.f32 %v2727_v0, 0.0  ;;  %v2725_v51 = vadd.f32 %v4978_v12, %v2654_v39  ;;  %v2659_v3 = vmul.f32 %v4972_v54, %v2588_v50  ;;  %v2586_v32 = vadd.f32 %v2391_v29, %v1901_v45 }
 0x174   :  { %3111 = vst.msk [vmem:[%s5422_s4 + $0x48] sm:$0xf] %vm3092_vm2, %v3703_v33  ;;  %v3701_v49 = vpack.c.bf16 %v2788_v6, %v2788_v6  ;;  %v1904_v1 = vadd.f32 %v4038_v16, %v4869_v18  ;;  %v1709_v10 = vpop.f32.mrf.mxu0  ;;  %v2394_v9 = vpop.f32.mrf.mxu1 }
 0x175   :  { %v3704_v11 = vpack.c.bf16 %v2791_v59, %v2791_v59  ;;  %v2789_v57 = vmax.f32 %v2725_v51, 0.0  ;;  %v2730_v58 = vadd.f32 %v4978_v12, %v2659_v3  ;;  %v2657_v19 = vmul.f32 %v4972_v54, %v2586_v32 }
 0x176   :  { %3109 = vst.msk [vmem:[%s5422_s4 + $0x40] sm:$0xf] %vm3092_vm2, %v3701_v49  ;;  %v2589_v35 = vadd.f32 %v4104_v44, %v1904_v1  ;;  %v1902_v53 = vadd.f32 %v1709_v10, %v4874_v23  ;;  %v4041_v26 = vpop.f32.mrf.mxu0  ;;  %v4107_v61 = vpop.f32.mrf.mxu1 }
 0x177   :  { %3112 = vst.msk [vmem:[%s5422_s4 + $0x4c] sm:$0xf] %vm3092_vm2, %v3704_v11  ;;  %v3702_v18 = vpack.c.bf16 %v2789_v57, %v2789_v57  ;;  %v2794_v5 = vmax.f32 %v2730_v58, 0.0  ;;  %v2728_v48 = vadd.f32 %v4978_v12, %v2657_v19  ;;  %v1907_v17 = vadd.f32 %v4041_v26, %v4879_v27 }
 0x178   :  { %v2660_v60 = vmul.f32 %v4972_v54, %v2589_v35  ;;  %v2587_v34 = vadd.f32 %v2394_v9, %v1902_v53  ;;  %v1722_v21 = vpop.f32.mrf.mxu0  ;;  %v2407_v28 = vpop.f32.mrf.mxu1 }
 0x179   :  { %3110 = vst.msk [vmem:[%s5422_s4 + $0x44] sm:$0xf] %vm3092_vm2, %v3702_v18  ;;  %v3707_v23 = vpack.c.bf16 %v2794_v5, %v2794_v5  ;;  %v2792_v41 = vmax.f32 %v2728_v48, 0.0  ;;  %v2592_v25 = vadd.f32 %v4107_v61, %v1907_v17  ;;  %v1905_v13 = vadd.f32 %v1722_v21, %v4882_v31 }
 0x17a   :  { %v2731_v43 = vadd.f32 %v4978_v12, %v2660_v60  ;;  %v2658_v27 = vmul.f32 %v4972_v54, %v2587_v34  ;;  %v4042_v2 = vpop.f32.mrf.mxu0  ;;  %v4108_v45 = vpop.f32.mrf.mxu1 }
 0x17b   :  { %3115 = vst.msk [vmem:[%s5422_s4 + $0x58] sm:$0xf] %vm3092_vm2, %v3707_v23  ;;  %v3705_v37 = vpack.c.bf16 %v2792_v41, %v2792_v41  ;;  %v2663_v0 = vmul.f32 %v4972_v54, %v2592_v25  ;;  %v2590_v39 = vadd.f32 %v2407_v28, %v1905_v13  ;;  %v1908_v50 = vadd.f32 %v4042_v2, %v4890_v38 }
 0x17c   :  { %v2795_v29 = vmax.f32 %v2731_v43, 0.0  ;;  %v2729_v31 = vadd.f32 %v4978_v12, %v2658_v27  ;;  %v1725_v33 = vpop.f32.mrf.mxu0  ;;  %v2410_v3 = vpop.f32.mrf.mxu1 }
 0x17d   :  { %3113 = vst.msk [vmem:[%s5422_s4 + $0x50] sm:$0xf] %vm3092_vm2, %v3705_v37  ;;  %v2734_v6 = vadd.f32 %v4978_v12, %v2663_v0  ;;  %v2661_v16 = vmul.f32 %v4972_v54, %v2590_v39  ;;  %v2593_v59 = vadd.f32 %v4108_v45, %v1908_v50  ;;  %v1906_v51 = vadd.f32 %v1725_v33, %v4892_v42 }
 0x17e   :  { %v3708_v32 = vpack.c.bf16 %v2795_v29, %v2795_v29  ;;  %v2793_v38 = vmax.f32 %v2729_v31, 0.0  ;;  %v4045_v44 = vpop.f32.mrf.mxu0  ;;  %v4111_v57 = vpop.f32.mrf.mxu1 }
 0x17f   :  { %v2798_v49 = vmax.f32 %v2734_v6, 0.0  ;;  %v2732_v1 = vadd.f32 %v4978_v12, %v2661_v16  ;;  %v2664_v10 = vmul.f32 %v4972_v54, %v2593_v59  ;;  %v2591_v11 = vadd.f32 %v2410_v3, %v1906_v51 }
 0x180   :  { %3116 = vst.msk [vmem:[%s5422_s4 + $0x5c] sm:$0xf] %vm3092_vm2, %v3708_v32  ;;  %v3706_v58 = vpack.c.bf16 %v2793_v38, %v2793_v38  ;;  %v1911_v19 = vadd.f32 %v4045_v44, %v4896_v46  ;;  %v1738_v42 = vpop.f32.mrf.mxu0  ;;  %v2423_v18 = vpop.f32.mrf.mxu1 }
 0x181   :  { %v3711_v9 = vpack.c.bf16 %v2798_v49, %v2798_v49  ;;  %v2796_v35 = vmax.f32 %v2732_v1, 0.0  ;;  %v2735_v53 = vadd.f32 %v4978_v12, %v2664_v10  ;;  %v2662_v26 = vmul.f32 %v4972_v54, %v2591_v11 }
 0x182   :  { %3114 = vst.msk [vmem:[%s5422_s4 + $0x54] sm:$0xf] %vm3092_vm2, %v3706_v58  ;;  %v2596_v5 = vadd.f32 %v4111_v57, %v1911_v19  ;;  %v1909_v48 = vadd.f32 %v1738_v42, %v4898_v52  ;;  %v4046_v17 = vpop.f32.mrf.mxu0  ;;  %v4112_v21 = vpop.f32.mrf.mxu1 }
 0x183   :  { %3119 = vst.msk [vmem:[%s5422_s4 + $0x68] sm:$0xf] %vm3092_vm2, %v3711_v9  ;;  %v3709_v46 = vpack.c.bf16 %v2796_v35, %v2796_v35  ;;  %v2799_v61 = vmax.f32 %v2735_v53, 0.0  ;;  %v2733_v60 = vadd.f32 %v4978_v12, %v2662_v26  ;;  %v1912_v34 = vadd.f32 %v4046_v17, %v4900_v56 }
 0x184   :  { %v2667_v23 = vmul.f32 %v4972_v54, %v2596_v5  ;;  %v2594_v41 = vadd.f32 %v2423_v18, %v1909_v48  ;;  %v1741_v25 = vpop.f32.mrf.mxu0  ;;  %v2426_v27 = vpop.f32.mrf.mxu1 }
 0x185   :  { %3117 = vst.msk [vmem:[%s5422_s4 + $0x60] sm:$0xf] %vm3092_vm2, %v3709_v46  ;;  %v3712_v52 = vpack.c.bf16 %v2799_v61, %v2799_v61  ;;  %v2797_v13 = vmax.f32 %v2733_v60, 0.0  ;;  %v2597_v28 = vadd.f32 %v4112_v21, %v1912_v34  ;;  %v1910_v43 = vadd.f32 %v1741_v25, %v4902_v62 }
 0x186   :  { %v2738_v2 = vadd.f32 %v4978_v12, %v2667_v23  ;;  %v2665_v56 = vmul.f32 %v4972_v54, %v2594_v41  ;;  %v4049_v37 = vpop.f32.mrf.mxu0  ;;  %v4115_v29 = vpop.f32.mrf.mxu1 }
 0x187   :  { %3120 = vst.msk [vmem:[%s5422_s4 + $0x6c] sm:$0xf] %vm3092_vm2, %v3712_v52  ;;  %v3710_v0 = vpack.c.bf16 %v2797_v13, %v2797_v13  ;;  %v2668_v39 = vmul.f32 %v4972_v54, %v2597_v28  ;;  %v2595_v50 = vadd.f32 %v2426_v27, %v1910_v43  ;;  %v1915_v45 = vadd.f32 %v4049_v37, %v4904_v4 }
 0x188   :  { %v2802_v31 = vmax.f32 %v2738_v2, 0.0  ;;  %v2736_v62 = vadd.f32 %v4978_v12, %v2665_v56  ;;  %v1754_v33 = vpop.f32.mrf.mxu0  ;;  %v2439_v3 = vpop.f32.mrf.mxu1 }
 0x189   :  { %3118 = vst.msk [vmem:[%s5422_s4 + $0x64] sm:$0xf] %vm3092_vm2, %v3710_v0  ;;  %v2739_v6 = vadd.f32 %v4978_v12, %v2668_v39  ;;  %v2666_v16 = vmul.f32 %v4972_v54, %v2595_v50  ;;  %v2600_v59 = vadd.f32 %v4115_v29, %v1915_v45  ;;  %v1913_v51 = vadd.f32 %v1754_v33, %v4906_v8 }
 0x18a   :  { %v3715_v32 = vpack.c.bf16 %v2802_v31, %v2802_v31  ;;  %v2800_v4 = vmax.f32 %v2736_v62, 0.0  ;;  %v4050_v38 = vpop.f32.mrf.mxu0  ;;  %v4116_v11 = vpop.f32.mrf.mxu1 }
 0x18b   :  { %v2803_v44 = vmax.f32 %v2739_v6, 0.0  ;;  %v2737_v49 = vadd.f32 %v4978_v12, %v2666_v16  ;;  %v2671_v1 = vmul.f32 %v4972_v54, %v2600_v59  ;;  %v2598_v10 = vadd.f32 %v2439_v3, %v1913_v51 }
 0x18c   :  { %3123 = vst.msk [vmem:[%s5422_s4 + $0x78] sm:$0xf] %vm3092_vm2, %v3715_v32  ;;  %v3713_v57 = vpack.c.bf16 %v2800_v4, %v2800_v4  ;;  %v1916_v58 = vadd.f32 %v4050_v38, %v4908_v14  ;;  %v1757_v8 = vpop.f32.mrf.mxu0  ;;  %v2442_v53 = vpop.f32.mrf.mxu1 }
 0x18d   :  { %v3716_v19 = vpack.c.bf16 %v2803_v44, %v2803_v44  ;;  %v2801_v42 = vmax.f32 %v2737_v49, 0.0  ;;  %v2742_v9 = vadd.f32 %v4978_v12, %v2671_v1  ;;  %v2669_v35 = vmul.f32 %v4972_v54, %v2598_v10 }
 0x18e   :  { %3121 = vst.msk [vmem:[%s5422_s4 + $0x70] sm:$0xf] %vm3092_vm2, %v3713_v57  ;;  %v2601_v26 = vadd.f32 %v4116_v11, %v1916_v58  ;;  %v1914_v18 = vadd.f32 %v1757_v8, %v4910_v20  ;;  %v4053_v5 = vpop.f32.mrf.mxu0  ;;  %v4119_v61 = vpop.f32.mrf.mxu1 }
 0x18f   :  { %3124 = vst.msk [vmem:[%s5422_s4 + $0x7c] sm:$0xf] %vm3092_vm2, %v3716_v19  ;;  %v3714_v14 = vpack.c.bf16 %v2801_v42, %v2801_v42  ;;  %v2806_v48 = vmax.f32 %v2742_v9, 0.0  ;;  %v2740_v17 = vadd.f32 %v4978_v12, %v2669_v35  ;;  %v1919_v46 = vadd.f32 %v4053_v5, %v4912_v24 }
 0x190   :  { %v2672_v60 = vmul.f32 %v4972_v54, %v2601_v26  ;;  %v2599_v34 = vadd.f32 %v2442_v53, %v1914_v18  ;;  %v1770_v21 = vpop.f32.mrf.mxu0  ;;  %v2455_v52 = vpop.f32.mrf.mxu1 }
 0x191   :  { %3122 = vst.msk [vmem:[%s5422_s4 + $0x74] sm:$0xf] %vm3092_vm2, %v3714_v14  ;;  %v3719_v20 = vpack.c.bf16 %v2806_v48, %v2806_v48  ;;  %v2804_v23 = vmax.f32 %v2740_v17, 0.0  ;;  %v2604_v41 = vadd.f32 %v4119_v61, %v1919_v46  ;;  %v1917_v25 = vadd.f32 %v1770_v21, %v4914_v30 }
 0x192   :  { %v2743_v13 = vadd.f32 %v4978_v12, %v2672_v60  ;;  %v2670_v24 = vmul.f32 %v4972_v54, %v2599_v34  ;;  %v4054_v28 = vpop.f32.mrf.mxu0  ;;  %v4120_v37 = vpop.f32.mrf.mxu1 }
 0x193   :  { %3127 = vst.msk [vmem:[%s5422_s4 + $0x88] sm:$0xf] %vm3092_vm2, %v3719_v20  ;;  %v3717_v43 = vpack.c.bf16 %v2804_v23, %v2804_v23  ;;  %v2675_v27 = vmul.f32 %v4972_v54, %v2604_v41  ;;  %v2602_v2 = vadd.f32 %v2455_v52, %v1917_v25  ;;  %v1920_v56 = vadd.f32 %v4054_v28, %v4916_v36 }
 0x194   :  { %v2807_v0 = vmax.f32 %v2743_v13, 0.0  ;;  %v2741_v30 = vadd.f32 %v4978_v12, %v2670_v24  ;;  %v1773_v39 = vpop.f32.mrf.mxu0  ;;  %v2458_v62 = vpop.f32.mrf.mxu1 }
 0x195   :  { %3125 = vst.msk [vmem:[%s5422_s4 + $0x80] sm:$0xf] %vm3092_vm2, %v3717_v43  ;;  %v2746_v50 = vadd.f32 %v4978_v12, %v2675_v27  ;;  %v2673_v45 = vmul.f32 %v4972_v54, %v2602_v2  ;;  %v2605_v29 = vadd.f32 %v4120_v37, %v1920_v56  ;;  %v1918_v31 = vadd.f32 %v1773_v39, %v4918_v40 }
 0x196   :  { %v3720_v33 = vpack.c.bf16 %v2807_v0, %v2807_v0  ;;  %v2805_v36 = vmax.f32 %v2741_v30, 0.0  ;;  %v4057_v6 = vpop.f32.mrf.mxu0  ;;  %v4123_v32 = vpop.f32.mrf.mxu1 }
 0x197   :  { %v2810_v16 = vmax.f32 %v2746_v50, 0.0  ;;  %v2744_v59 = vadd.f32 %v4978_v12, %v2673_v45  ;;  %v2676_v51 = vmul.f32 %v4972_v54, %v2605_v29  ;;  %v2603_v3 = vadd.f32 %v2458_v62, %v1918_v31  ;;  %v5441_v45 = vld [vmem:[#allocation2_spill] sm:$0xff] }
 0x198   :  { %3128 = vst.msk [vmem:[%s5422_s4 + $0x8c] sm:$0xf] %vm3092_vm2, %v3720_v33  ;;  %v3718_v4 = vpack.c.bf16 %v2805_v36, %v2805_v36  ;;  %v1923_v38 = vadd.f32 %v4057_v6, %v4920_v47  ;;  %v1786_v40 = vpop.f32.mrf.mxu0  ;;  %v2471_v11 = vpop.f32.mrf.mxu1 }
 0x199   :  { %v3723_v44 = vpack.c.bf16 %v2810_v16, %v2810_v16  ;;  %v2808_v49 = vmax.f32 %v2744_v59, 0.0  ;;  %v2747_v1 = vadd.f32 %v4978_v12, %v2676_v51  ;;  %v2674_v10 = vmul.f32 %v4972_v54, %v2603_v3  ;;  %v5442_v59 = vld [vmem:[#allocation3_spill] sm:$0xff] }
 0x19a   :  { %3126 = vst.msk [vmem:[%s5422_s4 + $0x84] sm:$0xf] %vm3092_vm2, %v3718_v4  ;;  %v2608_v57 = vadd.f32 %v4123_v32, %v1923_v38  ;;  %v1921_v58 = vadd.f32 %v1786_v40, %v4922_v55  ;;  %v4058_v8 = vpop.f32.mrf.mxu0  ;;  %v4124_v35 = vpop.f32.mrf.mxu1  ;;  %v5443_v40 = vld [vmem:[#allocation4_spill] sm:$0xff] }
 0x19b   :  { %3131 = vst.msk [vmem:[%s5422_s4 + $0x98] sm:$0xf] %vm3092_vm2, %v3723_v44  ;;  %v3721_v47 = vpack.c.bf16 %v2808_v49, %v2808_v49  ;;  %v2811_v19 = vmax.f32 %v2747_v1, 0.0  ;;  %v2745_v42 = vadd.f32 %v4978_v12, %v2674_v10  ;;  %v1924_v9 = vadd.f32 %v4058_v8, %v4924_v63 }
 0x19c   :  { %v2679_v53 = vmul.f32 %v4972_v54, %v2608_v57  ;;  %v2606_v26 = vadd.f32 %v2471_v11, %v1921_v58  ;;  %v1789_v18 = vpop.f32.mrf.mxu0  ;;  %v2474_v17 = vpop.f32.mrf.mxu1 }
 0x19d   :  { %3129 = vst.msk [vmem:[%s5422_s4 + $0x90] sm:$0xf] %vm3092_vm2, %v3721_v47  ;;  %v3724_v55 = vpack.c.bf16 %v2811_v19, %v2811_v19  ;;  %v2809_v5 = vmax.f32 %v2745_v42, 0.0  ;;  %v2609_v14 = vadd.f32 %v4124_v35, %v1924_v9  ;;  %v1922_v48 = vadd.f32 %v1789_v18, %v4926_v7  ;;  %v5444_v47 = vld [vmem:[#allocation5_spill] sm:$0xff] }
 0x19e   :  { %v2750_v46 = vadd.f32 %v4978_v12, %v2679_v53  ;;  %v2677_v63 = vmul.f32 %v4972_v54, %v2606_v26  ;;  %v4061_v61 = vpop.f32.mrf.mxu0  ;;  %v4127_v23 = vpop.f32.mrf.mxu1 }
 0x19f   :  { %3132 = vst.msk [vmem:[%s5422_s4 + $0x9c] sm:$0xf] %vm3092_vm2, %v3724_v55  ;;  %v3722_v60 = vpack.c.bf16 %v2809_v5, %v2809_v5  ;;  %v2680_v34 = vmul.f32 %v4972_v54, %v2609_v14  ;;  %v2607_v21 = vadd.f32 %v2474_v17, %v1922_v48  ;;  %v1927_v20 = vadd.f32 %v4061_v61, %v4928_v15  ;;  %v5445_v5 = vld [vmem:[#allocation6_spill] sm:$0xff] }
 0x1a0   :  { %v2814_v41 = vmax.f32 %v2750_v46, 0.0  ;;  %v2748_v7 = vadd.f32 %v4978_v12, %v2677_v63  ;;  %v1802_v25 = vpop.f32.mrf.mxu0  ;;  %v2487_v43 = vpop.f32.mrf.mxu1 }
 0x1a1   :  { %3130 = vst.msk [vmem:[%s5422_s4 + $0x94] sm:$0xf] %vm3092_vm2, %v3722_v60  ;;  %v2751_v52 = vadd.f32 %v4978_v12, %v2680_v34  ;;  %v2678_v13 = vmul.f32 %v4972_v54, %v2607_v21  ;;  %v2612_v24 = vadd.f32 %v4127_v23, %v1927_v20  ;;  %v1925_v28 = vadd.f32 %v1802_v25, %v4930_v22  ;;  %v5446_v21 = vld [vmem:[#allocation7_spill] sm:$0xff] }
 0x1a2   :  { %v3727_v27 = vpack.c.bf16 %v2814_v41, %v2814_v41  ;;  %v2812_v15 = vmax.f32 %v2748_v7, 0.0  ;;  %v4062_v2 = vpop.f32.mrf.mxu0  ;;  %v4128_v39 = vpop.f32.mrf.mxu1 }
 0x1a3   :  { %v2815_v56 = vmax.f32 %v2751_v52, 0.0  ;;  %v2749_v37 = vadd.f32 %v4978_v12, %v2678_v13  ;;  %v2683_v0 = vmul.f32 %v4972_v54, %v2612_v24  ;;  %v2610_v30 = vadd.f32 %v2487_v43, %v1925_v28 }
 0x1a4   :  { %3135 = vst.msk [vmem:[%s5422_s4 + $0xa8] sm:$0xf] %vm3092_vm2, %v3727_v27  ;;  %v3725_v50 = vpack.c.bf16 %v2812_v15, %v2812_v15  ;;  %v1928_v29 = vadd.f32 %v4062_v2, %v5441_v45  ;;  %v1805_v22 = vpop.f32.mrf.mxu0  ;;  %v2490_v6 = vpop.f32.mrf.mxu1  ;;  %v5447_v15 = vld [vmem:[#allocation8_spill] sm:$0xff] }
 0x1a5   :  { %v3728_v31 = vpack.c.bf16 %v2815_v56, %v2815_v56  ;;  %v2813_v62 = vmax.f32 %v2749_v37, 0.0  ;;  %v2754_v33 = vadd.f32 %v4978_v12, %v2683_v0  ;;  %v2681_v36 = vmul.f32 %v4972_v54, %v2610_v30 }
 0x1a6   :  { %3133 = vst.msk [vmem:[%s5422_s4 + $0xa0] sm:$0xf] %vm3092_vm2, %v3725_v50  ;;  %v2613_v16 = vadd.f32 %v4128_v39, %v1928_v29  ;;  %v1926_v51 = vadd.f32 %v1805_v22, %v5442_v59  ;;  %v4065_v3 = vpop.f32.mrf.mxu0  ;;  %v4131_v49 = vpop.f32.mrf.mxu1  ;;  %v5448_v29 = vld [vmem:[#allocation9_spill] sm:$0xff] }
 0x1a7   :  { %3136 = vst.msk [vmem:[%s5422_s4 + $0xac] sm:$0xf] %vm3092_vm2, %v3728_v31  ;;  %v3726_v32 = vpack.c.bf16 %v2813_v62, %v2813_v62  ;;  %v2818_v4 = vmax.f32 %v2754_v33, 0.0  ;;  %v2752_v38 = vadd.f32 %v4978_v12, %v2681_v36  ;;  %v1931_v44 = vadd.f32 %v4065_v3, %v5443_v40 }
 0x1a8   :  { %v2684_v1 = vmul.f32 %v4972_v54, %v2613_v16  ;;  %v2611_v10 = vadd.f32 %v2490_v6, %v1926_v51  ;;  %v1818_v11 = vpop.f32.mrf.mxu0  ;;  %v2503_v42 = vpop.f32.mrf.mxu1  ;;  %v5449_v6 = vld [vmem:[#allocation10_spill] sm:$0xff] }
 0x1a9   :  { %3134 = vst.msk [vmem:[%s5422_s4 + $0xa4] sm:$0xf] %vm3092_vm2, %v3726_v32  ;;  %v3731_v57 = vpack.c.bf16 %v2818_v4, %v2818_v4  ;;  %v2816_v58 = vmax.f32 %v2752_v38, 0.0  ;;  %v2616_v8 = vadd.f32 %v4131_v49, %v1931_v44  ;;  %v1929_v19 = vadd.f32 %v1818_v11, %v5444_v47  ;;  %v5450_v44 = vld [vmem:[#allocation11_spill] sm:$0xff] }
 0x1aa   :  { %v2755_v9 = vadd.f32 %v4978_v12, %v2684_v1  ;;  %v2682_v35 = vmul.f32 %v4972_v54, %v2611_v10  ;;  %v4066_v53 = vpop.f32.mrf.mxu0  ;;  %v4132_v48 = vpop.f32.mrf.mxu1 }
 0x1ab   :  { %3139 = vst.msk [vmem:[%s5422_s4 + $0xb8] sm:$0xf] %vm3092_vm2, %v3731_v57  ;;  %v3729_v26 = vpack.c.bf16 %v2816_v58, %v2816_v58  ;;  %v2687_v18 = vmul.f32 %v4972_v54, %v2616_v8  ;;  %v2614_v55 = vadd.f32 %v2503_v42, %v1929_v19  ;;  %v1932_v14 = vadd.f32 %v4066_v53, %v5445_v5  ;;  %v5451_v19 = vld [vmem:[#allocation12_spill] sm:$0xff] }
 0x1ac   :  { %v2819_v17 = vmax.f32 %v2755_v9, 0.0  ;;  %v2753_v46 = vadd.f32 %v4978_v12, %v2682_v35  ;;  %v1821_v63 = vpop.f32.mrf.mxu0  ;;  %v2506_v23 = vpop.f32.mrf.mxu1 }
 0x1ad   :  { %3137 = vst.msk [vmem:[%s5422_s4 + $0xb0] sm:$0xf] %vm3092_vm2, %v3729_v26  ;;  %v2758_v61 = vadd.f32 %v4978_v12, %v2687_v18  ;;  %v2685_v60 = vmul.f32 %v4972_v54, %v2614_v55  ;;  %v2617_v34 = vadd.f32 %v4132_v48, %v1932_v14  ;;  %v1930_v20 = vadd.f32 %v1821_v63, %v5446_v21  ;;  %v5452_v14 = vld [vmem:[#allocation13_spill] sm:$0xff] }
 0x1ae   :  { %v3732_v41 = vpack.c.bf16 %v2819_v17, %v2819_v17  ;;  %v2817_v7 = vmax.f32 %v2753_v46, 0.0  ;;  %v4069_v25 = vpop.f32.mrf.mxu0  ;;  %v4135_v43 = vpop.f32.mrf.mxu1 }
 0x1af   :  { %v2822_v52 = vmax.f32 %v2758_v61, 0.0  ;;  %v2756_v13 = vadd.f32 %v4978_v12, %v2685_v60  ;;  %v2688_v24 = vmul.f32 %v4972_v54, %v2617_v34  ;;  %v2615_v28 = vadd.f32 %v2506_v23, %v1930_v20 }
 0x1b0   :  { %3140 = vst.msk [vmem:[%s5422_s4 + $0xbc] sm:$0xf] %vm3092_vm2, %v3732_v41  ;;  %v3730_v27 = vpack.c.bf16 %v2817_v7, %v2817_v7  ;;  %v1935_v2 = vadd.f32 %v4069_v25, %v5447_v15  ;;  %v1834_v56 = vpop.f32.mrf.mxu0  ;;  %v2519_v50 = vpop.f32.mrf.mxu1  ;;  %v5453_v7 = vld [vmem:[#allocation14_spill] sm:$0xff] }
 0x1b1   :  { %v3735_v37 = vpack.c.bf16 %v2822_v52, %v2822_v52  ;;  %v2820_v0 = vmax.f32 %v2756_v13, 0.0  ;;  %v2759_v30 = vadd.f32 %v4978_v12, %v2688_v24  ;;  %v2686_v39 = vmul.f32 %v4972_v54, %v2615_v28 }
 0x1b2   :  { %3138 = vst.msk [vmem:[%s5422_s4 + $0xb4] sm:$0xf] %vm3092_vm2, %v3730_v27  ;;  %v2620_v45 = vadd.f32 %v4135_v43, %v1935_v2  ;;  %v1933_v22 = vadd.f32 %v1834_v56, %v5448_v29  ;;  %v4070_v31 = vpop.f32.mrf.mxu0  ;;  %v4136_v59 = vpop.f32.mrf.mxu1  ;;  %v4281_v43 = vld [vmem:[%s5420_s2] ss:$0 sm:$0xff]  ;;  %v5454_v2 = vld [vmem:[#allocation15_spill] sm:$0xff] }
 0x1b3   :  { %3143 = vst.msk [vmem:[%s5422_s4 + $0xc8] sm:$0xf] %vm3092_vm2, %v3735_v37  ;;  %v3733_v62 = vpack.c.bf16 %v2820_v0, %v2820_v0  ;;  %v2823_v33 = vmax.f32 %v2759_v30, 0.0  ;;  %v2757_v36 = vadd.f32 %v4978_v12, %v2686_v39  ;;  %v1936_v16 = vadd.f32 %v4070_v31, %v5449_v6  ;;  %v4282_v30 = vld [vmem:[%s5421_s3] ss:$0 sm:$0xff] }
 0x1b4   :  { %v2691_v51 = vmul.f32 %v4972_v54, %v2620_v45  ;;  %v2618_v3 = vadd.f32 %v2519_v50, %v1933_v22  ;;  %v1837_v32 = vpop.f32.mrf.mxu0  ;;  %v2522_v1 = vpop.f32.mrf.mxu1  ;;  %v5455_v50 = vld [vmem:[#allocation16_spill] sm:$0xff] }
 0x1b5   :  { %3141 = vst.msk [vmem:[%s5422_s4 + $0xc0] sm:$0xf] %vm3092_vm2, %v3733_v62  ;;  %v3736_v4 = vpack.c.bf16 %v2823_v33, %v2823_v33  ;;  %v2821_v38 = vmax.f32 %v2757_v36, 0.0  ;;  %v2621_v40 = vadd.f32 %v4136_v59, %v1936_v16  ;;  %v1934_v49 = vadd.f32 %v1837_v32, %v5450_v44  ;;  %v5456_v16 = vld [vmem:[#allocation17_spill] sm:$0xff] }
 0x1b6   :  { %v2762_v10 = vadd.f32 %v4978_v12, %v2691_v51  ;;  %v2689_v11 = vmul.f32 %v4972_v54, %v2618_v3  ;;  %v4073_v57 = vpop.f32.mrf.mxu0  ;;  %v4139_v9 = vpop.f32.mrf.mxu1 }
 0x1b7   :  { %3144 = vst.msk [vmem:[%s5422_s4 + $0xcc] sm:$0xf] %vm3092_vm2, %v3736_v4  ;;  %v3734_v58 = vpack.c.bf16 %v2821_v38, %v2821_v38  ;;  %v2692_v8 = vmul.f32 %v4972_v54, %v2621_v40  ;;  %v2619_v47 = vadd.f32 %v2522_v1, %v1934_v49  ;;  %v1939_v42 = vadd.f32 %v4073_v57, %v5451_v19  ;;  %v5457_v49 = vld [vmem:[#allocation18_spill] sm:$0xff] }
 0x1b8   :  { %v2826_v35 = vmax.f32 %v2762_v10, 0.0  ;;  %v2760_v53 = vadd.f32 %v4978_v12, %v2689_v11  ;;  %v1850_v26 = vpop.f32.mrf.mxu0  ;;  %v2535_v17 = vpop.f32.mrf.mxu1 }
 0x1b9   :  { %3142 = vst.msk [vmem:[%s5422_s4 + $0xc4] sm:$0xf] %vm3092_vm2, %v3734_v58  ;;  %v2763_v18 = vadd.f32 %v4978_v12, %v2692_v8  ;;  %v2690_v55 = vmul.f32 %v4972_v54, %v2619_v47  ;;  %v2624_v5 = vadd.f32 %v4139_v9, %v1939_v42  ;;  %v1937_v48 = vadd.f32 %v1850_v26, %v5452_v14  ;;  %v5458_v42 = vld [vmem:[#allocation19_spill] sm:$0xff] }
 0x1ba   :  { %v3739_v46 = vpack.c.bf16 %v2826_v35, %v2826_v35  ;;  %v2824_v63 = vmax.f32 %v2760_v53, 0.0  ;;  %v4074_v61 = vpop.f32.mrf.mxu0  ;;  %v4140_v23 = vpop.f32.mrf.mxu1 }
 0x1bb   :  { %v2827_v60 = vmax.f32 %v2763_v18, 0.0  ;;  %v2761_v34 = vadd.f32 %v4978_v12, %v2690_v55  ;;  %v2695_v21 = vmul.f32 %v4972_v54, %v2624_v5  ;;  %v2622_v20 = vadd.f32 %v2535_v17, %v1937_v48 }
 0x1bc   :  { %3147 = vst.msk [vmem:[%s5422_s4 + $0xd8] sm:$0xf] %vm3092_vm2, %v3739_v46  ;;  %v3737_v41 = vpack.c.bf16 %v2824_v63, %v2824_v63  ;;  %v1940_v25 = vadd.f32 %v4074_v61, %v5453_v7  ;;  %v1853_v52 = vpop.f32.mrf.mxu0  ;;  %v2538_v27 = vpop.f32.mrf.mxu1 }
 0x1bd   :  { %v3740_v13 = vpack.c.bf16 %v2827_v60, %v2827_v60  ;;  %v2825_v24 = vmax.f32 %v2761_v34, 0.0  ;;  %v2766_v28 = vadd.f32 %v4978_v12, %v2695_v21  ;;  %v2693_v54 = vmul.f32 %v4281_v43, %v2622_v20 }
 0x1be   :  { %3145 = vst.msk [vmem:[%s5422_s4 + $0xd0] sm:$0xf] %vm3092_vm2, %v3737_v41  ;;  %v2625_v15 = vadd.f32 %v4140_v23, %v1940_v25  ;;  %v1938_v56 = vadd.f32 %v1853_v52, %v5454_v2  ;;  %v4077_v37 = vpop.f32.mrf.mxu0  ;;  %v4143_v29 = vpop.f32.mrf.mxu1 }
 0x1bf   :  { %3148 = vst.msk [vmem:[%s5422_s4 + $0xdc] sm:$0xf] %vm3092_vm2, %v3740_v13  ;;  %v3738_v12 = vpack.c.bf16 %v2825_v24, %v2825_v24  ;;  %v2830_v0 = vmax.f32 %v2766_v28, 0.0  ;;  %v2764_v39 = vadd.f32 %v4282_v30, %v2693_v54  ;;  %v1943_v45 = vadd.f32 %v4077_v37, %v5455_v50 }
 0x1c0   :  { %v2696_v22 = vmul.f32 %v4281_v43, %v2625_v15  ;;  %v2623_v31 = vadd.f32 %v2538_v27, %v1938_v56  ;;  %v1866_v62 = vpop.f32.mrf.mxu0  ;;  %v2551_v51 = vpop.f32.mrf.mxu1 }
 0x1c1   :  { %3146 = vst.msk [vmem:[%s5422_s4 + $0xd4] sm:$0xf] %vm3092_vm2, %v3738_v12  ;;  %v3743_v33 = vpack.c.bf16 %v2830_v0, %v2830_v0  ;;  %v2828_v36 = vmax.f32 %v2764_v39, 0.0  ;;  %v2628_v6 = vadd.f32 %v4143_v29, %v1943_v45  ;;  %v1941_v59 = vadd.f32 %v1866_v62, %v5456_v16 }
 0x1c2   :  { %v2767_v3 = vadd.f32 %v4282_v30, %v2696_v22  ;;  %v2694_v32 = vmul.f32 %v4281_v43, %v2623_v31  ;;  %v4078_v4 = vpop.f32.mrf.mxu0  ;;  %v4144_v10 = vpop.f32.mrf.mxu1 }
 0x1c3   :  { %3151 = vst.msk [vmem:[%s5422_s4 + $0xe8] sm:$0xf] %vm3092_vm2, %v3743_v33  ;;  %v3741_v38 = vpack.c.bf16 %v2828_v36, %v2828_v36  ;;  %v2699_v40 = vmul.f32 %v4281_v43, %v2628_v6  ;;  %v2626_v44 = vadd.f32 %v2551_v51, %v1941_v59  ;;  %v1944_v1 = vadd.f32 %v4078_v4, %v5457_v49 }
 0x1c4   :  { %v2831_v11 = vmax.f32 %v2767_v3, 0.0  ;;  %v2765_v57 = vadd.f32 %v4282_v30, %v2694_v32  ;;  %v1869_v58 = vpop.f32.mrf.mxu0  ;;  %v2554_v26 = vpop.f32.mrf.mxu1 }
 0x1c5   :  { %3149 = vst.msk [vmem:[%s5422_s4 + $0xe0] sm:$0xf] %vm3092_vm2, %v3741_v38  ;;  %v2770_v8 = vadd.f32 %v4282_v30, %v2699_v40  ;;  %v2697_v47 = vmul.f32 %v4281_v43, %v2626_v44  ;;  %v2629_v19 = vadd.f32 %v4144_v10, %v1944_v1  ;;  %v1942_v9 = vadd.f32 %v1869_v58, %v5458_v42 }
 0x1c6   :  { %v3744_v35 = vpack.c.bf16 %v2831_v11, %v2831_v11  ;;  %v2829_v53 = vmax.f32 %v2765_v57, 0.0 }
 0x1c7   :  { %v2834_v18 = vmax.f32 %v2770_v8, 0.0  ;;  %v2768_v55 = vadd.f32 %v4282_v30, %v2697_v47  ;;  %v2700_v5 = vmul.f32 %v4281_v43, %v2629_v19  ;;  %v2627_v14 = vadd.f32 %v2554_v26, %v1942_v9 }
 0x1c8   :  { %3152 = vst.msk [vmem:[%s5422_s4 + $0xec] sm:$0xf] %vm3092_vm2, %v3744_v35  ;;  %v3742_v48 = vpack.c.bf16 %v2829_v53, %v2829_v53 }
 0x1c9   :  { %v3747_v17 = vpack.c.bf16 %v2834_v18, %v2834_v18  ;;  %v2832_v46 = vmax.f32 %v2768_v55, 0.0  ;;  %v2771_v63 = vadd.f32 %v4282_v30, %v2700_v5  ;;  %v2698_v61 = vmul.f32 %v4281_v43, %v2627_v14 }
 0x1ca   :  { %3150 = vst.msk [vmem:[%s5422_s4 + $0xe4] sm:$0xf] %vm3092_vm2, %v3742_v48 }
 0x1cb   :  { %3155 = vst.msk [vmem:[%s5422_s4 + $0xf8] sm:$0xf] %vm3092_vm2, %v3747_v17  ;;  %v3745_v60 = vpack.c.bf16 %v2832_v46, %v2832_v46  ;;  %v2835_v34 = vmax.f32 %v2771_v63, 0.0  ;;  %v2769_v21 = vadd.f32 %v4282_v30, %v2698_v61 }
 0x1cd   :  { %3153 = vst.msk [vmem:[%s5422_s4 + $0xf0] sm:$0xf] %vm3092_vm2, %v3745_v60  ;;  %v3748_v20 = vpack.c.bf16 %v2835_v34, %v2835_v34  ;;  %v2833_v23 = vmax.f32 %v2769_v21, 0.0 }
 0x1cf   :  { %3156 = vst.msk [vmem:[%s5422_s4 + $0xfc] sm:$0xf] %vm3092_vm2, %v3748_v20  ;;  %v3746_v41 = vpack.c.bf16 %v2833_v23, %v2833_v23 }
 0x1d1   :  { %3154 = vst.msk [vmem:[%s5422_s4 + $0xf4] sm:$0xf] %vm3092_vm2, %v3746_v41 }

// kernel: upernet_forward.5
= control target key start
LH: loop header
LB: loop body
LE: loop exit
PB: predicated region body
PF: predicated region fallthrough
CT: control target
= control target key end

     0   :  { %vm250_vm0 = vcmask 130048   ;;  %vm1098_vm1 = vcmask 519168   ;;  %s2046_s1 = inlined_call_operand.vmem [shape: bf16[16,64], index: 1, kind: input, shape index: {}]   ;;  %s2047_s0 = inlined_call_operand.vmem [shape: bf16[512,16], index: 0, kind: input, shape index: {}]   ;;  %s2048_s2 = inlined_call_operand.vmem [shape: f32[1,64], index: 2, kind: input, shape index: {}]   ;;  %s2049_s3 = inlined_call_operand.vmem [shape: f32[1,64], index: 3, kind: input, shape index: {}]   ;;  %s2050_s4 = inlined_call_operand.vmem [shape: bf16[512,64], index: 4, kind: output, shape index: {}]  }
   0x1   :  { %v1463_v0 = vld [vmem:[%s2046_s1] sm:$0xff]   ;;  %v1466_v3 = vld [vmem:[%s2047_s0 + $0x8] sm:$0xff]   ;;  %v1468_v5 = vld [vmem:[%s2047_s0 + $0x10] sm:$0xff]  }
   0x2   :  { %v1464_v1 = vld [vmem:[%s2047_s0] sm:$0xff]   ;;  %1395 = vmatprep.subr.bf16.mxu0 %v1463_v0  ;;  %1461 = vmatprep.subr.bf16.mxu1 %v1463_v0  ;;  %v1467_v4 = vld [vmem:[%s2047_s0 + $0x88] sm:$0xff]   ;;  %v1469_v6 = vld [vmem:[%s2047_s0 + $0x90] sm:$0xff]  }
   0x3   :  { %v1465_v2 = vld [vmem:[%s2047_s0 + $0x80] sm:$0xff]   ;;  %1396 = vmatpush3.bf16.msra.mxu0 %v1463_v0  ;;  %1462 = vmatpush3.bf16.msra.mxu1 %v1463_v0  ;;  %v1470_v7 = vld [vmem:[%s2047_s0 + $0x18] sm:$0xff]   ;;  %v1474_v11 = vld [vmem:[%s2047_s0 + $0x28] sm:$0xff]  }
   0x4   :  { %1397 = vmatprep.mubr.msk.bf16.mxu0 %vm250_vm0, %v1464_v1  ;;  %1429 = vmatprep.mubr.msk.bf16.mxu1 %vm250_vm0, %v1465_v2  ;;  %v1471_v8 = vld [vmem:[%s2047_s0 + $0x98] sm:$0xff]   ;;  %v1472_v9 = vld [vmem:[%s2047_s0 + $0x20] sm:$0xff]   ;;  %v1475_v12 = vld [vmem:[%s2047_s0 + $0xa8] sm:$0xff]  }
   0x5   :  { %v1473_v10 = vld [vmem:[%s2047_s0 + $0xa0] sm:$0xff]   ;;  %v1476_v13 = vld [vmem:[%s2047_s0 + $0x30] sm:$0xff]   ;;  %v1478_v15 = vld [vmem:[%s2047_s0 + $0x38] sm:$0xff]  }
   0x6   :  { %1398 = vmatmul.mubr.msk.bf16.vlgmr.msra.gmra.mxu0 %vm250_vm0, %v1466_v3  ;;  %1430 = vmatmul.mubr.msk.bf16.vlgmr.msra.gmra.mxu1 %vm250_vm0, %v1467_v4  ;;  %v1477_v14 = vld [vmem:[%s2047_s0 + $0xb0] sm:$0xff]   ;;  %v1479_v16 = vld [vmem:[%s2047_s0 + $0xb8] sm:$0xff]   ;;  %v1480_v17 = vld [vmem:[%s2047_s0 + $0x40] sm:$0xff]  }
   0x7   :  { %1401 = vmatprep.mubr.msk.bf16.mxu0 %vm250_vm0, %v1468_v5  ;;  %1433 = vmatprep.mubr.msk.bf16.mxu1 %vm250_vm0, %v1469_v6  ;;  %v1481_v18 = vld [vmem:[%s2047_s0 + $0xc0] sm:$0xff]   ;;  %v1482_v19 = vld [vmem:[%s2047_s0 + $0x48] sm:$0xff]   ;;  %v1484_v21 = vld [vmem:[%s2047_s0 + $0x50] sm:$0xff]  }
   0x8   :  { %v1483_v20 = vld [vmem:[%s2047_s0 + $0xc8] sm:$0xff]   ;;  %v1485_v22 = vld [vmem:[%s2047_s0 + $0xd0] sm:$0xff]   ;;  %v1486_v23 = vld [vmem:[%s2047_s0 + $0x58] sm:$0xff]  }
   0x9   :  { %v1487_v24 = vld [vmem:[%s2047_s0 + $0xd8] sm:$0xff]   ;;  %v1488_v25 = vld [vmem:[%s2047_s0 + $0x60] sm:$0xff]   ;;  %v1490_v27 = vld [vmem:[%s2047_s0 + $0x68] sm:$0xff]  }
   0xa   :  { %v1489_v26 = vld [vmem:[%s2047_s0 + $0xe0] sm:$0xff]   ;;  %v1491_v28 = vld [vmem:[%s2047_s0 + $0xe8] sm:$0xff]   ;;  %v1492_v29 = vld [vmem:[%s2047_s0 + $0x70] sm:$0xff]  }
   0xb   :  { %v1493_v30 = vld [vmem:[%s2047_s0 + $0xf0] sm:$0xff]   ;;  %v1494_v31 = vld [vmem:[%s2047_s0 + $0x78] sm:$0xff]   ;;  %v1655_v33 = vld [vmem:[%s2048_s2] ss:$0 sm:$0xff] }
   0xc   :  { %v1495_v32 = vld [vmem:[%s2047_s0 + $0xf8] sm:$0xff]   ;;  %v1660_v35 = vld [vmem:[%s2049_s3] ss:$0 sm:$0xff] }
   0xe   :  { %1402 = vmatmul.mubr.msk.bf16.gmra.mxu0 %vm250_vm0, %v1470_v7  ;;  %1434 = vmatmul.mubr.msk.bf16.gmra.mxu1 %vm250_vm0, %v1471_v8 }
   0xf   :  { %1405 = vmatprep.mubr.msk.bf16.mxu0 %vm250_vm0, %v1472_v9  ;;  %1437 = vmatprep.mubr.msk.bf16.mxu1 %vm250_vm0, %v1473_v10 }
  0x16   :  { %1406 = vmatmul.mubr.msk.bf16.gmra.mxu0 %vm250_vm0, %v1474_v11  ;;  %1438 = vmatmul.mubr.msk.bf16.gmra.mxu1 %vm250_vm0, %v1475_v12 }
  0x17   :  { %1409 = vmatprep.mubr.msk.bf16.mxu0 %vm250_vm0, %v1476_v13  ;;  %1441 = vmatprep.mubr.msk.bf16.mxu1 %vm250_vm0, %v1477_v14 }
  0x1e   :  { %1410 = vmatmul.mubr.msk.bf16.gmra.mxu0 %vm250_vm0, %v1478_v15  ;;  %1442 = vmatmul.mubr.msk.bf16.gmra.mxu1 %vm250_vm0, %v1479_v16 }
  0x1f   :  { %1413 = vmatprep.mubr.msk.bf16.mxu0 %vm250_vm0, %v1480_v17  ;;  %1445 = vmatprep.mubr.msk.bf16.mxu1 %vm250_vm0, %v1481_v18 }
  0x26   :  { %1414 = vmatmul.mubr.msk.bf16.gmra.mxu0 %vm250_vm0, %v1482_v19  ;;  %1446 = vmatmul.mubr.msk.bf16.gmra.mxu1 %vm250_vm0, %v1483_v20 }
  0x27   :  { %1417 = vmatprep.mubr.msk.bf16.mxu0 %vm250_vm0, %v1484_v21  ;;  %1449 = vmatprep.mubr.msk.bf16.mxu1 %vm250_vm0, %v1485_v22 }
  0x2e   :  { %1418 = vmatmul.mubr.msk.bf16.gmra.mxu0 %vm250_vm0, %v1486_v23  ;;  %1450 = vmatmul.mubr.msk.bf16.gmra.mxu1 %vm250_vm0, %v1487_v24 }
  0x2f   :  { %1421 = vmatprep.mubr.msk.bf16.mxu0 %vm250_vm0, %v1488_v25  ;;  %1453 = vmatprep.mubr.msk.bf16.mxu1 %vm250_vm0, %v1489_v26 }
  0x36   :  { %1422 = vmatmul.mubr.msk.bf16.gmra.mxu0 %vm250_vm0, %v1490_v27  ;;  %1454 = vmatmul.mubr.msk.bf16.gmra.mxu1 %vm250_vm0, %v1491_v28 }
  0x37   :  { %1425 = vmatprep.mubr.msk.bf16.mxu0 %vm250_vm0, %v1492_v29  ;;  %1457 = vmatprep.mubr.msk.bf16.mxu1 %vm250_vm0, %v1493_v30 }
  0x3e   :  { %1426 = vmatmul.mubr.msk.bf16.gmra.mxu0 %vm250_vm0, %v1494_v31  ;;  %1458 = vmatmul.mubr.msk.bf16.gmra.mxu1 %vm250_vm0, %v1495_v32 }
  0xc6   :  { %v1399_v34 = vpop.f32.mrf.mxu0  ;;  %v1431_v36 = vpop.f32.mrf.mxu1 }
  0xc7   :  { %v645_v37 = vmul.f32 %v1399_v34, %v1655_v33  ;;  %v677_v38 = vmul.f32 %v1431_v36, %v1655_v33 }
  0xc8   :  { %v381_v39 = vpop.f32.mrf.mxu0  ;;  %v509_v40 = vpop.f32.mrf.mxu1 }
  0xc9   :  { %v716_v41 = vadd.f32 %v1660_v35, %v645_v37  ;;  %v748_v42 = vadd.f32 %v1660_v35, %v677_v38  ;;  %v643_v43 = vmul.f32 %v1655_v33, %v381_v39  ;;  %v675_v44 = vmul.f32 %v1655_v33, %v509_v40 }
  0xca   :  { %v1400_v45 = vpop.f32.mrf.mxu0  ;;  %v1432_v46 = vpop.f32.mrf.mxu1 }
  0xcb   :  { %v780_v47 = vmax.f32 %v716_v41, 0.0  ;;  %v812_v48 = vmax.f32 %v748_v42, 0.0  ;;  %v714_v49 = vadd.f32 %v1660_v35, %v643_v43  ;;  %v746_v50 = vadd.f32 %v1660_v35, %v675_v44 }
  0xcc   :  { %v646_v51 = vmul.f32 %v1400_v45, %v1655_v33  ;;  %v678_v52 = vmul.f32 %v1432_v46, %v1655_v33  ;;  %v384_v53 = vpop.f32.mrf.mxu0  ;;  %v512_v54 = vpop.f32.mrf.mxu1 }
  0xcd   :  { %v1300_v55 = vpack.c.bf16 %v780_v47, %v780_v47  ;;  %v1332_v56 = vpack.c.bf16 %v812_v48, %v812_v48  ;;  %v778_v57 = vmax.f32 %v714_v49, 0.0  ;;  %v810_v58 = vmax.f32 %v746_v50, 0.0 }
  0xce   :  { %v717_v59 = vadd.f32 %v1660_v35, %v646_v51  ;;  %v749_v60 = vadd.f32 %v1660_v35, %v678_v52  ;;  %v644_v61 = vmul.f32 %v1655_v33, %v384_v53  ;;  %v676_v62 = vmul.f32 %v1655_v33, %v512_v54  ;;  %v1403_v63 = vpop.f32.mrf.mxu0  ;;  %v1435_v0 = vpop.f32.mrf.mxu1 }
  0xcf   :  { %1101 = vst.msk [vmem:[%s2050_s4 + $0x8] sm:$0xf] %vm1098_vm1, %v1300_v55  ;;  %1133 = vst.msk [vmem:[%s2050_s4 + $0x88] sm:$0xf] %vm1098_vm1, %v1332_v56  ;;  %v1298_v1 = vpack.c.bf16 %v778_v57, %v778_v57  ;;  %v1330_v2 = vpack.c.bf16 %v810_v58, %v810_v58  ;;  %v649_v3 = vmul.f32 %v1403_v63, %v1655_v33 }
  0xd0   :  { %v681_v4 = vmul.f32 %v1435_v0, %v1655_v33  ;;  %v781_v5 = vmax.f32 %v717_v59, 0.0  ;;  %v813_v6 = vmax.f32 %v749_v60, 0.0  ;;  %v715_v7 = vadd.f32 %v1660_v35, %v644_v61  ;;  %v397_v9 = vpop.f32.mrf.mxu0  ;;  %v525_v10 = vpop.f32.mrf.mxu1 }
  0xd1   :  { %v747_v8 = vadd.f32 %v1660_v35, %v676_v62  ;;  %1099 = vst.msk [vmem:[%s2050_s4] sm:$0xf] %vm1098_vm1, %v1298_v1  ;;  %1131 = vst.msk [vmem:[%s2050_s4 + $0x80] sm:$0xf] %vm1098_vm1, %v1330_v2  ;;  %v720_v11 = vadd.f32 %v1660_v35, %v649_v3  ;;  %v647_v13 = vmul.f32 %v1655_v33, %v397_v9 }
  0xd2   :  { %v752_v12 = vadd.f32 %v1660_v35, %v681_v4  ;;  %v679_v14 = vmul.f32 %v1655_v33, %v525_v10  ;;  %v1301_v15 = vpack.c.bf16 %v781_v5, %v781_v5  ;;  %v1333_v16 = vpack.c.bf16 %v813_v6, %v813_v6  ;;  %v1404_v19 = vpop.f32.mrf.mxu0  ;;  %v1436_v20 = vpop.f32.mrf.mxu1 }
  0xd3   :  { %v779_v17 = vmax.f32 %v715_v7, 0.0  ;;  %v811_v18 = vmax.f32 %v747_v8, 0.0  ;;  %v784_v21 = vmax.f32 %v720_v11, 0.0  ;;  %v718_v23 = vadd.f32 %v1660_v35, %v647_v13 }
  0xd4   :  { %v816_v22 = vmax.f32 %v752_v12, 0.0  ;;  %v750_v24 = vadd.f32 %v1660_v35, %v679_v14  ;;  %1102 = vst.msk [vmem:[%s2050_s4 + $0xc] sm:$0xf] %vm1098_vm1, %v1301_v15  ;;  %1134 = vst.msk [vmem:[%s2050_s4 + $0x8c] sm:$0xf] %vm1098_vm1, %v1333_v16  ;;  %v650_v27 = vmul.f32 %v1404_v19, %v1655_v33  ;;  %v682_v28 = vmul.f32 %v1436_v20, %v1655_v33  ;;  %v400_v29 = vpop.f32.mrf.mxu0  ;;  %v528_v30 = vpop.f32.mrf.mxu1 }
  0xd5   :  { %v1299_v25 = vpack.c.bf16 %v779_v17, %v779_v17  ;;  %v1331_v26 = vpack.c.bf16 %v811_v18, %v811_v18  ;;  %v1304_v31 = vpack.c.bf16 %v784_v21, %v784_v21  ;;  %v782_v34 = vmax.f32 %v718_v23, 0.0 }
  0xd6   :  { %v1336_v32 = vpack.c.bf16 %v816_v22, %v816_v22  ;;  %v814_v36 = vmax.f32 %v750_v24, 0.0  ;;  %v721_v37 = vadd.f32 %v1660_v35, %v650_v27  ;;  %v753_v38 = vadd.f32 %v1660_v35, %v682_v28  ;;  %v1407_v41 = vpop.f32.mrf.mxu0  ;;  %v1439_v42 = vpop.f32.mrf.mxu1 }
  0xd7   :  { %1100 = vst.msk [vmem:[%s2050_s4 + $0x4] sm:$0xf] %vm1098_vm1, %v1299_v25  ;;  %1132 = vst.msk [vmem:[%s2050_s4 + $0x84] sm:$0xf] %vm1098_vm1, %v1331_v26  ;;  %v648_v39 = vmul.f32 %v1655_v33, %v400_v29  ;;  %v680_v40 = vmul.f32 %v1655_v33, %v528_v30  ;;  %v1302_v43 = vpack.c.bf16 %v782_v34, %v782_v34 }
  0xd8   :  { %1105 = vst.msk [vmem:[%s2050_s4 + $0x18] sm:$0xf] %vm1098_vm1, %v1304_v31  ;;  %1137 = vst.msk [vmem:[%s2050_s4 + $0x98] sm:$0xf] %vm1098_vm1, %v1336_v32  ;;  %v1334_v44 = vpack.c.bf16 %v814_v36, %v814_v36  ;;  %v653_v45 = vmul.f32 %v1407_v41, %v1655_v33  ;;  %v685_v46 = vmul.f32 %v1439_v42, %v1655_v33  ;;  %v785_v47 = vmax.f32 %v721_v37, 0.0  ;;  %v413_v51 = vpop.f32.mrf.mxu0  ;;  %v541_v52 = vpop.f32.mrf.mxu1 }
  0xd9   :  { %v817_v48 = vmax.f32 %v753_v38, 0.0  ;;  %v719_v49 = vadd.f32 %v1660_v35, %v648_v39  ;;  %v751_v50 = vadd.f32 %v1660_v35, %v680_v40  ;;  %1103 = vst.msk [vmem:[%s2050_s4 + $0x10] sm:$0xf] %vm1098_vm1, %v1302_v43  ;;  %v651_v55 = vmul.f32 %v1655_v33, %v413_v51 }
  0xda   :  { %1135 = vst.msk [vmem:[%s2050_s4 + $0x90] sm:$0xf] %vm1098_vm1, %v1334_v44  ;;  %v724_v53 = vadd.f32 %v1660_v35, %v653_v45  ;;  %v756_v54 = vadd.f32 %v1660_v35, %v685_v46  ;;  %v683_v56 = vmul.f32 %v1655_v33, %v541_v52  ;;  %v1305_v57 = vpack.c.bf16 %v785_v47, %v785_v47  ;;  %v1408_v61 = vpop.f32.mrf.mxu0  ;;  %v1440_v62 = vpop.f32.mrf.mxu1 }
  0xdb   :  { %v1337_v58 = vpack.c.bf16 %v817_v48, %v817_v48  ;;  %v783_v59 = vmax.f32 %v719_v49, 0.0  ;;  %v815_v60 = vmax.f32 %v751_v50, 0.0  ;;  %v722_v1 = vadd.f32 %v1660_v35, %v651_v55 }
  0xdc   :  { %v788_v63 = vmax.f32 %v724_v53, 0.0  ;;  %v820_v0 = vmax.f32 %v756_v54, 0.0  ;;  %v754_v2 = vadd.f32 %v1660_v35, %v683_v56  ;;  %1106 = vst.msk [vmem:[%s2050_s4 + $0x1c] sm:$0xf] %vm1098_vm1, %v1305_v57  ;;  %v654_v5 = vmul.f32 %v1408_v61, %v1655_v33  ;;  %v416_v7 = vpop.f32.mrf.mxu0  ;;  %v544_v8 = vpop.f32.mrf.mxu1 }
  0xdd   :  { %1138 = vst.msk [vmem:[%s2050_s4 + $0x9c] sm:$0xf] %vm1098_vm1, %v1337_v58  ;;  %v1303_v3 = vpack.c.bf16 %v783_v59, %v783_v59  ;;  %v1335_v4 = vpack.c.bf16 %v815_v60, %v815_v60  ;;  %v686_v6 = vmul.f32 %v1440_v62, %v1655_v33  ;;  %v786_v11 = vmax.f32 %v722_v1, 0.0 }
  0xde   :  { %v1308_v9 = vpack.c.bf16 %v788_v63, %v788_v63  ;;  %v1340_v10 = vpack.c.bf16 %v820_v0, %v820_v0  ;;  %v818_v12 = vmax.f32 %v754_v2, 0.0  ;;  %v725_v13 = vadd.f32 %v1660_v35, %v654_v5  ;;  %v1411_v17 = vpop.f32.mrf.mxu0  ;;  %v1443_v18 = vpop.f32.mrf.mxu1 }
  0xdf   :  { %1104 = vst.msk [vmem:[%s2050_s4 + $0x14] sm:$0xf] %vm1098_vm1, %v1303_v3  ;;  %1136 = vst.msk [vmem:[%s2050_s4 + $0x94] sm:$0xf] %vm1098_vm1, %v1335_v4  ;;  %v757_v14 = vadd.f32 %v1660_v35, %v686_v6  ;;  %v652_v15 = vmul.f32 %v1655_v33, %v416_v7  ;;  %v684_v16 = vmul.f32 %v1655_v33, %v544_v8 }
  0xe0   :  { %1109 = vst.msk [vmem:[%s2050_s4 + $0x28] sm:$0xf] %vm1098_vm1, %v1308_v9  ;;  %1141 = vst.msk [vmem:[%s2050_s4 + $0xa8] sm:$0xf] %vm1098_vm1, %v1340_v10  ;;  %v1306_v19 = vpack.c.bf16 %v786_v11, %v786_v11  ;;  %v1338_v20 = vpack.c.bf16 %v818_v12, %v818_v12  ;;  %v657_v21 = vmul.f32 %v1411_v17, %v1655_v33  ;;  %v789_v23 = vmax.f32 %v725_v13, 0.0  ;;  %v429_v27 = vpop.f32.mrf.mxu0  ;;  %v557_v28 = vpop.f32.mrf.mxu1 }
  0xe1   :  { %v689_v22 = vmul.f32 %v1443_v18, %v1655_v33  ;;  %v821_v24 = vmax.f32 %v757_v14, 0.0  ;;  %v723_v25 = vadd.f32 %v1660_v35, %v652_v15  ;;  %v755_v26 = vadd.f32 %v1660_v35, %v684_v16 }
  0xe2   :  { %1107 = vst.msk [vmem:[%s2050_s4 + $0x20] sm:$0xf] %vm1098_vm1, %v1306_v19  ;;  %1139 = vst.msk [vmem:[%s2050_s4 + $0xa0] sm:$0xf] %vm1098_vm1, %v1338_v20  ;;  %v728_v29 = vadd.f32 %v1660_v35, %v657_v21  ;;  %v655_v31 = vmul.f32 %v1655_v33, %v429_v27  ;;  %v687_v32 = vmul.f32 %v1655_v33, %v557_v28  ;;  %v1412_v39 = vpop.f32.mrf.mxu0  ;;  %v1444_v40 = vpop.f32.mrf.mxu1 }
  0xe3   :  { %v760_v30 = vadd.f32 %v1660_v35, %v689_v22  ;;  %v1309_v34 = vpack.c.bf16 %v789_v23, %v789_v23  ;;  %v1341_v36 = vpack.c.bf16 %v821_v24, %v821_v24  ;;  %v787_v37 = vmax.f32 %v723_v25, 0.0 }
  0xe4   :  { %v819_v38 = vmax.f32 %v755_v26, 0.0  ;;  %v792_v41 = vmax.f32 %v728_v29, 0.0  ;;  %v726_v43 = vadd.f32 %v1660_v35, %v655_v31  ;;  %v758_v44 = vadd.f32 %v1660_v35, %v687_v32  ;;  %v432_v49 = vpop.f32.mrf.mxu0  ;;  %v560_v50 = vpop.f32.mrf.mxu1 }
  0xe5   :  { %v824_v42 = vmax.f32 %v760_v30, 0.0  ;;  %1110 = vst.msk [vmem:[%s2050_s4 + $0x2c] sm:$0xf] %vm1098_vm1, %v1309_v34  ;;  %1142 = vst.msk [vmem:[%s2050_s4 + $0xac] sm:$0xf] %vm1098_vm1, %v1341_v36  ;;  %v1307_v45 = vpack.c.bf16 %v787_v37, %v787_v37  ;;  %v658_v47 = vmul.f32 %v1412_v39, %v1655_v33  ;;  %v690_v48 = vmul.f32 %v1444_v40, %v1655_v33 }
  0xe6   :  { %v1339_v46 = vpack.c.bf16 %v819_v38, %v819_v38  ;;  %v1312_v51 = vpack.c.bf16 %v792_v41, %v792_v41  ;;  %v790_v53 = vmax.f32 %v726_v43, 0.0  ;;  %v822_v54 = vmax.f32 %v758_v44, 0.0  ;;  %v1415_v59 = vpop.f32.mrf.mxu0  ;;  %v1447_v60 = vpop.f32.mrf.mxu1 }
  0xe7   :  { %v1344_v52 = vpack.c.bf16 %v824_v42, %v824_v42  ;;  %1108 = vst.msk [vmem:[%s2050_s4 + $0x24] sm:$0xf] %vm1098_vm1, %v1307_v45  ;;  %v729_v55 = vadd.f32 %v1660_v35, %v658_v47  ;;  %v761_v56 = vadd.f32 %v1660_v35, %v690_v48  ;;  %v656_v57 = vmul.f32 %v1655_v33, %v432_v49 }
  0xe8   :  { %1140 = vst.msk [vmem:[%s2050_s4 + $0xa4] sm:$0xf] %vm1098_vm1, %v1339_v46  ;;  %v688_v58 = vmul.f32 %v1655_v33, %v560_v50  ;;  %1113 = vst.msk [vmem:[%s2050_s4 + $0x38] sm:$0xf] %vm1098_vm1, %v1312_v51  ;;  %v1310_v61 = vpack.c.bf16 %v790_v53, %v790_v53  ;;  %v1342_v62 = vpack.c.bf16 %v822_v54, %v822_v54  ;;  %v445_v5 = vpop.f32.mrf.mxu0  ;;  %v573_v6 = vpop.f32.mrf.mxu1 }
  0xe9   :  { %1145 = vst.msk [vmem:[%s2050_s4 + $0xb8] sm:$0xf] %vm1098_vm1, %v1344_v52  ;;  %v661_v63 = vmul.f32 %v1415_v59, %v1655_v33  ;;  %v693_v0 = vmul.f32 %v1447_v60, %v1655_v33  ;;  %v793_v1 = vmax.f32 %v729_v55, 0.0  ;;  %v825_v2 = vmax.f32 %v761_v56, 0.0 }
  0xea   :  { %v727_v3 = vadd.f32 %v1660_v35, %v656_v57  ;;  %v759_v4 = vadd.f32 %v1660_v35, %v688_v58  ;;  %1111 = vst.msk [vmem:[%s2050_s4 + $0x30] sm:$0xf] %vm1098_vm1, %v1310_v61  ;;  %1143 = vst.msk [vmem:[%s2050_s4 + $0xb0] sm:$0xf] %vm1098_vm1, %v1342_v62  ;;  %v659_v9 = vmul.f32 %v1655_v33, %v445_v5  ;;  %v1416_v15 = vpop.f32.mrf.mxu0  ;;  %v1448_v16 = vpop.f32.mrf.mxu1 }
  0xeb   :  { %v732_v7 = vadd.f32 %v1660_v35, %v661_v63  ;;  %v764_v8 = vadd.f32 %v1660_v35, %v693_v0  ;;  %v691_v10 = vmul.f32 %v1655_v33, %v573_v6  ;;  %v1313_v11 = vpack.c.bf16 %v793_v1, %v793_v1 }
  0xec   :  { %v1345_v12 = vpack.c.bf16 %v825_v2, %v825_v2  ;;  %v791_v13 = vmax.f32 %v727_v3, 0.0  ;;  %v823_v14 = vmax.f32 %v759_v4, 0.0  ;;  %v730_v19 = vadd.f32 %v1660_v35, %v659_v9  ;;  %v448_v25 = vpop.f32.mrf.mxu0  ;;  %v576_v26 = vpop.f32.mrf.mxu1 }
  0xed   :  { %v796_v17 = vmax.f32 %v732_v7, 0.0  ;;  %v828_v18 = vmax.f32 %v764_v8, 0.0  ;;  %v762_v20 = vadd.f32 %v1660_v35, %v691_v10  ;;  %1114 = vst.msk [vmem:[%s2050_s4 + $0x3c] sm:$0xf] %vm1098_vm1, %v1313_v11  ;;  %v662_v23 = vmul.f32 %v1416_v15, %v1655_v33 }
  0xee   :  { %1146 = vst.msk [vmem:[%s2050_s4 + $0xbc] sm:$0xf] %vm1098_vm1, %v1345_v12  ;;  %v1311_v21 = vpack.c.bf16 %v791_v13, %v791_v13  ;;  %v1343_v22 = vpack.c.bf16 %v823_v14, %v823_v14  ;;  %v694_v24 = vmul.f32 %v1448_v16, %v1655_v33  ;;  %v794_v29 = vmax.f32 %v730_v19, 0.0  ;;  %v1419_v37 = vpop.f32.mrf.mxu0  ;;  %v1451_v38 = vpop.f32.mrf.mxu1 }
  0xef   :  { %v1316_v27 = vpack.c.bf16 %v796_v17, %v796_v17  ;;  %v1348_v28 = vpack.c.bf16 %v828_v18, %v828_v18  ;;  %v826_v30 = vmax.f32 %v762_v20, 0.0  ;;  %v733_v31 = vadd.f32 %v1660_v35, %v662_v23 }
  0xf0   :  { %1112 = vst.msk [vmem:[%s2050_s4 + $0x34] sm:$0xf] %vm1098_vm1, %v1311_v21  ;;  %1144 = vst.msk [vmem:[%s2050_s4 + $0xb4] sm:$0xf] %vm1098_vm1, %v1343_v22  ;;  %v765_v32 = vadd.f32 %v1660_v35, %v694_v24  ;;  %v660_v34 = vmul.f32 %v1655_v33, %v448_v25  ;;  %v692_v36 = vmul.f32 %v1655_v33, %v576_v26  ;;  %v461_v47 = vpop.f32.mrf.mxu0  ;;  %v589_v48 = vpop.f32.mrf.mxu1 }
  0xf1   :  { %1117 = vst.msk [vmem:[%s2050_s4 + $0x48] sm:$0xf] %vm1098_vm1, %v1316_v27  ;;  %1149 = vst.msk [vmem:[%s2050_s4 + $0xc8] sm:$0xf] %vm1098_vm1, %v1348_v28  ;;  %v1314_v39 = vpack.c.bf16 %v794_v29, %v794_v29  ;;  %v1346_v40 = vpack.c.bf16 %v826_v30, %v826_v30  ;;  %v665_v41 = vmul.f32 %v1419_v37, %v1655_v33  ;;  %v797_v43 = vmax.f32 %v733_v31, 0.0 }
  0xf2   :  { %v697_v42 = vmul.f32 %v1451_v38, %v1655_v33  ;;  %v829_v44 = vmax.f32 %v765_v32, 0.0  ;;  %v731_v45 = vadd.f32 %v1660_v35, %v660_v34  ;;  %v763_v46 = vadd.f32 %v1660_v35, %v692_v36  ;;  %v1420_v57 = vpop.f32.mrf.mxu0  ;;  %v1452_v58 = vpop.f32.mrf.mxu1 }
  0xf3   :  { %1115 = vst.msk [vmem:[%s2050_s4 + $0x40] sm:$0xf] %vm1098_vm1, %v1314_v39  ;;  %1147 = vst.msk [vmem:[%s2050_s4 + $0xc0] sm:$0xf] %vm1098_vm1, %v1346_v40  ;;  %v736_v49 = vadd.f32 %v1660_v35, %v665_v41  ;;  %v663_v51 = vmul.f32 %v1655_v33, %v461_v47  ;;  %v695_v52 = vmul.f32 %v1655_v33, %v589_v48 }
  0xf4   :  { %v768_v50 = vadd.f32 %v1660_v35, %v697_v42  ;;  %v1317_v53 = vpack.c.bf16 %v797_v43, %v797_v43  ;;  %v1349_v54 = vpack.c.bf16 %v829_v44, %v829_v44  ;;  %v795_v55 = vmax.f32 %v731_v45, 0.0  ;;  %v464_v3 = vpop.f32.mrf.mxu0  ;;  %v592_v4 = vpop.f32.mrf.mxu1 }
  0xf5   :  { %v827_v56 = vmax.f32 %v763_v46, 0.0  ;;  %v800_v59 = vmax.f32 %v736_v49, 0.0  ;;  %v734_v61 = vadd.f32 %v1660_v35, %v663_v51  ;;  %v766_v62 = vadd.f32 %v1660_v35, %v695_v52 }
  0xf6   :  { %v832_v60 = vmax.f32 %v768_v50, 0.0  ;;  %1118 = vst.msk [vmem:[%s2050_s4 + $0x4c] sm:$0xf] %vm1098_vm1, %v1317_v53  ;;  %1150 = vst.msk [vmem:[%s2050_s4 + $0xcc] sm:$0xf] %vm1098_vm1, %v1349_v54  ;;  %v1315_v63 = vpack.c.bf16 %v795_v55, %v795_v55  ;;  %v666_v1 = vmul.f32 %v1420_v57, %v1655_v33  ;;  %v698_v2 = vmul.f32 %v1452_v58, %v1655_v33  ;;  %v1423_v13 = vpop.f32.mrf.mxu0  ;;  %v1455_v14 = vpop.f32.mrf.mxu1 }
  0xf7   :  { %v1347_v0 = vpack.c.bf16 %v827_v56, %v827_v56  ;;  %v1320_v5 = vpack.c.bf16 %v800_v59, %v800_v59  ;;  %v798_v7 = vmax.f32 %v734_v61, 0.0  ;;  %v830_v8 = vmax.f32 %v766_v62, 0.0 }
  0xf8   :  { %v1352_v6 = vpack.c.bf16 %v832_v60, %v832_v60  ;;  %1116 = vst.msk [vmem:[%s2050_s4 + $0x44] sm:$0xf] %vm1098_vm1, %v1315_v63  ;;  %v737_v9 = vadd.f32 %v1660_v35, %v666_v1  ;;  %v769_v10 = vadd.f32 %v1660_v35, %v698_v2  ;;  %v664_v11 = vmul.f32 %v1655_v33, %v464_v3  ;;  %v477_v23 = vpop.f32.mrf.mxu0  ;;  %v605_v24 = vpop.f32.mrf.mxu1 }
  0xf9   :  { %1148 = vst.msk [vmem:[%s2050_s4 + $0xc4] sm:$0xf] %vm1098_vm1, %v1347_v0  ;;  %v696_v12 = vmul.f32 %v1655_v33, %v592_v4  ;;  %1121 = vst.msk [vmem:[%s2050_s4 + $0x58] sm:$0xf] %vm1098_vm1, %v1320_v5  ;;  %v1318_v15 = vpack.c.bf16 %v798_v7, %v798_v7  ;;  %v1350_v16 = vpack.c.bf16 %v830_v8, %v830_v8 }
  0xfa   :  { %1153 = vst.msk [vmem:[%s2050_s4 + $0xd8] sm:$0xf] %vm1098_vm1, %v1352_v6  ;;  %v669_v17 = vmul.f32 %v1423_v13, %v1655_v33  ;;  %v701_v18 = vmul.f32 %v1455_v14, %v1655_v33  ;;  %v801_v19 = vmax.f32 %v737_v9, 0.0  ;;  %v833_v20 = vmax.f32 %v769_v10, 0.0  ;;  %v1424_v34 = vpop.f32.mrf.mxu0  ;;  %v1456_v36 = vpop.f32.mrf.mxu1 }
  0xfb   :  { %v735_v21 = vadd.f32 %v1660_v35, %v664_v11  ;;  %v767_v22 = vadd.f32 %v1660_v35, %v696_v12  ;;  %1119 = vst.msk [vmem:[%s2050_s4 + $0x50] sm:$0xf] %vm1098_vm1, %v1318_v15  ;;  %1151 = vst.msk [vmem:[%s2050_s4 + $0xd0] sm:$0xf] %vm1098_vm1, %v1350_v16  ;;  %v667_v27 = vmul.f32 %v1655_v33, %v477_v23 }
  0xfc   :  { %v740_v25 = vadd.f32 %v1660_v35, %v669_v17  ;;  %v772_v26 = vadd.f32 %v1660_v35, %v701_v18  ;;  %v699_v28 = vmul.f32 %v1655_v33, %v605_v24  ;;  %v1321_v29 = vpack.c.bf16 %v801_v19, %v801_v19  ;;  %v480_v45 = vpop.f32.mrf.mxu0  ;;  %v608_v46 = vpop.f32.mrf.mxu1 }
  0xfd   :  { %v1353_v30 = vpack.c.bf16 %v833_v20, %v833_v20  ;;  %v799_v31 = vmax.f32 %v735_v21, 0.0  ;;  %v831_v32 = vmax.f32 %v767_v22, 0.0  ;;  %v738_v39 = vadd.f32 %v1660_v35, %v667_v27 }
  0xfe   :  { %v804_v37 = vmax.f32 %v740_v25, 0.0  ;;  %v836_v38 = vmax.f32 %v772_v26, 0.0  ;;  %v770_v40 = vadd.f32 %v1660_v35, %v699_v28  ;;  %1122 = vst.msk [vmem:[%s2050_s4 + $0x5c] sm:$0xf] %vm1098_vm1, %v1321_v29  ;;  %v670_v43 = vmul.f32 %v1424_v34, %v1655_v33  ;;  %v1427_v55 = vpop.f32.mrf.mxu0  ;;  %v1459_v56 = vpop.f32.mrf.mxu1 }
  0xff   :  { %1154 = vst.msk [vmem:[%s2050_s4 + $0xdc] sm:$0xf] %vm1098_vm1, %v1353_v30  ;;  %v1319_v41 = vpack.c.bf16 %v799_v31, %v799_v31  ;;  %v1351_v42 = vpack.c.bf16 %v831_v32, %v831_v32  ;;  %v702_v44 = vmul.f32 %v1456_v36, %v1655_v33  ;;  %v802_v49 = vmax.f32 %v738_v39, 0.0 }
 0x100   :  { %v1324_v47 = vpack.c.bf16 %v804_v37, %v804_v37  ;;  %v1356_v48 = vpack.c.bf16 %v836_v38, %v836_v38  ;;  %v834_v50 = vmax.f32 %v770_v40, 0.0  ;;  %v741_v51 = vadd.f32 %v1660_v35, %v670_v43  ;;  %v493_v1 = vpop.f32.mrf.mxu0  ;;  %v621_v2 = vpop.f32.mrf.mxu1 }
 0x101   :  { %1120 = vst.msk [vmem:[%s2050_s4 + $0x54] sm:$0xf] %vm1098_vm1, %v1319_v41  ;;  %1152 = vst.msk [vmem:[%s2050_s4 + $0xd4] sm:$0xf] %vm1098_vm1, %v1351_v42  ;;  %v773_v52 = vadd.f32 %v1660_v35, %v702_v44  ;;  %v668_v53 = vmul.f32 %v1655_v33, %v480_v45  ;;  %v700_v54 = vmul.f32 %v1655_v33, %v608_v46 }
 0x102   :  { %1125 = vst.msk [vmem:[%s2050_s4 + $0x68] sm:$0xf] %vm1098_vm1, %v1324_v47  ;;  %1157 = vst.msk [vmem:[%s2050_s4 + $0xe8] sm:$0xf] %vm1098_vm1, %v1356_v48  ;;  %v1322_v57 = vpack.c.bf16 %v802_v49, %v802_v49  ;;  %v1354_v58 = vpack.c.bf16 %v834_v50, %v834_v50  ;;  %v673_v59 = vmul.f32 %v1427_v55, %v1655_v33  ;;  %v805_v61 = vmax.f32 %v741_v51, 0.0  ;;  %v1428_v11 = vpop.f32.mrf.mxu0  ;;  %v1460_v12 = vpop.f32.mrf.mxu1 }
 0x103   :  { %v705_v60 = vmul.f32 %v1459_v56, %v1655_v33  ;;  %v837_v62 = vmax.f32 %v773_v52, 0.0  ;;  %v739_v63 = vadd.f32 %v1660_v35, %v668_v53  ;;  %v771_v0 = vadd.f32 %v1660_v35, %v700_v54 }
 0x104   :  { %1123 = vst.msk [vmem:[%s2050_s4 + $0x60] sm:$0xf] %vm1098_vm1, %v1322_v57  ;;  %1155 = vst.msk [vmem:[%s2050_s4 + $0xe0] sm:$0xf] %vm1098_vm1, %v1354_v58  ;;  %v744_v3 = vadd.f32 %v1660_v35, %v673_v59  ;;  %v671_v5 = vmul.f32 %v1655_v33, %v493_v1  ;;  %v703_v6 = vmul.f32 %v1655_v33, %v621_v2  ;;  %v496_v21 = vpop.f32.mrf.mxu0  ;;  %v624_v22 = vpop.f32.mrf.mxu1 }
 0x105   :  { %v776_v4 = vadd.f32 %v1660_v35, %v705_v60  ;;  %v1325_v7 = vpack.c.bf16 %v805_v61, %v805_v61  ;;  %v1357_v8 = vpack.c.bf16 %v837_v62, %v837_v62  ;;  %v803_v9 = vmax.f32 %v739_v63, 0.0 }
 0x106   :  { %v835_v10 = vmax.f32 %v771_v0, 0.0  ;;  %v808_v13 = vmax.f32 %v744_v3, 0.0  ;;  %v742_v15 = vadd.f32 %v1660_v35, %v671_v5  ;;  %v774_v16 = vadd.f32 %v1660_v35, %v703_v6 }
 0x107   :  { %v840_v14 = vmax.f32 %v776_v4, 0.0  ;;  %1126 = vst.msk [vmem:[%s2050_s4 + $0x6c] sm:$0xf] %vm1098_vm1, %v1325_v7  ;;  %1158 = vst.msk [vmem:[%s2050_s4 + $0xec] sm:$0xf] %vm1098_vm1, %v1357_v8  ;;  %v1323_v17 = vpack.c.bf16 %v803_v9, %v803_v9  ;;  %v674_v19 = vmul.f32 %v1428_v11, %v1655_v33  ;;  %v706_v20 = vmul.f32 %v1460_v12, %v1655_v33 }
 0x108   :  { %v1355_v18 = vpack.c.bf16 %v835_v10, %v835_v10  ;;  %v1328_v23 = vpack.c.bf16 %v808_v13, %v808_v13  ;;  %v806_v25 = vmax.f32 %v742_v15, 0.0  ;;  %v838_v26 = vmax.f32 %v774_v16, 0.0 }
 0x109   :  { %v1360_v24 = vpack.c.bf16 %v840_v14, %v840_v14  ;;  %1124 = vst.msk [vmem:[%s2050_s4 + $0x64] sm:$0xf] %vm1098_vm1, %v1323_v17  ;;  %v745_v27 = vadd.f32 %v1660_v35, %v674_v19  ;;  %v777_v28 = vadd.f32 %v1660_v35, %v706_v20  ;;  %v672_v29 = vmul.f32 %v1655_v33, %v496_v21 }
 0x10a   :  { %1156 = vst.msk [vmem:[%s2050_s4 + $0xe4] sm:$0xf] %vm1098_vm1, %v1355_v18  ;;  %v704_v30 = vmul.f32 %v1655_v33, %v624_v22  ;;  %1129 = vst.msk [vmem:[%s2050_s4 + $0x78] sm:$0xf] %vm1098_vm1, %v1328_v23  ;;  %v1326_v31 = vpack.c.bf16 %v806_v25, %v806_v25  ;;  %v1358_v32 = vpack.c.bf16 %v838_v26, %v838_v26 }
 0x10b   :  { %1161 = vst.msk [vmem:[%s2050_s4 + $0xf8] sm:$0xf] %vm1098_vm1, %v1360_v24  ;;  %v809_v34 = vmax.f32 %v745_v27, 0.0  ;;  %v841_v36 = vmax.f32 %v777_v28, 0.0  ;;  %v743_v37 = vadd.f32 %v1660_v35, %v672_v29 }
 0x10c   :  { %v775_v38 = vadd.f32 %v1660_v35, %v704_v30  ;;  %1127 = vst.msk [vmem:[%s2050_s4 + $0x70] sm:$0xf] %vm1098_vm1, %v1326_v31  ;;  %1159 = vst.msk [vmem:[%s2050_s4 + $0xf0] sm:$0xf] %vm1098_vm1, %v1358_v32 }
 0x10d   :  { %v1329_v33 = vpack.c.bf16 %v809_v34, %v809_v34  ;;  %v1361_v39 = vpack.c.bf16 %v841_v36, %v841_v36  ;;  %v807_v40 = vmax.f32 %v743_v37, 0.0 }
 0x10e   :  { %v839_v41 = vmax.f32 %v775_v38, 0.0 }
 0x10f   :  { %1130 = vst.msk [vmem:[%s2050_s4 + $0x7c] sm:$0xf] %vm1098_vm1, %v1329_v33  ;;  %1162 = vst.msk [vmem:[%s2050_s4 + $0xfc] sm:$0xf] %vm1098_vm1, %v1361_v39  ;;  %v1327_v35 = vpack.c.bf16 %v807_v40, %v807_v40 }
 0x110   :  { %v1359_v42 = vpack.c.bf16 %v839_v41, %v839_v41 }
 0x111   :  { %1128 = vst.msk [vmem:[%s2050_s4 + $0x74] sm:$0xf] %vm1098_vm1, %v1327_v35 }
 0x112   :  { %1160 = vst.msk [vmem:[%s2050_s4 + $0xf4] sm:$0xf] %vm1098_vm1, %v1359_v42 }

// kernel: upernet_forward.6
= control target key start
LH: loop header
LB: loop body
LE: loop exit
PB: predicated region body
PF: predicated region fallthrough
CT: control target
= control target key end

     0   :  { %s6717_s15 = smov 0   ;;  %s9494_s0 = inlined_call_operand.vmem [shape: bf16[2,18,18,64], index: 0, kind: input, shape index: {}]   ;;  %s9495_s1 = inlined_call_operand.vmem [shape: bf16[9,64,64], index: 1, kind: input, shape index: {}]   ;;  %s9496_s2 = inlined_call_operand.vmem [shape: f32[1,64], index: 2, kind: input, shape index: {}]   ;;  %s9497_s3 = inlined_call_operand.vmem [shape: f32[1,64], index: 3, kind: input, shape index: {}]   ;;  %s9498_s4 = inlined_call_operand.vmem [shape: bf16[512,64], index: 4, kind: output, shape index: {}]  }
   0x1 LB: > { %s6723_s16 = sadd.s32 4294967295, %s6690_s15   ;;  %p5341_p0 = scmp.ge.s32.totalorder %s6690_s15, 1  ;;  %s6690_s15 = sphi %s6717_s15, %s14_s15  }
   0x2   : > { %p162_p1 = scmp.lt.s32.totalorder %s6690_s15, 3 }
   0x4   : > { %p163_p2 = pnand %p5341_p0, %p162_p1 }
   0x6   : > { %166 = sbr.rel (%p163_p2) target bundleno = 563 (0x233), region = 36 }
   0xb   : > { %v6598_v0 = vld [vmem:[%s9495_s1 + $0x38] sm:$0xff]   ;;  %p188_p3 = scmp.lt.s32.totalorder %s6723_s16, 1  ;;  %v6599_v1 = vld [vmem:[%s9495_s1 + $0x30] sm:$0xff]   ;;  %v6600_v2 = vld [vmem:[%s9495_s1 + $0x28] sm:$0xff]   ;;  %vm256_vm0 = vsmask.f32 3328 }
   0xc   : > { %6581 = vmatprep.subr.bf16.mxu1 %v6598_v0  ;;  %6221 = vmatprep.subr.bf16.mxu0 %v6598_v0  ;;  %v6601_v3 = vld [vmem:[%s9495_s1 + $0x20] sm:$0xff]   ;;  %vm257_vm1 = vsmask.f32 7440  ;;  %vm724_vm2 = vcmask 523264   ;;  %v6775_v23 = vld [vmem:[%s9495_s1 + $0x18] sm:$0xff]   ;;  %vm1295_vm4 = vcmask 1042432  }
   0xd   : > { %s189_s21 = scalar_select %p188_p3, %s6723_s16, 1  ;;  %6585 = vmatpush3.bf16.msra.mxu1 %v6598_v0  ;;  %6222 = vmatpush3.bf16.msra.mxu0 %v6598_v0  ;;  %v6780_v24 = vld [vmem:[%s9495_s1 + $0x58] sm:$0xff]   ;;  %vm6792_vm3 = vmor %vm256_vm0, %vm257_vm1  ;;  %vm1296_vm5 = vcmask 1046532   ;;  %vm5248_vm7 = vcmask 519168  }
   0xe   : > { %6582 = vmatprep.subr.bf16.mxu1 %v6599_v1  ;;  %6223 = vmatprep.subr.bf16.mxu0 %v6599_v1  ;;  %vm7096_vm6 = vmor %vm1295_vm4, %vm1296_vm5 }
   0xf   : > { %s6589_s24 = smul.u32 216, %s189_s21 }
  0x11   : > { %s6744_s29 = scalar_lea.vmem %s9494_s0, %s6589_s24  ;;  %6586 = vmatpush3.bf16.msra.mxu1 %v6599_v1  ;;  %6224 = vmatpush3.bf16.msra.mxu0 %v6599_v1 }
  0x12   : > { %v6747_v4 = vld [vmem:[%s6744_s29] sm:$0xf]  ;;  %v6750_v5 = vld [vmem:[%s6744_s29 + $0x4] sm:$0xf]  ;;  %v6753_v6 = vld [vmem:[%s6744_s29 + $0x8] sm:$0x1]  ;;  %6583 = vmatprep.subr.bf16.mxu1 %v6600_v2  ;;  %6225 = vmatprep.subr.bf16.mxu0 %v6600_v2 }
  0x13   : > { %v260_v7 = vshrl.u32 %v6747_v4, 16  ;;  %v263_v8 = vshll.u32 %v6747_v4, 16  ;;  %v269_v9 = vshll.u32 %v6750_v5, 16  ;;  %v273_v10 = vshrl.u32 %v6750_v5, 16  ;;  %v6760_v11 = vld [vmem:[%s6744_s29 + $0x60] sm:$0xf] }
  0x14   : > { %v279_v12 = vshll.u32 %v6753_v6, 16  ;;  %v6764_v13 = vld [vmem:[%s6744_s29 + $0x64] sm:$0xf]  ;;  %v6767_v14 = vld [vmem:[%s6744_s29 + $0x68] sm:$0x1]  ;;  %v452_v20 = vshrl.u32 %v6760_v11, 16 }
  0x15   : > { %v262_v15 = vrot.slane %v260_v7, 4  ;;  %v265_v16 = vrot.slane %v263_v8, 5  ;;  %v271_v17 = vrot.slane %v269_v9, 5  ;;  %v275_v18 = vrot.slane %v273_v10, 4  ;;  %6587 = vmatpush3.bf16.msra.mxu1 %v6600_v2  ;;  %6226 = vmatpush3.bf16.msra.mxu0 %v6600_v2  ;;  %v6785_v29 = vld [vmem:[%s6744_s29 + $0xc] sm:$0xf] }
  0x16   : > { %v281_v19 = vrot.slane %v279_v12, 5  ;;  %v455_v21 = vshll.u32 %v6760_v11, 16  ;;  %v461_v22 = vshll.u32 %v6764_v13, 16  ;;  %6584 = vmatprep.subr.bf16.mxu1 %v6601_v3  ;;  %6227 = vmatprep.subr.bf16.mxu0 %v6601_v3  ;;  %v465_v27 = vshrl.u32 %v6764_v13, 16  ;;  %v6788_v30 = vld [vmem:[%s6744_s29 + $0x10] sm:$0xf] }
  0x17   : > { %v266_v25 = vor.u32 %v265_v16, %v262_v15  ;;  %v276_v26 = vor.u32 %v275_v18, %v271_v17  ;;  %v471_v28 = vshll.u32 %v6767_v14, 16  ;;  %v454_v33 = vrot.slane %v452_v20, 4  ;;  %v6798_v41 = vld [vmem:[%s6744_s29 + $0x14] sm:$0x1]  ;;  %v6811_v53 = vld [vmem:[%s6744_s29 + $0x6c] sm:$0xf] }
  0x18   : > { %v457_v34 = vrot.slane %v455_v21, 5  ;;  %v463_v35 = vrot.slane %v461_v22, 5  ;;  %v467_v38 = vrot.slane %v465_v27, 4  ;;  %v284_v42 = vshrl.u32 %v6785_v29, 16  ;;  %v6815_v58 = vld [vmem:[%s6744_s29 + $0x70] sm:$0xf] }
  0x19   : > { %v267_v36 = vrot.slane %v266_v25, 4  ;;  %v277_v37 = vrot.slane %v276_v26, 4  ;;  %v473_v39 = vrot.slane %v471_v28, 5  ;;  %6588 = vmatpush3.bf16.msra.mxu1 %v6601_v3  ;;  %6228 = vmatpush3.bf16.msra.mxu0 %v6601_v3  ;;  %v287_v43 = vshll.u32 %v6785_v29, 16  ;;  %v6823_v63 = vld [vmem:[%s6744_s29 + $0x74] sm:$0x1] }
  0x1a   : > { %v458_v40 = vor.u32 %v457_v34, %v454_v33  ;;  %v293_v44 = vshll.u32 %v6788_v30, 16  ;;  %v468_v47 = vor.u32 %v467_v38, %v463_v35  ;;  %6261 = vmatprep.subr.bf16.mxu1 %v6775_v23  ;;  %v297_v48 = vshrl.u32 %v6788_v30, 16  ;;  %6301 = vmatprep.subr.bf16.mxu0 %v6780_v24  ;;  %v6829_v7 = vld [vmem:[%s6744_s29 + $0x18] sm:$0xf]  ;;  %v6842_v25 = vld [vmem:[%s6744_s29 + $0x20] sm:$0x1] }
  0x1b   : > { %v272_v45 = vsel %vm6792_vm3, %v267_v36, %v271_v17  ;;  %v282_v46 = vsel %vm6792_vm3, %v277_v37, %v281_v19  ;;  %v286_v51 = vrot.slane %v284_v42, 4  ;;  %v289_v52 = vrot.slane %v287_v43, 5  ;;  %v6836_v19 = vld [vmem:[%s6744_s29 + $0x1c] sm:$0xf]  ;;  %v6605_v36 = vld [vmem:[%s9495_s1 + $0x50] sm:$0xff]  }
  0x1c   : > { %v5353_v49 = vcombine.low %v272_v45, %v282_v46  ;;  %v459_v50 = vrot.slane %v458_v40, 4  ;;  %v469_v54 = vrot.slane %v468_v47, 4  ;;  %v295_v55 = vrot.slane %v293_v44, 5  ;;  %v6856_v42 = vld [vmem:[%s6744_s29 + $0x7c] sm:$0xf] }
  0x1d   : > { %v299_v56 = vrot.slane %v297_v48, 4  ;;  %v303_v57 = vshll.u32 %v6798_v41, 16  ;;  %v290_v60 = vor.u32 %v289_v52, %v286_v51  ;;  %v476_v3 = vshrl.u32 %v6811_v53, 16  ;;  %9535 = vst [vmem:[#allocation3_spill] sm:$0xff] %v6856_v42 }
  0x1e   : > { %6229 = vmatprep.mubr.msk.bf16.mxu0 %vm724_vm2, %v5353_v49  ;;  %v464_v59 = vsel %vm6792_vm3, %v459_v50, %v463_v35  ;;  %v474_v0 = vsel %vm6792_vm3, %v469_v54, %v473_v39  ;;  %v479_v10 = vshll.u32 %v6811_v53, 16  ;;  %v485_v12 = vshll.u32 %v6815_v58, 16  ;;  %v6849_v35 = vld [vmem:[%s6744_s29 + $0x78] sm:$0xf] }
  0x1f   : > { %v300_v1 = vor.u32 %v299_v56, %v295_v55  ;;  %v305_v2 = vrot.slane %v303_v57, 5  ;;  %v5361_v8 = vcombine.low %v464_v59, %v474_v0  ;;  %v291_v9 = vrot.slane %v290_v60, 4  ;;  %9534 = vst [vmem:[#allocation2_spill] sm:$0xff] %v6849_v35  ;;  %v6865_v56 = vld [vmem:[%s6744_s29 + $0x80] sm:$0x1] }
  0x20   : > { %v478_v16 = vrot.slane %v476_v3, 4  ;;  %v489_v17 = vshrl.u32 %v6815_v58, 16  ;;  %v495_v18 = vshll.u32 %v6823_v63, 16  ;;  %v481_v21 = vrot.slane %v479_v10, 5  ;;  %9536 = vst [vmem:[#allocation4_spill] sm:$0xff] %v6865_v56  ;;  %v6604_v10 = vld [vmem:[%s9495_s1 + $0x10] sm:$0xff]  }
  0x21   : > { %v301_v15 = vrot.slane %v300_v1, 4  ;;  %6245 = vmatprep.mubr.msk.bf16.mxu1 %vm724_vm2, %v5361_v8  ;;  %v296_v20 = vsel %vm6792_vm3, %v291_v9, %v295_v55  ;;  %v487_v22 = vrot.slane %v485_v12, 5  ;;  %v308_v26 = vshrl.u32 %v6829_v7, 16  ;;  %v6871_v1 = vld [vmem:[%s6744_s29 + $0x24] sm:$0xf] }
  0x22   : > { %v491_v28 = vrot.slane %v489_v17, 4  ;;  %v497_v33 = vrot.slane %v495_v18, 5  ;;  %v311_v34 = vshll.u32 %v6829_v7, 16  ;;  %v482_v38 = vor.u32 %v481_v21, %v478_v16  ;;  %v6883_v12 = vld [vmem:[%s6744_s29 + $0x28] sm:$0xf] }
  0x23   : > { %v306_v27 = vsel %vm6792_vm3, %v301_v15, %v305_v2  ;;  %v310_v39 = vrot.slane %v308_v26, 4  ;;  %v317_v40 = vshll.u32 %v6836_v19, 16  ;;  %v321_v45 = vshrl.u32 %v6836_v19, 16  ;;  %v6890_v21 = vld [vmem:[%s6744_s29 + $0x84] sm:$0xf] }
  0x24   : > { %v5354_v37 = vcombine.low %v296_v20, %v306_v27  ;;  %v492_v43 = vor.u32 %v491_v28, %v487_v22  ;;  %v313_v44 = vrot.slane %v311_v34, 5  ;;  %v327_v46 = vshll.u32 %v6842_v25, 16  ;;  %v6887_v20 = vld [vmem:[%s6744_s29 + $0x2c] sm:$0x1] }
  0x25   : > { %v483_v47 = vrot.slane %v482_v38, 4  ;;  %v319_v48 = vrot.slane %v317_v40, 5  ;;  %v500_v49 = vshrl.u32 %v6849_v35, 16  ;;  %v503_v50 = vshll.u32 %v6849_v35, 16  ;;  %v1248_v35 = vld [vmem:[%s6744_s29 + $0xc] sm:$0xe] }
  0x26   : > { %6230 = vmatmul.mubr.msk.bf16.vlgmr.msra.gmra.mxu0 %vm724_vm2, %v5354_v37  ;;  %v493_v51 = vrot.slane %v492_v43, 4  ;;  %v314_v52 = vor.u32 %v313_v44, %v310_v39  ;;  %v323_v54 = vrot.slane %v321_v45, 4  ;;  %v329_v55 = vrot.slane %v327_v46, 5  ;;  %v6609_v39 = vld [vmem:[%s9495_s1 + $0x40] sm:$0xff]   ;;  %v6906_v45 = vld [vmem:[%s6744_s29 + $0x88] sm:$0xf] }
  0x27   : > { %6302 = vmatpush3.bf16.msra.mxu0 %v6780_v24  ;;  %v488_v57 = vsel %vm6792_vm3, %v483_v47, %v487_v22  ;;  %v502_v59 = vrot.slane %v500_v49, 4  ;;  %v505_v60 = vrot.slane %v503_v50, 5  ;;  %v509_v0 = vshll.u32 %v6856_v42, 16  ;;  %v6607_v24 = vld [vmem:[%s9495_s1 + $0x48] sm:$0xff]  }
  0x28   : > { %6303 = vmatprep.subr.bf16.mxu0 %v6605_v36  ;;  %v498_v2 = vsel %vm6792_vm3, %v493_v51, %v497_v33  ;;  %v315_v3 = vrot.slane %v314_v52, 4  ;;  %v324_v8 = vor.u32 %v323_v54, %v319_v48  ;;  %v513_v9 = vshrl.u32 %v6856_v42, 16  ;;  %v6911_v50 = vld [vmem:[%s6744_s29 + $0x8c] sm:$0x1] }
  0x29   : > { %v5362_v15 = vcombine.low %v488_v57, %v498_v2  ;;  %v506_v16 = vor.u32 %v505_v60, %v502_v59  ;;  %v511_v17 = vrot.slane %v509_v0, 5  ;;  %v519_v18 = vshll.u32 %v6865_v56, 16  ;;  %v6919_v57 = vld [vmem:[%s6744_s29 + $0x30] sm:$0xf] }
  0x2a   : > { %v320_v22 = vsel %vm6792_vm3, %v315_v3, %v319_v48  ;;  %v325_v26 = vrot.slane %v324_v8, 4  ;;  %v515_v27 = vrot.slane %v513_v9, 4  ;;  %v332_v28 = vshrl.u32 %v6871_v1, 16  ;;  %v6928_v3 = vld [vmem:[%s9495_s1 + $0x98] sm:$0xff]  }
  0x2b   : > { %6304 = vmatpush3.bf16.msra.mxu0 %v6605_v36  ;;  %6246 = vmatmul.mubr.msk.bf16.vlgmr.msra.gmra.mxu1 %vm724_vm2, %v5362_v15  ;;  %v507_v33 = vrot.slane %v506_v16, 4  ;;  %v521_v34 = vrot.slane %v519_v18, 5  ;;  %v335_v37 = vshll.u32 %v6871_v1, 16  ;;  %v341_v38 = vshll.u32 %v6883_v12, 16  ;;  %v6933_v16 = vld [vmem:[%s6744_s29 + $0x34] sm:$0xf] }
  0x2c   : > { %6305 = vmatprep.subr.bf16.mxu0 %v6607_v24  ;;  %6262 = vmatpush3.bf16.msra.mxu1 %v6775_v23  ;;  %v330_v40 = vsel %vm6792_vm3, %v325_v26, %v329_v55  ;;  %v516_v36 = vor.u32 %v515_v27, %v511_v17  ;;  %v334_v43 = vrot.slane %v332_v28, 4  ;;  %v345_v44 = vshrl.u32 %v6883_v12, 16  ;;  %v6606_v23 = vld [vmem:[%s9495_s1 + $0x8] sm:$0xff]   ;;  %v6608_v27 = vld [vmem:[%s9495_s1] sm:$0xff]  }
  0x2d   : > { %v5355_v46 = vcombine.low %v320_v22, %v330_v40  ;;  %v512_v47 = vsel %vm6792_vm3, %v507_v33, %v511_v17  ;;  %6263 = vmatprep.subr.bf16.mxu1 %v6604_v10  ;;  %v337_v48 = vrot.slane %v335_v37, 5  ;;  %v343_v49 = vrot.slane %v341_v38, 5  ;;  %v6944_v40 = vld [vmem:[%s6744_s29 + $0x38] sm:$0x1] }
  0x2e   : > { %v517_v51 = vrot.slane %v516_v36, 4  ;;  %v347_v52 = vrot.slane %v345_v44, 4  ;;  %v351_v54 = vshll.u32 %v6887_v20, 16  ;;  %v524_v55 = vshrl.u32 %v6890_v21, 16  ;;  %v6949_v44 = vld [vmem:[%s6744_s29 + $0x90] sm:$0xf] }
  0x2f   : > { %6306 = vmatpush3.bf16.msra.mxu0 %v6607_v24  ;;  %6233 = vmatprep.mubr.msk.bf16.mxu0 %vm724_vm2, %v5355_v46  ;;  %v338_v59 = vor.u32 %v337_v48, %v334_v43  ;;  %v527_v60 = vshll.u32 %v6890_v21, 16  ;;  %v533_v0 = vshll.u32 %v6906_v45, 16  ;;  %v537_v2 = vshrl.u32 %v6906_v45, 16  ;;  %9537 = vst [vmem:[#allocation5_spill] sm:$0xff] %v6949_v44 }
  0x30   : > { %6307 = vmatprep.subr.bf16.mxu0 %v6609_v39  ;;  %v522_v8 = vsel %vm6792_vm3, %v517_v51, %v521_v34  ;;  %v348_v9 = vor.u32 %v347_v52, %v343_v49  ;;  %v353_v24 = vrot.slane %v351_v54, 5  ;;  %v526_v15 = vrot.slane %v524_v55, 4  ;;  %6264 = vmatpush3.bf16.msra.mxu1 %v6604_v10  ;;  %v6955_v51 = vld [vmem:[%s6744_s29 + $0x94] sm:$0xf] }
  0x31   : > { %v5363_v17 = vcombine.low %v512_v47, %v522_v8  ;;  %v339_v18 = vrot.slane %v338_v59, 4  ;;  %v529_v22 = vrot.slane %v527_v60, 5  ;;  %v535_v26 = vrot.slane %v533_v0, 5  ;;  %6265 = vmatprep.subr.bf16.mxu1 %v6606_v23  ;;  %9538 = vst [vmem:[#allocation6_spill] sm:$0xff] %v6955_v51  ;;  %v6960_v59 = vld [vmem:[%s9495_s1 + $0x78] sm:$0xff]  }
  0x32   : > { %v349_v28 = vrot.slane %v348_v9, 4  ;;  %v539_v33 = vrot.slane %v537_v2, 4  ;;  %v543_v34 = vshll.u32 %v6911_v50, 16  ;;  %v356_v10 = vshrl.u32 %v6919_v57, 16 }
  0x33   : > { %6308 = vmatpush3.bf16.msra.mxu0 %v6609_v39  ;;  %6249 = vmatprep.mubr.msk.bf16.mxu1 %vm724_vm2, %v5363_v17  ;;  %v344_v37 = vsel %vm6792_vm3, %v339_v18, %v343_v49  ;;  %v530_v38 = vor.u32 %v529_v22, %v526_v15  ;;  %v359_v36 = vshll.u32 %v6919_v57, 16  ;;  %v365_v43 = vshll.u32 %v6933_v16, 16  ;;  %v6974_v18 = vld [vmem:[%s6744_s29 + $0x3c] sm:$0xf] }
  0x34   : > { %6381 = vmatprep.subr.bf16.mxu0 %v6928_v3  ;;  %v354_v46 = vsel %vm6792_vm3, %v349_v28, %v353_v24  ;;  %v540_v39 = vor.u32 %v539_v33, %v535_v26  ;;  %v545_v47 = vrot.slane %v543_v34, 5  ;;  %v358_v48 = vrot.slane %v356_v10, 4  ;;  %6266 = vmatpush3.bf16.msra.mxu1 %v6606_v23  ;;  %v6969_v24 = vld [vmem:[%s6744_s29 + $0x98] sm:$0x1]  ;;  %v6979_v10 = vld [vmem:[%s6744_s29 + $0x40] sm:$0xf] }
  0x35   : > { %v5356_v49 = vcombine.low %v344_v37, %v354_v46  ;;  %v531_v52 = vrot.slane %v530_v38, 4  ;;  %v361_v54 = vrot.slane %v359_v36, 5  ;;  %v367_v55 = vrot.slane %v365_v43, 5  ;;  %6267 = vmatprep.subr.bf16.mxu1 %v6608_v27  ;;  %9539 = vst [vmem:[#allocation7_spill] sm:$0xff] %v6969_v24  ;;  %v6982_v43 = vld [vmem:[%s6744_s29 + $0x44] sm:$0x1] }
  0x36   : > { %v541_v60 = vrot.slane %v540_v39, 4  ;;  %v369_v0 = vshrl.u32 %v6933_v16, 16  ;;  %v375_v2 = vshll.u32 %v6944_v40, 16  ;;  %v548_v8 = vshrl.u32 %v6949_v44, 16 }
  0x37   : > { %6234 = vmatmul.mubr.msk.bf16.gmra.mxu0 %vm724_vm2, %v5356_v49  ;;  %v536_v23 = vsel %vm6792_vm3, %v531_v52, %v535_v26  ;;  %v362_v9 = vor.u32 %v361_v54, %v358_v48  ;;  %v551_v15 = vshll.u32 %v6949_v44, 16  ;;  %v557_v17 = vshll.u32 %v6955_v51, 16  ;;  %v6989_v49 = vld [vmem:[%s6744_s29 + $0x9c] sm:$0xf] }
  0x38   : > { %v546_v22 = vsel %vm6792_vm3, %v541_v60, %v545_v47  ;;  %v371_v28 = vrot.slane %v369_v0, 4  ;;  %v377_v33 = vrot.slane %v375_v2, 5  ;;  %v550_v34 = vrot.slane %v548_v8, 4  ;;  %6268 = vmatpush3.bf16.msra.mxu1 %v6608_v27  ;;  %9540 = vst [vmem:[#allocation8_spill] sm:$0xff] %v6989_v49 }
  0x39   : > { %v5364_v26 = vcombine.low %v536_v23, %v546_v22  ;;  %v363_v37 = vrot.slane %v362_v9, 4  ;;  %v553_v38 = vrot.slane %v551_v15, 5  ;;  %v559_v36 = vrot.slane %v557_v17, 5  ;;  %6341 = vmatprep.subr.bf16.mxu1 %v6960_v59  ;;  %v6997_v9 = vld [vmem:[%s6744_s29 + $0xa0] sm:$0xf] }
  0x3a   : > { %v372_v46 = vor.u32 %v371_v28, %v367_v55  ;;  %v561_v39 = vshrl.u32 %v6955_v51, 16  ;;  %v567_v47 = vshll.u32 %v6969_v24, 16  ;;  %v380_v48 = vshrl.u32 %v6974_v18, 16  ;;  %9541 = vst [vmem:[#allocation9_spill] sm:$0xff] %v6997_v9 }
  0x3b   : > { %6250 = vmatmul.mubr.msk.bf16.gmra.mxu1 %vm724_vm2, %v5364_v26  ;;  %v368_v27 = vsel %vm6792_vm3, %v363_v37, %v367_v55  ;;  %v554_v52 = vor.u32 %v553_v38, %v550_v34  ;;  %v383_v54 = vshll.u32 %v6974_v18, 16  ;;  %v389_v60 = vshll.u32 %v6979_v10, 16  ;;  %v7001_v26 = vld [vmem:[%s6744_s29 + $0xa4] sm:$0x1] }
  0x3c   : > { %v373_v0 = vrot.slane %v372_v46, 4  ;;  %v563_v2 = vrot.slane %v561_v39, 4  ;;  %v569_v8 = vrot.slane %v567_v47, 5  ;;  %v382_v23 = vrot.slane %v380_v48, 4  ;;  %9542 = vst [vmem:[#allocation10_spill] sm:$0xff] %v7001_v26 }
  0x3d   : > { %v555_v15 = vrot.slane %v554_v52, 4  ;;  %v385_v17 = vrot.slane %v383_v54, 5  ;;  %v391_v22 = vrot.slane %v389_v60, 5  ;;  %v393_v28 = vshrl.u32 %v6979_v10, 16  ;;  %v7008_v46 = vld [vmem:[%s6744_s29 + $0x48] sm:$0xf] }
  0x3e   : > { %v378_v55 = vsel %vm6792_vm3, %v373_v0, %v377_v33  ;;  %v564_v34 = vor.u32 %v563_v2, %v559_v36  ;;  %v399_v37 = vshll.u32 %v6982_v43, 16  ;;  %v572_v38 = vshrl.u32 %v6989_v49, 16  ;;  %v7014_v0 = vld [vmem:[%s6744_s29 + $0x4c] sm:$0xf] }
  0x3f   : > { %v5357_v39 = vcombine.low %v368_v27, %v378_v55  ;;  %v560_v47 = vsel %vm6792_vm3, %v555_v15, %v559_v36  ;;  %v386_v48 = vor.u32 %v385_v17, %v382_v23  ;;  %v395_v52 = vrot.slane %v393_v28, 4  ;;  %v7020_v36 = vld [vmem:[%s6744_s29 + $0x50] sm:$0x1]  ;;  %v7027_v55 = vld [vmem:[%s6744_s29 + $0xa8] sm:$0xf] }
  0x40   : > { %v565_v54 = vrot.slane %v564_v34, 4  ;;  %v401_v60 = vrot.slane %v399_v37, 5  ;;  %v574_v62 = vrot.slane %v572_v38, 4  ;;  %v575_v33 = vshll.u32 %v6989_v49, 16  ;;  %9543 = vst [vmem:[#allocation11_spill] sm:$0xff] %v7027_v55 }
  0x41   : > { %6237 = vmatprep.mubr.msk.bf16.mxu0 %vm724_vm2, %v5357_v39  ;;  %v387_v2 = vrot.slane %v386_v48, 4  ;;  %v396_v32 = vor.u32 %v395_v52, %v391_v22  ;;  %v581_v61 = vshll.u32 %v6997_v9, 16  ;;  %v585_v27 = vshrl.u32 %v6997_v9, 16 }
  0x42   : > { %v570_v23 = vsel %vm6792_vm3, %v565_v54, %v569_v8  ;;  %v577_v15 = vrot.slane %v575_v33, 5  ;;  %v591_v17 = vshll.u32 %v7001_v26, 16  ;;  %v404_v28 = vshrl.u32 %v7008_v46, 16  ;;  %v7032_v8 = vld [vmem:[%s6744_s29 + $0xac] sm:$0xf] }
  0x43   : > { %v5365_v34 = vcombine.low %v560_v47, %v570_v23  ;;  %v392_v37 = vsel %vm6792_vm3, %v387_v2, %v391_v22  ;;  %v397_v38 = vrot.slane %v396_v32, 4  ;;  %v583_v39 = vrot.slane %v581_v61, 5  ;;  %9544 = vst [vmem:[#allocation12_spill] sm:$0xff] %v7032_v8 }
  0x44   : > { %v578_v48 = vor.u32 %v577_v15, %v574_v62  ;;  %v587_v52 = vrot.slane %v585_v27, 4  ;;  %v593_v56 = vrot.slane %v591_v17, 5  ;;  %v406_v49 = vrot.slane %v404_v28, 4  ;;  %v7042_v27 = vld [vmem:[%s6744_s29 + $0xb0] sm:$0x1] }
  0x45   : > { %6253 = vmatprep.mubr.msk.bf16.mxu1 %vm724_vm2, %v5365_v34  ;;  %v402_v54 = vsel %vm6792_vm3, %v397_v38, %v401_v60  ;;  %v407_v47 = vshll.u32 %v7008_v46, 16  ;;  %v413_v33 = vshll.u32 %v7014_v0, 16  ;;  %v417_v32 = vshrl.u32 %v7014_v0, 16  ;;  %9545 = vst [vmem:[#allocation13_spill] sm:$0xff] %v7042_v27  ;;  %v7046_v60 = vld [vmem:[%s6744_s29 + $0x54] sm:$0xf] }
  0x46   : > { %v5358_v61 = vcombine.low %v392_v37, %v402_v54  ;;  %v579_v62 = vrot.slane %v578_v48, 4  ;;  %v588_v22 = vor.u32 %v587_v52, %v583_v39  ;;  %v423_v2 = vshll.u32 %v7020_v36, 16  ;;  %v7053_v52 = vld [vmem:[%s6744_s29 + $0x58] sm:$0xf] }
  0x47   : > { %v409_v23 = vrot.slane %v407_v47, 5  ;;  %v415_v15 = vrot.slane %v413_v33, 5  ;;  %v419_v17 = vrot.slane %v417_v32, 4  ;;  %v596_v28 = vshrl.u32 %v7027_v55, 16 }
  0x48   : > { %6238 = vmatmul.mubr.msk.bf16.gmra.mxu0 %vm724_vm2, %v5358_v61  ;;  %v584_v34 = vsel %vm6792_vm3, %v579_v62, %v583_v39  ;;  %v589_v37 = vrot.slane %v588_v22, 4  ;;  %v425_v38 = vrot.slane %v423_v2, 5  ;;  %v599_v48 = vshll.u32 %v7027_v55, 16  ;;  %v7061_v62 = vld [vmem:[%s6744_s29 + $0x5c] sm:$0x1] }
  0x49   : > { %v410_v54 = vor.u32 %v409_v23, %v406_v49  ;;  %v420_v47 = vor.u32 %v419_v17, %v415_v15  ;;  %v598_v33 = vrot.slane %v596_v28, 4  ;;  %v605_v32 = vshll.u32 %v7032_v8, 16 }
  0x4a   : > { %v594_v61 = vsel %vm6792_vm3, %v589_v37, %v593_v56  ;;  %v601_v26 = vrot.slane %v599_v48, 5  ;;  %v609_v9 = vshrl.u32 %v7032_v8, 16  ;;  %v615_v39 = vshll.u32 %v7042_v27, 16 }
  0x4b   : > { %v5366_v22 = vcombine.low %v584_v34, %v594_v61  ;;  %v411_v2 = vrot.slane %v410_v54, 4  ;;  %v421_v49 = vrot.slane %v420_v47, 4  ;;  %v607_v23 = vrot.slane %v605_v32, 5  ;;  %v7072_v54 = vld [vmem:[%s6744_s29 + $0xb4] sm:$0xf] }
  0x4c   : > { %v602_v17 = vor.u32 %v601_v26, %v598_v33  ;;  %v611_v28 = vrot.slane %v609_v9, 4  ;;  %v617_v55 = vrot.slane %v615_v39, 5  ;;  %v428_v24 = vshrl.u32 %v7046_v60, 16  ;;  %9546 = vst [vmem:[#allocation14_spill] sm:$0xff] %v7072_v54  ;;  %v7075_v32 = vld [vmem:[%s6744_s29 + $0xb8] sm:$0xf] }
  0x4d   : > { %6254 = vmatmul.mubr.msk.bf16.gmra.mxu1 %vm724_vm2, %v5366_v22  ;;  %v416_v56 = vsel %vm6792_vm3, %v411_v2, %v415_v15  ;;  %v426_v37 = vsel %vm6792_vm3, %v421_v49, %v425_v38  ;;  %v431_v34 = vshll.u32 %v7046_v60, 16  ;;  %v437_v48 = vshll.u32 %v7053_v52, 16  ;;  %v7080_v38 = vld [vmem:[%s6744_s29 + $0xbc] sm:$0x1] }
  0x4e   : > { %v5359_v9 = vcombine.low %v416_v56, %v426_v37  ;;  %v603_v26 = vrot.slane %v602_v17, 4  ;;  %v612_v47 = vor.u32 %v611_v28, %v607_v23  ;;  %v430_v33 = vrot.slane %v428_v24, 4  ;;  %v1247_v28 = vld [vmem:[%s6744_s29] sm:$0xe] }
  0x4f   : > { %v433_v61 = vrot.slane %v431_v34, 5  ;;  %v439_v39 = vrot.slane %v437_v48, 5  ;;  %v441_v15 = vshrl.u32 %v7053_v52, 16  ;;  %v447_v22 = vshll.u32 %v7061_v62, 16 }
  0x50   : > { %6241 = vmatprep.mubr.msk.bf16.mxu0 %vm724_vm2, %v5359_v9  ;;  %v608_v2 = vsel %vm6792_vm3, %v603_v26, %v607_v23  ;;  %v613_v49 = vrot.slane %v612_v47, 4  ;;  %v620_v17 = vshrl.u32 %v7072_v54, 16  ;;  %v623_v24 = vshll.u32 %v7072_v54, 16 }
  0x51   : > { %v434_v56 = vor.u32 %v433_v61, %v430_v33  ;;  %v443_v37 = vrot.slane %v441_v15, 4  ;;  %v449_v34 = vrot.slane %v447_v22, 5  ;;  %v629_v48 = vshll.u32 %v7075_v32, 16 }
  0x52   : > { %v618_v27 = vsel %vm6792_vm3, %v613_v49, %v617_v55  ;;  %v622_v8 = vrot.slane %v620_v17, 4  ;;  %v625_v9 = vrot.slane %v623_v24, 5  ;;  %v633_v44 = vshrl.u32 %v7075_v32, 16  ;;  %v1249_v24 = vld [vmem:[%s6744_s29 + $0x18] sm:$0xe] }
  0x53   : > { %v5367_v23 = vcombine.low %v608_v2, %v618_v27  ;;  %v435_v26 = vrot.slane %v434_v56, 4  ;;  %v444_v47 = vor.u32 %v443_v37, %v439_v39  ;;  %v631_v51 = vrot.slane %v629_v48, 5 }
  0x54   : > { %v626_v54 = vor.u32 %v625_v9, %v622_v8  ;;  %v635_v42 = vrot.slane %v633_v44, 4  ;;  %v639_v33 = vshll.u32 %v7080_v38, 16  ;;  %v5425_v55 = vrot.slane %v1247_v28, 9 }
  0x55   : > { %6257 = vmatprep.mubr.msk.bf16.mxu1 %vm724_vm2, %v5367_v23  ;;  %v440_v27 = vsel %vm6792_vm3, %v435_v26, %v439_v39  ;;  %v445_v15 = vrot.slane %v444_v47, 4  ;;  %v1300_v22 = vrot.slane %v6750_v5, 5  ;;  %v5390_v44 = vcombine.low %v6785_v29, %v6788_v30 }
  0x56   : > { %v627_v8 = vrot.slane %v626_v54, 4  ;;  %v636_v2 = vor.u32 %v635_v42, %v631_v51  ;;  %v641_v49 = vrot.slane %v639_v33, 5  ;;  %v5426_v17 = vrot.slane %v1248_v35, 9 }
  0x57   : > { %v450_v56 = vsel %vm6792_vm3, %v445_v15, %v449_v34  ;;  %v1301_v28 = vsel %vm7096_vm6, %v5425_v55, %v1300_v22  ;;  %v1302_v37 = vrot.slane %v1300_v22, 4  ;;  %v9549_v39 = vrot.slane %v6788_v30, 5  ;;  %v1250_v15 = vld [vmem:[%s6744_s29 + $0x24] sm:$0xe]  ;;  %v1251_v22 = vld [vmem:[%s6744_s29 + $0x30] sm:$0xe] }
  0x58   : > { %v5360_v9 = vcombine.low %v440_v27, %v450_v56  ;;  %v632_v54 = vsel %vm6792_vm3, %v627_v8, %v631_v51  ;;  %v637_v42 = vrot.slane %v636_v2, 4  ;;  %v5389_v35 = vcombine.low %v6747_v4, %v6750_v5 }
  0x59   : > { %v1309_v48 = vrot.slane %v9549_v39, 4  ;;  %v9550_v23 = vrot.slane %v6753_v6, 5  ;;  %v9551_v26 = vmov %v9549_v39  ;;  %v5391_v33 = vcombine.low %v6829_v7, %v6836_v19  ;;  %v1253_v39 = vld [vmem:[%s6744_s29 + $0x48] sm:$0xe] }
  0x5a   : > { %v1308_v47 = vsel %vm7096_vm6, %v5426_v17, %v9551_v26  ;;  %v5427_v55 = vrot.slane %v1249_v24, 9  ;;  %6242 = vmatmul.mubr.msk.bf16.gmra.mxu0 %vm724_vm2, %v5360_v9  ;;  %v642_v4 = vsel %vm6792_vm3, %v637_v42, %v641_v49  ;;  %v9552_v6 = vrot.slane %v6798_v41, 5  ;;  %v1252_v24 = vld [vmem:[%s6744_s29 + $0x3c] sm:$0xe]  ;;  %v1254_v26 = vld [vmem:[%s6744_s29 + $0x54] sm:$0xe] }
  0x5b   : > { %v1304_v34 = vsel %vm7096_vm6, %v1302_v37, %v9550_v23  ;;  %v1314_v27 = vrot.slane %v6836_v19, 5  ;;  %v5368_v8 = vcombine.low %v632_v54, %v642_v4  ;;  %v1317_v7 = vrot.slane %v6842_v25, 5  ;;  %v6619_v23 = vld [vmem:[%s9495_s1 + $0x90] sm:$0xff]   ;;  %v1255_v4 = vld [vmem:[%s6744_s29 + $0x60] sm:$0xe] }
  0x5c   : > { %v5449_v5 = vcombine.low %v1301_v28, %v1304_v34  ;;  %v1311_v51 = vsel %vm7096_vm6, %v1309_v48, %v9552_v6  ;;  %v1321_v17 = vrot.slane %v6883_v12, 5  ;;  %v1328_v19 = vrot.slane %v6933_v16, 5 }
  0x5d   : > { %v1315_v2 = vsel %vm7096_vm6, %v5427_v55, %v1314_v27  ;;  %v1316_v49 = vrot.slane %v1314_v27, 4  ;;  %6258 = vmatmul.mubr.msk.bf16.gmra.mxu1 %vm724_vm2, %v5368_v8  ;;  %v5450_v41 = vcombine.low %v1308_v47, %v1311_v51  ;;  %v5428_v56 = vrot.slane %v1250_v15, 9 }
  0x5e   : > { %6309 = vmatprep.mubr.msk.bf16.mxu0 %vm724_vm2, %v5449_v5  ;;  %6269 = vmatprep.mubr.msk.bf16.mxu1 %vm724_vm2, %v5389_v35  ;;  %v1324_v28 = vrot.slane %v6887_v20, 5  ;;  %v5429_v37 = vrot.slane %v1251_v22, 9  ;;  %v1323_v9 = vrot.slane %v1321_v17, 4  ;;  %v1330_v54 = vrot.slane %v1328_v19, 4  ;;  %v6617_v22 = vld [vmem:[%s9495_s1 + $0x70] sm:$0xff]  }
  0x5f   : > { %v1318_v25 = vsel %vm7096_vm6, %v1316_v49, %v1317_v7  ;;  %v1331_v42 = vrot.slane %v6944_v40, 5  ;;  %v5430_v34 = vrot.slane %v1252_v24, 9  ;;  %v1335_v35 = vrot.slane %v6979_v10, 5  ;;  %v6625_v49 = vld [vmem:[%s9495_s1 + $0x88] sm:$0xff]  }
  0x60   : > { %v5451_v48 = vcombine.low %v1315_v2, %v1318_v25  ;;  %v1338_v47 = vrot.slane %v6982_v43, 5  ;;  %v5431_v55 = vrot.slane %v1253_v39, 9  ;;  %v1342_v20 = vrot.slane %v7014_v0, 5 }
  0x61   : > { %v5392_v5 = vcombine.low %v6871_v1, %v6883_v12  ;;  %v1322_v40 = vsel %vm7096_vm6, %v5428_v56, %v1321_v17  ;;  %v1337_v6 = vrot.slane %v1335_v35, 4  ;;  %v1345_v51 = vrot.slane %v7020_v36, 5  ;;  %v9557_v1 = vld [vmem:[#allocation7_spill] sm:$0xff] }
  0x62   : > { %6310 = vmatmul.mubr.msk.bf16.vlgmr.msra.gmra.mxu0 %vm724_vm2, %v5450_v41  ;;  %v1325_v43 = vsel %vm7096_vm6, %v1323_v9, %v1324_v28  ;;  %v1329_v27 = vsel %vm7096_vm6, %v5429_v37, %v1328_v19  ;;  %v1332_v15 = vsel %vm7096_vm6, %v1330_v54, %v1331_v42  ;;  %v1344_v8 = vrot.slane %v1342_v20, 4  ;;  %v7229_v54 = vld [vmem:[%s6744_s29 + $0x78] sm:$0xe]  ;;  %v1258_v42 = vld [vmem:[%s6744_s29 + $0x84] sm:$0xe] }
  0x63   : > { %6382 = vmatpush3.bf16.msra.mxu0 %v6928_v3  ;;  %6313 = vmatprep.mubr.msk.bf16.mxu0 %vm724_vm2, %v5451_v48  ;;  %v7178_v36 = vsel %vm7096_vm6, %v5430_v34, %v1335_v35  ;;  %v7182_v3 = vsel %vm7096_vm6, %v5431_v55, %v1342_v20  ;;  %v5432_v7 = vrot.slane %v1254_v26, 9  ;;  %v1349_v2 = vrot.slane %v7053_v52, 5  ;;  %v9563_v48 = vld [vmem:[#allocation13_spill] sm:$0xff] }
  0x64   : > { %6383 = vmatprep.subr.bf16.mxu0 %v6619_v23  ;;  %v7194_v17 = vsel %vm7096_vm6, %v1337_v6, %v1338_v47  ;;  %v7198_v41 = vsel %vm7096_vm6, %v1344_v8, %v1345_v51  ;;  %v1352_v19 = vrot.slane %v7061_v62, 5  ;;  %v5433_v24 = vrot.slane %v1255_v4, 9  ;;  %v1259_v47 = vld [vmem:[%s6744_s29 + $0x90] sm:$0xe]  ;;  %v6629_v6 = vld [vmem:[%s9495_s1 + $0x60] sm:$0xff]  }
  0x65   : > { %6270 = vmatmul.mubr.msk.bf16.vlgmr.msra.gmra.mxu1 %vm724_vm2, %v5390_v44  ;;  %v5452_v25 = vcombine.low %v1322_v40, %v1325_v43  ;;  %v5393_v29 = vcombine.low %v6919_v57, %v6933_v16  ;;  %v1351_v30 = vrot.slane %v1349_v2, 4  ;;  %v1356_v44 = vrot.slane %v6764_v13, 5  ;;  %v6623_v57 = vld [vmem:[%s9495_s1 + $0x68] sm:$0xff]  }
  0x66   : > { %6342 = vmatpush3.bf16.msra.mxu1 %v6960_v59  ;;  %6273 = vmatprep.mubr.msk.bf16.mxu1 %vm724_vm2, %v5391_v33  ;;  %v1359_v56 = vrot.slane %v6767_v14, 5  ;;  %v5453_v28 = vcombine.low %v1329_v27, %v1332_v15  ;;  %v5394_v62 = vcombine.low %v6974_v18, %v6979_v10  ;;  %v5395_v59 = vcombine.low %v7008_v46, %v7014_v0  ;;  %v7215_v16 = vld [vmem:[%s6744_s29 + $0x6c] sm:$0xe]  ;;  %v6631_v33 = vld [vmem:[%s9495_s1 + $0x80] sm:$0xff]  }
  0x67   : > { %6343 = vmatprep.subr.bf16.mxu1 %v6617_v22  ;;  %6384 = vmatpush3.bf16.msra.mxu0 %v6619_v23  ;;  %v5454_v37 = vcombine.low %v7178_v36, %v7194_v17  ;;  %v5455_v39 = vcombine.low %v7182_v3, %v7198_v41  ;;  %v7234_v23 = vsel %vm7096_vm6, %v5432_v7, %v1349_v2  ;;  %v1358_v55 = vrot.slane %v1356_v44, 4  ;;  %v9553_v36 = vld [vmem:[#allocation3_spill] sm:$0xff]  ;;  %v9554_v7 = vld [vmem:[#allocation2_spill] sm:$0xff] }
  0x68   : > { %6385 = vmatprep.subr.bf16.mxu0 %v6625_v49  ;;  %v7238_v34 = vsel %vm7096_vm6, %v1351_v30, %v1352_v19  ;;  %v7242_v35 = vsel %vm7096_vm6, %v5433_v24, %v1356_v44  ;;  %v5434_v20 = vrot.slane %v7215_v16, 9  ;;  %v1363_v4 = vrot.slane %v6815_v58, 5  ;;  %v9555_v19 = vld [vmem:[#allocation6_spill] sm:$0xff]  ;;  %v9556_v24 = vld [vmem:[#allocation5_spill] sm:$0xff]  ;;  %v9559_v16 = vld [vmem:[#allocation8_spill] sm:$0xff] }
  0x69   : > { %v1366_v51 = vrot.slane %v6823_v63, 5  ;;  %v5436_v43 = vrot.slane %v1258_v42, 9  ;;  %v1377_v27 = vrot.slane %v6906_v45, 5  ;;  %v1380_v15 = vrot.slane %v6911_v50, 5  ;;  %v7279_v44 = vld [vmem:[%s9495_s1 + $0xd8] sm:$0xff]   ;;  %v9560_v42 = vld [vmem:[#allocation10_spill] sm:$0xff] }
  0x6a   : > { %6314 = vmatmul.mubr.msk.bf16.gmra.mxu0 %vm724_vm2, %v5452_v25  ;;  %6344 = vmatpush3.bf16.msra.mxu1 %v6617_v22  ;;  %v1260_v22 = vld [vmem:[%s6744_s29 + $0x9c] sm:$0xe]  ;;  %v1384_v30 = vrot.slane %v9555_v19, 5  ;;  %v1387_v12 = vrot.slane %v9557_v1, 5  ;;  %v1394_v2 = vrot.slane %v9560_v42, 5  ;;  %v1401_v8 = vrot.slane %v9563_v48, 5 }
  0x6b   : > { %6317 = vmatprep.mubr.msk.bf16.mxu0 %vm724_vm2, %v5453_v28  ;;  %6345 = vmatprep.subr.bf16.mxu1 %v6623_v57  ;;  %v7273_v63 = vsel %vm7096_vm6, %v5436_v43, %v1377_v27  ;;  %v1379_v50 = vrot.slane %v1377_v27, 4  ;;  %v1365_v28 = vrot.slane %v1363_v4, 4  ;;  %v5438_v43 = vrot.slane %v1260_v22, 9  ;;  %v1261_v27 = vld [vmem:[%s6744_s29 + $0xa8] sm:$0xe] }
  0x6c   : > { %6386 = vmatpush3.bf16.msra.mxu0 %v6625_v49  ;;  %v5437_v49 = vrot.slane %v1259_v47, 9  ;;  %v1370_v47 = vrot.slane %v9553_v36, 5  ;;  %v5561_v17 = vld [vmem:[%s6744_s29 + $0xc] sm:$0xf]  ;;  %v7333_v48 = vsel %vm7096_vm6, %v5434_v20, %v1363_v4 }
  0x6d   : > { %6274 = vmatmul.mubr.msk.bf16.gmra.mxu1 %vm724_vm2, %v5392_v5  ;;  %6387 = vmatprep.subr.bf16.mxu0 %v6631_v33  ;;  %v9558_v5 = vld [vmem:[#allocation9_spill] sm:$0xff]  ;;  %v7289_v25 = vsel %vm7096_vm6, %v1379_v50, %v1380_v15  ;;  %v9561_v15 = vld [vmem:[#allocation12_spill] sm:$0xff]  ;;  %v9562_v50 = vld [vmem:[#allocation11_spill] sm:$0xff]  ;;  %v7345_v14 = vsel %vm7096_vm6, %v1365_v28, %v1366_v51  ;;  %v2168_v41 = vshrl.u32 %v5561_v17, 16 }
  0x6e   : > { %6277 = vmatprep.mubr.msk.bf16.mxu1 %vm724_vm2, %v5393_v29  ;;  %6346 = vmatpush3.bf16.msra.mxu1 %v6623_v57  ;;  %v7293_v40 = vsel %vm7096_vm6, %v5437_v49, %v1384_v30  ;;  %v1386_v29 = vrot.slane %v1384_v30, 4  ;;  %v7298_v57 = vld [vmem:[%s9495_s1 + $0xb8] sm:$0xff]   ;;  %v1391_v1 = vrot.slane %v9558_v5, 5  ;;  %v5439_v30 = vrot.slane %v1261_v27, 9  ;;  %v9564_v27 = vld [vmem:[#allocation14_spill] sm:$0xff] }
  0x6f   : > { %6347 = vmatprep.subr.bf16.mxu1 %v6629_v6  ;;  %v1398_v9 = vrot.slane %v9561_v15, 5  ;;  %v2170_v10 = vrot.slane %v2168_v41, 4  ;;  %v5565_v28 = vld [vmem:[%s6744_s29 + $0x1c] sm:$0xf] }
  0x70   : > { %6388 = vmatpush3.bf16.msra.mxu0 %v6631_v33  ;;  %v7308_v49 = vsel %vm7096_vm6, %v1386_v29, %v1387_v12  ;;  %v7319_v42 = vsel %vm7096_vm6, %v5438_v43, %v1391_v1  ;;  %v1393_v12 = vrot.slane %v1391_v1, 4  ;;  %v7340_v1 = vld [vmem:[%s6744_s29 + $0x10] sm:$0xf]  ;;  %v5566_v29 = vld [vmem:[%s6744_s29 + $0x20] sm:$0x1]  ;;  %v2201_v18 = vshll.u32 %v5565_v28, 16 }
  0x71   : > { %6461 = vmatprep.subr.bf16.mxu0 %v7279_v44  ;;  %v1400_v43 = vrot.slane %v1398_v9, 4  ;;  %v2181_v46 = vshrl.u32 %v7340_v1, 16  ;;  %v7458_v33 = vld [vmem:[%s6744_s29 + $0x44] sm:$0x1] }
  0x72   : > { %6318 = vmatmul.mubr.msk.bf16.gmra.mxu0 %vm724_vm2, %v5454_v37  ;;  %6348 = vmatpush3.bf16.msra.mxu1 %v6629_v6  ;;  %v1360_v37 = vsel %vm7096_vm6, %v1358_v55, %v1359_v56  ;;  %v7337_v6 = vsel %vm7096_vm6, %v5439_v30, %v1398_v9  ;;  %v7349_v3 = vsel %vm7096_vm6, %v1393_v12, %v1394_v2  ;;  %v2171_v56 = vshll.u32 %v5561_v17, 16  ;;  %v9565_v55 = vld [vmem:[#allocation4_spill] sm:$0xff] }
  0x73   : > { %6321 = vmatprep.mubr.msk.bf16.mxu0 %vm724_vm2, %v5455_v39  ;;  %6421 = vmatprep.subr.bf16.mxu1 %v7298_v57  ;;  %v5564_v39 = vld [vmem:[%s6744_s29 + $0x18] sm:$0xf]  ;;  %v1372_v9 = vrot.slane %v1370_v47, 4  ;;  %v1373_v20 = vrot.slane %v9565_v55, 5  ;;  %v7361_v51 = vsel %vm7096_vm6, %v1400_v43, %v1401_v8  ;;  %v1262_v2 = vld [vmem:[%s6744_s29 + $0xb4] sm:$0xe]  ;;  %v5457_v30 = vcombine.low %v7242_v35, %v1360_v37 }
  0x74   : > { %v2177_v17 = vshll.u32 %v7340_v1, 16  ;;  %v5458_v8 = vcombine.low %v7333_v48, %v7345_v14  ;;  %v7376_v12 = vld [vmem:[%s6744_s29 + $0x14] sm:$0x1]  ;;  %v2192_v0 = vshrl.u32 %v5564_v39, 16  ;;  %v9566_v43 = vrot.slane %v7229_v54, 9 }
  0x75   : > { %6278 = vmatmul.mubr.msk.bf16.gmra.mxu1 %vm724_vm2, %v5394_v62  ;;  %v2173_v62 = vrot.slane %v2171_v56, 5  ;;  %v1405_v56 = vrot.slane %v7075_v32, 5  ;;  %v2195_v26 = vshll.u32 %v5564_v39, 16  ;;  %v7387_v35 = vld [vmem:[%s6744_s29 + $0x28] sm:$0xf]  ;;  %v1374_v37 = vsel %vm7096_vm6, %v1372_v9, %v1373_v20 }
  0x76   : > { %6281 = vmatprep.mubr.msk.bf16.mxu1 %vm724_vm2, %v5395_v59  ;;  %v5567_v59 = vld [vmem:[%s6744_s29 + $0x24] sm:$0xf]  ;;  %v1371_v41 = vsel %vm7096_vm6, %v9566_v43, %v1370_v47  ;;  %v5440_v48 = vrot.slane %v1262_v2, 9  ;;  %v1408_v14 = vrot.slane %v7080_v38, 5  ;;  %v9567_v54 = vcombine.low %v7234_v23, %v7238_v34 }
  0x77   : > { %v2174_v55 = vor.u32 %v2173_v62, %v2170_v10  ;;  %v7396_v47 = vrot.slane %v2177_v17, 5  ;;  %v2183_v10 = vrot.slane %v2181_v46, 4  ;;  %v2194_v62 = vrot.slane %v2192_v0, 4  ;;  %v5570_v17 = vld [vmem:[%s6744_s29 + $0x30] sm:$0xf] }
  0x78   : > { %v2205_v39 = vshrl.u32 %v5565_v28, 16  ;;  %v2197_v43 = vrot.slane %v2195_v26, 5  ;;  %v7399_v4 = vrot.slane %v2201_v18, 5  ;;  %v2216_v9 = vshrl.u32 %v5567_v59, 16 }
  0x79   : > { %v2219_v38 = vshll.u32 %v5567_v59, 16  ;;  %v1407_v20 = vrot.slane %v1405_v56, 4  ;;  %v7401_v2 = vrot.slane %v2174_v55, 4  ;;  %v2187_v23 = vshll.u32 %v7376_v12, 16 }
  0x7a   : > { %6322 = vmatmul.mubr.msk.bf16.gmra.mxu0 %vm724_vm2, %v9567_v54  ;;  %v2207_v34 = vrot.slane %v2205_v39, 4  ;;  %v9568_v46 = vcombine.low %v7046_v60, %v7053_v52  ;;  %v2211_v28 = vshll.u32 %v5566_v29, 16  ;;  %v2218_v26 = vrot.slane %v2216_v9, 4  ;;  %v7420_v52 = vld [vmem:[%s6744_s29 + $0x2c] sm:$0x1] }
  0x7b   : > { %6325 = vmatprep.mubr.msk.bf16.mxu0 %vm724_vm2, %v5457_v30  ;;  %v2221_v18 = vrot.slane %v2219_v38, 5  ;;  %v2225_v30 = vshll.u32 %v7387_v35, 16  ;;  %v9569_v0 = vcombine.low %v6760_v11, %v6764_v13  ;;  %v5459_v59 = vcombine.low %v1371_v41, %v1374_v37  ;;  %v7427_v11 = vld [vmem:[%s6744_s29 + $0x34] sm:$0xf]  ;;  %v5573_v38 = vld [vmem:[%s6744_s29 + $0x3c] sm:$0xf] }
  0x7c   : > { %v7416_v55 = vsel %vm7096_vm6, %v5440_v48, %v1405_v56  ;;  %v2184_v60 = vor.u32 %v2183_v10, %v7396_v47  ;;  %v2229_v29 = vshrl.u32 %v7387_v35, 16  ;;  %v2198_v54 = vor.u32 %v2197_v43, %v2194_v62  ;;  %v7436_v10 = vld [vmem:[%s6744_s29 + $0x38] sm:$0x1] }
  0x7d   : > { %6282 = vmatmul.mubr.msk.bf16.gmra.mxu1 %vm724_vm2, %v9568_v46  ;;  %v2208_v39 = vor.u32 %v2207_v34, %v7399_v4  ;;  %v7424_v9 = vrot.slane %v2225_v30, 5  ;;  %v2240_v13 = vshrl.u32 %v5570_v17, 16  ;;  %v7431_v41 = vsel %vm7096_vm6, %v1407_v20, %v1408_v14 }
  0x7e   : > { %6285 = vmatprep.mubr.msk.bf16.mxu1 %vm724_vm2, %v9569_v0  ;;  %v7433_v56 = vrot.slane %v2187_v23, 5  ;;  %v2222_v37 = vor.u32 %v2221_v18, %v2218_v26  ;;  %v2231_v48 = vrot.slane %v2229_v29, 4  ;;  %v2180_v62 = vsel %vm6792_vm3, %v7401_v2, %v7396_v47  ;;  %v7451_v18 = vld [vmem:[%s6744_s29 + $0x40] sm:$0xf]  ;;  %v5576_v0 = vld [vmem:[%s6744_s29 + $0x48] sm:$0xf] }
  0x7f   : > { %v7443_v43 = vrot.slane %v2211_v28, 5  ;;  %v2235_v34 = vshll.u32 %v7420_v52, 16  ;;  %v2243_v46 = vshll.u32 %v5570_v17, 16  ;;  %v2242_v20 = vrot.slane %v2240_v13, 4 }
  0x80   : > { %v2232_v14 = vor.u32 %v2231_v48, %v7424_v9  ;;  %v2249_v23 = vshll.u32 %v7427_v11, 16  ;;  %v2253_v26 = vshrl.u32 %v7427_v11, 16  ;;  %v2185_v47 = vrot.slane %v2184_v60, 4 }
  0x81   : > { %v2199_v2 = vrot.slane %v2198_v54, 4  ;;  %v2209_v28 = vrot.slane %v2208_v39, 4  ;;  %v2245_v30 = vrot.slane %v2243_v46, 5  ;;  %v2223_v17 = vrot.slane %v2222_v37, 4 }
  0x82   : > { %6326 = vmatmul.mubr.msk.bf16.gmra.mxu0 %vm724_vm2, %v5458_v8  ;;  %v7455_v29 = vrot.slane %v2249_v23, 5  ;;  %v2255_v8 = vrot.slane %v2253_v26, 4  ;;  %v2264_v13 = vshrl.u32 %v5573_v38, 16  ;;  %v9570_v48 = vcombine.low %v6811_v53, %v6815_v58 }
  0x83   : > { %6329 = vmatprep.mubr.msk.bf16.mxu0 %vm724_vm2, %v5459_v59  ;;  %v2237_v22 = vrot.slane %v2235_v34, 5  ;;  %v2259_v59 = vshll.u32 %v7436_v10, 16  ;;  %v2267_v60 = vshll.u32 %v5573_v38, 16  ;;  %v2273_v54 = vshll.u32 %v7451_v18, 16 }
  0x84   : > { %v9571_v39 = vcombine.low %v9554_v7, %v9553_v36  ;;  %v2233_v37 = vrot.slane %v2232_v14, 4  ;;  %v2246_v46 = vor.u32 %v2245_v30, %v2242_v20  ;;  %v2266_v23 = vrot.slane %v2264_v13, 4  ;;  %v7484_v20 = vld [vmem:[%s6744_s29 + $0x4c] sm:$0xf] }
  0x85   : > { %6286 = vmatmul.mubr.msk.bf16.gmra.mxu1 %vm724_vm2, %v9570_v48  ;;  %v2277_v53 = vshrl.u32 %v7451_v18, 16  ;;  %v2190_v58 = vsel %vm6792_vm3, %v2185_v47, %v7433_v56  ;;  %v2256_v34 = vor.u32 %v2255_v8, %v7455_v29  ;;  %v2269_v38 = vrot.slane %v2267_v60, 5  ;;  %v5579_v48 = vld [vmem:[%s6744_s29 + $0x54] sm:$0xf]  ;;  %v7503_v60 = vld [vmem:[%s6744_s29 + $0x50] sm:$0x1] }
  0x86   : > { %6289 = vmatprep.mubr.msk.bf16.mxu1 %vm724_vm2, %v9571_v39  ;;  %v7475_v26 = vrot.slane %v2273_v54, 5  ;;  %v2204_v36 = vsel %vm6792_vm3, %v2199_v2, %v7399_v4  ;;  %v2214_v7 = vsel %vm6792_vm3, %v2209_v28, %v7443_v43  ;;  %v2288_v30 = vshrl.u32 %v5576_v0, 16  ;;  %v7507_v39 = vld [vmem:[%s6744_s29 + $0x58] sm:$0xf] }
  0x87   : > { %v2279_v14 = vrot.slane %v2277_v53, 4  ;;  %v2228_v56 = vsel %vm6792_vm3, %v2223_v17, %v7424_v9  ;;  %v2270_v47 = vor.u32 %v2269_v38, %v2266_v23  ;;  %v2283_v8 = vshll.u32 %v7458_v33, 16 }
  0x88   : > { %v2291_v13 = vshll.u32 %v5576_v0, 16  ;;  %v9572_v4 = vcombine.low %v7273_v63, %v7289_v25  ;;  %v2238_v43 = vsel %vm6792_vm3, %v2233_v37, %v2237_v22  ;;  %v2247_v2 = vrot.slane %v2246_v46, 4  ;;  %v5582_v46 = vld [vmem:[%s6744_s29 + $0x60] sm:$0xf] }
  0x89   : > { %v2261_v28 = vrot.slane %v2259_v59, 5  ;;  %v2280_v9 = vor.u32 %v2279_v14, %v7475_v26  ;;  %v9573_v17 = vcombine.low %v7293_v40, %v7308_v49  ;;  %v2257_v0 = vrot.slane %v2256_v34, 4  ;;  %v7516_v40 = vld [vmem:[%s6744_s29 + $0x64] sm:$0xf] }
  0x8a   : > { %6330 = vmatmul.mubr.msk.bf16.gmra.mxu0 %vm724_vm2, %v9572_v4  ;;  %v2290_v25 = vrot.slane %v2288_v30, 4  ;;  %v2293_v63 = vrot.slane %v2291_v13, 5  ;;  %v2297_v54 = vshll.u32 %v7484_v20, 16  ;;  %v5464_v22 = vcombine.low %v7416_v55, %v7431_v41  ;;  %v7620_v55 = vld [vmem:[%s6744_s29 + $0x88] sm:$0xf] }
  0x8b   : > { %6333 = vmatprep.mubr.msk.bf16.mxu0 %vm724_vm2, %v9573_v17  ;;  %v7511_v59 = vcombine.low %v2180_v62, %v2190_v58  ;;  %v2301_v37 = vshrl.u32 %v7484_v20, 16  ;;  %v9574_v49 = vcombine.low %v6890_v21, %v6906_v45  ;;  %v7522_v23 = vcombine.low %v2204_v36, %v2214_v7  ;;  %9582 = vst [vmem:[#allocation6_spill] sm:$0xff] %v7620_v55 }
  0x8c   : > { %v2271_v53 = vrot.slane %v2270_v47, 4  ;;  %v2281_v34 = vrot.slane %v2280_v9, 4  ;;  %v2285_v38 = vrot.slane %v2283_v8, 5  ;;  %v9575_v14 = vcombine.low %v9556_v24, %v9555_v19 }
  0x8d   : > { %6290 = vmatmul.mubr.msk.bf16.gmra.mxu1 %vm724_vm2, %v9574_v49  ;;  %v7528_v62 = vcombine.low %v2228_v56, %v2238_v43  ;;  %v2312_v58 = vshrl.u32 %v5579_v48, 16  ;;  %v2315_v30 = vshll.u32 %v5579_v48, 16  ;;  %v2321_v21 = vshll.u32 %v7507_v39, 16  ;;  %v7546_v48 = vld [vmem:[%s6744_s29 + $0x5c] sm:$0x1] }
  0x8e   : > { %6293 = vmatprep.mubr.msk.bf16.mxu1 %vm724_vm2, %v9575_v14  ;;  %v2252_v45 = vsel %vm6792_vm3, %v2247_v2, %v7455_v29  ;;  %v2262_v36 = vsel %vm6792_vm3, %v2257_v0, %v2261_v28  ;;  %v2294_v7 = vor.u32 %v2293_v63, %v2290_v25  ;;  %v7536_v47 = vrot.slane %v2297_v54, 5  ;;  %v5585_v2 = vld [vmem:[%s6744_s29 + $0x6c] sm:$0xf]  ;;  %v7557_v25 = vld [vmem:[%s6744_s29 + $0x68] sm:$0x1] }
  0x8f   : > { %v2303_v19 = vrot.slane %v2301_v37, 4  ;;  %v2307_v24 = vshll.u32 %v7503_v60, 16  ;;  %v2325_v56 = vshrl.u32 %v7507_v39, 16  ;;  %v2336_v8 = vshrl.u32 %v5582_v46, 16  ;;  %v7560_v63 = vld [vmem:[%s6744_s29 + $0x70] sm:$0xf] }
  0x90   : > { %v2276_v13 = vsel %vm6792_vm3, %v2271_v53, %v7475_v26  ;;  %v2286_v29 = vsel %vm6792_vm3, %v2281_v34, %v2285_v38  ;;  %v2339_v4 = vshll.u32 %v5582_v46, 16  ;;  %v2345_v43 = vshll.u32 %v7516_v40, 16  ;;  %v7575_v38 = vld [vmem:[%s6744_s29 + $0x74] sm:$0x1] }
  0x91   : > { %v9576_v28 = vcombine.low %v7319_v42, %v7349_v3  ;;  %v2314_v9 = vrot.slane %v2312_v58, 4  ;;  %v2317_v17 = vrot.slane %v2315_v30, 5  ;;  %v7554_v0 = vrot.slane %v2321_v21, 5  ;;  %v5588_v58 = vld [vmem:[%s6744_s29 + $0x78] sm:$0xf] }
  0x92   : > { %v2327_v26 = vrot.slane %v2325_v56, 4  ;;  %v9577_v54 = vcombine.low %v7337_v6, %v7361_v51  ;;  %v7566_v37 = vrot.slane %v2294_v7, 4  ;;  %v2338_v42 = vrot.slane %v2336_v8, 4 }
  0x93   : > { %6334 = vmatmul.mubr.msk.bf16.gmra.mxu0 %vm724_vm2, %v9576_v28  ;;  %v2341_v3 = vrot.slane %v2339_v4, 5  ;;  %v2349_v46 = vshrl.u32 %v7516_v40, 16  ;;  %v7569_v49 = vcombine.low %v2252_v45, %v2262_v36  ;;  %v2304_v53 = vor.u32 %v2303_v19, %v7536_v47 }
  0x94   : > { %6337 = vmatprep.mubr.msk.bf16.mxu0 %vm724_vm2, %v9577_v54  ;;  %v7572_v34 = vrot.slane %v2345_v43, 5  ;;  %v2360_v14 = vshrl.u32 %v5585_v2, 16  ;;  %v9578_v6 = vcombine.low %v9559_v16, %v9558_v5  ;;  %v7582_v51 = vcombine.low %v2276_v13, %v2286_v29  ;;  %v7593_v16 = vld [vmem:[%s6744_s29 + $0x7c] sm:$0xf] }
  0x95   : > { %v7584_v30 = vrot.slane %v2307_v24, 5  ;;  %v2331_v21 = vshll.u32 %v7546_v48, 16  ;;  %v2351_v45 = vrot.slane %v2349_v46, 4  ;;  %v9579_v36 = vcombine.low %v9562_v50, %v9561_v15  ;;  %9580 = vst [vmem:[#allocation3_spill] sm:$0xff] %v7593_v16 }
  0x96   : > { %6294 = vmatmul.mubr.msk.bf16.gmra.mxu1 %vm724_vm2, %v9578_v6  ;;  %v2318_v7 = vor.u32 %v2317_v17, %v2314_v9  ;;  %v2328_v19 = vor.u32 %v2327_v26, %v7554_v0  ;;  %v2362_v56 = vrot.slane %v2360_v14, 4  ;;  %v2363_v5 = vshll.u32 %v5585_v2, 16  ;;  %v5591_v2 = vld [vmem:[%s6744_s29 + $0x84] sm:$0xf]  ;;  %v6634_v26 = vld [vmem:[%s6744_s29 + $0xc] sm:$0xff]  }
  0x97   : > { %6297 = vmatprep.mubr.msk.bf16.mxu1 %vm724_vm2, %v9579_v36  ;;  %v2300_v24 = vsel %vm6792_vm3, %v7566_v37, %v7536_v47  ;;  %v2355_v8 = vshll.u32 %v7557_v25, 16  ;;  %v2369_v13 = vshll.u32 %v7560_v63, 16  ;;  %v2373_v15 = vshrl.u32 %v7560_v63, 16 }
  0x98   : > { %v2305_v50 = vrot.slane %v2304_v53, 4  ;;  %v2342_v29 = vor.u32 %v2341_v3, %v2338_v42  ;;  %v2352_v4 = vor.u32 %v2351_v45, %v7572_v34  ;;  %v2365_v43 = vrot.slane %v2363_v5, 5  ;;  %v7615_v53 = vld [vmem:[%s6744_s29 + $0x80] sm:$0x1]  ;;  %v5594_v5 = vld [vmem:[%s6744_s29 + $0x90] sm:$0xf] }
  0x99   : > { %v2333_v28 = vrot.slane %v2331_v21, 5  ;;  %v7604_v9 = vrot.slane %v2369_v13, 5  ;;  %v2379_v17 = vshll.u32 %v7575_v38, 16  ;;  %v2384_v47 = vshrl.u32 %v5588_v58, 16  ;;  %9581 = vst [vmem:[#allocation2_spill] sm:$0xff] %v7615_v53 }
  0x9a   : > { %v2319_v54 = vrot.slane %v2318_v7, 4  ;;  %v2329_v37 = vrot.slane %v2328_v19, 4  ;;  %v2366_v42 = vor.u32 %v2365_v43, %v2362_v56  ;;  %v2375_v3 = vrot.slane %v2373_v15, 4  ;;  %v7642_v15 = vld [vmem:[%s6744_s29 + $0x94] sm:$0xf] }
  0x9b   : > { %6338 = vmatmul.mubr.msk.bf16.gmra.mxu0 %vm724_vm2, %v5464_v22  ;;  %v2357_v46 = vrot.slane %v2355_v8, 5  ;;  %v2387_v14 = vshll.u32 %v5588_v58, 16  ;;  %v2393_v6 = vshll.u32 %v7593_v16, 16  ;;  %v2397_v21 = vshrl.u32 %v7593_v16, 16  ;;  %9584 = vst [vmem:[#allocation5_spill] sm:$0xff] %v7642_v15 }
  0x9c   : > { %6389 = vmatprep.mubr.msk.bf16.mxu0 %vm724_vm2, %v7511_v59  ;;  %v2310_v41 = vsel %vm6792_vm3, %v2305_v50, %v7584_v30  ;;  %v2343_v22 = vrot.slane %v2342_v29, 4  ;;  %v2353_v45 = vrot.slane %v2352_v4, 4  ;;  %v2376_v59 = vor.u32 %v2375_v3, %v7604_v9  ;;  %v6643_v30 = vld [vmem:[%s9495_s1 + $0xd0] sm:$0xff]   ;;  %v6636_v50 = vld [vmem:[%s6744_s29 + $0x18] sm:$0xff]   ;;  %v6638_v3 = vld [vmem:[%s6744_s29 + $0x24] sm:$0xff]  }
  0x9d   : > { %v9583_v36 = vcombine.low %v9564_v27, %v7075_v32  ;;  %v7630_v58 = vrot.slane %v2379_v17, 5  ;;  %v2386_v7 = vrot.slane %v2384_v47, 4  ;;  %v2389_v19 = vrot.slane %v2387_v14, 5  ;;  %v6641_v14 = vld [vmem:[%s9495_s1 + $0xb0] sm:$0xff]  }
  0x9e   : > { %v2408_v56 = vshrl.u32 %v5591_v2, 16  ;;  %v7637_v8 = vrot.slane %v2366_v42, 4  ;;  %v7639_v13 = vrot.slane %v2393_v6, 5  ;;  %v2399_v32 = vrot.slane %v2397_v21, 4 }
  0x9f   : > { %6298 = vmatmul.mubr.msk.bf16.gmra.mxu1 %vm724_vm2, %v9583_v36  ;;  %v2411_v27 = vshll.u32 %v5591_v2, 16  ;;  %v2324_v29 = vsel %vm6792_vm3, %v2319_v54, %v7554_v0  ;;  %v2334_v4 = vsel %vm6792_vm3, %v2329_v37, %v2333_v28  ;;  %v2417_v17 = vshll.u32 %v7620_v55, 16  ;;  %v7663_v37 = vld [vmem:[%s6744_s29 + $0x8c] sm:$0x1] }
  0xa0   : > { %6349 = vmatprep.mubr.msk.bf16.mxu1 %vm724_vm2, %v6634_v26  ;;  %v2410_v43 = vrot.slane %v2408_v56, 4  ;;  %v2377_v47 = vrot.slane %v2376_v59, 4  ;;  %v2403_v26 = vshll.u32 %v7615_v53, 16  ;;  %v2421_v2 = vshrl.u32 %v7620_v55, 16  ;;  %9585 = vst [vmem:[#allocation7_spill] sm:$0xff] %v7663_v37 }
  0xa1   : > { %v2413_v42 = vrot.slane %v2411_v27, 5  ;;  %v2348_v0 = vsel %vm6792_vm3, %v2343_v22, %v7572_v34  ;;  %v2358_v28 = vsel %vm6792_vm3, %v2353_v45, %v2357_v46  ;;  %v2390_v54 = vor.u32 %v2389_v19, %v2386_v7  ;;  %v5597_v34 = vld [vmem:[%s6744_s29 + $0x9c] sm:$0xf]  ;;  %v6649_v7 = vld [vmem:[%s9495_s1 + $0xc8] sm:$0xff]   ;;  %v7694_v19 = vld [vmem:[%s6744_s29 + $0x98] sm:$0x1] }
  0xa2   : > { %v7665_v6 = vrot.slane %v2417_v17, 5  ;;  %v7669_v21 = vcombine.low %v2300_v24, %v2310_v41  ;;  %v7671_v59 = vcombine.low %v2324_v29, %v2334_v4  ;;  %v2423_v36 = vrot.slane %v2421_v2, 4  ;;  %9586 = vst [vmem:[#allocation9_spill] sm:$0xff] %v7694_v19  ;;  %v5600_v29 = vld [vmem:[%s6744_s29 + $0xa8] sm:$0xf] }
  0xa3   : > { %6390 = vmatmul.mubr.msk.bf16.vlgmr.msra.gmra.mxu0 %vm724_vm2, %v7522_v23  ;;  %v2432_v56 = vshrl.u32 %v5594_v5, 16  ;;  %v2400_v46 = vor.u32 %v2399_v32, %v7639_v13  ;;  %v2414_v22 = vor.u32 %v2413_v42, %v2410_v43  ;;  %v2435_v45 = vshll.u32 %v5594_v5, 16  ;;  %v7697_v5 = vld [vmem:[%s6744_s29 + $0xa0] sm:$0xf] }
  0xa4   : > { %6462 = vmatpush3.bf16.msra.mxu0 %v7279_v44  ;;  %6393 = vmatprep.mubr.msk.bf16.mxu0 %vm724_vm2, %v7528_v62  ;;  %v2441_v23 = vshll.u32 %v7642_v15, 16  ;;  %v7679_v24 = vcombine.low %v2348_v0, %v2358_v28  ;;  %v2372_v41 = vsel %vm6792_vm3, %v7637_v8, %v7604_v9  ;;  %v2382_v44 = vsel %vm6792_vm3, %v2377_v47, %v7630_v58  ;;  %v7703_v9 = vld [vmem:[%s9495_s1 + $0xa8] sm:$0xff]   ;;  %v6639_v47 = vld [vmem:[%s6744_s29 + $0x30] sm:$0xff]  }
  0xa5   : > { %6463 = vmatprep.subr.bf16.mxu0 %v6643_v30  ;;  %v7688_v62 = vrot.slane %v2403_v26, 5  ;;  %9587 = vst [vmem:[#allocation8_spill] sm:$0xff] %v7697_v5  ;;  %v7705_v8 = vrot.slane %v2390_v54, 4  ;;  %v2424_v58 = vor.u32 %v2423_v36, %v7665_v6  ;;  %v2427_v32 = vshll.u32 %v7663_v37, 16  ;;  %v7722_v28 = vld [vmem:[%s6744_s29 + $0xac] sm:$0xf] }
  0xa6   : > { %v2445_v27 = vshrl.u32 %v7642_v15, 16  ;;  %v2437_v4 = vrot.slane %v2435_v45, 5  ;;  %v2456_v43 = vshrl.u32 %v5597_v34, 16  ;;  %v2459_v17 = vshll.u32 %v5597_v34, 16  ;;  %9588 = vst [vmem:[#allocation10_spill] sm:$0xff] %v7722_v28  ;;  %v6642_v37 = vld [vmem:[%s6744_s29 + $0x48] sm:$0xff]  }
  0xa7   : > { %6350 = vmatmul.mubr.msk.bf16.vlgmr.msra.gmra.mxu1 %vm724_vm2, %v6636_v50  ;;  %v2434_v50 = vrot.slane %v2432_v56, 4  ;;  %v7714_v26 = vrot.slane %v2400_v46, 4  ;;  %v7716_v42 = vrot.slane %v2414_v22, 4  ;;  %v7718_v2 = vrot.slane %v2441_v23, 5  ;;  %v7726_v54 = vld [vmem:[%s6744_s29 + $0xa4] sm:$0x1] }
  0xa8   : > { %6422 = vmatpush3.bf16.msra.mxu1 %v7298_v57  ;;  %6353 = vmatprep.mubr.msk.bf16.mxu1 %vm724_vm2, %v6638_v3  ;;  %v2465_v0 = vshll.u32 %v7697_v5, 16  ;;  %v6640_v57 = vld [vmem:[%s6744_s29 + $0x3c] sm:$0xff]   ;;  %v2447_v3 = vrot.slane %v2445_v27, 4  ;;  %9589 = vst [vmem:[#allocation12_spill] sm:$0xff] %v7726_v54  ;;  %v2458_v36 = vrot.slane %v2456_v43, 4  ;;  %v2461_v56 = vrot.slane %v2459_v17, 5 }
  0xa9   : > { %6423 = vmatprep.subr.bf16.mxu1 %v6641_v14  ;;  %6464 = vmatpush3.bf16.msra.mxu0 %v6643_v30  ;;  %v2469_v30 = vshrl.u32 %v7697_v5, 16  ;;  %v7729_v34 = vcombine.low %v2372_v41, %v2382_v44  ;;  %v7731_v46 = vrot.slane %v2424_v58, 4  ;;  %v7733_v22 = vrot.slane %v2427_v32, 5  ;;  %v6655_v23 = vld [vmem:[%s9495_s1 + $0xc0] sm:$0xff]   ;;  %v7747_v58 = vld [vmem:[%s6744_s29 + $0xb0] sm:$0x1] }
  0xaa   : > { %6465 = vmatprep.subr.bf16.mxu0 %v6649_v7  ;;  %v2451_v45 = vshll.u32 %v7694_v19, 16  ;;  %v2438_v27 = vor.u32 %v2437_v4, %v2434_v50  ;;  %v7741_v43 = vrot.slane %v2465_v0, 5  ;;  %v6653_v44 = vld [vmem:[%s9495_s1 + $0xa0] sm:$0xff]   ;;  %v2480_v32 = vshrl.u32 %v5600_v29, 16  ;;  %v5603_v17 = vld [vmem:[%s6744_s29 + $0xb4] sm:$0xf] }
  0xab   : > { %6394 = vmatmul.mubr.msk.bf16.gmra.mxu0 %vm724_vm2, %v7569_v49  ;;  %v2471_v41 = vrot.slane %v2469_v30, 4  ;;  %v2483_v50 = vshll.u32 %v5600_v29, 16  ;;  %v2489_v4 = vshll.u32 %v7722_v28, 16  ;;  %v2448_v0 = vor.u32 %v2447_v3, %v7718_v2  ;;  %v7768_v5 = vld [vmem:[%s6744_s29 + $0xb8] sm:$0xf] }
  0xac   : > { %6424 = vmatpush3.bf16.msra.mxu1 %v6641_v14  ;;  %6397 = vmatprep.mubr.msk.bf16.mxu0 %vm724_vm2, %v7582_v51  ;;  %v2462_v30 = vor.u32 %v2461_v56, %v2458_v36  ;;  %v2482_v49 = vrot.slane %v2480_v32, 4  ;;  %9590 = vst [vmem:[#allocation11_spill] sm:$0xff] %v7768_v5  ;;  %v7773_v29 = vld [vmem:[%s9495_s1 + $0x118] sm:$0xff]   ;;  %v2493_v51 = vshrl.u32 %v7722_v28, 16  ;;  %v7794_v56 = vrot.slane %v2438_v27, 4 }
  0xad   : > { %6425 = vmatprep.subr.bf16.mxu1 %v7703_v9  ;;  %6466 = vmatpush3.bf16.msra.mxu0 %v6649_v7  ;;  %9591 = vst [vmem:[#allocation13_spill] sm:$0xff] %v7773_v29  ;;  %v2475_v7 = vshll.u32 %v7726_v54, 16  ;;  %v2485_v14 = vrot.slane %v2483_v50, 5  ;;  %v7777_v19 = vrot.slane %v2489_v4, 5  ;;  %v7781_v3 = vld [vmem:[%s6744_s29 + $0xbc] sm:$0x1]  ;;  %v2472_v50 = vor.u32 %v2471_v41, %v7741_v43 }
  0xae   : > { %6467 = vmatprep.subr.bf16.mxu0 %v6655_v23  ;;  %v7786_v36 = vld [vmem:[%s9495_s1 + $0xf8] sm:$0xff]   ;;  %v7796_v32 = vrot.slane %v2451_v45, 5  ;;  %v5606_v4 = vld [vmem:[%s6744_s29 + $0xc0] sm:$0xf]  ;;  %v2495_v28 = vrot.slane %v2493_v51, 4  ;;  %v2499_v54 = vshll.u32 %v7747_v58, 16 }
  0xaf   : > { %6354 = vmatmul.mubr.msk.bf16.gmra.mxu1 %vm724_vm2, %v6639_v47  ;;  %v2430_v47 = vsel %vm6792_vm3, %v7731_v46, %v7733_v22  ;;  %v2507_v15 = vshll.u32 %v5603_v17, 16  ;;  %v7805_v55 = vrot.slane %v2448_v0, 4  ;;  %v2486_v46 = vor.u32 %v2485_v14, %v2482_v49  ;;  %v6644_v27 = vld [vmem:[%s6744_s29 + $0x54] sm:$0xff]  }
  0xb0   : > { %6357 = vmatprep.mubr.msk.bf16.mxu1 %vm724_vm2, %v6640_v57  ;;  %6426 = vmatpush3.bf16.msra.mxu1 %v7703_v9  ;;  %v2504_v57 = vshrl.u32 %v5603_v17, 16  ;;  %v7802_v9 = vld [vmem:[%s6744_s29 + $0xc4] sm:$0xf]  ;;  %v2513_v22 = vshll.u32 %v7768_v5, 16  ;;  %v2517_v45 = vshrl.u32 %v7768_v5, 16  ;;  %v2463_v41 = vrot.slane %v2462_v30, 4 }
  0xb1   : > { %6427 = vmatprep.subr.bf16.mxu1 %v6653_v44  ;;  %6468 = vmatpush3.bf16.msra.mxu0 %v6655_v23  ;;  %v2477_v53 = vrot.slane %v2475_v7, 5  ;;  %v2496_v51 = vor.u32 %v2495_v28, %v7777_v19  ;;  %v2509_v17 = vrot.slane %v2507_v15, 5  ;;  %v2523_v14 = vshll.u32 %v7781_v3, 16 }
  0xb2   : > { %v2506_v16 = vrot.slane %v2504_v57, 4  ;;  %6541 = vmatprep.subr.bf16.mxu0 %v7773_v29  ;;  %v2515_v49 = vrot.slane %v2513_v22, 5  ;;  %v2519_v23 = vrot.slane %v2517_v45, 4  ;;  %v2473_v0 = vrot.slane %v2472_v50, 4  ;;  %v6645_v45 = vld [vmem:[%s6744_s29 + $0x60] sm:$0xff]  }
  0xb3   : > { %6398 = vmatmul.mubr.msk.bf16.gmra.mxu0 %vm724_vm2, %v7669_v21  ;;  %v2501_v30 = vrot.slane %v2499_v54, 5  ;;  %v2528_v7 = vshrl.u32 %v5606_v4, 16  ;;  %v2531_v28 = vshll.u32 %v5606_v4, 16  ;;  %v2487_v57 = vrot.slane %v2486_v46, 4  ;;  %v7819_v21 = vld [vmem:[%s6744_s29 + $0xc8] sm:$0x1] }
  0xb4   : > { %6428 = vmatpush3.bf16.msra.mxu1 %v6653_v44  ;;  %6401 = vmatprep.mubr.msk.bf16.mxu0 %vm724_vm2, %v7671_v59  ;;  %v2510_v29 = vor.u32 %v2509_v17, %v2506_v16  ;;  %v2520_v5 = vor.u32 %v2519_v23, %v2515_v49  ;;  %v2537_v15 = vshll.u32 %v7802_v9, 16  ;;  %v2497_v44 = vrot.slane %v2496_v51, 4  ;;  %v6646_v23 = vld [vmem:[%s6744_s29 + $0x6c] sm:$0xff]  }
  0xb5   : > { %6501 = vmatprep.subr.bf16.mxu1 %v7786_v36  ;;  %v2530_v22 = vrot.slane %v2528_v7, 4  ;;  %v2533_v59 = vrot.slane %v2531_v28, 5  ;;  %v2541_v54 = vshrl.u32 %v7802_v9, 16  ;;  %v2525_v46 = vrot.slane %v2523_v14, 5 }
  0xb6   : > { %v2511_v50 = vrot.slane %v2510_v29, 4  ;;  %v2521_v4 = vrot.slane %v2520_v5, 4  ;;  %v7825_v16 = vrot.slane %v2537_v15, 5  ;;  %v9593_v51 = vsel %vm6792_vm3, %v7705_v8, %v7639_v13 }
  0xb7   : > { %6358 = vmatmul.mubr.msk.bf16.gmra.mxu1 %vm724_vm2, %v6642_v37  ;;  %v9592_v37 = vsel %vm6792_vm3, %v7714_v26, %v7688_v62  ;;  %v2543_v29 = vrot.slane %v2541_v54, 4  ;;  %v2547_v5 = vshll.u32 %v7819_v21, 16  ;;  %v9594_v14 = vsel %vm6792_vm3, %v7716_v42, %v7665_v6  ;;  %v5655_v26 = vld [vmem:[%s6744_s29 + $0x24] sm:$0xe] }
  0xb8   : > { %6361 = vmatprep.mubr.msk.bf16.mxu1 %vm724_vm2, %v6644_v27  ;;  %v5626_v17 = vcombine.low %v9593_v51, %v9592_v37  ;;  %v2534_v27 = vor.u32 %v2533_v59, %v2530_v22  ;;  %v5627_v7 = vcombine.low %v9594_v14, %v2430_v47  ;;  %v2444_v62 = vsel %vm6792_vm3, %v7794_v56, %v7718_v2  ;;  %v7866_v56 = vld [vmem:[%s6744_s29 + $0xc] sm:$0xe] }
  0xb9   : > { %v2454_v13 = vsel %vm6792_vm3, %v7805_v55, %v7796_v32  ;;  %v2468_v8 = vsel %vm6792_vm3, %v2463_v41, %v7741_v43  ;;  %v2478_v6 = vsel %vm6792_vm3, %v2473_v0, %v2477_v53  ;;  %v2492_v42 = vsel %vm6792_vm3, %v2487_v57, %v7777_v19  ;;  %v5656_v55 = vld [vmem:[%s6744_s29 + $0x30] sm:$0xe]  ;;  %v5657_v41 = vld [vmem:[%s6744_s29 + $0x3c] sm:$0xe] }
  0xba   : > { %v2502_v2 = vsel %vm6792_vm3, %v2497_v44, %v2501_v30  ;;  %v2544_v47 = vor.u32 %v2543_v29, %v7825_v16  ;;  %v2516_v43 = vsel %vm6792_vm3, %v2511_v50, %v2515_v49  ;;  %v2526_v53 = vsel %vm6792_vm3, %v2521_v4, %v2525_v46  ;;  %v5658_v49 = vld [vmem:[%s6744_s29 + $0x48] sm:$0xe] }
  0xbb   : > { %6402 = vmatmul.mubr.msk.bf16.gmra.mxu0 %vm724_vm2, %v7679_v24  ;;  %v7875_v32 = vrot.slane %v2534_v27, 4  ;;  %v2939_v19 = vrot.slane %v7340_v1, 5  ;;  %v7881_v0 = vcombine.low %v2444_v62, %v2454_v13  ;;  %v7885_v28 = vrot.slane %v2547_v5, 5  ;;  %v6648_v13 = vld [vmem:[%s6744_s29 + $0x78] sm:$0xff]   ;;  %v6657_v1 = vld [vmem:[%s6744_s29 + $0xc0] sm:$0xff]  }
  0xbc   : > { %6405 = vmatprep.mubr.msk.bf16.mxu0 %vm724_vm2, %v7729_v34  ;;  %v7883_v30 = vrot.slane %v2544_v47, 4  ;;  %v5671_v24 = vrot.slane %v5655_v26, 9  ;;  %v7888_v57 = vcombine.low %v2468_v8, %v2478_v6  ;;  %v7890_v15 = vcombine.low %v2492_v42, %v2502_v2  ;;  %v5660_v6 = vld [vmem:[%s6744_s29 + $0x60] sm:$0xe] }
  0xbd   : > { %v5669_v44 = vrot.slane %v7866_v56, 9  ;;  %v2953_v22 = vrot.slane %v7387_v35, 5  ;;  %v7895_v34 = vcombine.low %v2516_v43, %v2526_v53  ;;  %v2942_v59 = vrot.slane %v7376_v12, 5  ;;  %v5661_v53 = vld [vmem:[%s6744_s29 + $0x6c] sm:$0xe] }
  0xbe   : > { %v2956_v54 = vrot.slane %v7420_v52, 5  ;;  %v5672_v50 = vrot.slane %v5656_v55, 9  ;;  %v2540_v4 = vsel %vm6792_vm3, %v7875_v32, %v7825_v16  ;;  %v7906_v35 = vrot.slane %v2939_v19, 4  ;;  %v5659_v52 = vld [vmem:[%s6744_s29 + $0x54] sm:$0xe]  ;;  %v6658_v32 = vld [vmem:[%s6744_s29 + $0x18] sm:$0xff]  }
  0xbf   : > { %6362 = vmatmul.mubr.msk.bf16.gmra.mxu1 %vm724_vm2, %v6645_v45  ;;  %v7910_v46 = vsel %vm7096_vm6, %v5671_v24, %v2953_v22  ;;  %v2955_v45 = vrot.slane %v2953_v22, 4  ;;  %v2550_v37 = vsel %vm6792_vm3, %v7883_v30, %v7885_v28  ;;  %v2960_v51 = vrot.slane %v7427_v11, 5  ;;  %v5654_v28 = vld [vmem:[%s6744_s29 + $0x18] sm:$0xe] }
  0xc0   : > { %6365 = vmatprep.mubr.msk.bf16.mxu1 %vm724_vm2, %v6646_v23  ;;  %v2963_v27 = vrot.slane %v7436_v10, 5  ;;  %v5673_v29 = vrot.slane %v5657_v41, 9  ;;  %v2967_v23 = vrot.slane %v7451_v18, 5  ;;  %v2970_v14 = vrot.slane %v7458_v33, 5  ;;  %v6650_v18 = vld [vmem:[%s6744_s29 + $0x84] sm:$0xff]  }
  0xc1   : > { %v7921_v5 = vsel %vm7096_vm6, %v2955_v45, %v2956_v54  ;;  %v5674_v62 = vrot.slane %v5658_v49, 9  ;;  %v7930_v11 = vsel %vm7096_vm6, %v5672_v50, %v2960_v51  ;;  %v2962_v10 = vrot.slane %v2960_v51, 4  ;;  %v5662_v49 = vld [vmem:[%s6744_s29 + $0x78] sm:$0xe] }
  0xc2   : > { %v5695_v8 = vcombine.low %v7910_v46, %v7921_v5  ;;  %v2974_v26 = vrot.slane %v7484_v20, 5  ;;  %v7938_v33 = vsel %vm7096_vm6, %v5673_v29, %v2967_v23  ;;  %v2969_v42 = vrot.slane %v2967_v23, 4 }
  0xc3   : > { %6406 = vmatmul.mubr.msk.bf16.gmra.mxu0 %vm724_vm2, %v5626_v17  ;;  %v2977_v2 = vrot.slane %v7503_v60, 5  ;;  %v5675_v47 = vrot.slane %v5659_v52, 9  ;;  %v7944_v55 = vsel %vm7096_vm6, %v2962_v10, %v2963_v27  ;;  %v2981_v43 = vrot.slane %v7507_v39, 5  ;;  %v5663_v27 = vld [vmem:[%s6744_s29 + $0x84] sm:$0xe]  ;;  %v9595_v10 = vld [vmem:[#allocation3_spill] sm:$0xff] }
  0xc4   : > { %6409 = vmatprep.mubr.msk.bf16.mxu0 %vm724_vm2, %v5627_v7  ;;  %v7948_v20 = vsel %vm7096_vm6, %v5674_v62, %v2974_v26  ;;  %v2976_v17 = vrot.slane %v2974_v26, 4  ;;  %v5696_v41 = vcombine.low %v7930_v11, %v7944_v55  ;;  %v7956_v60 = vsel %vm7096_vm6, %v2969_v42, %v2970_v14  ;;  %v6666_v11 = vld [vmem:[%s6744_s29 + $0x54] sm:$0xff]  }
  0xc5   : > { %v2984_v7 = vrot.slane %v7546_v48, 5  ;;  %v5676_v24 = vrot.slane %v5660_v6, 9  ;;  %v5697_v22 = vcombine.low %v7938_v33, %v7956_v60  ;;  %v7969_v54 = vsel %vm7096_vm6, %v5675_v47, %v2981_v43  ;;  %v5664_v6 = vld [vmem:[%s6744_s29 + $0x90] sm:$0xe]  ;;  %v8230_v48 = vld [vmem:[%s6744_s29 + $0x38] sm:$0x1] }
  0xc6   : > { %v7965_v39 = vsel %vm7096_vm6, %v2976_v17, %v2977_v2  ;;  %v2983_v50 = vrot.slane %v2981_v43, 4  ;;  %v2988_v45 = vrot.slane %v7516_v40, 5  ;;  %v2991_v52 = vrot.slane %v7557_v25, 5  ;;  %v6652_v17 = vld [vmem:[%s6744_s29 + $0x9c] sm:$0xff]  }
  0xc7   : > { %6366 = vmatmul.mubr.msk.bf16.gmra.mxu1 %vm724_vm2, %v6648_v13  ;;  %v5677_v51 = vrot.slane %v5661_v53, 9  ;;  %v2995_v23 = vrot.slane %v7560_v63, 5  ;;  %v2998_v14 = vrot.slane %v7575_v38, 5  ;;  %v5678_v62 = vrot.slane %v5662_v49, 9  ;;  %v9596_v38 = vld [vmem:[#allocation2_spill] sm:$0xff] }
  0xc8   : > { %6369 = vmatprep.mubr.msk.bf16.mxu1 %vm724_vm2, %v6650_v18  ;;  %v7979_v29 = vsel %vm7096_vm6, %v2983_v50, %v2984_v7  ;;  %v7987_v40 = vsel %vm7096_vm6, %v5676_v24, %v2988_v45  ;;  %v2990_v25 = vrot.slane %v2988_v45, 4  ;;  %v3002_v26 = vrot.slane %v9595_v10, 5  ;;  %v6651_v18 = vld [vmem:[%s6744_s29 + $0x90] sm:$0xff]   ;;  %v9597_v24 = vld [vmem:[#allocation6_spill] sm:$0xff]  ;;  %v5665_v50 = vld [vmem:[%s6744_s29 + $0x9c] sm:$0xe] }
  0xc9   : > { %v7994_v42 = vsel %vm7096_vm6, %v5677_v51, %v2995_v23  ;;  %v2997_v63 = vrot.slane %v2995_v23, 4  ;;  %v3005_v2 = vrot.slane %v9596_v38, 5  ;;  %v5679_v47 = vrot.slane %v5663_v27, 9  ;;  %v5666_v23 = vld [vmem:[%s6744_s29 + $0xa8] sm:$0xe] }
  0xca   : > { %v8002_v43 = vsel %vm7096_vm6, %v2990_v25, %v2991_v52  ;;  %v8006_v53 = vsel %vm7096_vm6, %v5678_v62, %v3002_v26  ;;  %v3004_v7 = vrot.slane %v3002_v26, 4  ;;  %v3009_v49 = vrot.slane %v9597_v24, 5  ;;  %v9598_v52 = vld [vmem:[#allocation7_spill] sm:$0xff]  ;;  %v9599_v26 = vld [vmem:[#allocation5_spill] sm:$0xff] }
  0xcb   : > { %6410 = vmatmul.mubr.msk.bf16.gmra.mxu0 %vm724_vm2, %v7881_v0  ;;  %v8016_v45 = vsel %vm7096_vm6, %v2997_v63, %v2998_v14  ;;  %v3012_v51 = vrot.slane %v9598_v52, 5  ;;  %v5680_v27 = vrot.slane %v5664_v6, 9  ;;  %v3016_v6 = vrot.slane %v9599_v26, 5  ;;  %v9600_v63 = vld [vmem:[#allocation9_spill] sm:$0xff]  ;;  %v5667_v52 = vld [vmem:[%s6744_s29 + $0xb4] sm:$0xe] }
  0xcc   : > { %6413 = vmatprep.mubr.msk.bf16.mxu0 %vm724_vm2, %v7888_v57  ;;  %v8024_v25 = vsel %vm7096_vm6, %v3004_v7, %v3005_v2  ;;  %v8028_v57 = vsel %vm7096_vm6, %v5679_v47, %v3009_v49  ;;  %v3011_v10 = vrot.slane %v3009_v49, 4  ;;  %v3019_v38 = vrot.slane %v9600_v63, 5  ;;  %v9601_v47 = vld [vmem:[#allocation8_spill] sm:$0xff]  ;;  %v9603_v14 = vld [vmem:[#allocation10_spill] sm:$0xff] }
  0xcd   : > { %v5681_v24 = vrot.slane %v5665_v50, 9  ;;  %v3023_v7 = vrot.slane %v9601_v47, 5  ;;  %v9602_v49 = vld [vmem:[#allocation12_spill] sm:$0xff]  ;;  %v5682_v62 = vrot.slane %v5666_v23, 9  ;;  %v8047_v50 = vsel %vm7096_vm6, %v5680_v27, %v3016_v6  ;;  %v5668_v0 = vld [vmem:[%s6744_s29 + $0xc0] sm:$0xe] }
  0xce   : > { %v8039_v2 = vsel %vm7096_vm6, %v3011_v10, %v3012_v51  ;;  %v3018_v63 = vrot.slane %v3016_v6, 4  ;;  %v3033_v47 = vrot.slane %v7747_v58, 5  ;;  %v5683_v23 = vrot.slane %v5667_v52, 9 }
  0xcf   : > { %6370 = vmatmul.mubr.msk.bf16.gmra.mxu1 %vm724_vm2, %v6651_v18  ;;  %v3026_v18 = vrot.slane %v9602_v49, 5  ;;  %v8053_v51 = vsel %vm7096_vm6, %v5681_v24, %v3023_v7  ;;  %v3025_v10 = vrot.slane %v3023_v7, 4  ;;  %v6654_v49 = vld [vmem:[%s6744_s29 + $0xa8] sm:$0xff]   ;;  %v6656_v24 = vld [vmem:[%s6744_s29 + $0xb4] sm:$0xff]   ;;  %v5684_v7 = vrot.slane %v5668_v0, 9 }
  0xd0   : > { %6373 = vmatprep.mubr.msk.bf16.mxu1 %vm724_vm2, %v6652_v17  ;;  %v3030_v17 = vrot.slane %v9603_v14, 5  ;;  %v8059_v26 = vsel %vm7096_vm6, %v3018_v63, %v3019_v38  ;;  %v9604_v14 = vld [vmem:[#allocation11_spill] sm:$0xff]  ;;  %v3040_v38 = vrot.slane %v7781_v3, 5  ;;  %v3044_v0 = vrot.slane %v7802_v9, 5 }
  0xd1   : > { %v3037_v13 = vrot.slane %v9604_v14, 5  ;;  %v8073_v52 = vsel %vm7096_vm6, %v3025_v10, %v3026_v18  ;;  %v5632_v9 = vcombine.low %v2540_v4, %v2550_v37  ;;  %v2940_v30 = vsel %vm7096_vm6, %v5669_v44, %v2939_v19  ;;  %v6662_v14 = vld [vmem:[%s6744_s29 + $0x30] sm:$0xff]  }
  0xd2   : > { %v8063_v27 = vsel %vm7096_vm6, %v5682_v62, %v3030_v17  ;;  %v3032_v6 = vrot.slane %v3030_v17, 4  ;;  %v6682_v17 = vld [vmem:[%s6744_s29 + $0x1c] sm:$0xf]  ;;  %v2943_v16 = vsel %vm7096_vm6, %v7906_v35, %v2942_v59  ;;  %v5670_v19 = vrot.slane %v5654_v28, 9  ;;  %v6683_v59 = vld [vmem:[%s6744_s29 + $0x20] sm:$0x1] }
  0xd3   : > { %6414 = vmatmul.mubr.msk.bf16.gmra.mxu0 %vm724_vm2, %v7890_v15  ;;  %v8086_v63 = vsel %vm7096_vm6, %v5683_v23, %v3037_v13  ;;  %v3039_v18 = vrot.slane %v3037_v13, 4  ;;  %v2946_v10 = vrot.slane %v6682_v17, 5  ;;  %v8113_v13 = vsel %vm7096_vm6, %v5684_v7, %v3044_v0  ;;  %v8151_v7 = vld [vmem:[%s6744_s29 + $0x1c] sm:$0xf] }
  0xd4   : > { %6417 = vmatprep.mubr.msk.bf16.mxu0 %vm724_vm2, %v7895_v34  ;;  %v8082_v15 = vsel %vm7096_vm6, %v3032_v6, %v3033_v47  ;;  %v3047_v34 = vrot.slane %v7819_v21, 5  ;;  %v3046_v23 = vrot.slane %v3044_v0, 4  ;;  %v5693_v12 = vcombine.low %v2940_v30, %v2943_v16  ;;  %v6660_v6 = vld [vmem:[%s6744_s29 + $0x24] sm:$0xff]   ;;  %v9605_v17 = vld [vmem:[#allocation13_spill] sm:$0xff] }
  0xd5   : > { %v8096_v47 = vsel %vm7096_vm6, %v3039_v18, %v3040_v38  ;;  %v2948_v44 = vrot.slane %v2946_v10, 4  ;;  %v2949_v35 = vrot.slane %v6683_v59, 5  ;;  %v2947_v37 = vsel %vm7096_vm6, %v5670_v19, %v2946_v10  ;;  %v5805_v38 = vld [vmem:[%s6744_s29 + $0x18] sm:$0xf]  ;;  %v5808_v0 = vld [vmem:[%s6744_s29 + $0x24] sm:$0xf] }
  0xd6   : > { %v8130_v4 = vsel %vm7096_vm6, %v3046_v23, %v3047_v34  ;;  %v8156_v34 = vld [vmem:[%s6744_s29 + $0x28] sm:$0xf]  ;;  %v6665_v10 = vld [vmem:[%s9495_s1 + $0xf0] sm:$0xff]   ;;  %v3810_v23 = vshll.u32 %v5805_v38, 16  ;;  %v3816_v30 = vshll.u32 %v8151_v7, 16  ;;  %v3820_v16 = vshrl.u32 %v8151_v7, 16 }
  0xd7   : > { %6374 = vmatmul.mubr.msk.bf16.gmra.mxu1 %vm724_vm2, %v6654_v49  ;;  %v2950_v49 = vsel %vm7096_vm6, %v2948_v44, %v2949_v35  ;;  %v3831_v28 = vshrl.u32 %v5808_v0, 16  ;;  %v3844_v19 = vshrl.u32 %v8156_v34, 16  ;;  %v6663_v44 = vld [vmem:[%s6744_s29 + $0x3c] sm:$0xff]   ;;  %v6664_v59 = vld [vmem:[%s6744_s29 + $0x48] sm:$0xff]  }
  0xd8   : > { %6377 = vmatprep.mubr.msk.bf16.mxu1 %vm724_vm2, %v6656_v24  ;;  %v6667_v24 = vld [vmem:[%s9495_s1 + $0x110] sm:$0xff]   ;;  %v5694_v18 = vcombine.low %v2947_v37, %v2950_v49  ;;  %v6671_v35 = vld [vmem:[%s9495_s1 + $0xe8] sm:$0xff]   ;;  %v8182_v37 = vld [vmem:[%s6744_s29 + $0x20] sm:$0x1] }
  0xd9   : > { %v3833_v46 = vrot.slane %v3831_v28, 4 }
  0xdb   : > { %6418 = vmatmul.mubr.msk.bf16.gmra.mxu0 %vm724_vm2, %v5632_v9  ;;  %v3807_v9 = vshrl.u32 %v5805_v38, 16  ;;  %v6679_v38 = vld [vmem:[%s9495_s1 + $0x100] sm:$0xff]  }
  0xdc   : > { %6469 = vmatprep.mubr.msk.bf16.mxu0 %vm724_vm2, %v6658_v32  ;;  %v6673_v32 = vld [vmem:[%s9495_s1 + $0x108] sm:$0xff]  }
  0xdd   : > { %v3809_v49 = vrot.slane %v3807_v9, 4  ;;  %v4578_v9 = vrot.slane %v8151_v7, 5 }
  0xdf   : > { %6378 = vmatmul.mubr.msk.bf16.gmra.mxu1 %vm724_vm2, %v6657_v1  ;;  %v3834_v1 = vshll.u32 %v5808_v0, 16 }
  0xe0   : > { %6429 = vmatprep.mubr.msk.bf16.mxu1 %vm724_vm2, %v5693_v12  ;;  %v3840_v12 = vshll.u32 %v8156_v34, 16 }
  0xe1   : > { %v3836_v5 = vrot.slane %v3834_v1, 5  ;;  %v5897_v1 = vld [vmem:[%s6744_s29 + $0x18] sm:$0xe] }
  0xe3   : > { %6470 = vmatmul.mubr.msk.bf16.vlgmr.msra.gmra.mxu0 %vm724_vm2, %v6660_v6  ;;  %v3812_v6 = vrot.slane %v3810_v23, 5  ;;  %v5810_v23 = vld [vmem:[%s6744_s29 + $0x2c] sm:$0x1]  ;;  %v3837_v7 = vor.u32 %v3836_v5, %v3833_v46  ;;  %v4580_v46 = vrot.slane %v4578_v9, 4  ;;  %v4581_v5 = vrot.slane %v8182_v37, 5 }
  0xe4   : > { %6542 = vmatpush3.bf16.msra.mxu0 %v9605_v17  ;;  %6473 = vmatprep.mubr.msk.bf16.mxu0 %vm724_vm2, %v6662_v14  ;;  %v3822_v14 = vrot.slane %v3820_v16, 4  ;;  %v3826_v17 = vshll.u32 %v8182_v37, 16  ;;  %v6677_v16 = vld [vmem:[%s9495_s1 + $0xe0] sm:$0xff]  }
  0xe5   : > { %6543 = vmatprep.subr.bf16.mxu0 %v6667_v24  ;;  %v3813_v28 = vor.u32 %v3812_v6, %v3809_v49  ;;  %v3850_v6 = vshll.u32 %v5810_v23, 16  ;;  %v3838_v33 = vrot.slane %v3837_v7, 4  ;;  %v5814_v7 = vld [vmem:[%s6744_s29 + $0x3c] sm:$0xf] }
  0xe6   : > { %v8193_v0 = vpop.f32.mrf.mxu0 }
  0xe7   : > { %6430 = vmatmul.mubr.msk.bf16.vlgmr.msra.gmra.mxu1 %vm724_vm2, %v5694_v18  ;;  %v8190_v18 = vrot.slane %v3840_v12, 5 }
  0xe8   : > { %6502 = vmatpush3.bf16.msra.mxu1 %v7786_v36  ;;  %6433 = vmatprep.mubr.msk.bf16.mxu1 %vm724_vm2, %v5695_v8  ;;  %v8184_v36 = vrot.slane %v3816_v30, 5  ;;  %v5811_v8 = vld [vmem:[%s6744_s29 + $0x30] sm:$0xf]  ;;  %v8199_v30 = vld [vmem:[%s6744_s29 + $0x34] sm:$0xf]  ;;  %v8223_v55 = vpop.f32.mrf.mxu0 }
  0xe9   : > { %6503 = vmatprep.subr.bf16.mxu1 %v6665_v10  ;;  %6544 = vmatpush3.bf16.msra.mxu0 %v6667_v24  ;;  %v3846_v24 = vrot.slane %v3844_v19, 4  ;;  %v3855_v12 = vshrl.u32 %v5811_v8, 16  ;;  %v3858_v19 = vshll.u32 %v5811_v8, 16  ;;  %v3864_v56 = vshll.u32 %v8199_v30, 16  ;;  %v6668_v8 = vld [vmem:[%s6744_s29 + $0x60] sm:$0xff]  }
  0xea   : > { %6545 = vmatprep.subr.bf16.mxu0 %v6673_v32 }
  0xeb   : > { %6474 = vmatmul.mubr.msk.bf16.gmra.mxu0 %vm724_vm2, %v6663_v44  ;;  %v4585_v44 = vrot.slane %v8156_v34, 5  ;;  %v3847_v49 = vor.u32 %v3846_v24, %v8190_v18  ;;  %v5913_v34 = vrot.slane %v5897_v1, 9  ;;  %v3814_v24 = vrot.slane %v3813_v28, 4  ;;  %v8235_v28 = vpop.f32.mrf.mxu0 }
  0xec   : > { %6504 = vmatpush3.bf16.msra.mxu1 %v6665_v10  ;;  %6477 = vmatprep.mubr.msk.bf16.mxu0 %vm724_vm2, %v6664_v59  ;;  %v3823_v10 = vor.u32 %v3822_v14, %v8184_v36  ;;  %v8212_v59 = vpop.f32.mrf.mxu1  ;;  %v5898_v14 = vld [vmem:[%s6744_s29 + $0x24] sm:$0xe]  ;;  %v3857_v3 = vrot.slane %v3855_v12, 4  ;;  %v3860_v62 = vrot.slane %v3858_v19, 5  ;;  %v3852_v1 = vrot.slane %v3850_v6, 5 }
  0xed   : > { %6505 = vmatprep.subr.bf16.mxu1 %v6671_v35  ;;  %6546 = vmatpush3.bf16.msra.mxu0 %v6673_v32  ;;  %9606 = vst [vmem:[#allocation14_spill] sm:$0xff] %v8212_v59  ;;  %v3868_v32 = vshrl.u32 %v8199_v30, 16  ;;  %v5914_v60 = vrot.slane %v5898_v14, 9  ;;  %v8232_v59 = vrot.slane %v3864_v56, 5  ;;  %v3819_v56 = vsel %vm6792_vm3, %v3814_v24, %v8184_v36 }
  0xee   : > { %6547 = vmatprep.subr.bf16.mxu0 %v6679_v38  ;;  %v3824_v21 = vrot.slane %v3823_v10, 4  ;;  %v8227_v58 = vpop.f32.mrf.mxu1  ;;  %v8250_v12 = vsel %vm7096_vm6, %v4580_v46, %v4581_v5  ;;  %v4592_v14 = vrot.slane %v8199_v30, 5  ;;  %v5817_v46 = vld [vmem:[%s6744_s29 + $0x48] sm:$0xf]  ;;  %v3879_v30 = vshrl.u32 %v5814_v7, 16 }
  0xef   : > { %6434 = vmatmul.mubr.msk.bf16.gmra.mxu1 %vm724_vm2, %v5696_v41  ;;  %v3828_v41 = vrot.slane %v3826_v17, 5  ;;  %9607 = vst [vmem:[#allocation4_spill] sm:$0xff] %v8227_v58  ;;  %v3848_v17 = vrot.slane %v3847_v49, 4  ;;  %v3870_v37 = vrot.slane %v3868_v32, 4  ;;  %v8257_v19 = vsel %vm7096_vm6, %v5914_v60, %v4585_v44  ;;  %v8266_v49 = vld [vmem:[%s6744_s29 + $0x40] sm:$0xf] }
  0xf0   : > { %6437 = vmatprep.mubr.msk.bf16.mxu1 %vm724_vm2, %v5697_v22  ;;  %6506 = vmatpush3.bf16.msra.mxu1 %v6671_v35  ;;  %v4587_v22 = vrot.slane %v4585_v44, 4  ;;  %v4588_v35 = vrot.slane %v5810_v23, 5  ;;  %v5899_v23 = vld [vmem:[%s6744_s29 + $0x30] sm:$0xe]  ;;  %v9610_v32 = vcombine.low %v7969_v54, %v7979_v29  ;;  %v3888_v54 = vshll.u32 %v8266_v49, 16 }
  0xf1   : > { %6507 = vmatprep.subr.bf16.mxu1 %v6677_v16  ;;  %6548 = vmatpush3.bf16.msra.mxu0 %v6679_v38  ;;  %v8239_v38 = vsel %vm7096_vm6, %v5913_v34, %v4578_v9  ;;  %v3829_v10 = vsel %vm6792_vm3, %v3824_v21, %v3828_v41  ;;  %v3843_v9 = vsel %vm6792_vm3, %v3838_v33, %v8190_v18  ;;  %v3874_v21 = vshll.u32 %v8230_v48, 16  ;;  %v8295_v29 = vld [vmem:[%s6744_s29 + $0x4c] sm:$0xf] }
  0xf2   : > { %v8261_v36 = vsel %vm7096_vm6, %v4587_v22, %v4588_v35  ;;  %v3853_v18 = vsel %vm6792_vm3, %v3848_v17, %v3852_v1  ;;  %v3871_v44 = vor.u32 %v3870_v37, %v8232_v59  ;;  %v5915_v6 = vrot.slane %v5899_v23, 9  ;;  %v8302_v22 = vld [vmem:[%s6744_s29 + $0x44] sm:$0x1] }
  0xf3   : > { %6478 = vmatmul.mubr.msk.bf16.gmra.mxu0 %vm724_vm2, %v6666_v11  ;;  %v8284_v11 = vpop.f32.mrf.mxu0  ;;  %v8286_v41 = vcombine.low %v3819_v56, %v3829_v10  ;;  %v8297_v24 = vcombine.low %v3843_v9, %v3853_v18  ;;  %v3876_v60 = vrot.slane %v3874_v21, 5  ;;  %v3892_v35 = vshrl.u32 %v8266_v49, 16  ;;  %v5820_v10 = vld [vmem:[%s6744_s29 + $0x54] sm:$0xf]  ;;  %v8319_v18 = vld [vmem:[%s6744_s29 + $0x58] sm:$0xf] }
  0xf4   : > { %6508 = vmatpush3.bf16.msra.mxu1 %v6677_v16  ;;  %6481 = vmatprep.mubr.msk.bf16.mxu0 %vm724_vm2, %v6668_v8  ;;  %v3861_v16 = vor.u32 %v3860_v62, %v3857_v3  ;;  %v9608_v62 = vcombine.low %v7948_v20, %v7965_v39  ;;  %v8272_v3 = vpop.f32.mrf.mxu1  ;;  %v6669_v20 = vld [vmem:[%s6744_s29 + $0x6c] sm:$0xff]   ;;  %v6670_v39 = vld [vmem:[%s6744_s29 + $0x78] sm:$0xff]   ;;  %v3882_v8 = vshll.u32 %v5814_v7, 16  ;;  %v3872_v1 = vrot.slane %v3871_v44, 4 }
  0xf5   : > { %9609 = vst [vmem:[#allocation3_spill] sm:$0xff] %v8272_v3  ;;  %v8309_v37 = vsel %vm7096_vm6, %v5915_v6, %v4592_v14  ;;  %v4594_v23 = vrot.slane %v4592_v14, 4  ;;  %v4595_v56 = vrot.slane %v8230_v48, 5  ;;  %v3903_v9 = vshrl.u32 %v5817_v46, 16 }
  0xf6   : > { %v8291_v5 = vrot.slane %v3861_v16, 4  ;;  %v8305_v17 = vpop.f32.mrf.mxu1  ;;  %v3906_v21 = vshll.u32 %v5817_v46, 16  ;;  %v3912_v7 = vshll.u32 %v8295_v29, 16  ;;  %v3881_v44 = vrot.slane %v3879_v30, 4 }
  0xf7   : > { %6438 = vmatmul.mubr.msk.bf16.gmra.mxu1 %vm724_vm2, %v9608_v62  ;;  %9611 = vst [vmem:[#allocation2_spill] sm:$0xff] %v8305_v17  ;;  %v8314_v16 = vpop.f32.mrf.mxu0  ;;  %v3916_v62 = vshrl.u32 %v8295_v29, 16  ;;  %v3884_v6 = vrot.slane %v3882_v8, 5  ;;  %v8326_v14 = vrot.slane %v3888_v54, 5  ;;  %v4599_v46 = vrot.slane %v8266_v49, 5  ;;  %v6672_v17 = vld [vmem:[%s6744_s29 + $0x84] sm:$0xff]  }
  0xf8   : > { %6441 = vmatprep.mubr.msk.bf16.mxu1 %vm724_vm2, %v9610_v32  ;;  %9612 = vst [vmem:[#allocation6_spill] sm:$0xff] %v8314_v16  ;;  %v3867_v48 = vsel %vm6792_vm3, %v8291_v5, %v8232_v59  ;;  %v3894_v32 = vrot.slane %v3892_v35, 4  ;;  %v3927_v33 = vshrl.u32 %v5820_v10, 16  ;;  %v3930_v34 = vshll.u32 %v5820_v10, 16  ;;  %v6674_v10 = vld [vmem:[%s6744_s29 + $0x90] sm:$0xff]  }
  0xf9   : > { %v8339_v59 = vsel %vm7096_vm6, %v4594_v23, %v4595_v56  ;;  %v3898_v5 = vshll.u32 %v8302_v22, 16  ;;  %v3936_v30 = vshll.u32 %v8319_v18, 16  ;;  %v3940_v49 = vshrl.u32 %v8319_v18, 16 }
  0xfa   : > { %v9615_v8 = vcombine.low %v7994_v42, %v8016_v45  ;;  %v3905_v54 = vrot.slane %v3903_v9, 4  ;;  %v3908_v35 = vrot.slane %v3906_v21, 5  ;;  %v8353_v23 = vrot.slane %v3912_v7, 5  ;;  %v5823_v9 = vld [vmem:[%s6744_s29 + $0x60] sm:$0xf] }
  0xfb   : > { %6482 = vmatmul.mubr.msk.bf16.gmra.mxu0 %vm724_vm2, %v6669_v20  ;;  %v5900_v20 = vld [vmem:[%s6744_s29 + $0x3c] sm:$0xe]  ;;  %v8335_v3 = vpop.f32.mrf.mxu1  ;;  %v3918_v56 = vrot.slane %v3916_v62, 4  ;;  %v4602_v42 = vrot.slane %v8302_v22, 5  ;;  %v3895_v45 = vor.u32 %v3894_v32, %v8326_v14  ;;  %v3932_v16 = vrot.slane %v3930_v34, 5 }
  0xfc   : > { %6485 = vmatprep.mubr.msk.bf16.mxu0 %vm724_vm2, %v6670_v39  ;;  %v9613_v39 = vcombine.low %v7987_v40, %v8002_v43  ;;  %9614 = vst [vmem:[#allocation7_spill] sm:$0xff] %v8335_v3  ;;  %v8348_v40 = vpop.f32.mrf.mxu0  ;;  %v8351_v43 = vld [vmem:[%s6744_s29 + $0x50] sm:$0x1]  ;;  %v3885_v3 = vor.u32 %v3884_v6, %v3881_v44  ;;  %v5916_v58 = vrot.slane %v5900_v20, 9  ;;  %v5901_v6 = vld [vmem:[%s6744_s29 + $0x48] sm:$0xe] }
  0xfd   : > { %9616 = vst [vmem:[#allocation5_spill] sm:$0xff] %v8348_v40  ;;  %v3929_v40 = vrot.slane %v3927_v33, 4  ;;  %v8361_v21 = vpop.f32.mrf.mxu1  ;;  %v3922_v62 = vshll.u32 %v8351_v43, 16  ;;  %v3909_v33 = vor.u32 %v3908_v35, %v3905_v54  ;;  %v3919_v34 = vor.u32 %v3918_v56, %v8353_v23  ;;  %v8377_v20 = vld [vmem:[%s6744_s29 + $0x5c] sm:$0x1] }
  0xfe   : > { %9617 = vst [vmem:[#allocation9_spill] sm:$0xff] %v8361_v21  ;;  %v8369_v22 = vpop.f32.mrf.mxu0  ;;  %v4606_v32 = vrot.slane %v8295_v29, 5  ;;  %v3954_v7 = vshll.u32 %v5823_v9, 16  ;;  %v8386_v54 = vsel %vm7096_vm6, %v5916_v58, %v4599_v46  ;;  %v8393_v56 = vld [vmem:[%s6744_s29 + $0x64] sm:$0xf] }
  0xff   : > { %6442 = vmatmul.mubr.msk.bf16.gmra.mxu1 %vm724_vm2, %v9613_v39  ;;  %v3877_v39 = vsel %vm6792_vm3, %v3872_v1, %v3876_v60  ;;  %v8366_v60 = vrot.slane %v3936_v30, 5  ;;  %v3942_v1 = vrot.slane %v3940_v49, 4  ;;  %v8380_v30 = vrot.slane %v3885_v3, 4 }
 0x100   : > { %6445 = vmatprep.mubr.msk.bf16.mxu1 %vm724_vm2, %v9615_v8  ;;  %v4601_v8 = vrot.slane %v4599_v46, 4  ;;  %v8371_v44 = vcombine.low %v3867_v48, %v3877_v39  ;;  %v8382_v49 = vrot.slane %v3898_v5, 5  ;;  %v3896_v48 = vrot.slane %v3895_v45, 4  ;;  %v8399_v5 = vpop.f32.mrf.mxu1  ;;  %v6676_v45 = vld [vmem:[%s6744_s29 + $0xa8] sm:$0xff]  }
 0x101   : > { %v3933_v35 = vor.u32 %v3932_v16, %v3929_v40  ;;  %v9618_v3 = vcombine.low %v8006_v53, %v8024_v25  ;;  %9619 = vst [vmem:[#allocation8_spill] sm:$0xff] %v8399_v5  ;;  %v5917_v39 = vrot.slane %v5901_v6, 9  ;;  %v3943_v58 = vor.u32 %v3942_v1, %v8366_v60  ;;  %v6675_v16 = vld [vmem:[%s6744_s29 + $0x9c] sm:$0xff]   ;;  %v8408_v40 = vpop.f32.mrf.mxu0 }
 0x102   : > { %v8390_v29 = vsel %vm7096_vm6, %v4601_v8, %v4602_v42  ;;  %v3946_v46 = vshll.u32 %v8377_v20, 16  ;;  %v9620_v42 = vcombine.low %v8028_v57, %v8039_v2  ;;  %9621 = vst [vmem:[#allocation12_spill] sm:$0xff] %v8408_v40  ;;  %v3910_v53 = vrot.slane %v3909_v33, 4 }
 0x103   : > { %6486 = vmatmul.mubr.msk.bf16.gmra.mxu0 %vm724_vm2, %v6672_v17  ;;  %v3951_v17 = vshrl.u32 %v5823_v9, 16  ;;  %v3920_v25 = vrot.slane %v3919_v34, 4  ;;  %v4608_v8 = vrot.slane %v4606_v32, 4  ;;  %v4609_v9 = vrot.slane %v8351_v43, 5  ;;  %v8423_v34 = vpop.f32.mrf.mxu1 }
 0x104   : > { %6489 = vmatprep.mubr.msk.bf16.mxu0 %vm724_vm2, %v6674_v10  ;;  %v3924_v10 = vrot.slane %v3922_v62, 5  ;;  %v5902_v62 = vld [vmem:[%s6744_s29 + $0x54] sm:$0xe]  ;;  %v3956_v1 = vrot.slane %v3954_v7, 5  ;;  %v3964_v5 = vshrl.u32 %v8393_v56, 16  ;;  %v3891_v57 = vsel %vm6792_vm3, %v8380_v30, %v8326_v14  ;;  %9622 = vst [vmem:[#allocation10_spill] sm:$0xff] %v8423_v34 }
 0x105   : > { %v3953_v6 = vrot.slane %v3951_v17, 4  ;;  %v3901_v2 = vsel %vm6792_vm3, %v3896_v48, %v8382_v49  ;;  %v3934_v33 = vrot.slane %v3933_v35, 4  ;;  %v4613_v43 = vrot.slane %v8319_v18, 5  ;;  %v5826_v30 = vld [vmem:[%s6744_s29 + $0x6c] sm:$0xf] }
 0x106   : > { %v8429_v17 = vsel %vm7096_vm6, %v5917_v39, %v4606_v32  ;;  %v3948_v14 = vrot.slane %v3946_v46, 5  ;;  %v3915_v18 = vsel %vm6792_vm3, %v3910_v53, %v8353_v23  ;;  %v3925_v48 = vsel %vm6792_vm3, %v3920_v25, %v3924_v10  ;;  %v8445_v39 = vld [vmem:[%s6744_s29 + $0x68] sm:$0x1]  ;;  %v8453_v53 = vld [vmem:[%s6744_s29 + $0x70] sm:$0xf] }
 0x107   : > { %6446 = vmatmul.mubr.msk.bf16.gmra.mxu1 %vm724_vm2, %v9618_v3  ;;  %v3960_v3 = vshll.u32 %v8393_v56, 16  ;;  %v8442_v35 = vsel %vm7096_vm6, %v4608_v8, %v4609_v9  ;;  %v5918_v32 = vrot.slane %v5902_v62, 9  ;;  %v4616_v46 = vrot.slane %v8377_v20, 5 }
 0x108   : > { %6449 = vmatprep.mubr.msk.bf16.mxu1 %vm724_vm2, %v9620_v42  ;;  %v3944_v42 = vrot.slane %v3943_v58, 4  ;;  %v8433_v49 = vpop.f32.mrf.mxu0  ;;  %v5903_v58 = vld [vmem:[%s6744_s29 + $0x60] sm:$0xe]  ;;  %v3966_v23 = vrot.slane %v3964_v5, 4  ;;  %v3939_v10 = vsel %vm6792_vm3, %v3934_v33, %v8366_v60  ;;  %v4615_v25 = vrot.slane %v4613_v43, 4 }
 0x109   : > { %9623 = vst [vmem:[#allocation11_spill] sm:$0xff] %v8433_v49  ;;  %v8450_v7 = vrot.slane %v3960_v3, 5  ;;  %v3975_v8 = vshrl.u32 %v5826_v30, 16  ;;  %v3978_v9 = vshll.u32 %v5826_v30, 16  ;;  %v3970_v62 = vshll.u32 %v8445_v39, 16  ;;  %v6680_v30 = vld [vmem:[%s6744_s29 + $0xc0] sm:$0xff]  }
 0x10a   : > { %v3949_v5 = vsel %vm6792_vm3, %v3944_v42, %v3948_v14  ;;  %v4620_v60 = vrot.slane %v8393_v56, 5  ;;  %v8475_v3 = vcombine.low %v3891_v57, %v3901_v2  ;;  %v8477_v33 = vcombine.low %v3915_v18, %v3925_v48  ;;  %v5829_v2 = vld [vmem:[%s6744_s29 + $0x78] sm:$0xf]  ;;  %v8502_v56 = vld [vmem:[%s6744_s29 + $0x7c] sm:$0xf] }
 0x10b   : > { %6490 = vmatmul.mubr.msk.bf16.gmra.mxu0 %vm724_vm2, %v6675_v16  ;;  %v3957_v16 = vor.u32 %v3956_v1, %v3953_v6  ;;  %v5919_v6 = vrot.slane %v5903_v58, 9  ;;  %v9626_v1 = vcombine.low %v8053_v51, %v8073_v52  ;;  %v3984_v42 = vshll.u32 %v8453_v53, 16  ;;  %v8499_v58 = vld [vmem:[%s6744_s29 + $0x74] sm:$0x1] }
 0x10c   : > { %6493 = vmatprep.mubr.msk.bf16.mxu0 %vm724_vm2, %v6676_v45  ;;  %v9624_v45 = vcombine.low %v8047_v50, %v8059_v26  ;;  %v6678_v26 = vld [vmem:[%s6744_s29 + $0xb4] sm:$0xff]   ;;  %v8473_v50 = vpop.f32.mrf.mxu0  ;;  %v3988_v14 = vshrl.u32 %v8453_v53, 16  ;;  %v8486_v51 = vsel %vm7096_vm6, %v5918_v32, %v4613_v43  ;;  %v3967_v57 = vor.u32 %v3966_v23, %v8450_v7 }
 0x10d   : > { %v8462_v20 = vpop.f32.mrf.mxu1  ;;  %9627 = vst [vmem:[#allocation15_spill] sm:$0xff] %v8473_v50  ;;  %v8488_v52 = vrot.slane %v3957_v16, 4  ;;  %v8492_v18 = vcombine.low %v3939_v10, %v3949_v5  ;;  %v8496_v48 = vsel %vm7096_vm6, %v4615_v25, %v4616_v46  ;;  %v8506_v32 = vrot.slane %v3970_v62, 5  ;;  %v5832_v10 = vld [vmem:[%s6744_s29 + $0x84] sm:$0xf] }
 0x10e   : > { %9625 = vst [vmem:[#allocation13_spill] sm:$0xff] %v8462_v20  ;;  %v8510_v16 = vsel %vm7096_vm6, %v5919_v6, %v4620_v60  ;;  %v4622_v23 = vrot.slane %v4620_v60, 4  ;;  %v4623_v46 = vrot.slane %v8445_v39, 5  ;;  %v8515_v25 = vpop.f32.mrf.mxu0  ;;  %v3999_v5 = vshrl.u32 %v5829_v2, 16  ;;  %v8520_v20 = vld [vmem:[%s6744_s29 + $0x88] sm:$0xf] }
 0x10f   : > { %6450 = vmatmul.mubr.msk.bf16.gmra.mxu1 %vm724_vm2, %v9624_v45  ;;  %9628 = vst [vmem:[#allocation16_spill] sm:$0xff] %v8492_v18  ;;  %v3977_v45 = vrot.slane %v3975_v8, 4  ;;  %v8504_v43 = vpop.f32.mrf.mxu1  ;;  %9630 = vst [vmem:[#allocation18_spill] sm:$0xff] %v8515_v25  ;;  %v8517_v8 = vrot.slane %v3984_v42, 5  ;;  %v8527_v39 = vrot.slane %v3967_v57, 4  ;;  %v4008_v60 = vshll.u32 %v8502_v56, 16 }
 0x110   : > { %6453 = vmatprep.mubr.msk.bf16.mxu1 %vm724_vm2, %v9626_v1  ;;  %v3980_v1 = vrot.slane %v3978_v9, 5  ;;  %9629 = vst [vmem:[#allocation17_spill] sm:$0xff] %v8504_v43  ;;  %v3990_v9 = vrot.slane %v3988_v14, 4  ;;  %v4002_v43 = vshll.u32 %v5829_v2, 16  ;;  %v5904_v6 = vld [vmem:[%s6744_s29 + $0x6c] sm:$0xe]  ;;  %v8541_v57 = vsel %vm7096_vm6, %v4622_v23, %v4623_v46 }
 0x111   : > { %v4627_v14 = vrot.slane %v8453_v53, 5  ;;  %v4023_v2 = vshrl.u32 %v5832_v10, 16  ;;  %v4026_v34 = vshll.u32 %v5832_v10, 16  ;;  %v8537_v62 = vpop.f32.mrf.mxu1  ;;  %v3994_v21 = vshll.u32 %v8499_v58, 16  ;;  %v5831_v23 = vld [vmem:[%s6744_s29 + $0x80] sm:$0x1] }
 0x112   : > { %v3981_v42 = vor.u32 %v3980_v1, %v3977_v45  ;;  %9632 = vst [vmem:[#allocation19_spill] sm:$0xff] %v8537_v62  ;;  %v4032_v45 = vshll.u32 %v8520_v20, 16  ;;  %v4036_v53 = vshrl.u32 %v8520_v20, 16  ;;  %v8546_v1 = vpop.f32.mrf.mxu0  ;;  %v3991_v10 = vor.u32 %v3990_v9, %v8517_v8  ;;  %v5905_v18 = vld [vmem:[%s6744_s29 + $0x78] sm:$0xe] }
 0x113   : > { %6494 = vmatmul.mubr.msk.bf16.gmra.mxu0 %vm724_vm2, %v6678_v26  ;;  %v4012_v26 = vshrl.u32 %v8502_v56, 16  ;;  %9633 = vst [vmem:[#allocation20_spill] sm:$0xff] %v8546_v1  ;;  %v4001_v46 = vrot.slane %v3999_v5, 4  ;;  %v4004_v62 = vrot.slane %v4002_v43, 5  ;;  %v4630_v25 = vrot.slane %v8499_v58, 5  ;;  %v8562_v9 = vpop.f32.mrf.mxu1 }
 0x114   : > { %6497 = vmatprep.mubr.msk.bf16.mxu0 %vm724_vm2, %v6680_v30  ;;  %v9631_v30 = vcombine.low %v8063_v27, %v8082_v15  ;;  %v9634_v27 = vcombine.low %v8086_v63, %v8096_v47  ;;  %v6681_v15 = vld [vmem:[%s6744_s29 + $0xcc] sm:$0xff]   ;;  %v8556_v50 = vrot.slane %v4008_v60, 5  ;;  %v4634_v1 = vrot.slane %v8502_v56, 5  ;;  %9635 = vst [vmem:[#allocation21_spill] sm:$0xff] %v8562_v9 }
 0x115   : > { %v4014_v49 = vrot.slane %v4012_v26, 4  ;;  %v8560_v40 = vrot.slane %v3981_v42, 4  ;;  %v4629_v63 = vrot.slane %v4627_v14, 4  ;;  %v4025_v47 = vrot.slane %v4023_v2, 4  ;;  %v8571_v5 = vld [vmem:[%s6744_s29 + $0x8c] sm:$0x1] }
 0x116   : > { %v3973_v43 = vsel %vm6792_vm3, %v8527_v39, %v8506_v32  ;;  %v8568_v58 = vrot.slane %v3994_v21, 5  ;;  %v4038_v56 = vrot.slane %v4036_v53, 4  ;;  %v4005_v26 = vor.u32 %v4004_v62, %v4001_v46  ;;  %v5835_v9 = vld [vmem:[%s6744_s29 + $0x90] sm:$0xf] }
 0x117   : > { %6454 = vmatmul.mubr.msk.bf16.gmra.mxu1 %vm724_vm2, %v9631_v30  ;;  %v5920_v30 = vrot.slane %v5904_v6, 9  ;;  %v8573_v6 = vrot.slane %v4032_v45, 5  ;;  %v4018_v42 = vshll.u32 %v5831_v23, 16  ;;  %v5921_v2 = vrot.slane %v5905_v18, 9 }
 0x118   : > { %6457 = vmatprep.mubr.msk.bf16.mxu1 %vm724_vm2, %v9634_v27  ;;  %v4028_v27 = vrot.slane %v4026_v34, 5  ;;  %v3992_v34 = vrot.slane %v3991_v10, 4  ;;  %v9636_v21 = vcombine.low %v8239_v38, %v8250_v12  ;;  %v4015_v39 = vor.u32 %v4014_v49, %v8556_v50 }
 0x119   : > { %v8585_v32 = vsel %vm7096_vm6, %v5920_v30, %v4627_v14  ;;  %v4636_v45 = vrot.slane %v4634_v1, 4  ;;  %v4637_v53 = vrot.slane %v5831_v23, 5  ;;  %v3987_v18 = vsel %vm6792_vm3, %v8560_v40, %v8517_v8  ;;  %v8600_v14 = vld [vmem:[%s6744_s29 + $0x94] sm:$0xf]  ;;  %v5906_v23 = vld [vmem:[%s6744_s29 + $0x84] sm:$0xe] }
 0x11a   : > { %v8575_v60 = vpop.f32.mrf.mxu0  ;;  %v8596_v38 = vsel %vm7096_vm6, %v4629_v63, %v4630_v25  ;;  %v4029_v12 = vor.u32 %v4028_v27, %v4025_v47  ;;  %v4042_v62 = vshll.u32 %v8571_v5, 16  ;;  %v9637_v49 = vcombine.low %v8113_v13, %v8130_v4 }
 0x11b   : > { %6498 = vmatmul.mubr.msk.bf16.gmra.mxu0 %vm724_vm2, %v6681_v15  ;;  %v4039_v30 = vor.u32 %v4038_v56, %v8573_v6  ;;  %v4641_v40 = vrot.slane %v8520_v20, 5  ;;  %v4047_v8 = vshrl.u32 %v5835_v9, 16  ;;  %v4050_v25 = vshll.u32 %v5835_v9, 16  ;;  %v9672_v31 = vld [vmem:[#allocation21_spill] sm:$0xff] }
 0x11c   : > { %6549 = vmatprep.mubr.msk.bf16.mxu0 %vm724_vm2, %v9636_v21  ;;  %v8588_v15 = vpop.f32.mrf.mxu0  ;;  %v3997_v63 = vsel %vm6792_vm3, %v3992_v34, %v8568_v58  ;;  %v4006_v47 = vrot.slane %v4005_v26, 4  ;;  %v4020_v13 = vrot.slane %v4018_v42, 5  ;;  %v8620_v4 = vsel %vm7096_vm6, %v5921_v2, %v4634_v1 }
 0x11d   : > { %v8602_v10 = vpop.f32.mrf.mxu1  ;;  %v4016_v20 = vrot.slane %v4015_v39, 4  ;;  %v8626_v9 = vsel %vm7096_vm6, %v4636_v45, %v4637_v53  ;;  %v4056_v56 = vshll.u32 %v8600_v14, 16  ;;  %v4030_v58 = vrot.slane %v4029_v12, 4 }
 0x11e   : > { %v8611_v46 = vpop.f32.mrf.mxu0  ;;  %v4044_v34 = vrot.slane %v4042_v62, 5  ;;  %v5922_v26 = vrot.slane %v5906_v23, 9  ;;  %v4644_v1 = vrot.slane %v8571_v5, 5  ;;  %v4040_v2 = vrot.slane %v4039_v30, 4 }
 0x11f   : > { %6458 = vmatmul.mubr.msk.bf16.gmra.mxu1 %vm724_vm2, %v9637_v49  ;;  %v8622_v27 = vpop.f32.mrf.mxu1  ;;  %v4643_v39 = vrot.slane %v4641_v40, 4  ;;  %v4049_v49 = vrot.slane %v4047_v8, 4  ;;  %v4052_v45 = vrot.slane %v4050_v25, 5  ;;  %v5942_v12 = vcombine.low %v8486_v51, %v8496_v48 }
 0x120   : > { %6509 = vmatprep.mubr.msk.bf16.mxu1 %vm724_vm2, %v8286_v41  ;;  %9638 = vst [vmem:[#allocation22_spill] sm:$0xff] %v8622_v27  ;;  %v4060_v41 = vshrl.u32 %v8600_v14, 16  ;;  %v8630_v21 = vpop.f32.mrf.mxu0  ;;  %v9639_v27 = vcombine.low %v8257_v19, %v8261_v36  ;;  %v9640_v5 = vsel %vm6792_vm3, %v8488_v52, %v8450_v7  ;;  %v8653_v19 = vld [vmem:[%s6744_s29 + $0x98] sm:$0x1]  ;;  %v9641_v8 = vcombine.low %v8309_v37, %v8339_v59  ;;  %v5841_v37 = vld [vmem:[%s6744_s29 + $0xa8] sm:$0xf] }
 0x121   : > { %v8633_v42 = vpop.f32.mrf.mxu1  ;;  %v8646_v62 = vcombine.low %v9640_v5, %v3973_v43  ;;  %v4011_v7 = vsel %vm6792_vm3, %v4006_v47, %v8556_v50  ;;  %v4021_v52 = vsel %vm6792_vm3, %v4016_v20, %v4020_v13  ;;  %v8666_v43 = vrot.slane %v4056_v56, 5  ;;  %v8681_v47 = vld [vmem:[%s6744_s29 + $0xa0] sm:$0xf] }
 0x122   : > { %v6311_v53 = vpop.f32.mrf.mxu0  ;;  %v4062_v25 = vrot.slane %v4060_v41, 4  ;;  %v8669_v23 = vcombine.low %v3987_v18, %v3997_v63  ;;  %v4035_v59 = vsel %vm6792_vm3, %v4030_v58, %v8573_v6  ;;  %v8678_v50 = vsel %vm7096_vm6, %v5922_v26, %v4641_v40  ;;  %v5907_v58 = vld [vmem:[%s6744_s29 + $0x90] sm:$0xe] }
 0x123   : > { %6550 = vmatmul.mubr.msk.bf16.vlgmr.msra.gmra.mxu0 %vm724_vm2, %v9639_v27  ;;  %v8655_v36 = vpop.f32.mrf.mxu1  ;;  %v5838_v27 = vld [vmem:[%s6744_s29 + $0x9c] sm:$0xf]  ;;  %v4045_v18 = vsel %vm6792_vm3, %v4040_v2, %v4044_v34  ;;  %v8689_v63 = vsel %vm7096_vm6, %v4643_v39, %v4644_v1  ;;  %v4053_v20 = vor.u32 %v4052_v45, %v4049_v49  ;;  %v4066_v6 = vshll.u32 %v8653_v19, 16 }
 0x124   : > { %6553 = vmatprep.mubr.msk.bf16.mxu0 %vm724_vm2, %v9641_v8  ;;  %v1573_v5 = vpop.f32.mrf.mxu0  ;;  %v8695_v41 = vcombine.low %v4011_v7, %v4021_v52  ;;  %v4074_v26 = vshll.u32 %v5838_v27, 16  ;;  %v4063_v2 = vor.u32 %v4062_v25, %v8666_v43  ;;  %v4648_v1 = vrot.slane %v8600_v14, 5 }
 0x125   : > { %v6271_v13 = vpop.f32.mrf.mxu1  ;;  %v4080_v39 = vshll.u32 %v8681_v47, 16  ;;  %v4084_v49 = vshrl.u32 %v8681_v47, 16  ;;  %v8705_v8 = vcombine.low %v4035_v59, %v4045_v18  ;;  %v4068_v25 = vrot.slane %v4066_v6, 5 }
 0x126   : > { %v1129_v56 = vadd.f32 %v6271_v13, %v8193_v0  ;;  %v6312_v40 = vpop.f32.mrf.mxu0  ;;  %v5923_v14 = vrot.slane %v5907_v58, 9  ;;  %v4651_v13 = vrot.slane %v8653_v19, 5  ;;  %v9642_v59 = vcombine.low %v8386_v54, %v8390_v29 }
 0x127   : > { %6510 = vmatmul.mubr.msk.bf16.vlgmr.msra.gmra.mxu1 %vm724_vm2, %v8297_v24  ;;  %v4071_v24 = vshrl.u32 %v5838_v27, 16  ;;  %v1120_v34 = vpop.f32.mrf.mxu1  ;;  %v8709_v27 = vrot.slane %v4053_v20, 4  ;;  %v8721_v20 = vld [vmem:[%s6744_s29 + $0xac] sm:$0xf]  ;;  %v9643_v19 = vcombine.low %v8429_v17, %v8442_v35  ;;  %v4650_v58 = vrot.slane %v4648_v1, 4 }
 0x128   : > { %6513 = vmatprep.mubr.msk.bf16.mxu1 %vm724_vm2, %v8371_v44  ;;  %v8702_v0 = vadd.f32 %v6311_v53, %v1129_v56  ;;  %v1121_v45 = vadd.f32 %v1120_v34, %v8223_v55  ;;  %v1576_v44 = vpop.f32.mrf.mxu0  ;;  %v4076_v56 = vrot.slane %v4074_v26, 5  ;;  %v8727_v34 = vrot.slane %v4080_v39, 5 }
 0x129   : > { %v6272_v52 = vpop.f32.mrf.mxu1  ;;  %v4073_v18 = vrot.slane %v4071_v24, 4  ;;  %v8733_v24 = vld [vmem:[%s6744_s29 + $0xa4] sm:$0x1]  ;;  %v4095_v26 = vshrl.u32 %v5841_v37, 16  ;;  %v4059_v17 = vsel %vm6792_vm3, %v8709_v27, %v8666_v43  ;;  %v8743_v35 = vsel %vm7096_vm6, %v5923_v14, %v4648_v1 }
 0x12a   : > { %v8713_v30 = vadd.f32 %v1573_v5, %v1121_v45  ;;  %v1132_v55 = vadd.f32 %v6272_v52, %v8235_v28  ;;  %v6315_v53 = vpop.f32.mrf.mxu0  ;;  %v4064_v5 = vrot.slane %v4063_v2, 4  ;;  %v4086_v28 = vrot.slane %v4084_v49, 4 }
 0x12b   : > { %6554 = vmatmul.mubr.msk.bf16.gmra.mxu0 %vm724_vm2, %v9642_v59  ;;  %v1123_v6 = vpop.f32.mrf.mxu1  ;;  %v4098_v52 = vshll.u32 %v5841_v37, 16  ;;  %v9644_v37 = vld [vmem:[#allocation6_spill] sm:$0xff]  ;;  %v4655_v43 = vrot.slane %v8681_v47, 5  ;;  %v8758_v14 = vsel %vm7096_vm6, %v4650_v58, %v4651_v13  ;;  %v4097_v47 = vrot.slane %v4095_v26, 4 }
 0x12c   : > { %6557 = vmatprep.mubr.msk.bf16.mxu0 %vm724_vm2, %v9643_v19  ;;  %v8729_v45 = vadd.f32 %v6312_v40, %v1132_v55  ;;  %v1124_v54 = vadd.f32 %v1123_v6, %v8284_v11  ;;  %v1589_v29 = vpop.f32.mrf.mxu0  ;;  %v4104_v11 = vshll.u32 %v8721_v20, 16  ;;  %v4108_v40 = vshrl.u32 %v8721_v20, 16  ;;  %v5908_v55 = vld [vmem:[%s6744_s29 + $0x9c] sm:$0xe] }
 0x12d   : > { %v6275_v59 = vpop.f32.mrf.mxu1  ;;  %v4069_v1 = vsel %vm6792_vm3, %v4064_v5, %v4068_v25  ;;  %v4090_v6 = vshll.u32 %v8733_v24, 16  ;;  %v4658_v25 = vrot.slane %v8733_v24, 5  ;;  %v5909_v24 = vld [vmem:[%s6744_s29 + $0xa8] sm:$0xe] }
 0x12e   : > { %v8747_v2 = vadd.f32 %v1576_v44, %v1124_v54  ;;  %v1145_v39 = vadd.f32 %v6275_v59, %v9644_v37  ;;  %v6316_v49 = vpop.f32.mrf.mxu0  ;;  %v4087_v44 = vor.u32 %v4086_v28, %v8727_v34  ;;  %v9645_v54 = vld [vmem:[#allocation5_spill] sm:$0xff]  ;;  %v5924_v37 = vrot.slane %v5908_v55, 9 }
 0x12f   : > { %6514 = vmatmul.mubr.msk.bf16.gmra.mxu1 %vm724_vm2, %v8475_v3  ;;  %v4077_v3 = vor.u32 %v4076_v56, %v4073_v18  ;;  %v1136_v27 = vpop.f32.mrf.mxu1  ;;  %v4100_v56 = vrot.slane %v4098_v52, 5  ;;  %v8766_v5 = vrot.slane %v4104_v11, 5  ;;  %v4110_v13 = vrot.slane %v4108_v40, 4 }
 0x130   : > { %6517 = vmatprep.mubr.msk.bf16.mxu1 %vm724_vm2, %v8477_v33  ;;  %v8762_v19 = vadd.f32 %v6315_v53, %v1145_v39  ;;  %v1137_v33 = vadd.f32 %v1136_v27, %v9645_v54  ;;  %v1592_v18 = vpop.f32.mrf.mxu0  ;;  %v4657_v52 = vrot.slane %v4655_v43, 4  ;;  %v8778_v39 = vld [vmem:[%s6744_s29 + $0xb0] sm:$0x1]  ;;  %v8789_v48 = vrot.slane %v4087_v44, 4 }
 0x131   : > { %v6276_v59 = vpop.f32.mrf.mxu1  ;;  %v8775_v26 = vrot.slane %v4077_v3, 4  ;;  %v9647_v3 = vld [vmem:[#allocation12_spill] sm:$0xff]  ;;  %v4101_v54 = vor.u32 %v4100_v56, %v4097_v47  ;;  %v4111_v44 = vor.u32 %v4110_v13, %v8766_v5  ;;  %v9649_v47 = vld [vmem:[#allocation11_spill] sm:$0xff] }
 0x132   : > { %v8768_v58 = vadd.f32 %v1589_v29, %v1137_v33  ;;  %v1148_v28 = vadd.f32 %v6276_v59, %v8369_v22  ;;  %v6319_v53 = vpop.f32.mrf.mxu0  ;;  %v9646_v29 = vcombine.low %v8510_v16, %v8541_v57  ;;  %v8785_v22 = vcombine.low %v4059_v17, %v4069_v1  ;;  %v5844_v16 = vld [vmem:[%s6744_s29 + $0xb4] sm:$0xf] }
 0x133   : > { %6558 = vmatmul.mubr.msk.bf16.gmra.mxu0 %vm724_vm2, %v5942_v12  ;;  %v1139_v11 = vpop.f32.mrf.mxu1  ;;  %v8791_v12 = vrot.slane %v4090_v6, 5  ;;  %v4662_v33 = vrot.slane %v8721_v20, 5  ;;  %v9648_v17 = vld [vmem:[#allocation16_spill] sm:$0xff]  ;;  %v8802_v1 = vsel %vm7096_vm6, %v5924_v37, %v4655_v43  ;;  %v5925_v6 = vrot.slane %v5909_v24, 9  ;;  %v8825_v24 = vld [vmem:[%s6744_s29 + $0xb8] sm:$0xf] }
 0x134   : > { %6561 = vmatprep.mubr.msk.bf16.mxu0 %vm724_vm2, %v9646_v29  ;;  %v8793_v40 = vadd.f32 %v6316_v49, %v1148_v28  ;;  %v1140_v55 = vadd.f32 %v1139_v11, %v9647_v3  ;;  %v1605_v27 = vpop.f32.mrf.mxu0  ;;  %v4114_v49 = vshll.u32 %v8778_v39, 16  ;;  %v4083_v43 = vsel %vm6792_vm3, %v8775_v26, %v8727_v34  ;;  %v9650_v34 = vld [vmem:[#allocation15_spill] sm:$0xff] }
 0x135   : > { %v6279_v57 = vpop.f32.mrf.mxu1  ;;  %v8817_v37 = vsel %vm7096_vm6, %v4657_v52, %v4658_v25  ;;  %v4665_v28 = vrot.slane %v8778_v39, 5  ;;  %v4122_v11 = vshll.u32 %v5844_v16, 16  ;;  %v4102_v25 = vrot.slane %v4101_v54, 4 }
 0x136   : > { %v8806_v59 = vadd.f32 %v1592_v18, %v1140_v55  ;;  %v1161_v56 = vadd.f32 %v6279_v57, %v9649_v47  ;;  %v6320_v20 = vpop.f32.mrf.mxu0  ;;  %v4093_v18 = vsel %vm6792_vm3, %v8789_v48, %v8791_v12  ;;  %v4664_v52 = vrot.slane %v4662_v33, 4  ;;  %v5847_v55 = vld [vmem:[%s6744_s29 + $0xc0] sm:$0xf] }
 0x137   : > { %6518 = vmatmul.mubr.msk.bf16.gmra.mxu1 %vm724_vm2, %v9648_v17  ;;  %v1152_v13 = vpop.f32.mrf.mxu1  ;;  %v4112_v12 = vrot.slane %v4111_v44, 4  ;;  %v4116_v39 = vrot.slane %v4114_v49, 5  ;;  %v8835_v17 = vsel %vm7096_vm6, %v5925_v6, %v4662_v33  ;;  %v9652_v54 = vcombine.low %v8585_v32, %v8596_v38  ;;  %v8850_v49 = vld [vmem:[%s6744_s29 + $0xc4] sm:$0xf] }
 0x138   : > { %6521 = vmatprep.mubr.msk.bf16.mxu1 %vm724_vm2, %v8646_v62  ;;  %v4119_v62 = vshrl.u32 %v5844_v16, 16  ;;  %v8827_v29 = vadd.f32 %v6319_v53, %v1161_v56  ;;  %v1153_v26 = vadd.f32 %v1152_v13, %v9650_v34  ;;  %v1608_v3 = vpop.f32.mrf.mxu0  ;;  %v9651_v53 = vld [vmem:[#allocation18_spill] sm:$0xff]  ;;  %v8845_v13 = vld [vmem:[%s6744_s29 + $0xbc] sm:$0x1]  ;;  %v4128_v34 = vshll.u32 %v8825_v24, 16 }
 0x139   : > { %v6280_v57 = vpop.f32.mrf.mxu1  ;;  %v4132_v44 = vshrl.u32 %v8825_v24, 16  ;;  %v4143_v32 = vshrl.u32 %v5847_v55, 16  ;;  %v4146_v38 = vshll.u32 %v5847_v55, 16  ;;  %v4107_v51 = vsel %vm6792_vm3, %v4102_v25, %v8766_v5 }
 0x13a   : > { %v8837_v16 = vadd.f32 %v1605_v27, %v1153_v26  ;;  %v1164_v47 = vadd.f32 %v6280_v57, %v9651_v53  ;;  %v6323_v56 = vpop.f32.mrf.mxu0  ;;  %v9653_v27 = vcombine.low %v8620_v4, %v8626_v9  ;;  %v4121_v6 = vrot.slane %v4119_v62, 4  ;;  %v9654_v53 = vld [vmem:[#allocation20_spill] sm:$0xff] }
 0x13b   : > { %6562 = vmatmul.mubr.msk.bf16.gmra.mxu0 %vm724_vm2, %v9652_v54  ;;  %v1155_v33 = vpop.f32.mrf.mxu1  ;;  %v4124_v26 = vrot.slane %v4122_v11, 5  ;;  %v8864_v7 = vsel %vm7096_vm6, %v4664_v52, %v4665_v28  ;;  %v4117_v9 = vsel %vm6792_vm3, %v4112_v12, %v4116_v39  ;;  %v5910_v62 = vld [vmem:[%s6744_s29 + $0xb4] sm:$0xe]  ;;  %v4152_v11 = vshll.u32 %v8850_v49, 16 }
 0x13c   : > { %6565 = vmatprep.mubr.msk.bf16.mxu0 %vm724_vm2, %v9653_v27  ;;  %v8856_v57 = vadd.f32 %v6320_v20, %v1164_v47  ;;  %v1156_v54 = vadd.f32 %v1155_v33, %v9654_v53  ;;  %v1621_v48 = vpop.f32.mrf.mxu0  ;;  %v4138_v20 = vshll.u32 %v8845_v13, 16  ;;  %v4156_v55 = vshrl.u32 %v8850_v49, 16 }
 0x13d   : > { %v6283_v4 = vpop.f32.mrf.mxu1  ;;  %v8879_v25 = vrot.slane %v4128_v34, 5  ;;  %v4125_v12 = vor.u32 %v4124_v26, %v4121_v6  ;;  %v4669_v39 = vrot.slane %v8825_v24, 5  ;;  %v4145_v33 = vrot.slane %v4143_v32, 4 }
 0x13e   : > { %v8874_v47 = vadd.f32 %v1608_v3, %v1156_v54  ;;  %v1177_v5 = vadd.f32 %v6283_v4, %v8575_v60  ;;  %v6324_v28 = vpop.f32.mrf.mxu0  ;;  %v4148_v27 = vrot.slane %v4146_v38, 5  ;;  %v8885_v54 = vcombine.low %v4083_v43, %v4093_v18 }
 0x13f   : > { %6522 = vmatmul.mubr.msk.bf16.gmra.mxu1 %vm724_vm2, %v8669_v23  ;;  %v4134_v23 = vrot.slane %v4132_v44, 4  ;;  %v1168_v52 = vpop.f32.mrf.mxu1  ;;  %v5926_v4 = vrot.slane %v5910_v62, 9  ;;  %v8887_v34 = vcombine.low %v4107_v51, %v4117_v9  ;;  %v5949_v44 = vcombine.low %v8835_v17, %v8864_v7  ;;  %v5849_v7 = vld [vmem:[%s6744_s29 + $0xc8] sm:$0x1]  ;;  %v5850_v17 = vld [vmem:[%s6744_s29 + $0xcc] sm:$0xf] }
 0x140   : > { %6525 = vmatprep.mubr.msk.bf16.mxu1 %vm724_vm2, %v8695_v41  ;;  %v8882_v53 = vadd.f32 %v6323_v56, %v1177_v5  ;;  %v1169_v3 = vadd.f32 %v1168_v52, %v8588_v15  ;;  %v1624_v60 = vpop.f32.mrf.mxu0  ;;  %v8891_v6 = vrot.slane %v4152_v11, 5  ;;  %v4158_v24 = vrot.slane %v4156_v55, 4  ;;  %v8913_v9 = vld [vmem:[%s6744_s29 + $0xd0] sm:$0xf] }
 0x141   : > { %v6284_v41 = vpop.f32.mrf.mxu1  ;;  %v9656_v43 = vcombine.low %v8678_v50, %v8689_v63  ;;  %v8900_v51 = vrot.slane %v4138_v20, 5  ;;  %v4672_v18 = vrot.slane %v8845_v13, 5  ;;  %v4135_v38 = vor.u32 %v4134_v23, %v8879_v25 }
 0x142   : > { %v8893_v56 = vadd.f32 %v1621_v48, %v1169_v3  ;;  %v1180_v26 = vadd.f32 %v6284_v41, %v8611_v46  ;;  %v6327_v15 = vpop.f32.mrf.mxu0  ;;  %v9657_v48 = vcombine.low %v8743_v35, %v8758_v14  ;;  %v8909_v46 = vrot.slane %v4125_v12, 4  ;;  %v5911_v35 = vld [vmem:[%s6744_s29 + $0xc0] sm:$0xe] }
 0x143   : > { %6566 = vmatmul.mubr.msk.bf16.gmra.mxu0 %vm724_vm2, %v9656_v43  ;;  %v1171_v32 = vpop.f32.mrf.mxu1  ;;  %v4671_v50 = vrot.slane %v4669_v39, 4  ;;  %v4149_v63 = vor.u32 %v4148_v27, %v4145_v33  ;;  %v8920_v11 = vsel %vm7096_vm6, %v5926_v4, %v4669_v39  ;;  %v4676_v14 = vrot.slane %v8850_v49, 5 }
 0x144   : > { %9655 = vst [vmem:[#allocation6_spill] sm:$0xff] %v8893_v56  ;;  %6569 = vmatprep.mubr.msk.bf16.mxu0 %vm724_vm2, %v9657_v48  ;;  %v8915_v20 = vadd.f32 %v6324_v28, %v1180_v26  ;;  %v1172_v13 = vadd.f32 %v1171_v32, %v8630_v21  ;;  %v1637_v62 = vpop.f32.mrf.mxu0  ;;  %v4159_v5 = vor.u32 %v4158_v24, %v8891_v6  ;;  %v4162_v23 = vshll.u32 %v5849_v7, 16  ;;  %v9660_v21 = vld [vmem:[#allocation14_spill] sm:$0xff] }
 0x145   : > { %v6287_v55 = vpop.f32.mrf.mxu1  ;;  %v4167_v52 = vshrl.u32 %v5850_v17, 16  ;;  %v4170_v28 = vshll.u32 %v5850_v17, 16  ;;  %v4176_v39 = vshll.u32 %v8913_v9, 16  ;;  %v4180_v49 = vshrl.u32 %v8913_v9, 16 }
 0x146   : > { %9658 = vst [vmem:[#allocation5_spill] sm:$0xff] %v8915_v20  ;;  %v8927_v12 = vadd.f32 %v1624_v60, %v1172_v13  ;;  %v1193_v33 = vadd.f32 %v6287_v55, %v9660_v21  ;;  %v6328_v27 = vpop.f32.mrf.mxu0  ;;  %v4136_v4 = vrot.slane %v4135_v38, 4  ;;  %v4150_v41 = vrot.slane %v4149_v63, 4  ;;  %v9661_v60 = vld [vmem:[#allocation4_spill] sm:$0xff]  ;;  %v9662_v38 = vld [vmem:[#allocation3_spill] sm:$0xff] }
 0x147   : > { %6526 = vmatmul.mubr.msk.bf16.gmra.mxu1 %vm724_vm2, %v8705_v8  ;;  %v1184_v3 = vpop.f32.mrf.mxu1  ;;  %v4673_v8 = vsel %vm7096_vm6, %v4671_v50, %v4672_v18  ;;  %v5927_v24 = vrot.slane %v5911_v35, 9  ;;  %v4678_v32 = vrot.slane %v4676_v14, 4  ;;  %v4679_v48 = vrot.slane %v5849_v7, 5 }
 0x148   : > { %9659 = vst [vmem:[#allocation12_spill] sm:$0xff] %v8927_v12  ;;  %6529 = vmatprep.mubr.msk.bf16.mxu1 %vm724_vm2, %v8785_v22  ;;  %v8936_v26 = vadd.f32 %v6327_v15, %v1193_v33  ;;  %v1185_v43 = vadd.f32 %v1184_v3, %v9661_v60  ;;  %v1640_v17 = vpop.f32.mrf.mxu0  ;;  %v4160_v13 = vrot.slane %v4159_v5, 4  ;;  %v4164_v55 = vrot.slane %v4162_v23, 5  ;;  %v5852_v5 = vld [vmem:[%s6744_s29 + $0xd4] sm:$0x1]  ;;  %v9664_v23 = vld [vmem:[#allocation2_spill] sm:$0xff] }
 0x149   : > { %v6288_v22 = vpop.f32.mrf.mxu1  ;;  %v4169_v21 = vrot.slane %v4167_v52, 4  ;;  %v4172_v12 = vrot.slane %v4170_v28, 5  ;;  %v9663_v15 = vcombine.low %v8802_v1, %v8817_v37  ;;  %v8946_v50 = vrot.slane %v4176_v39, 5  ;;  %v5912_v39 = vld [vmem:[%s6744_s29 + $0xcc] sm:$0xe]  ;;  %s5343_s29 = sshll.u32 %s6723_s16, 5 }
 0x14a   : > { %v8939_v20 = vadd.f32 %v1637_v62, %v1185_v43  ;;  %v1196_v56 = vadd.f32 %v6288_v22, %v9662_v38  ;;  %v6331_v18 = vpop.f32.mrf.mxu0  ;;  %v4182_v7 = vrot.slane %v4180_v49, 4  ;;  %v4131_v62 = vsel %vm6792_vm3, %v8909_v46, %v8879_v25  ;;  %v9666_v43 = vld [vmem:[#allocation9_spill] sm:$0xff]  ;;  %p194_p4 = scmp.lt.s32.totalorder %s5343_s29, 63 }
 0x14b   : > { %6570 = vmatmul.mubr.msk.bf16.gmra.mxu0 %vm724_vm2, %v9663_v15  ;;  %v1187_v63 = vpop.f32.mrf.mxu1  ;;  %v4141_v35 = vsel %vm6792_vm3, %v4136_v4, %v8900_v51  ;;  %v4683_v1 = vrot.slane %v8913_v9, 5  ;;  %v4680_v33 = vsel %vm7096_vm6, %v4678_v32, %v4679_v48  ;;  %v5950_v51 = vcombine.low %v8920_v11, %v4673_v8 }
 0x14c   : > { %6573 = vmatprep.mubr.msk.bf16.mxu0 %vm724_vm2, %v5949_v44  ;;  %v8958_v37 = vadd.f32 %v6328_v27, %v1196_v56  ;;  %v1188_v52 = vadd.f32 %v1187_v63, %v9664_v23  ;;  %v1653_v28 = vpop.f32.mrf.mxu0  ;;  %v4677_v44 = vsel %vm7096_vm6, %v5927_v24, %v4676_v14  ;;  %v4155_v56 = vsel %vm6792_vm3, %v4150_v41, %v8891_v6  ;;  %v9665_v14 = vld [vmem:[#allocation7_spill] sm:$0xff]  ;;  %s9762_s29 = smov (!%p194_p4, %s5343_s29), 63 }
 0x14d   : > { %v6291_v25 = vpop.f32.mrf.mxu1  ;;  %v4165_v46 = vsel %vm6792_vm3, %v4160_v13, %v4164_v55  ;;  %v4173_v9 = vor.u32 %v4172_v12, %v4169_v21  ;;  %v4186_v4 = vshll.u32 %v5852_v5, 16  ;;  %v5951_v8 = vcombine.low %v4677_v44, %v4680_v33  ;;  %s5344_s27 = sshll.u32 %s9762_s29, 2 }
 0x14e   : > { %v8974_v27 = vadd.f32 %v1640_v17, %v1188_v52  ;;  %v1209_v49 = vadd.f32 %v6291_v25, %v9665_v14  ;;  %v6332_v3 = vpop.f32.mrf.mxu0  ;;  %v5928_v24 = vrot.slane %v5912_v39, 9  ;;  %v4685_v60 = vrot.slane %v4683_v1, 4  ;;  %v9669_v39 = vld [vmem:[#allocation13_spill] sm:$0xff]  ;;  %s9295_s5 = scalar_lea.vmem %s9498_s4, %s5344_s27 }
 0x14f   : > { %6530 = vmatmul.mubr.msk.bf16.gmra.mxu1 %vm724_vm2, %v8885_v54  ;;  %v4183_v54 = vor.u32 %v4182_v7, %v8946_v50  ;;  %v1200_v11 = vpop.f32.mrf.mxu1  ;;  %v4686_v6 = vrot.slane %v5852_v5, 5  ;;  %v5874_v48 = vcombine.low %v4131_v62, %v4141_v35  ;;  %v5875_v22 = vcombine.low %v4155_v56, %v4165_v46  ;;  %v9668_v5 = vld [vmem:[#allocation10_spill] sm:$0xff] }
 0x150   : > { %6533 = vmatprep.mubr.msk.bf16.mxu1 %vm724_vm2, %v8887_v34  ;;  %v8980_v41 = vadd.f32 %v6331_v18, %v1209_v49  ;;  %v1201_v12 = vadd.f32 %v1200_v11, %v9666_v43  ;;  %v1656_v17 = vpop.f32.mrf.mxu0  ;;  %v4174_v13 = vrot.slane %v4173_v9, 4  ;;  %v9667_v34 = vld [vmem:[#allocation8_spill] sm:$0xff]  ;;  %v4188_v7 = vrot.slane %v4186_v4, 5  ;;  %v9670_v9 = vld [vmem:[#allocation17_spill] sm:$0xff]  ;;  %v9671_v4 = vld [vmem:[#allocation19_spill] sm:$0xff] }
 0x151   : > { %v6292_v32 = vpop.f32.mrf.mxu1  ;;  %v4184_v15 = vrot.slane %v4183_v54, 4  ;;  %v4684_v18 = vsel %vm7096_vm6, %v5928_v24, %v4683_v1  ;;  %v4687_v62 = vsel %vm7096_vm6, %v4685_v60, %v4686_v6 }
 0x152   : > { %v8983_v55 = vadd.f32 %v1653_v28, %v1201_v12  ;;  %v1212_v21 = vadd.f32 %v6292_v32, %v9667_v34  ;;  %v4179_v44 = vsel %vm6792_vm3, %v4174_v13, %v8946_v50  ;;  %v9673_v34 = vld [vmem:[#allocation22_spill] sm:$0xff] }
 0x153   : > { %v6335_v38 = vpop.f32.mrf.mxu0  ;;  %6574 = vmatmul.mubr.msk.bf16.gmra.mxu0 %vm724_vm2, %v5950_v51  ;;  %v1203_v63 = vpop.f32.mrf.mxu1  ;;  %v4189_v61 = vsel %vm6792_vm3, %v4184_v15, %v4188_v7  ;;  %v5952_v51 = vcombine.low %v4684_v18, %v4687_v62 }
 0x154   : > { %6577 = vmatprep.mubr.msk.bf16.mxu0 %vm724_vm2, %v5951_v8  ;;  %v8992_v35 = vadd.f32 %v6332_v3, %v1212_v21  ;;  %v1204_v23 = vadd.f32 %v1203_v63, %v9668_v5  ;;  %v5876_v54 = vcombine.low %v4179_v44, %v4189_v61 }
 0x155   : > { %v1669_v52 = vpop.f32.mrf.mxu0 }
 0x156   : > { %v6295_v28 = vpop.f32.mrf.mxu1  ;;  %v8999_v33 = vadd.f32 %v1656_v17, %v1204_v23 }
 0x157   : > { %6534 = vmatmul.mubr.msk.bf16.gmra.mxu1 %vm724_vm2, %v5874_v48  ;;  %v1225_v25 = vadd.f32 %v6295_v28, %v9669_v39  ;;  %v6336_v1 = vpop.f32.mrf.mxu0 }
 0x158   : > { %6537 = vmatprep.mubr.msk.bf16.mxu1 %vm724_vm2, %v5875_v22  ;;  %v1216_v56 = vpop.f32.mrf.mxu1 }
 0x159   : > { %v9005_v46 = vadd.f32 %v6335_v38, %v1225_v25  ;;  %v1217_v14 = vadd.f32 %v1216_v56, %v9670_v9  ;;  %v1672_v49 = vpop.f32.mrf.mxu0 }
 0x15a   : > { %v6296_v3 = vpop.f32.mrf.mxu1 }
 0x15b   : > { %v9008_v50 = vadd.f32 %v1669_v52, %v1217_v14  ;;  %v1228_v11 = vadd.f32 %v6296_v3, %v9671_v4  ;;  %v6339_v8 = vpop.f32.mrf.mxu0  ;;  %6578 = vmatmul.mubr.msk.bf16.gmra.mxu0 %vm724_vm2, %v5952_v51 }
 0x15c   : > { %v1219_v24 = vpop.f32.mrf.mxu1 }
 0x15d   : > { %v9012_v60 = vadd.f32 %v6336_v1, %v1228_v11  ;;  %v1220_v6 = vadd.f32 %v1219_v24, %v9672_v31  ;;  %v1685_v43 = vpop.f32.mrf.mxu0 }
 0x15f   : > { %v6299_v12 = vpop.f32.mrf.mxu1  ;;  %6538 = vmatmul.mubr.msk.bf16.gmra.mxu1 %vm724_vm2, %v5876_v54  ;;  %v9016_v17 = vadd.f32 %v1672_v49, %v1220_v6  ;;  %v6340_v48 = vpop.f32.mrf.mxu0 }
 0x160   : > { %v1241_v32 = vadd.f32 %v6299_v12, %v8602_v10 }
 0x161   : > { %v1232_v22 = vpop.f32.mrf.mxu1  ;;  %v1688_v38 = vpop.f32.mrf.mxu0 }
 0x162   : > { %v9019_v13 = vadd.f32 %v6339_v8, %v1241_v32  ;;  %v1233_v21 = vadd.f32 %v1232_v22, %v9673_v34 }
 0x163   : > { %v6300_v15 = vpop.f32.mrf.mxu1  ;;  %v6391_v18 = vpop.f32.mrf.mxu0 }
 0x164   : > { %v9022_v7 = vadd.f32 %v1685_v43, %v1233_v21  ;;  %v1244_v63 = vadd.f32 %v6300_v15, %v8633_v42 }
 0x165   : > { %v1235_v62 = vpop.f32.mrf.mxu1  ;;  %v2714_v52 = vpop.f32.mrf.mxu0 }
 0x166   : > { %v9025_v5 = vadd.f32 %v6340_v48, %v1244_v63  ;;  %v1236_v23 = vadd.f32 %v1235_v62, %v8655_v36 }
 0x167   : > { %v6351_v10 = vpop.f32.mrf.mxu1  ;;  %v6392_v39 = vpop.f32.mrf.mxu0 }
 0x168   : > { %v9028_v28 = vadd.f32 %v1688_v38, %v1236_v23  ;;  %v2089_v44 = vadd.f32 %v6351_v10, %v8702_v0 }
 0x169   : > { %v1960_v25 = vpop.f32.mrf.mxu1  ;;  %v2717_v51 = vpop.f32.mrf.mxu0 }
 0x16a   : > { %v9031_v1 = vadd.f32 %v6391_v18, %v2089_v44  ;;  %v2087_v61 = vadd.f32 %v1960_v25, %v8713_v30 }
 0x16b   : > { %v6352_v42 = vpop.f32.mrf.mxu1  ;;  %v6395_v14 = vpop.f32.mrf.mxu0 }
 0x16c   : > { %v9034_v56 = vadd.f32 %v2714_v52, %v2087_v61  ;;  %v2090_v9 = vadd.f32 %v6352_v42, %v8729_v45 }
 0x16d   : > { %v1963_v36 = vpop.f32.mrf.mxu1  ;;  %v2730_v54 = vpop.f32.mrf.mxu0 }
 0x16e   : > { %v9037_v49 = vadd.f32 %v6392_v39, %v2090_v9  ;;  %v2088_v3 = vadd.f32 %v1963_v36, %v8747_v2 }
 0x16f   : > { %v6355_v0 = vpop.f32.mrf.mxu1  ;;  %v6396_v8 = vpop.f32.mrf.mxu0 }
 0x170   : > { %v9040_v4 = vadd.f32 %v2717_v51, %v2088_v3  ;;  %v2093_v11 = vadd.f32 %v6355_v0, %v8762_v19  ;;  %v9675_v0 = vld [vmem:[#allocation5_spill] sm:$0xff] }
 0x171   : > { %v1976_v30 = vpop.f32.mrf.mxu1  ;;  %v2733_v6 = vpop.f32.mrf.mxu0 }
 0x172   : > { %v9043_v24 = vadd.f32 %v6395_v14, %v2093_v11  ;;  %v2091_v31 = vadd.f32 %v1976_v30, %v8768_v58  ;;  %v9674_v14 = vld [vmem:[#allocation6_spill] sm:$0xff] }
 0x173   : > { %v6356_v45 = vpop.f32.mrf.mxu1  ;;  %v6399_v32 = vpop.f32.mrf.mxu0 }
 0x174   : > { %v9046_v43 = vadd.f32 %v2730_v54, %v2091_v31  ;;  %v2094_v12 = vadd.f32 %v6356_v45, %v8793_v40  ;;  %v9676_v31 = vld [vmem:[#allocation12_spill] sm:$0xff] }
 0x175   : > { %v1979_v2 = vpop.f32.mrf.mxu1  ;;  %v2746_v34 = vpop.f32.mrf.mxu0 }
 0x176   : > { %v9049_v48 = vadd.f32 %v6396_v8, %v2094_v12  ;;  %v2092_v22 = vadd.f32 %v1979_v2, %v8806_v59 }
 0x177   : > { %v6359_v19 = vpop.f32.mrf.mxu1  ;;  %v6400_v15 = vpop.f32.mrf.mxu0 }
 0x178   : > { %v9052_v21 = vadd.f32 %v2733_v6, %v2092_v22  ;;  %v2097_v38 = vadd.f32 %v6359_v19, %v8827_v29 }
 0x179   : > { %v1992_v58 = vpop.f32.mrf.mxu1  ;;  %v2749_v62 = vpop.f32.mrf.mxu0 }
 0x17a   : > { %v9055_v63 = vadd.f32 %v6399_v32, %v2097_v38  ;;  %v2095_v18 = vadd.f32 %v1992_v58, %v8837_v16 }
 0x17b   : > { %v6360_v40 = vpop.f32.mrf.mxu1  ;;  %v6403_v10 = vpop.f32.mrf.mxu0 }
 0x17c   : > { %v9058_v23 = vadd.f32 %v2746_v34, %v2095_v18  ;;  %v2098_v52 = vadd.f32 %v6360_v40, %v8856_v57 }
 0x17d   : > { %v1995_v59 = vpop.f32.mrf.mxu1  ;;  %v2762_v25 = vpop.f32.mrf.mxu0 }
 0x17e   : > { %v9061_v44 = vadd.f32 %v6400_v15, %v2098_v52  ;;  %v2096_v39 = vadd.f32 %v1995_v59, %v8874_v47 }
 0x17f   : > { %v6363_v29 = vpop.f32.mrf.mxu1  ;;  %v6404_v42 = vpop.f32.mrf.mxu0 }
 0x180   : > { %v9064_v61 = vadd.f32 %v2749_v62, %v2096_v39  ;;  %v2101_v51 = vadd.f32 %v6363_v29, %v8882_v53 }
 0x181   : > { %v2008_v16 = vpop.f32.mrf.mxu1  ;;  %v2765_v3 = vpop.f32.mrf.mxu0 }
 0x182   : > { %v9067_v9 = vadd.f32 %v6403_v10, %v2101_v51  ;;  %v2099_v36 = vadd.f32 %v2008_v16, %v9674_v14 }
 0x183   : > { %v6364_v57 = vpop.f32.mrf.mxu1  ;;  %v6407_v8 = vpop.f32.mrf.mxu0 }
 0x184   : > { %v9070_v54 = vadd.f32 %v2762_v25, %v2099_v36  ;;  %v2102_v11 = vadd.f32 %v6364_v57, %v9675_v0 }
 0x185   : > { %v2011_v47 = vpop.f32.mrf.mxu1  ;;  %v2778_v45 = vpop.f32.mrf.mxu0 }
 0x186   : > { %v9073_v30 = vadd.f32 %v6404_v42, %v2102_v11  ;;  %v2100_v6 = vadd.f32 %v2011_v47, %v9676_v31 }
 0x187   : > { %v6367_v53 = vpop.f32.mrf.mxu1  ;;  %v6408_v2 = vpop.f32.mrf.mxu0 }
 0x188   : > { %v9076_v12 = vadd.f32 %v2765_v3, %v2100_v6  ;;  %v2105_v32 = vadd.f32 %v6367_v53, %v8936_v26 }
 0x189   : > { %v2024_v22 = vpop.f32.mrf.mxu1  ;;  %v2781_v38 = vpop.f32.mrf.mxu0 }
 0x18a   : > { %v9079_v34 = vadd.f32 %v6407_v8, %v2105_v32  ;;  %v2103_v19 = vadd.f32 %v2024_v22, %v8939_v20 }
 0x18b   : > { %v6368_v15 = vpop.f32.mrf.mxu1  ;;  %v6411_v62 = vpop.f32.mrf.mxu0 }
 0x18c   : > { %v9082_v58 = vadd.f32 %v2778_v45, %v2103_v19  ;;  %v2106_v18 = vadd.f32 %v6368_v15, %v8958_v37 }
 0x18d   : > { %v2027_v40 = vpop.f32.mrf.mxu1  ;;  %v2794_v59 = vpop.f32.mrf.mxu0 }
 0x18e   : > { %v9085_v52 = vadd.f32 %v6408_v2, %v2106_v18  ;;  %v2104_v10 = vadd.f32 %v2027_v40, %v8974_v27 }
 0x18f   : > { %v6371_v26 = vpop.f32.mrf.mxu1  ;;  %v6412_v29 = vpop.f32.mrf.mxu0 }
 0x190   : > { %9677 = vst [vmem:[#allocation16_spill] sm:$0xff] %v9085_v52  ;;  %v9088_v39 = vadd.f32 %v2781_v38, %v2104_v10  ;;  %v2109_v25 = vadd.f32 %v6371_v26, %v8980_v41 }
 0x191   : > { %v2040_v20 = vpop.f32.mrf.mxu1  ;;  %v2797_v16 = vpop.f32.mrf.mxu0 }
 0x192   : > { %9678 = vst [vmem:[#allocation11_spill] sm:$0xff] %v9088_v39  ;;  %v9091_v51 = vadd.f32 %v6411_v62, %v2109_v25  ;;  %v2107_v42 = vadd.f32 %v2040_v20, %v8983_v55 }
 0x193   : > { %v6372_v37 = vpop.f32.mrf.mxu1  ;;  %v6415_v3 = vpop.f32.mrf.mxu0 }
 0x194   : > { %9679 = vst [vmem:[#allocation15_spill] sm:$0xff] %v9091_v51  ;;  %v9094_v14 = vadd.f32 %v2794_v59, %v2107_v42  ;;  %v2110_v36 = vadd.f32 %v6372_v37, %v8992_v35 }
 0x195   : > { %v2043_v27 = vpop.f32.mrf.mxu1  ;;  %v2810_v11 = vpop.f32.mrf.mxu0 }
 0x196   : > { %9680 = vst [vmem:[#allocation18_spill] sm:$0xff] %v9094_v14  ;;  %v9097_v57 = vadd.f32 %v6412_v29, %v2110_v36  ;;  %v2108_v0 = vadd.f32 %v2043_v27, %v8999_v33 }
 0x197   : > { %v6375_v41 = vpop.f32.mrf.mxu1  ;;  %v6416_v31 = vpop.f32.mrf.mxu0 }
 0x198   : > { %9681 = vst [vmem:[#allocation20_spill] sm:$0xff] %v9097_v57  ;;  %v9100_v8 = vadd.f32 %v2797_v16, %v2108_v0  ;;  %v2113_v47 = vadd.f32 %v6375_v41, %v9005_v46 }
 0x199   : > { %v2056_v55 = vpop.f32.mrf.mxu1  ;;  %v2813_v53 = vpop.f32.mrf.mxu0 }
 0x19a   : > { %9682 = vst [vmem:[#allocation14_spill] sm:$0xff] %v9100_v8  ;;  %v9103_v6 = vadd.f32 %v6415_v3, %v2113_v47  ;;  %v2111_v45 = vadd.f32 %v2056_v55, %v9008_v50 }
 0x19b   : > { %v6376_v35 = vpop.f32.mrf.mxu1  ;;  %v6419_v22 = vpop.f32.mrf.mxu0 }
 0x19c   : > { %9683 = vst [vmem:[#allocation4_spill] sm:$0xff] %v9103_v6  ;;  %v9106_v32 = vadd.f32 %v2810_v11, %v2111_v45  ;;  %v2114_v2 = vadd.f32 %v6376_v35, %v9012_v60 }
 0x19d   : > { %v2059_v33 = vpop.f32.mrf.mxu1  ;;  %v2826_v15 = vpop.f32.mrf.mxu0 }
 0x19e   : > { %9684 = vst [vmem:[#allocation3_spill] sm:$0xff] %v9106_v32  ;;  %v9109_v19 = vadd.f32 %v6416_v31, %v2114_v2  ;;  %v2112_v38 = vadd.f32 %v2059_v33, %v9016_v17 }
 0x19f   : > { %v6379_v46 = vpop.f32.mrf.mxu1  ;;  %v6420_v40 = vpop.f32.mrf.mxu0 }
 0x1a0   : > { %9685 = vst [vmem:[#allocation2_spill] sm:$0xff] %v9109_v19  ;;  %v9112_v18 = vadd.f32 %v2813_v53, %v2112_v38  ;;  %v2117_v62 = vadd.f32 %v6379_v46, %v9019_v13 }
 0x1a1   : > { %v2072_v50 = vpop.f32.mrf.mxu1  ;;  %v2829_v26 = vpop.f32.mrf.mxu0 }
 0x1a2   : > { %9686 = vst [vmem:[#allocation7_spill] sm:$0xff] %v9112_v18  ;;  %v9115_v10 = vadd.f32 %v6419_v22, %v2117_v62  ;;  %v2115_v59 = vadd.f32 %v2072_v50, %v9022_v7 }
 0x1a3   : > { %v6380_v60 = vpop.f32.mrf.mxu1  ;;  %v9121_v20 = vpop.f32.mrf.mxu0 }
 0x1a4   : > { %9687 = vst [vmem:[#allocation9_spill] sm:$0xff] %v9115_v10  ;;  %v9118_v25 = vadd.f32 %v2826_v15, %v2115_v59  ;;  %v2118_v29 = vadd.f32 %v6380_v60, %v9025_v5 }
 0x1a5   : > { %v2075_v17 = vpop.f32.mrf.mxu1  ;;  %v9126_v13 = vpop.f32.mrf.mxu0 }
 0x1a6   : > { %9688 = vst [vmem:[#allocation8_spill] sm:$0xff] %v9118_v25  ;;  %v9123_v42 = vadd.f32 %v6420_v40, %v2118_v29  ;;  %v2116_v16 = vadd.f32 %v2075_v17, %v9028_v28 }
 0x1a7   : > { %v6431_v37 = vpop.f32.mrf.mxu1  ;;  %v9130_v3 = vpop.f32.mrf.mxu0 }
 0x1a8   : > { %9689 = vst [vmem:[#allocation10_spill] sm:$0xff] %v9123_v42  ;;  %v9128_v36 = vadd.f32 %v2829_v26, %v2116_v16 }
 0x1a9   : > { %v3212_v7 = vpop.f32.mrf.mxu1  ;;  %v9132_v27 = vpop.f32.mrf.mxu0 }
 0x1aa   : > { %9690 = vst [vmem:[#allocation13_spill] sm:$0xff] %v9128_v36 }
 0x1ab   : > { %v9134_v0 = vpop.f32.mrf.mxu1  ;;  %v9136_v5 = vpop.f32.mrf.mxu0 }
 0x1ad   : > { %v9138_v11 = vpop.f32.mrf.mxu1  ;;  %v9140_v41 = vpop.f32.mrf.mxu0 }
 0x1af   : > { %v9142_v47 = vpop.f32.mrf.mxu1  ;;  %v9144_v28 = vpop.f32.mrf.mxu0 }
 0x1b1   : > { %v9146_v31 = vpop.f32.mrf.mxu1  ;;  %v9148_v55 = vpop.f32.mrf.mxu0 }
 0x1b3   : > { %v9150_v45 = vpop.f32.mrf.mxu1  ;;  %v9152_v53 = vpop.f32.mrf.mxu0 }
 0x1b5   : > { %v9154_v35 = vpop.f32.mrf.mxu1  ;;  %v9156_v2 = vpop.f32.mrf.mxu0 }
 0x1b7   : > { %v9158_v22 = vpop.f32.mrf.mxu1  ;;  %v9160_v33 = vpop.f32.mrf.mxu0 }
 0x1b9   : > { %v9162_v38 = vpop.f32.mrf.mxu1  ;;  %v9164_v15 = vpop.f32.mrf.mxu0 }
 0x1bb   : > { %v9166_v46 = vpop.f32.mrf.mxu1  ;;  %v9168_v62 = vpop.f32.mrf.mxu0 }
 0x1bd   : > { %v9170_v40 = vpop.f32.mrf.mxu1  ;;  %v9172_v50 = vpop.f32.mrf.mxu0 }
 0x1bf   : > { %v9174_v59 = vpop.f32.mrf.mxu1  ;;  %v9176_v26 = vpop.f32.mrf.mxu0 }
 0x1c1   : > { %v9178_v60 = vpop.f32.mrf.mxu1  ;;  %v9180_v29 = vpop.f32.mrf.mxu0 }
 0x1c3   : > { %v9182_v17 = vpop.f32.mrf.mxu1  ;;  %v9184_v16 = vpop.f32.mrf.mxu0 }
 0x1c5   : > { %v9186_v36 = vpop.f32.mrf.mxu1  ;;  %v9188_v42 = vpop.f32.mrf.mxu0 }
 0x1c6   : > { %9691 = vst [vmem:[#allocation17_spill] sm:$0xff] %v9188_v42 }
 0x1c7   : > { %v9190_v25 = vpop.f32.mrf.mxu1  ;;  %v9192_v10 = vpop.f32.mrf.mxu0 }
 0x1c8   : > { %9692 = vst [vmem:[#allocation19_spill] sm:$0xff] %v9192_v10 }
 0x1c9   : > { %v9194_v18 = vpop.f32.mrf.mxu1  ;;  %v9196_v19 = vpop.f32.mrf.mxu0 }
 0x1ca   : > { %9693 = vst [vmem:[#allocation21_spill] sm:$0xff] %v9196_v19 }
 0x1cb   : > { %v9198_v32 = vpop.f32.mrf.mxu1  ;;  %v9200_v6 = vpop.f32.mrf.mxu0 }
 0x1cc   : > { %9694 = vst [vmem:[#allocation22_spill] sm:$0xff] %v9198_v32  ;;  %9695 = vst [vmem:[#allocation6_spill] sm:$0xff] %v9200_v6 }
 0x1cd   : > { %v9202_v8 = vpop.f32.mrf.mxu1  ;;  %v9204_v57 = vpop.f32.mrf.mxu0 }
 0x1ce   : > { %9696 = vst [vmem:[#allocation5_spill] sm:$0xff] %v9202_v8  ;;  %9697 = vst [vmem:[#allocation12_spill] sm:$0xff] %v9204_v57 }
 0x1cf   : > { %v9206_v14 = vpop.f32.mrf.mxu1  ;;  %v9208_v51 = vpop.f32.mrf.mxu0 }
 0x1d0   : > { %9698 = vst [vmem:[#allocation23_spill] sm:$0xff] %v9206_v14  ;;  %9699 = vst [vmem:[#allocation24_spill] sm:$0xff] %v9208_v51 }
 0x1d1   : > { %v9210_v39 = vpop.f32.mrf.mxu1  ;;  %v9212_v42 = vpop.f32.mrf.mxu0 }
 0x1d2   : > { %9700 = vst [vmem:[#allocation25_spill] sm:$0xff] %v9210_v39  ;;  %9701 = vst [vmem:[#allocation26_spill] sm:$0xff] %v9212_v42 }
 0x1d3   : > { %v9214_v10 = vpop.f32.mrf.mxu1  ;;  %v9216_v52 = vpop.f32.mrf.mxu0 }
 0x1d4   : > { %9702 = vst [vmem:[#allocation27_spill] sm:$0xff] %v9214_v10  ;;  %9703 = vst [vmem:[#allocation28_spill] sm:$0xff] %v9216_v52 }
 0x1d5   : > { %v9218_v19 = vpop.f32.mrf.mxu1  ;;  %v9220_v6 = vpop.f32.mrf.mxu0 }
 0x1d6   : > { %9704 = vst [vmem:[#allocation29_spill] sm:$0xff] %v9218_v19  ;;  %9705 = vst [vmem:[#allocation30_spill] sm:$0xff] %v9220_v6 }
 0x1d7   : > { %v9222_v8 = vpop.f32.mrf.mxu1  ;;  %v9224_v57 = vpop.f32.mrf.mxu0 }
 0x1d8   : > { %9706 = vst [vmem:[#allocation31_spill] sm:$0xff] %v9222_v8  ;;  %9707 = vst [vmem:[#allocation32_spill] sm:$0xff] %v9224_v57  ;;  %v3341_v57 = vadd.f32 %v6431_v37, %v9031_v1  ;;  %v3340_v37 = vadd.f32 %v9138_v11, %v9040_v4  ;;  %v9272_v4 = vld [vmem:[%s9497_s3] ss:$0 sm:$0xff] }
 0x1d9   : > { %v9226_v14 = vpop.f32.mrf.mxu1  ;;  %v9228_v51 = vpop.f32.mrf.mxu0 }
 0x1da   : > { %9708 = vst [vmem:[#allocation33_spill] sm:$0xff] %v9226_v14  ;;  %9709 = vst [vmem:[#allocation34_spill] sm:$0xff] %v9228_v51  ;;  %v3339_v51 = vadd.f32 %v3212_v7, %v9034_v56  ;;  %v9262_v56 = vld [vmem:[%s9496_s2] ss:$0 sm:$0xff] }
 0x1db   : > { %v9230_v39 = vpop.f32.mrf.mxu1  ;;  %v9232_v42 = vpop.f32.mrf.mxu0 }
 0x1dc   : > { %9710 = vst [vmem:[#allocation35_spill] sm:$0xff] %v9230_v39  ;;  %9711 = vst [vmem:[#allocation36_spill] sm:$0xff] %v9232_v42  ;;  %v3726_v1 = vadd.f32 %v9126_v13, %v3339_v51  ;;  %v3345_v51 = vadd.f32 %v9142_v47, %v9043_v24 }
 0x1dd   : > { %v9234_v10 = vpop.f32.mrf.mxu1  ;;  %v9236_v52 = vpop.f32.mrf.mxu0 }
 0x1de   : > { %9712 = vst [vmem:[#allocation37_spill] sm:$0xff] %v9236_v52  ;;  %v3728_v52 = vadd.f32 %v9121_v20, %v3341_v57 }
 0x1df   : > { %v9238_v19 = vpop.f32.mrf.mxu1  ;;  %v9240_v32 = vpop.f32.mrf.mxu0 }
 0x1e0   : > { %9713 = vst [vmem:[#allocation38_spill] sm:$0xff] %v9238_v19  ;;  %9714 = vst [vmem:[#allocation39_spill] sm:$0xff] %v9240_v32  ;;  %v3342_v19 = vadd.f32 %v9134_v0, %v9037_v49 }
 0x1e1   : > { %v9242_v6 = vpop.f32.mrf.mxu1  ;;  %v9245_v8 = vpop.f32.mrf.mxu0 }
 0x1e2   : > { %9715 = vst [vmem:[#allocation40_spill] sm:$0xff] %v9242_v6  ;;  %9716 = vst [vmem:[#allocation41_spill] sm:$0xff] %v9245_v8  ;;  %v3729_v57 = vadd.f32 %v9130_v3, %v3342_v19 }
 0x1e3   : > { %v9247_v14 = vpop.f32.mrf.mxu1  ;;  %v6551_v42 = vpop.f32.mrf.mxu0 }
 0x1e4   : > { %9717 = vst [vmem:[#allocation42_spill] sm:$0xff] %v9247_v14 }
 0x1e5   : > { %v9251_v39 = vpop.f32.mrf.mxu1  ;;  %v4851_v32 = vpop.f32.mrf.mxu0 }
 0x1e6   : > { %9718 = vst [vmem:[#allocation43_spill] sm:$0xff] %v9251_v39 }
 0x1e7   : > { %v6511_v6 = vpop.f32.mrf.mxu1  ;;  %v6552_v14 = vpop.f32.mrf.mxu0 }
 0x1e8   : > { %v4482_v8 = vadd.f32 %v6511_v6, %v3728_v52  ;;  %v3727_v6 = vadd.f32 %v9132_v27, %v3340_v37  ;;  %v3732_v37 = vadd.f32 %v9136_v5, %v3345_v51 }
 0x1e9   : > { %v4353_v7 = vpop.f32.mrf.mxu1  ;;  %v4854_v0 = vpop.f32.mrf.mxu0 }
 0x1ea   : > { %v4980_v49 = vadd.f32 %v6551_v42, %v4482_v8  ;;  %v4480_v20 = vadd.f32 %v4353_v7, %v3726_v1  ;;  %v3343_v8 = vadd.f32 %v9146_v31, %v9046_v43  ;;  %v3346_v42 = vadd.f32 %v9150_v45, %v9049_v48 }
 0x1eb   : > { %v6512_v52 = vpop.f32.mrf.mxu1  ;;  %v6555_v11 = vpop.f32.mrf.mxu0 }
 0x1ec   : > { %v5019_v13 = vmul.f32 %v9262_v56, %v4980_v49  ;;  %v4978_v19 = vadd.f32 %v4851_v32, %v4480_v20  ;;  %v4483_v3 = vadd.f32 %v6512_v52, %v3729_v57  ;;  %v3344_v32 = vadd.f32 %v9154_v35, %v9052_v21 }
 0x1ed   : > { %v4356_v24 = vpop.f32.mrf.mxu1  ;;  %v4867_v27 = vpop.f32.mrf.mxu0  ;;  %v3730_v20 = vadd.f32 %v9140_v41, %v3343_v8  ;;  %v3349_v52 = vadd.f32 %v9158_v22, %v9055_v63  ;;  %v3347_v63 = vadd.f32 %v9162_v38, %v9058_v23 }
 0x1ee   : > { %v5058_v47 = vadd.f32 %v9272_v4, %v5019_v13  ;;  %v5017_v1 = vmul.f32 %v9262_v56, %v4978_v19  ;;  %v4981_v7 = vadd.f32 %v6552_v14, %v4483_v3  ;;  %v4481_v39 = vadd.f32 %v4356_v24, %v3727_v6 }
 0x1ef   : > { %v6515_v57 = vpop.f32.mrf.mxu1  ;;  %v6556_v49 = vpop.f32.mrf.mxu0  ;;  %v3733_v14 = vadd.f32 %v9144_v28, %v3346_v42  ;;  %v3731_v28 = vadd.f32 %v9148_v55, %v3344_v32  ;;  %v3350_v55 = vadd.f32 %v9166_v46, %v9061_v44 }
 0x1f0   : > { %v5090_v43 = vmax.f32 %v5058_v47, 0.0  ;;  %v5056_v31 = vadd.f32 %v9272_v4, %v5017_v1  ;;  %v5020_v48 = vmul.f32 %v9262_v56, %v4981_v7  ;;  %v4979_v45 = vadd.f32 %v4854_v0, %v4481_v39 }
 0x1f1   : > { %v4486_v21 = vadd.f32 %v6515_v57, %v3732_v37  ;;  %v4369_v5 = vpop.f32.mrf.mxu1  ;;  %v4870_v41 = vpop.f32.mrf.mxu0  ;;  %v3736_v47 = vadd.f32 %v9152_v53, %v3349_v52  ;;  %v3348_v53 = vadd.f32 %v9170_v40, %v9064_v61 }
 0x1f2   : > { %v6011_v35 = vpack.c.bf16 %v5090_v43, %v5090_v43  ;;  %v5088_v51 = vmax.f32 %v5056_v31, 0.0  ;;  %v5059_v39 = vadd.f32 %v9272_v4, %v5020_v48  ;;  %v5018_v0 = vmul.f32 %v9262_v56, %v4979_v45 }
 0x1f3   : > { %v4984_v22 = vadd.f32 %v6555_v11, %v4486_v21  ;;  %v4484_v6 = vadd.f32 %v4369_v5, %v3730_v20  ;;  %v6516_v13 = vpop.f32.mrf.mxu1  ;;  %v6559_v24 = vpop.f32.mrf.mxu0  ;;  %v3734_v43 = vadd.f32 %v9156_v2, %v3347_v63  ;;  %v3353_v2 = vadd.f32 %v9174_v59, %v9067_v9 }
 0x1f4   : > { %5251 = vst.msk [vmem:[%s9295_s5 + $0x8] sm:$0xf] %vm5248_vm7, %v6011_v35  ;;  %v6009_v19 = vpack.c.bf16 %v5088_v51, %v5088_v51  ;;  %v5091_v3 = vmax.f32 %v5059_v39, 0.0  ;;  %v5057_v8 = vadd.f32 %v9272_v4, %v5018_v0  ;;  %v4487_v42 = vadd.f32 %v6516_v13, %v3733_v14 }
 0x1f5   : > { %v5023_v1 = vmul.f32 %v9262_v56, %v4984_v22  ;;  %v4982_v23 = vadd.f32 %v4867_v27, %v4484_v6  ;;  %v4372_v38 = vpop.f32.mrf.mxu1  ;;  %v4883_v57 = vpop.f32.mrf.mxu0  ;;  %v3737_v14 = vadd.f32 %v9160_v33, %v3350_v55  ;;  %v3735_v0 = vadd.f32 %v9164_v15, %v3348_v53 }
 0x1f6   : > { %5249 = vst.msk [vmem:[%s9295_s5] sm:$0xf] %vm5248_vm7, %v6009_v19  ;;  %v6012_v11 = vpack.c.bf16 %v5091_v3, %v5091_v3  ;;  %v5089_v7 = vmax.f32 %v5057_v8, 0.0  ;;  %v4985_v37 = vadd.f32 %v6556_v49, %v4487_v42  ;;  %v4485_v32 = vadd.f32 %v4372_v38, %v3731_v28 }
 0x1f7   : > { %v5062_v31 = vadd.f32 %v9272_v4, %v5023_v1  ;;  %v5021_v44 = vmul.f32 %v9262_v56, %v4982_v23  ;;  %v6519_v46 = vpop.f32.mrf.mxu1  ;;  %v6560_v20 = vpop.f32.mrf.mxu0  ;;  %v3351_v33 = vadd.f32 %v9178_v60, %v9070_v54  ;;  %v3740_v19 = vadd.f32 %v9168_v62, %v3353_v2 }
 0x1f8   : > { %5252 = vst.msk [vmem:[%s9295_s5 + $0xc] sm:$0xf] %vm5248_vm7, %v6012_v11  ;;  %v6010_v27 = vpack.c.bf16 %v5089_v7, %v5089_v7  ;;  %v5024_v48 = vmul.f32 %v9262_v56, %v4985_v37  ;;  %v4983_v45 = vadd.f32 %v4870_v41, %v4485_v32  ;;  %v4490_v49 = vadd.f32 %v6519_v46, %v3736_v47 }
 0x1f9   : > { %v5094_v52 = vmax.f32 %v5062_v31, 0.0  ;;  %v5060_v61 = vadd.f32 %v9272_v4, %v5021_v44  ;;  %v4385_v40 = vpop.f32.mrf.mxu1  ;;  %v4886_v39 = vpop.f32.mrf.mxu0  ;;  %v3354_v3 = vadd.f32 %v9182_v17, %v9073_v30  ;;  %v3738_v1 = vadd.f32 %v9172_v50, %v3351_v33 }
 0x1fa   : > { %5250 = vst.msk [vmem:[%s9295_s5 + $0x4] sm:$0xf] %vm5248_vm7, %v6010_v27  ;;  %v5063_v21 = vadd.f32 %v9272_v4, %v5024_v48  ;;  %v5022_v5 = vmul.f32 %v9262_v56, %v4983_v45  ;;  %v4988_v35 = vadd.f32 %v6559_v24, %v4490_v49  ;;  %v4488_v51 = vadd.f32 %v4385_v40, %v3734_v43  ;;  %v9720_v40 = vld [vmem:[#allocation22_spill] sm:$0xff] }
 0x1fb   : > { %v6015_v9 = vpack.c.bf16 %v5094_v52, %v5094_v52  ;;  %v5092_v59 = vmax.f32 %v5060_v61, 0.0  ;;  %v6520_v41 = vpop.f32.mrf.mxu1  ;;  %v6563_v13 = vpop.f32.mrf.mxu0  ;;  %v3352_v62 = vadd.f32 %v9186_v36, %v9076_v12  ;;  %v3357_v12 = vadd.f32 %v9190_v25, %v9079_v34 }
 0x1fc   : > { %v5095_v28 = vmax.f32 %v5063_v21, 0.0  ;;  %v5061_v63 = vadd.f32 %v9272_v4, %v5022_v5  ;;  %v5027_v22 = vmul.f32 %v9262_v56, %v4988_v35  ;;  %v4986_v6 = vadd.f32 %v4883_v57, %v4488_v51 }
 0x1fd   : > { %5255 = vst.msk [vmem:[%s9295_s5 + $0x18] sm:$0xf] %vm5248_vm7, %v6015_v9  ;;  %v6013_v54 = vpack.c.bf16 %v5092_v59, %v5092_v59  ;;  %v4491_v15 = vadd.f32 %v6520_v41, %v3737_v14  ;;  %v4388_v60 = vpop.f32.mrf.mxu1  ;;  %v4899_v55 = vpop.f32.mrf.mxu0  ;;  %v3741_v57 = vadd.f32 %v9176_v26, %v3354_v3  ;;  %v3739_v48 = vadd.f32 %v9180_v29, %v3352_v62  ;;  %v9719_v29 = vld [vmem:[#allocation16_spill] sm:$0xff]  ;;  %v9721_v9 = vld [vmem:[#allocation17_spill] sm:$0xff] }
 0x1fe   : > { %v6016_v8 = vpack.c.bf16 %v5095_v28, %v5095_v28  ;;  %v5093_v42 = vmax.f32 %v5061_v63, 0.0  ;;  %v5066_v24 = vadd.f32 %v9272_v4, %v5027_v22  ;;  %v5025_v47 = vmul.f32 %v9262_v56, %v4986_v6  ;;  %v9723_v41 = vld [vmem:[#allocation5_spill] sm:$0xff] }
 0x1ff   : > { %5253 = vst.msk [vmem:[%s9295_s5 + $0x10] sm:$0xf] %vm5248_vm7, %v6013_v54  ;;  %v4989_v30 = vadd.f32 %v6560_v20, %v4491_v15  ;;  %v4489_v17 = vadd.f32 %v4388_v60, %v3735_v0  ;;  %v6523_v23 = vpop.f32.mrf.mxu1  ;;  %v6564_v32 = vpop.f32.mrf.mxu0  ;;  %v3355_v26 = vadd.f32 %v9194_v18, %v9082_v58  ;;  %v3744_v61 = vadd.f32 %v9184_v16, %v3357_v12  ;;  %v9722_v16 = vld [vmem:[#allocation11_spill] sm:$0xff] }
 0x200   : > { %5256 = vst.msk [vmem:[%s9295_s5 + $0x1c] sm:$0xf] %vm5248_vm7, %v6016_v8  ;;  %v6014_v38 = vpack.c.bf16 %v5093_v42, %v5093_v42  ;;  %v5098_v11 = vmax.f32 %v5066_v24, 0.0  ;;  %v5064_v7 = vadd.f32 %v9272_v4, %v5025_v47  ;;  %v4494_v37 = vadd.f32 %v6523_v23, %v3740_v19  ;;  %v9724_v60 = vld [vmem:[#allocation19_spill] sm:$0xff] }
 0x201   : > { %v5028_v36 = vmul.f32 %v9262_v56, %v4989_v30  ;;  %v4987_v50 = vadd.f32 %v4886_v39, %v4489_v17  ;;  %v4401_v43 = vpop.f32.mrf.mxu1  ;;  %v4902_v27 = vpop.f32.mrf.mxu0  ;;  %v3358_v21 = vadd.f32 %v9720_v40, %v9719_v29  ;;  %v3742_v59 = vadd.f32 %v9721_v9, %v3355_v26  ;;  %v9725_v42 = vld [vmem:[#allocation15_spill] sm:$0xff] }
 0x202   : > { %5254 = vst.msk [vmem:[%s9295_s5 + $0x14] sm:$0xf] %vm5248_vm7, %v6014_v38  ;;  %v6019_v53 = vpack.c.bf16 %v5098_v11, %v5098_v11  ;;  %v5096_v31 = vmax.f32 %v5064_v7, 0.0  ;;  %v4992_v44 = vadd.f32 %v6563_v13, %v4494_v37  ;;  %v4492_v46 = vadd.f32 %v4401_v43, %v3738_v1  ;;  %v9726_v24 = vld [vmem:[#allocation23_spill] sm:$0xff]  ;;  %v9727_v7 = vld [vmem:[#allocation21_spill] sm:$0xff] }
 0x203   : > { %v5067_v45 = vadd.f32 %v9272_v4, %v5028_v36  ;;  %v5026_v34 = vmul.f32 %v9262_v56, %v4987_v50  ;;  %v6524_v25 = vpop.f32.mrf.mxu1  ;;  %v6567_v52 = vpop.f32.mrf.mxu0  ;;  %v3356_v28 = vadd.f32 %v9723_v41, %v9722_v16  ;;  %v3745_v8 = vadd.f32 %v9724_v60, %v3358_v21  ;;  %v9733_v21 = vld [vmem:[#allocation12_spill] sm:$0xff] }
 0x204   : > { %5259 = vst.msk [vmem:[%s9295_s5 + $0x28] sm:$0xf] %vm5248_vm7, %v6019_v53  ;;  %v6017_v49 = vpack.c.bf16 %v5096_v31, %v5096_v31  ;;  %v5031_v20 = vmul.f32 %v9262_v56, %v4992_v44  ;;  %v4990_v14 = vadd.f32 %v4899_v55, %v4492_v46  ;;  %v4495_v2 = vadd.f32 %v6524_v25, %v3741_v57  ;;  %v9729_v57 = vld [vmem:[#allocation25_spill] sm:$0xff] }
 0x205   : > { %v5099_v5 = vmax.f32 %v5067_v45, 0.0  ;;  %v5065_v58 = vadd.f32 %v9272_v4, %v5026_v34  ;;  %v4404_v18 = vpop.f32.mrf.mxu1  ;;  %v4915_v33 = vpop.f32.mrf.mxu0  ;;  %v3361_v47 = vadd.f32 %v9726_v24, %v9725_v42  ;;  %v3743_v37 = vadd.f32 %v9727_v7, %v3356_v28  ;;  %v9731_v45 = vld [vmem:[#allocation20_spill] sm:$0xff]  ;;  %v9732_v34 = vld [vmem:[#allocation27_spill] sm:$0xff] }
 0x206   : > { %5257 = vst.msk [vmem:[%s9295_s5 + $0x20] sm:$0xf] %vm5248_vm7, %v6017_v49  ;;  %v5070_v35 = vadd.f32 %v9272_v4, %v5031_v20  ;;  %v5029_v51 = vmul.f32 %v9262_v56, %v4990_v14  ;;  %v4993_v39 = vadd.f32 %v6564_v32, %v4495_v2  ;;  %v4493_v0 = vadd.f32 %v4404_v18, %v3739_v48  ;;  %v9728_v32 = vld [vmem:[#allocation18_spill] sm:$0xff]  ;;  %v9735_v18 = vld [vmem:[#allocation29_spill] sm:$0xff]  ;;  %v9736_v28 = vld [vmem:[#allocation24_spill] sm:$0xff] }
 0x207   : > { %v6020_v63 = vpack.c.bf16 %v5099_v5, %v5099_v5  ;;  %v5097_v22 = vmax.f32 %v5065_v58, 0.0  ;;  %v6527_v6 = vpop.f32.mrf.mxu1  ;;  %v6568_v15 = vpop.f32.mrf.mxu0  ;;  %v3359_v12 = vadd.f32 %v9729_v57, %v9728_v32  ;;  %v9730_v48 = vld [vmem:[#allocation6_spill] sm:$0xff]  ;;  %v3362_v25 = vadd.f32 %v9732_v34, %v9731_v45 }
 0x208   : > { %v5102_v13 = vmax.f32 %v5070_v35, 0.0  ;;  %v5068_v19 = vadd.f32 %v9272_v4, %v5029_v51  ;;  %v5032_v3 = vmul.f32 %v9262_v56, %v4993_v39  ;;  %v4991_v54 = vadd.f32 %v4902_v27, %v4493_v0  ;;  %v9734_v58 = vld [vmem:[#allocation14_spill] sm:$0xff] }
 0x209   : > { %5260 = vst.msk [vmem:[%s9295_s5 + $0x2c] sm:$0xf] %vm5248_vm7, %v6020_v63  ;;  %v6018_v55 = vpack.c.bf16 %v5097_v22, %v5097_v22  ;;  %v4498_v1 = vadd.f32 %v6527_v6, %v3744_v61  ;;  %v4417_v62 = vpop.f32.mrf.mxu1  ;;  %v4918_v11 = vpop.f32.mrf.mxu0  ;;  %v3748_v26 = vadd.f32 %v9730_v48, %v3361_v47  ;;  %v3746_v5 = vadd.f32 %v9733_v21, %v3359_v12  ;;  %v9737_v22 = vld [vmem:[#allocation4_spill] sm:$0xff]  ;;  %v9738_v6 = vld [vmem:[#allocation31_spill] sm:$0xff]  ;;  %v9739_v47 = vld [vmem:[#allocation26_spill] sm:$0xff] }
 0x20a   : > { %v6023_v30 = vpack.c.bf16 %v5102_v13, %v5102_v13  ;;  %v5100_v17 = vmax.f32 %v5068_v19, 0.0  ;;  %v5071_v23 = vadd.f32 %v9272_v4, %v5032_v3  ;;  %v5030_v38 = vmul.f32 %v9262_v56, %v4991_v54  ;;  %v9742_v12 = vld [vmem:[#allocation28_spill] sm:$0xff] }
 0x20b   : > { %5258 = vst.msk [vmem:[%s9295_s5 + $0x24] sm:$0xf] %vm5248_vm7, %v6018_v55  ;;  %v4996_v36 = vadd.f32 %v6567_v52, %v4498_v1  ;;  %v4496_v50 = vadd.f32 %v4417_v62, %v3742_v59  ;;  %v6528_v43 = vpop.f32.mrf.mxu1  ;;  %v6571_v27 = vpop.f32.mrf.mxu0  ;;  %v3360_v35 = vadd.f32 %v9735_v18, %v9734_v58  ;;  %v3749_v63 = vadd.f32 %v9736_v28, %v3362_v25  ;;  %v9740_v1 = vld [vmem:[#allocation3_spill] sm:$0xff]  ;;  %v9741_v62 = vld [vmem:[#allocation33_spill] sm:$0xff]  ;;  %v9745_v25 = vld [vmem:[#allocation30_spill] sm:$0xff] }
 0x20c   : > { %5263 = vst.msk [vmem:[%s9295_s5 + $0x38] sm:$0xf] %vm5248_vm7, %v6023_v30  ;;  %v6021_v53 = vpack.c.bf16 %v5100_v17, %v5100_v17  ;;  %v5103_v31 = vmax.f32 %v5071_v23, 0.0  ;;  %v5069_v44 = vadd.f32 %v9272_v4, %v5030_v38  ;;  %v4499_v46 = vadd.f32 %v6528_v43, %v3745_v8  ;;  %v9744_v43 = vld [vmem:[#allocation35_spill] sm:$0xff]  ;;  %v9747_v18 = vld [vmem:[#allocation32_spill] sm:$0xff] }
 0x20d   : > { %v5035_v49 = vmul.f32 %v9262_v56, %v4996_v36  ;;  %v4994_v20 = vadd.f32 %v4915_v33, %v4496_v50  ;;  %v4420_v14 = vpop.f32.mrf.mxu1  ;;  %v4931_v40 = vpop.f32.mrf.mxu0  ;;  %v3365_v13 = vadd.f32 %v9738_v6, %v9737_v22  ;;  %v3747_v55 = vadd.f32 %v9739_v47, %v3360_v35  ;;  %v9743_v50 = vld [vmem:[#allocation2_spill] sm:$0xff]  ;;  %v9752_v47 = vld [vmem:[#allocation40_spill] sm:$0xff] }
 0x20e   : > { %5261 = vst.msk [vmem:[%s9295_s5 + $0x30] sm:$0xf] %vm5248_vm7, %v6021_v53  ;;  %v6024_v2 = vpack.c.bf16 %v5103_v31, %v5103_v31  ;;  %v5101_v52 = vmax.f32 %v5069_v44, 0.0  ;;  %v4997_v61 = vadd.f32 %v6568_v15, %v4499_v46  ;;  %v4497_v29 = vadd.f32 %v4420_v14, %v3743_v37  ;;  %v9750_v22 = vld [vmem:[#allocation38_spill] sm:$0xff] }
 0x20f   : > { %v5074_v51 = vadd.f32 %v9272_v4, %v5035_v49  ;;  %v5033_v39 = vmul.f32 %v9262_v56, %v4994_v20  ;;  %v6531_v0 = vpop.f32.mrf.mxu1  ;;  %v6572_v41 = vpop.f32.mrf.mxu0  ;;  %v3363_v30 = vadd.f32 %v9741_v62, %v9740_v1  ;;  %v3752_v36 = vadd.f32 %v9742_v12, %v3365_v13  ;;  %v9746_v20 = vld [vmem:[#allocation7_spill] sm:$0xff]  ;;  %v9753_v1 = vld [vmem:[#allocation10_spill] sm:$0xff] }
 0x210   : > { %5264 = vst.msk [vmem:[%s9295_s5 + $0x3c] sm:$0xf] %vm5248_vm7, %v6024_v2  ;;  %v6022_v33 = vpack.c.bf16 %v5101_v52, %v5101_v52  ;;  %v5036_v9 = vmul.f32 %v9262_v56, %v4997_v61  ;;  %v4995_v59 = vadd.f32 %v4918_v11, %v4497_v29  ;;  %v4502_v16 = vadd.f32 %v6531_v0, %v3748_v26  ;;  %v9754_v62 = vld [vmem:[#allocation42_spill] sm:$0xff] }
 0x211   : > { %v5106_v19 = vmax.f32 %v5074_v51, 0.0  ;;  %v5072_v3 = vadd.f32 %v9272_v4, %v5033_v39  ;;  %v4433_v54 = vpop.f32.mrf.mxu1  ;;  %v4934_v24 = vpop.f32.mrf.mxu0  ;;  %v3366_v53 = vadd.f32 %v9744_v43, %v9743_v50  ;;  %v3750_v49 = vadd.f32 %v9745_v25, %v3363_v30  ;;  %v9757_v50 = vld [vmem:[#allocation43_spill] sm:$0xff] }
 0x212   : > { %5262 = vst.msk [vmem:[%s9295_s5 + $0x34] sm:$0xf] %vm5248_vm7, %v6022_v33  ;;  %v5075_v15 = vadd.f32 %v9272_v4, %v5036_v9  ;;  %v5034_v60 = vmul.f32 %v9262_v56, %v4995_v59  ;;  %v5000_v8 = vadd.f32 %v6571_v27, %v4502_v16  ;;  %v4500_v42 = vadd.f32 %v4433_v54, %v3746_v5 }
 0x213   : > { %v6027_v17 = vpack.c.bf16 %v5106_v19, %v5106_v19  ;;  %v5104_v23 = vmax.f32 %v5072_v3, 0.0  ;;  %v6532_v38 = vpop.f32.mrf.mxu1  ;;  %v6575_v57 = vpop.f32.mrf.mxu0  ;;  %v3364_v14 = vadd.f32 %v9234_v10, %v9746_v20  ;;  %v3753_v35 = vadd.f32 %v9747_v18, %v3366_v53 }
 0x214   : > { %v5107_v11 = vmax.f32 %v5075_v15, 0.0  ;;  %v5073_v7 = vadd.f32 %v9272_v4, %v5034_v60  ;;  %v5039_v37 = vmul.f32 %v9262_v56, %v5000_v8  ;;  %v4998_v32 = vadd.f32 %v4931_v40, %v4500_v42 }
 0x215   : > { %5267 = vst.msk [vmem:[%s9295_s5 + $0x48] sm:$0xf] %vm5248_vm7, %v6027_v17  ;;  %v6025_v31 = vpack.c.bf16 %v5104_v23, %v5104_v23  ;;  %v4503_v44 = vadd.f32 %v6532_v38, %v3749_v63  ;;  %v4436_v46 = vpop.f32.mrf.mxu1  ;;  %v4947_v34 = vpop.f32.mrf.mxu0  ;;  %v9749_v63 = vld [vmem:[#allocation9_spill] sm:$0xff]  ;;  %v3370_v30 = vadd.f32 %v9754_v62, %v9753_v1 }
 0x216   : > { %v6028_v27 = vpack.c.bf16 %v5107_v11, %v5107_v11  ;;  %v5105_v48 = vmax.f32 %v5073_v7, 0.0  ;;  %v5078_v26 = vadd.f32 %v9272_v4, %v5039_v37  ;;  %v5037_v45 = vmul.f32 %v9262_v56, %v4998_v32 }
 0x217   : > { %5265 = vst.msk [vmem:[%s9295_s5 + $0x40] sm:$0xf] %vm5248_vm7, %v6025_v31  ;;  %v5001_v2 = vadd.f32 %v6572_v41, %v4503_v44  ;;  %v4501_v52 = vadd.f32 %v4436_v46, %v3747_v55  ;;  %v6535_v61 = vpop.f32.mrf.mxu1  ;;  %v6576_v58 = vpop.f32.mrf.mxu0  ;;  %v9748_v41 = vld [vmem:[#allocation34_spill] sm:$0xff]  ;;  %v3369_v6 = vadd.f32 %v9750_v22, %v9749_v63 }
 0x218   : > { %5268 = vst.msk [vmem:[%s9295_s5 + $0x4c] sm:$0xf] %vm5248_vm7, %v6028_v27  ;;  %v6026_v29 = vpack.c.bf16 %v5105_v48, %v5105_v48  ;;  %v5110_v40 = vmax.f32 %v5078_v26, 0.0  ;;  %v5076_v21 = vadd.f32 %v9272_v4, %v5037_v45  ;;  %v4506_v5 = vadd.f32 %v6535_v61, %v3752_v36  ;;  %v9756_v36 = vld [vmem:[#allocation13_spill] sm:$0xff] }
 0x219   : > { %v5040_v51 = vmul.f32 %v9262_v56, %v5001_v2  ;;  %v4999_v39 = vadd.f32 %v4934_v24, %v4501_v52  ;;  %v4449_v10 = vpop.f32.mrf.mxu1  ;;  %v4950_v16 = vpop.f32.mrf.mxu0  ;;  %v3751_v28 = vadd.f32 %v9748_v41, %v3364_v14  ;;  %v9751_v24 = vld [vmem:[#allocation8_spill] sm:$0xff]  ;;  %v3368_v43 = vadd.f32 %v9757_v50, %v9756_v36 }
 0x21a   : > { %5266 = vst.msk [vmem:[%s9295_s5 + $0x44] sm:$0xf] %vm5248_vm7, %v6026_v29  ;;  %v6031_v0 = vpack.c.bf16 %v5110_v40, %v5110_v40  ;;  %v5108_v33 = vmax.f32 %v5076_v21, 0.0  ;;  %v5004_v9 = vadd.f32 %v6575_v57, %v4506_v5  ;;  %v4504_v59 = vadd.f32 %v4449_v10, %v3750_v49  ;;  %v9755_v57 = vld [vmem:[#allocation36_spill] sm:$0xff]  ;;  %v9759_v49 = vld [vmem:[#allocation39_spill] sm:$0xff]  ;;  %v9760_v5 = vld [vmem:[#allocation41_spill] sm:$0xff] }
 0x21b   : > { %v5079_v13 = vadd.f32 %v9272_v4, %v5040_v51  ;;  %v5038_v19 = vmul.f32 %v9262_v56, %v4999_v39  ;;  %v6536_v3 = vpop.f32.mrf.mxu1  ;;  %v6579_v42 = vpop.f32.mrf.mxu0  ;;  %v3367_v55 = vadd.f32 %v9752_v47, %v9751_v24  ;;  %v3756_v12 = vadd.f32 %v9755_v57, %v3369_v6 }
 0x21c   : > { %5271 = vst.msk [vmem:[%s9295_s5 + $0x58] sm:$0xf] %vm5248_vm7, %v6031_v0  ;;  %v6029_v54 = vpack.c.bf16 %v5108_v33, %v5108_v33  ;;  %v5043_v15 = vmul.f32 %v9262_v56, %v5004_v9  ;;  %v5002_v60 = vadd.f32 %v4947_v34, %v4504_v59  ;;  %v4507_v8 = vadd.f32 %v6536_v3, %v3753_v35  ;;  %v9758_v34 = vld [vmem:[#allocation37_spill] sm:$0xff] }
 0x21d   : > { %v5111_v17 = vmax.f32 %v5079_v13, 0.0  ;;  %v5077_v23 = vadd.f32 %v9272_v4, %v5038_v19  ;;  %v4452_v38 = vpop.f32.mrf.mxu1  ;;  %v4963_v46 = vpop.f32.mrf.mxu0  ;;  %v3754_v25 = vadd.f32 %v9758_v34, %v3367_v55  ;;  %v3757_v20 = vadd.f32 %v9759_v49, %v3370_v30 }
 0x21e   : > { %5269 = vst.msk [vmem:[%s9295_s5 + $0x50] sm:$0xf] %vm5248_vm7, %v6029_v54  ;;  %v5082_v11 = vadd.f32 %v9272_v4, %v5043_v15  ;;  %v5041_v7 = vmul.f32 %v9262_v56, %v5002_v60  ;;  %v5005_v37 = vadd.f32 %v6576_v58, %v4507_v8  ;;  %v4505_v32 = vadd.f32 %v4452_v38, %v3751_v28 }
 0x21f   : > { %v6032_v53 = vpack.c.bf16 %v5111_v17, %v5111_v17  ;;  %v5109_v31 = vmax.f32 %v5077_v23, 0.0  ;;  %v6539_v44 = vpop.f32.mrf.mxu1  ;;  %v3755_v58 = vadd.f32 %v9760_v5, %v3368_v43  ;;  %v6580_v39 = vpop.f32.mrf.mxu0 }
 0x220   : > { %v5114_v27 = vmax.f32 %v5082_v11, 0.0  ;;  %v5080_v48 = vadd.f32 %v9272_v4, %v5041_v7  ;;  %v5044_v26 = vmul.f32 %v9262_v56, %v5005_v37  ;;  %v5003_v45 = vadd.f32 %v4950_v16, %v4505_v32 }
 0x221   : > { %5272 = vst.msk [vmem:[%s9295_s5 + $0x5c] sm:$0xf] %vm5248_vm7, %v6032_v53  ;;  %v6030_v14 = vpack.c.bf16 %v5109_v31, %v5109_v31  ;;  %v4510_v2 = vadd.f32 %v6539_v44, %v3756_v12  ;;  %v4465_v52 = vpop.f32.mrf.mxu1  ;;  %v4966_v3 = vpop.f32.mrf.mxu0 }
 0x222   : > { %v6035_v61 = vpack.c.bf16 %v5114_v27, %v5114_v27  ;;  %v5112_v29 = vmax.f32 %v5080_v48, 0.0  ;;  %v5083_v40 = vadd.f32 %v9272_v4, %v5044_v26  ;;  %v5042_v21 = vmul.f32 %v9262_v56, %v5003_v45 }
 0x223   : > { %5270 = vst.msk [vmem:[%s9295_s5 + $0x54] sm:$0xf] %vm5248_vm7, %v6030_v14  ;;  %v5008_v18 = vadd.f32 %v6579_v42, %v4510_v2  ;;  %v4508_v35 = vadd.f32 %v4465_v52, %v3754_v25  ;;  %v6540_v51 = vpop.f32.mrf.mxu1 }
 0x224   : > { %5275 = vst.msk [vmem:[%s9295_s5 + $0x68] sm:$0xf] %vm5248_vm7, %v6035_v61  ;;  %v6033_v10 = vpack.c.bf16 %v5112_v29, %v5112_v29  ;;  %v5115_v0 = vmax.f32 %v5083_v40, 0.0  ;;  %v5081_v33 = vadd.f32 %v9272_v4, %v5042_v21  ;;  %v4511_v9 = vadd.f32 %v6540_v51, %v3757_v20 }
 0x225   : > { %v5047_v59 = vmul.f32 %v9262_v56, %v5008_v18  ;;  %v5006_v16 = vadd.f32 %v4963_v46, %v4508_v35  ;;  %v4468_v41 = vpop.f32.mrf.mxu1 }
 0x226   : > { %5273 = vst.msk [vmem:[%s9295_s5 + $0x60] sm:$0xf] %vm5248_vm7, %v6033_v10  ;;  %v6036_v28 = vpack.c.bf16 %v5115_v0, %v5115_v0  ;;  %v5113_v63 = vmax.f32 %v5081_v33, 0.0  ;;  %v5009_v22 = vadd.f32 %v6580_v39, %v4511_v9  ;;  %v4509_v6 = vadd.f32 %v4468_v41, %v3755_v58 }
 0x227   : > { %v5086_v13 = vadd.f32 %v9272_v4, %v5047_v59  ;;  %v5045_v19 = vmul.f32 %v9262_v56, %v5006_v16 }
 0x228   : > { %5276 = vst.msk [vmem:[%s9295_s5 + $0x6c] sm:$0xf] %vm5248_vm7, %v6036_v28  ;;  %v6034_v54 = vpack.c.bf16 %v5113_v63, %v5113_v63  ;;  %v5048_v15 = vmul.f32 %v9262_v56, %v5009_v22  ;;  %v5007_v60 = vadd.f32 %v4966_v3, %v4509_v6 }
 0x229   : > { %v5118_v8 = vmax.f32 %v5086_v13, 0.0  ;;  %v5084_v42 = vadd.f32 %v9272_v4, %v5045_v19 }
 0x22a   : > { %5274 = vst.msk [vmem:[%s9295_s5 + $0x64] sm:$0xf] %vm5248_vm7, %v6034_v54  ;;  %v5087_v24 = vadd.f32 %v9272_v4, %v5048_v15  ;;  %v5046_v47 = vmul.f32 %v9262_v56, %v5007_v60 }
 0x22b   : > { %v6039_v55 = vpack.c.bf16 %v5118_v8, %v5118_v8  ;;  %v5116_v1 = vmax.f32 %v5084_v42, 0.0 }
 0x22c   : > { %v5119_v62 = vmax.f32 %v5087_v24, 0.0  ;;  %v5085_v30 = vadd.f32 %v9272_v4, %v5046_v47 }
 0x22d   : > { %5279 = vst.msk [vmem:[%s9295_s5 + $0x78] sm:$0xf] %vm5248_vm7, %v6039_v55  ;;  %v6037_v17 = vpack.c.bf16 %v5116_v1, %v5116_v1 }
 0x22e   : > { %v6040_v23 = vpack.c.bf16 %v5119_v62, %v5119_v62  ;;  %v5117_v38 = vmax.f32 %v5085_v30, 0.0 }
 0x22f   : > { %5277 = vst.msk [vmem:[%s9295_s5 + $0x70] sm:$0xf] %vm5248_vm7, %v6037_v17 }
 0x230   : > { %5280 = vst.msk [vmem:[%s9295_s5 + $0x7c] sm:$0xf] %vm5248_vm7, %v6040_v23  ;;  %v6038_v11 = vpack.c.bf16 %v5117_v38, %v5117_v38 }
 0x232   : > { %5278 = vst.msk [vmem:[%s9295_s5 + $0x74] sm:$0xf] %vm5248_vm7, %v6038_v11 }
 0x233 PF: > { %s14_s15 = sadd.s32 1, %s6690_s15  }
 0x234   : > { %p11_p5 = scmp.ge.s32.totalorder %s14_s15, 4  }
 0x236   :  { %13 = sbr.rel (!%p11_p5) target bundleno = 1 (0x1), region = 76 }

// kernel: upernet_forward.7
= control target key start
LH: loop header
LB: loop body
LE: loop exit
PB: predicated region body
PF: predicated region fallthrough
CT: control target
= control target key end

     0   :  { %v1932_v0 = vmov 0   ;;  %vm1102_vm0 = vcmask 523264   ;;  %s2707_s1 = inlined_call_operand.vmem [shape: bf16[256,64], index: 1, kind: input, shape index: {}]   ;;  %s2708_s0 = inlined_call_operand.vmem [shape: bf16[512,256], index: 0, kind: input, shape index: {}]   ;;  %s2709_s4 = inlined_call_operand.vmem [shape: bf16[64,128], index: 4, kind: input, shape index: {}]   ;;  %s2710_s2 = inlined_call_operand.vmem [shape: f32[1,64], index: 2, kind: input, shape index: {}]   ;;  %s2711_s3 = inlined_call_operand.vmem [shape: f32[1,64], index: 3, kind: input, shape index: {}]   ;;  %s2712_s5 = inlined_call_operand.vmem [shape: f32[1,128], index: 5, kind: input, shape index: {}]   ;;  %s2713_s6 = inlined_call_operand.vmem [shape: f32[512,128], index: 6, kind: output, shape index: {}]  }
   0x1   :  { %536 = vmatprep.subr.bf16.mxu0 %v1932_v0  ;;  %v1816_v1 = vld [vmem:[%s2707_s1 + $0x38] sm:$0xff]   ;;  %1783 = vmatprep.subr.bf16.mxu1 %v1932_v0  ;;  %v1817_v2 = vld [vmem:[%s2707_s1 + $0x30] sm:$0xff]   ;;  %v1818_v3 = vld [vmem:[%s2707_s1 + $0x28] sm:$0xff]  }
   0x2   :  { %537 = vmatpush1.bf16.msra.mxu0 %v1816_v1  ;;  %1799 = vmatpush1.bf16.msra.mxu1 %v1816_v1  ;;  %v1819_v4 = vld [vmem:[%s2707_s1 + $0x20] sm:$0xff]   ;;  %v1820_v5 = vld [vmem:[%s2707_s1 + $0x18] sm:$0xff]   ;;  %v1821_v7 = vld [vmem:[%s2707_s1 + $0x10] sm:$0xff]  }
   0x3   :  { %538 = vmatprep.subr.bf16.mxu0 %v1932_v0  ;;  %1784 = vmatprep.subr.bf16.mxu1 %v1932_v0  ;;  %v1834_v6 = vld [vmem:[%s2708_s0 + $0x4] ss:$8 sps:$4 sm:$0xff]   ;;  %v1824_v10 = vld [vmem:[%s2707_s1 + $0x78] sm:$0xff]   ;;  %v1825_v11 = vld [vmem:[%s2707_s1 + $0x70] sm:$0xff]  }
   0x4   :  { %568 = vmatprep.mubr.bf16.mxu0 %v1834_v6  ;;  %v1822_v8 = vld [vmem:[%s2707_s1 + $0x8] sm:$0xff]   ;;  %v1823_v9 = vld [vmem:[%s2707_s1] sm:$0xff]   ;;  %v1828_v14 = vld [vmem:[%s2707_s1 + $0x58] sm:$0xff]  }
   0x5   :  { %v1826_v12 = vld [vmem:[%s2707_s1 + $0x68] sm:$0xff]   ;;  %v1827_v13 = vld [vmem:[%s2707_s1 + $0x60] sm:$0xff]   ;;  %v1829_v15 = vld [vmem:[%s2707_s1 + $0x50] sm:$0xff]  }
   0x6   :  { %539 = vmatpush1.bf16.msra.mxu0 %v1817_v2  ;;  %1800 = vmatpush1.bf16.msra.mxu1 %v1817_v2  ;;  %v1830_v16 = vld [vmem:[%s2707_s1 + $0x48] sm:$0xff]   ;;  %v1831_v17 = vld [vmem:[%s2707_s1 + $0x40] sm:$0xff]   ;;  %v1835_v19 = vld [vmem:[%s2708_s0 + $0x14] ss:$8 sps:$4 sm:$0xff]  }
   0x7   :  { %540 = vmatprep.subr.bf16.mxu0 %v1932_v0  ;;  %1785 = vmatprep.subr.bf16.mxu1 %v1932_v0  ;;  %v1832_v18 = vld [vmem:[%s2708_s0] ss:$8 sps:$4 sm:$0xff]   ;;  %v1837_v20 = vld [vmem:[%s2708_s0 + $0x10] ss:$8 sps:$4 sm:$0xff]   ;;  %v1838_v21 = vld [vmem:[%s2708_s0 + $0x24] ss:$8 sps:$4 sm:$0xff]  }
   0x8   :  { %v1840_v22 = vld [vmem:[%s2708_s0 + $0x20] ss:$8 sps:$4 sm:$0xff]   ;;  %v1841_v23 = vld [vmem:[%s2708_s0 + $0x34] ss:$8 sps:$4 sm:$0xff]   ;;  %v1891_v25 = vld [vmem:[%s2708_s0 + $0x184] ss:$8 sps:$4 sm:$0xff]  }
   0x9   :  { %v1889_v24 = vld [vmem:[%s2708_s0 + $0x180] ss:$8 sps:$4 sm:$0xff]   ;;  %760 = vmatprep.mubr.bf16.mxu1 %v1891_v25  ;;  %v1843_v26 = vld [vmem:[%s2708_s0 + $0x30] ss:$8 sps:$4 sm:$0xff]   ;;  %v1844_v27 = vld [vmem:[%s2708_s0 + $0x44] ss:$8 sps:$4 sm:$0xff]  }
   0xa   :  { %541 = vmatpush1.bf16.msra.mxu0 %v1818_v3  ;;  %1801 = vmatpush1.bf16.msra.mxu1 %v1818_v3  ;;  %v1895_v28 = vld [vmem:[%s2708_s0 + $0x194] ss:$8 sps:$4 sm:$0xff]   ;;  %v1897_v29 = vld [vmem:[%s2708_s0 + $0x190] ss:$8 sps:$4 sm:$0xff]   ;;  %v1846_v30 = vld [vmem:[%s2708_s0 + $0x40] ss:$8 sps:$4 sm:$0xff]  }
   0xb   :  { %542 = vmatprep.subr.bf16.mxu0 %v1932_v0  ;;  %1786 = vmatprep.subr.bf16.mxu1 %v1932_v0  ;;  %v1847_v31 = vld [vmem:[%s2708_s0 + $0x54] ss:$8 sps:$4 sm:$0xff]   ;;  %v1901_v32 = vld [vmem:[%s2708_s0 + $0x1a4] ss:$8 sps:$4 sm:$0xff]   ;;  %v1903_v33 = vld [vmem:[%s2708_s0 + $0x1a0] ss:$8 sps:$4 sm:$0xff]  }
   0xc   :  { %v1849_v34 = vld [vmem:[%s2708_s0 + $0x50] ss:$8 sps:$4 sm:$0xff]   ;;  %v1850_v35 = vld [vmem:[%s2708_s0 + $0x64] ss:$8 sps:$4 sm:$0xff]   ;;  %v1907_v36 = vld [vmem:[%s2708_s0 + $0x1b4] ss:$8 sps:$4 sm:$0xff]  }
   0xd   :  { %v1909_v37 = vld [vmem:[%s2708_s0 + $0x1b0] ss:$8 sps:$4 sm:$0xff]   ;;  %v1852_v38 = vld [vmem:[%s2708_s0 + $0x60] ss:$8 sps:$4 sm:$0xff]   ;;  %v1853_v39 = vld [vmem:[%s2708_s0 + $0x74] ss:$8 sps:$4 sm:$0xff]  }
   0xe   :  { %543 = vmatpush1.bf16.msra.mxu0 %v1819_v4  ;;  %1802 = vmatpush1.bf16.msra.mxu1 %v1819_v4  ;;  %v1913_v40 = vld [vmem:[%s2708_s0 + $0x1c4] ss:$8 sps:$4 sm:$0xff]   ;;  %v1915_v41 = vld [vmem:[%s2708_s0 + $0x1c0] ss:$8 sps:$4 sm:$0xff]   ;;  %v1855_v42 = vld [vmem:[%s2708_s0 + $0x70] ss:$8 sps:$4 sm:$0xff]  }
   0xf   :  { %544 = vmatprep.subr.bf16.mxu0 %v1932_v0  ;;  %1787 = vmatprep.subr.bf16.mxu1 %v1932_v0  ;;  %v1856_v43 = vld [vmem:[%s2708_s0 + $0x84] ss:$8 sps:$4 sm:$0xff]   ;;  %v1919_v44 = vld [vmem:[%s2708_s0 + $0x1d4] ss:$8 sps:$4 sm:$0xff]   ;;  %v1921_v45 = vld [vmem:[%s2708_s0 + $0x1d0] ss:$8 sps:$4 sm:$0xff]  }
  0x10   :  { %v1858_v46 = vld [vmem:[%s2708_s0 + $0x80] ss:$8 sps:$4 sm:$0xff]   ;;  %v1859_v47 = vld [vmem:[%s2708_s0 + $0x94] ss:$8 sps:$4 sm:$0xff]   ;;  %v1922_v48 = vld [vmem:[%s2708_s0 + $0x1e4] ss:$8 sps:$4 sm:$0xff]  }
  0x11   :  { %v1861_v49 = vld [vmem:[%s2708_s0 + $0x90] ss:$8 sps:$4 sm:$0xff]   ;;  %v1924_v50 = vld [vmem:[%s2708_s0 + $0x1e0] ss:$8 sps:$4 sm:$0xff]   ;;  %v1862_v51 = vld [vmem:[%s2708_s0 + $0xa4] ss:$8 sps:$4 sm:$0xff]  }
  0x12   :  { %545 = vmatpush1.bf16.msra.mxu0 %v1820_v5  ;;  %1803 = vmatpush1.bf16.msra.mxu1 %v1820_v5  ;;  %v1925_v52 = vld [vmem:[%s2709_s4 + $0x18] sm:$0xff]   ;;  %v1926_v53 = vld [vmem:[%s2709_s4 + $0x10] sm:$0xff]   ;;  %v1930_v56 = vld [vmem:[%s2709_s4 + $0x8] sm:$0xff]  }
  0x13   :  { %546 = vmatprep.subr.bf16.mxu0 %v1932_v0  ;;  %1788 = vmatprep.subr.bf16.mxu1 %v1932_v0  ;;  %v1927_v54 = vld [vmem:[%s2708_s0 + $0x1f4] ss:$8 sps:$4 sm:$0xff]   ;;  %v1929_v55 = vld [vmem:[%s2708_s0 + $0x1f0] ss:$8 sps:$4 sm:$0xff]   ;;  %v1864_v57 = vld [vmem:[%s2708_s0 + $0xa0] ss:$8 sps:$4 sm:$0xff]  }
  0x14   :  { %v1865_v58 = vld [vmem:[%s2708_s0 + $0xb4] ss:$8 sps:$4 sm:$0xff]   ;;  %v1931_v59 = vld [vmem:[%s2709_s4] sm:$0xff]   ;;  %v1867_v60 = vld [vmem:[%s2708_s0 + $0xb0] ss:$8 sps:$4 sm:$0xff]  }
  0x15   :  { %v1868_v61 = vld [vmem:[%s2708_s0 + $0xc4] ss:$8 sps:$4 sm:$0xff]   ;;  %v1870_v62 = vld [vmem:[%s2708_s0 + $0xc0] ss:$8 sps:$4 sm:$0xff]   ;;  %v1871_v63 = vld [vmem:[%s2708_s0 + $0xd4] ss:$8 sps:$4 sm:$0xff]  }
  0x16   :  { %547 = vmatpush1.bf16.msra.mxu0 %v1821_v7  ;;  %1804 = vmatpush1.bf16.msra.mxu1 %v1821_v7  ;;  %v1874_v1 = vld [vmem:[%s2708_s0 + $0xe4] ss:$8 sps:$4 sm:$0xff]   ;;  %v1876_v2 = vld [vmem:[%s2708_s0 + $0xe0] ss:$8 sps:$4 sm:$0xff]   ;;  %v1877_v3 = vld [vmem:[%s2708_s0 + $0xf4] ss:$8 sps:$4 sm:$0xff]  }
  0x17   :  { %548 = vmatprep.subr.bf16.mxu0 %v1932_v0  ;;  %1789 = vmatprep.subr.bf16.mxu1 %v1932_v0  ;;  %v1879_v4 = vld [vmem:[%s2708_s0 + $0xf0] ss:$8 sps:$4 sm:$0xff]   ;;  %v1880_v5 = vld [vmem:[%s2708_s0 + $0x104] ss:$8 sps:$4 sm:$0xff]   ;;  %v1882_v6 = vld [vmem:[%s2708_s0 + $0x100] ss:$8 sps:$4 sm:$0xff]  }
  0x18   :  { %v1883_v7 = vld [vmem:[%s2708_s0 + $0x114] ss:$8 sps:$4 sm:$0xff]  }
  0x1a   :  { %549 = vmatpush1.bf16.msra.mxu0 %v1822_v8  ;;  %1805 = vmatpush1.bf16.msra.mxu1 %v1822_v8  ;;  %v1885_v8 = vld [vmem:[%s2708_s0 + $0x110] ss:$8 sps:$4 sm:$0xff]  }
  0x1b   :  { %550 = vmatprep.subr.bf16.mxu0 %v1932_v0  ;;  %1790 = vmatprep.subr.bf16.mxu1 %v1932_v0 }
  0x1e   :  { %551 = vmatpush1.bf16.msra.mxu0 %v1823_v9  ;;  %1806 = vmatpush1.bf16.msra.mxu1 %v1823_v9  ;;  %v1886_v9 = vld [vmem:[%s2708_s0 + $0x124] ss:$8 sps:$4 sm:$0xff]  }
  0x1f   :  { %552 = vmatprep.subr.bf16.mxu0 %v1932_v0  ;;  %1791 = vmatprep.subr.bf16.mxu1 %v1932_v0 }
  0x22   :  { %553 = vmatpush2.bf16.msra.mxu0 %v1824_v10  ;;  %1807 = vmatpush2.bf16.msra.mxu1 %v1824_v10  ;;  %v1888_v10 = vld [vmem:[%s2708_s0 + $0x120] ss:$8 sps:$4 sm:$0xff]  }
  0x23   :  { %554 = vmatprep.subr.bf16.mxu0 %v1932_v0  ;;  %1792 = vmatprep.subr.bf16.mxu1 %v1932_v0 }
  0x26   :  { %555 = vmatpush2.bf16.msra.mxu0 %v1825_v11  ;;  %1808 = vmatpush2.bf16.msra.mxu1 %v1825_v11  ;;  %v1892_v11 = vld [vmem:[%s2708_s0 + $0x134] ss:$8 sps:$4 sm:$0xff]  }
  0x27   :  { %556 = vmatprep.subr.bf16.mxu0 %v1932_v0  ;;  %1793 = vmatprep.subr.bf16.mxu1 %v1932_v0 }
  0x2a   :  { %557 = vmatpush2.bf16.msra.mxu0 %v1826_v12  ;;  %1809 = vmatpush2.bf16.msra.mxu1 %v1826_v12  ;;  %v1894_v12 = vld [vmem:[%s2708_s0 + $0x130] ss:$8 sps:$4 sm:$0xff]  }
  0x2b   :  { %558 = vmatprep.subr.bf16.mxu0 %v1932_v0  ;;  %1794 = vmatprep.subr.bf16.mxu1 %v1932_v0 }
  0x2e   :  { %559 = vmatpush2.bf16.msra.mxu0 %v1827_v13  ;;  %1810 = vmatpush2.bf16.msra.mxu1 %v1827_v13  ;;  %v1898_v13 = vld [vmem:[%s2708_s0 + $0x144] ss:$8 sps:$4 sm:$0xff]  }
  0x2f   :  { %560 = vmatprep.subr.bf16.mxu0 %v1932_v0  ;;  %1795 = vmatprep.subr.bf16.mxu1 %v1932_v0 }
  0x32   :  { %561 = vmatpush2.bf16.msra.mxu0 %v1828_v14  ;;  %1811 = vmatpush2.bf16.msra.mxu1 %v1828_v14  ;;  %v1900_v14 = vld [vmem:[%s2708_s0 + $0x140] ss:$8 sps:$4 sm:$0xff]  }
  0x33   :  { %562 = vmatprep.subr.bf16.mxu0 %v1932_v0  ;;  %1796 = vmatprep.subr.bf16.mxu1 %v1932_v0 }
  0x36   :  { %563 = vmatpush2.bf16.msra.mxu0 %v1829_v15  ;;  %1812 = vmatpush2.bf16.msra.mxu1 %v1829_v15  ;;  %v1904_v15 = vld [vmem:[%s2708_s0 + $0x154] ss:$8 sps:$4 sm:$0xff]  }
  0x37   :  { %564 = vmatprep.subr.bf16.mxu0 %v1932_v0  ;;  %1797 = vmatprep.subr.bf16.mxu1 %v1932_v0 }
  0x3a   :  { %565 = vmatpush2.bf16.msra.mxu0 %v1830_v16  ;;  %1813 = vmatpush2.bf16.msra.mxu1 %v1830_v16  ;;  %v1906_v16 = vld [vmem:[%s2708_s0 + $0x150] ss:$8 sps:$4 sm:$0xff]  }
  0x3b   :  { %566 = vmatprep.subr.bf16.mxu0 %v1932_v0  ;;  %1798 = vmatprep.subr.bf16.mxu1 %v1932_v0  ;;  %v1873_v0 = vld [vmem:[%s2708_s0 + $0xd0] ss:$8 sps:$4 sm:$0xff]  }
  0x3e   :  { %567 = vmatpush2.bf16.msra.mxu0 %v1831_v17  ;;  %1814 = vmatpush2.bf16.msra.mxu1 %v1831_v17  ;;  %v1910_v17 = vld [vmem:[%s2708_s0 + $0x164] ss:$8 sps:$4 sm:$0xff]  }
  0x3f   :  { %1711 = vmatprep.subr.bf16.mxu1 %v1925_v52 }
  0x41   :  { %569 = vmatmul.mubr.bf16.vlgmr.msra.gmra.mxu0 %v1832_v18  ;;  %761 = vmatmul.mubr.bf16.vlgmr.msra.gmra.mxu1 %v1889_v24  ;;  %v1912_v18 = vld [vmem:[%s2708_s0 + $0x160] ss:$8 sps:$4 sm:$0xff]  }
  0x42   :  { %576 = vmatprep.mubr.bf16.mxu0 %v1835_v19  ;;  %768 = vmatprep.mubr.bf16.mxu1 %v1895_v28  ;;  %v1916_v19 = vld [vmem:[%s2708_s0 + $0x174] ss:$8 sps:$4 sm:$0xff]   ;;  %v2261_v24 = vld [vmem:[%s2711_s3] ss:$0 sm:$0xff] }
  0x43   :  { %1712 = vmatpush3.bf16.msra.mxu1 %v1925_v52 }
  0x44   :  { %1713 = vmatprep.subr.bf16.mxu1 %v1926_v53 }
  0x47   :  { %1714 = vmatpush3.bf16.msra.mxu1 %v1926_v53 }
  0x48   :  { %1715 = vmatprep.subr.bf16.mxu1 %v1930_v56 }
  0x49   :  { %577 = vmatmul.mubr.bf16.gmra.mxu0 %v1837_v20  ;;  %769 = vmatmul.mubr.bf16.gmra.mxu1 %v1897_v29  ;;  %v1918_v20 = vld [vmem:[%s2708_s0 + $0x170] ss:$8 sps:$4 sm:$0xff]  }
  0x4a   :  { %584 = vmatprep.mubr.bf16.mxu0 %v1838_v21  ;;  %776 = vmatprep.mubr.bf16.mxu1 %v1901_v32  ;;  %v2255_v21 = vld [vmem:[%s2710_s2] ss:$0 sm:$0xff] }
  0x4b   :  { %1716 = vmatpush3.bf16.msra.mxu1 %v1930_v56 }
  0x4c   :  { %1717 = vmatprep.subr.bf16.mxu1 %v1931_v59 }
  0x4f   :  { %1718 = vmatpush3.bf16.msra.mxu1 %v1931_v59 }
  0x51   :  { %585 = vmatmul.mubr.bf16.gmra.mxu0 %v1840_v22  ;;  %777 = vmatmul.mubr.bf16.gmra.mxu1 %v1903_v33 }
  0x52   :  { %592 = vmatprep.mubr.bf16.mxu0 %v1841_v23  ;;  %784 = vmatprep.mubr.bf16.mxu1 %v1907_v36 }
  0x59   :  { %593 = vmatmul.mubr.bf16.gmra.mxu0 %v1843_v26  ;;  %785 = vmatmul.mubr.bf16.gmra.mxu1 %v1909_v37 }
  0x5a   :  { %600 = vmatprep.mubr.bf16.mxu0 %v1844_v27  ;;  %792 = vmatprep.mubr.bf16.mxu1 %v1913_v40 }
  0x61   :  { %601 = vmatmul.mubr.bf16.gmra.mxu0 %v1846_v30  ;;  %793 = vmatmul.mubr.bf16.gmra.mxu1 %v1915_v41 }
  0x62   :  { %608 = vmatprep.mubr.bf16.mxu0 %v1847_v31  ;;  %800 = vmatprep.mubr.bf16.mxu1 %v1919_v44 }
  0x69   :  { %609 = vmatmul.mubr.bf16.gmra.mxu0 %v1849_v34  ;;  %801 = vmatmul.mubr.bf16.gmra.mxu1 %v1921_v45 }
  0x6a   :  { %616 = vmatprep.mubr.bf16.mxu0 %v1850_v35  ;;  %808 = vmatprep.mubr.bf16.mxu1 %v1922_v48 }
  0x71   :  { %617 = vmatmul.mubr.bf16.gmra.mxu0 %v1852_v38  ;;  %809 = vmatmul.mubr.bf16.gmra.mxu1 %v1924_v50 }
  0x72   :  { %624 = vmatprep.mubr.bf16.mxu0 %v1853_v39  ;;  %816 = vmatprep.mubr.bf16.mxu1 %v1927_v54 }
  0x79   :  { %625 = vmatmul.mubr.bf16.gmra.mxu0 %v1855_v42  ;;  %817 = vmatmul.mubr.bf16.gmra.mxu1 %v1929_v55 }
  0x7a   :  { %632 = vmatprep.mubr.bf16.mxu0 %v1856_v43 }
  0x81   :  { %633 = vmatmul.mubr.bf16.gmra.mxu0 %v1858_v46 }
  0x82   :  { %640 = vmatprep.mubr.bf16.mxu0 %v1859_v47 }
  0x89   :  { %641 = vmatmul.mubr.bf16.gmra.mxu0 %v1861_v49 }
  0x8a   :  { %648 = vmatprep.mubr.bf16.mxu0 %v1862_v51 }
  0x91   :  { %649 = vmatmul.mubr.bf16.gmra.mxu0 %v1864_v57 }
  0x92   :  { %656 = vmatprep.mubr.bf16.mxu0 %v1865_v58 }
  0x99   :  { %657 = vmatmul.mubr.bf16.gmra.mxu0 %v1867_v60 }
  0x9a   :  { %664 = vmatprep.mubr.bf16.mxu0 %v1868_v61 }
  0xa1   :  { %665 = vmatmul.mubr.bf16.gmra.mxu0 %v1870_v62 }
  0xa2   :  { %672 = vmatprep.mubr.bf16.mxu0 %v1871_v63 }
  0xa9   :  { %673 = vmatmul.mubr.bf16.gmra.mxu0 %v1873_v0 }
  0xaa   :  { %680 = vmatprep.mubr.bf16.mxu0 %v1874_v1 }
  0xb1   :  { %681 = vmatmul.mubr.bf16.gmra.mxu0 %v1876_v2 }
  0xb2   :  { %688 = vmatprep.mubr.bf16.mxu0 %v1877_v3 }
  0xb9   :  { %689 = vmatmul.mubr.bf16.gmra.mxu0 %v1879_v4 }
  0xba   :  { %696 = vmatprep.mubr.bf16.mxu0 %v1880_v5 }
  0xc1   :  { %697 = vmatmul.mubr.bf16.gmra.mxu0 %v1882_v6 }
  0xc2   :  { %704 = vmatprep.mubr.bf16.mxu0 %v1883_v7 }
  0xc9   :  { %705 = vmatmul.mubr.bf16.gmra.mxu0 %v1885_v8 }
  0xca   :  { %712 = vmatprep.mubr.bf16.mxu0 %v1886_v9 }
  0xd1   :  { %713 = vmatmul.mubr.bf16.gmra.mxu0 %v1888_v10 }
  0xd2   :  { %720 = vmatprep.mubr.bf16.mxu0 %v1892_v11 }
  0xd9   :  { %721 = vmatmul.mubr.bf16.gmra.mxu0 %v1894_v12 }
  0xda   :  { %728 = vmatprep.mubr.bf16.mxu0 %v1898_v13 }
  0xe1   :  { %729 = vmatmul.mubr.bf16.gmra.mxu0 %v1900_v14 }
  0xe2   :  { %736 = vmatprep.mubr.bf16.mxu0 %v1904_v15 }
  0xe9   :  { %737 = vmatmul.mubr.bf16.gmra.mxu0 %v1906_v16 }
  0xea   :  { %744 = vmatprep.mubr.bf16.mxu0 %v1910_v17 }
  0xf1   :  { %745 = vmatmul.mubr.bf16.gmra.mxu0 %v1912_v18 }
  0xf2   :  { %752 = vmatprep.mubr.bf16.mxu0 %v1916_v19 }
  0xf9   :  { %753 = vmatmul.mubr.bf16.gmra.mxu0 %v1918_v20 }
 0x101   :  { %v570_v22 = vpop.f32.mrf.mxu0  ;;  %v762_v51 = vpop.f32.mrf.mxu1 }
 0x102   :  { %v832_v23 = vmul.f32 %v2255_v21, %v570_v22  ;;  %v880_v62 = vmul.f32 %v2255_v21, %v762_v51 }
 0x103   :  { %v572_v25 = vpop.f32.mrf.mxu0  ;;  %v764_v54 = vpop.f32.mrf.mxu1 }
 0x104   :  { %v903_v27 = vadd.f32 %v2261_v24, %v832_v23  ;;  %v951_v3 = vadd.f32 %v2261_v24, %v880_v62 }
 0x105   :  { %v573_v26 = vpop.f32.mrf.mxu0  ;;  %v765_v59 = vpop.f32.mrf.mxu1 }
 0x106   :  { %v833_v28 = vmul.f32 %v2255_v21, %v573_v26  ;;  %v967_v32 = vmax.f32 %v903_v27, 0.0  ;;  %v881_v4 = vmul.f32 %v2255_v21, %v765_v59  ;;  %v1015_v8 = vmax.f32 %v951_v3, 0.0 }
 0x107   :  { %v575_v29 = vpop.f32.mrf.mxu0  ;;  %v767_v63 = vpop.f32.mrf.mxu1 }
 0x108   :  { %v904_v30 = vadd.f32 %v2261_v24, %v833_v28  ;;  %v952_v9 = vadd.f32 %v2261_v24, %v881_v4 }
 0x109   :  { %v578_v31 = vpop.f32.mrf.mxu0  ;;  %v770_v5 = vpop.f32.mrf.mxu1 }
 0x10a   :  { %v968_v33 = vmax.f32 %v904_v30, 0.0  ;;  %v834_v34 = vmul.f32 %v2255_v21, %v578_v31  ;;  %v1016_v15 = vmax.f32 %v952_v9, 0.0  ;;  %v882_v20 = vmul.f32 %v2255_v21, %v770_v5 }
 0x10b   :  { %v580_v35 = vpop.f32.mrf.mxu0  ;;  %v772_v10 = vpop.f32.mrf.mxu1 }
 0x10c   :  { %v1031_v36 = vpack.c.bf16 %v968_v33, %v967_v32  ;;  %v905_v38 = vadd.f32 %v2261_v24, %v834_v34  ;;  %v2286_v19 = vpack.c.bf16 %v1016_v15, %v1015_v8  ;;  %v953_v27 = vadd.f32 %v2261_v24, %v882_v20 }
 0x10d   :  { %v581_v37 = vpop.f32.mrf.mxu0  ;;  %v773_v16 = vpop.f32.mrf.mxu1 }
 0x10e   :  { %v835_v39 = vmul.f32 %v2255_v21, %v581_v37  ;;  %1719 = vmatprep.mubr.msk.bf16.mxu1 %vm1102_vm0, %v1031_v36  ;;  %v969_v43 = vmax.f32 %v905_v38, 0.0  ;;  %v883_v28 = vmul.f32 %v2255_v21, %v773_v16  ;;  %v1017_v32 = vmax.f32 %v953_v27, 0.0 }
 0x10f   :  { %v583_v40 = vpop.f32.mrf.mxu0  ;;  %v775_v22 = vpop.f32.mrf.mxu1 }
 0x110   :  { %v906_v41 = vadd.f32 %v2261_v24, %v835_v39  ;;  %v954_v33 = vadd.f32 %v2261_v24, %v883_v28 }
 0x111   :  { %v586_v42 = vpop.f32.mrf.mxu0  ;;  %v778_v29 = vpop.f32.mrf.mxu1 }
 0x112   :  { %v970_v44 = vmax.f32 %v906_v41, 0.0  ;;  %v836_v45 = vmul.f32 %v2255_v21, %v586_v42  ;;  %v1018_v39 = vmax.f32 %v954_v33, 0.0 }
 0x113   :  { %v588_v46 = vpop.f32.mrf.mxu0  ;;  %v780_v34 = vpop.f32.mrf.mxu1 }
 0x114   :  { %v1032_v47 = vpack.c.bf16 %v970_v44, %v969_v43  ;;  %v907_v49 = vadd.f32 %v2261_v24, %v836_v45  ;;  %v2297_v43 = vpack.c.bf16 %v1018_v39, %v1017_v32  ;;  %v884_v44 = vmul.f32 %v2255_v21, %v778_v29 }
 0x115   :  { %v589_v48 = vpop.f32.mrf.mxu0  ;;  %v781_v40 = vpop.f32.mrf.mxu1 }
 0x116   :  { %v837_v50 = vmul.f32 %v2255_v21, %v589_v48  ;;  %1720 = vmatmul.mubr.msk.bf16.vlgmr.msra.gmra.mxu1 %vm1102_vm0, %v1032_v47  ;;  %v971_v56 = vmax.f32 %v907_v49, 0.0  ;;  %v955_v49 = vadd.f32 %v2261_v24, %v884_v44 }
 0x117   :  { %v591_v52 = vpop.f32.mrf.mxu0  ;;  %v783_v45 = vpop.f32.mrf.mxu1 }
 0x118   :  { %v908_v53 = vadd.f32 %v2261_v24, %v837_v50  ;;  %v885_v50 = vmul.f32 %v2255_v21, %v781_v40  ;;  %v1019_v54 = vmax.f32 %v955_v49, 0.0 }
 0x119   :  { %v594_v55 = vpop.f32.mrf.mxu0  ;;  %v786_v51 = vpop.f32.mrf.mxu1 }
 0x11a   :  { %v972_v57 = vmax.f32 %v908_v53, 0.0  ;;  %v838_v58 = vmul.f32 %v2255_v21, %v594_v55  ;;  %v956_v55 = vadd.f32 %v2261_v24, %v885_v50 }
 0x11b   :  { %v596_v60 = vpop.f32.mrf.mxu0 }
 0x11c   :  { %v1033_v61 = vpack.c.bf16 %v972_v57, %v971_v56  ;;  %v909_v1 = vadd.f32 %v2261_v24, %v838_v58  ;;  %v788_v56 = vpop.f32.mrf.mxu1 }
 0x11d   :  { %v597_v0 = vpop.f32.mrf.mxu0 }
 0x11e   :  { %v839_v2 = vmul.f32 %v2255_v21, %v597_v0  ;;  %1723 = vmatprep.mubr.msk.bf16.mxu1 %vm1102_vm0, %v1033_v61  ;;  %v973_v12 = vmax.f32 %v909_v1, 0.0  ;;  %v1020_v61 = vmax.f32 %v956_v55, 0.0  ;;  %v789_v62 = vpop.f32.mrf.mxu1 }
 0x11f   :  { %v599_v6 = vpop.f32.mrf.mxu0  ;;  %v887_v8 = vmul.f32 %v2255_v21, %v789_v62 }
 0x120   :  { %v910_v7 = vadd.f32 %v2261_v24, %v839_v2  ;;  %v2308_v1 = vpack.c.bf16 %v1020_v61, %v1019_v54  ;;  %v886_v2 = vmul.f32 %v2255_v21, %v786_v51  ;;  %v791_v3 = vpop.f32.mrf.mxu1 }
 0x121   :  { %v602_v11 = vpop.f32.mrf.mxu0 }
 0x122   :  { %v974_v13 = vmax.f32 %v910_v7, 0.0  ;;  %v840_v14 = vmul.f32 %v2255_v21, %v602_v11  ;;  %v957_v7 = vadd.f32 %v2261_v24, %v886_v2  ;;  %v794_v9 = vpop.f32.mrf.mxu1 }
 0x123   :  { %v604_v17 = vpop.f32.mrf.mxu0  ;;  %v888_v27 = vmul.f32 %v2255_v21, %v794_v9 }
 0x124   :  { %v1034_v18 = vpack.c.bf16 %v974_v13, %v973_v12  ;;  %v911_v25 = vadd.f32 %v2261_v24, %v840_v14  ;;  %v1021_v12 = vmax.f32 %v957_v7, 0.0  ;;  %v958_v13 = vadd.f32 %v2261_v24, %v887_v8  ;;  %v796_v14 = vpop.f32.mrf.mxu1 }
 0x125   :  { %v605_v23 = vpop.f32.mrf.mxu0  ;;  %v959_v32 = vadd.f32 %v2261_v24, %v888_v27 }
 0x126   :  { %v841_v26 = vmul.f32 %v2255_v21, %v605_v23  ;;  %1724 = vmatmul.mubr.msk.bf16.gmra.mxu1 %vm1102_vm0, %v1034_v18  ;;  %v975_v36 = vmax.f32 %v911_v25, 0.0  ;;  %v1022_v20 = vmax.f32 %v958_v13, 0.0  ;;  %v797_v22 = vpop.f32.mrf.mxu1 }
 0x127   :  { %v607_v30 = vpop.f32.mrf.mxu0  ;;  %v889_v33 = vmul.f32 %v2255_v21, %v797_v22 }
 0x128   :  { %v912_v31 = vadd.f32 %v2261_v24, %v841_v26  ;;  %v2319_v26 = vpack.c.bf16 %v1022_v20, %v1021_v12  ;;  %v799_v28 = vpop.f32.mrf.mxu1 }
 0x129   :  { %v610_v35 = vpop.f32.mrf.mxu0 }
 0x12a   :  { %v976_v37 = vmax.f32 %v912_v31, 0.0  ;;  %v842_v38 = vmul.f32 %v2255_v21, %v610_v35  ;;  %v802_v34 = vpop.f32.mrf.mxu1 }
 0x12b   :  { %v612_v41 = vpop.f32.mrf.mxu0  ;;  %v890_v50 = vmul.f32 %v2255_v21, %v802_v34 }
 0x12c   :  { %v1035_v42 = vpack.c.bf16 %v976_v37, %v975_v36  ;;  %v913_v47 = vadd.f32 %v2261_v24, %v842_v38  ;;  %v1023_v37 = vmax.f32 %v959_v32, 0.0  ;;  %v960_v38 = vadd.f32 %v2261_v24, %v889_v33  ;;  %v804_v39 = vpop.f32.mrf.mxu1 }
 0x12d   :  { %v613_v46 = vpop.f32.mrf.mxu0  ;;  %v961_v56 = vadd.f32 %v2261_v24, %v890_v50 }
 0x12e   :  { %v843_v48 = vmul.f32 %v2255_v21, %v613_v46  ;;  %1727 = vmatprep.mubr.msk.bf16.mxu1 %vm1102_vm0, %v1035_v42  ;;  %v977_v58 = vmax.f32 %v913_v47, 0.0  ;;  %v1024_v45 = vmax.f32 %v960_v38, 0.0  ;;  %v805_v46 = vpop.f32.mrf.mxu1 }
 0x12f   :  { %v615_v52 = vpop.f32.mrf.mxu0  ;;  %v1025_v62 = vmax.f32 %v961_v56, 0.0 }
 0x130   :  { %v914_v53 = vadd.f32 %v2261_v24, %v843_v48  ;;  %v2330_v49 = vpack.c.bf16 %v1024_v45, %v1023_v37  ;;  %v807_v51 = vpop.f32.mrf.mxu1 }
 0x131   :  { %v618_v57 = vpop.f32.mrf.mxu0 }
 0x132   :  { %v978_v59 = vmax.f32 %v914_v53, 0.0  ;;  %v844_v60 = vmul.f32 %v2255_v21, %v618_v57  ;;  %v891_v53 = vmul.f32 %v2255_v21, %v805_v46  ;;  %v810_v57 = vpop.f32.mrf.mxu1 }
 0x133   :  { %v620_v63 = vpop.f32.mrf.mxu0 }
 0x134   :  { %v1036_v0 = vpack.c.bf16 %v978_v59, %v977_v58  ;;  %v915_v5 = vadd.f32 %v2261_v24, %v844_v60  ;;  %v962_v59 = vadd.f32 %v2261_v24, %v891_v53  ;;  %v892_v60 = vmul.f32 %v2255_v21, %v810_v57  ;;  %v812_v63 = vpop.f32.mrf.mxu1 }
 0x135   :  { %v621_v4 = vpop.f32.mrf.mxu0 }
 0x136   :  { %v845_v6 = vmul.f32 %v2255_v21, %v621_v4  ;;  %1728 = vmatmul.mubr.msk.bf16.gmra.mxu1 %vm1102_vm0, %v1036_v0  ;;  %v979_v16 = vmax.f32 %v915_v5, 0.0  ;;  %v1026_v2 = vmax.f32 %v962_v59, 0.0  ;;  %v963_v3 = vadd.f32 %v2261_v24, %v892_v60  ;;  %v813_v7 = vpop.f32.mrf.mxu1 }
 0x137   :  { %v623_v10 = vpop.f32.mrf.mxu0 }
 0x138   :  { %v916_v11 = vadd.f32 %v2261_v24, %v845_v6  ;;  %v2343_v9 = vpack.c.bf16 %v1026_v2, %v1025_v62  ;;  %v893_v10 = vmul.f32 %v2255_v21, %v813_v7  ;;  %v815_v12 = vpop.f32.mrf.mxu1  ;;  %v1027_v14 = vmax.f32 %v963_v3, 0.0 }
 0x139   :  { %v626_v15 = vpop.f32.mrf.mxu0 }
 0x13a   :  { %v980_v17 = vmax.f32 %v916_v11, 0.0  ;;  %v846_v18 = vmul.f32 %v2255_v21, %v626_v15  ;;  %v964_v15 = vadd.f32 %v2261_v24, %v893_v10 }
 0x13b   :  { %v628_v23 = vpop.f32.mrf.mxu0 }
 0x13c   :  { %v1037_v25 = vpack.c.bf16 %v980_v17, %v979_v16  ;;  %v917_v30 = vadd.f32 %v2261_v24, %v846_v18  ;;  %v818_v18 = vpop.f32.mrf.mxu1  ;;  %v1028_v22 = vmax.f32 %v964_v15, 0.0 }
 0x13d   :  { %v629_v29 = vpop.f32.mrf.mxu0  ;;  %v894_v23 = vmul.f32 %v2255_v21, %v818_v18 }
 0x13e   :  { %v847_v31 = vmul.f32 %v2255_v21, %v629_v29  ;;  %1731 = vmatprep.mubr.msk.bf16.mxu1 %vm1102_vm0, %v1037_v25  ;;  %v981_v41 = vmax.f32 %v917_v30, 0.0  ;;  %v820_v27 = vpop.f32.mrf.mxu1  ;;  %v2352_v29 = vpack.c.bf16 %v1028_v22, %v1027_v14 }
 0x13f   :  { %v631_v35 = vpop.f32.mrf.mxu0  ;;  %v965_v30 = vadd.f32 %v2261_v24, %v894_v23 }
 0x140   :  { %v918_v36 = vadd.f32 %v2261_v24, %v847_v31  ;;  %v821_v34 = vpop.f32.mrf.mxu1 }
 0x141   :  { %v634_v40 = vpop.f32.mrf.mxu0 }
 0x142   :  { %v982_v42 = vmax.f32 %v918_v36, 0.0  ;;  %v848_v44 = vmul.f32 %v2255_v21, %v634_v40  ;;  %v895_v36 = vmul.f32 %v2255_v21, %v821_v34  ;;  %v823_v38 = vpop.f32.mrf.mxu1  ;;  %v1029_v40 = vmax.f32 %v965_v30, 0.0 }
 0x143   :  { %v636_v47 = vpop.f32.mrf.mxu0 }
 0x144   :  { %v1038_v48 = vpack.c.bf16 %v982_v42, %v981_v41  ;;  %v919_v54 = vadd.f32 %v2261_v24, %v848_v44  ;;  %v966_v41 = vadd.f32 %v2261_v24, %v895_v36 }
 0x145   :  { %v637_v52 = vpop.f32.mrf.mxu0 }
 0x146   :  { %v849_v55 = vmul.f32 %v2255_v21, %v637_v52  ;;  %1732 = vmatmul.mubr.msk.bf16.gmra.mxu1 %vm1102_vm0, %v1038_v48  ;;  %v983_v4 = vmax.f32 %v919_v54, 0.0  ;;  %v1030_v46 = vmax.f32 %v966_v41, 0.0 }
 0x147   :  { %v639_v58 = vpop.f32.mrf.mxu0 }
 0x148   :  { %v920_v61 = vadd.f32 %v2261_v24, %v849_v55  ;;  %v2362_v50 = vpack.c.bf16 %v1030_v46, %v1029_v40 }
 0x149   :  { %v642_v0 = vpop.f32.mrf.mxu0 }
 0x14a   :  { %v984_v5 = vmax.f32 %v920_v61, 0.0  ;;  %v850_v6 = vmul.f32 %v2255_v21, %v642_v0 }
 0x14b   :  { %v644_v8 = vpop.f32.mrf.mxu0 }
 0x14c   :  { %v1039_v11 = vpack.c.bf16 %v984_v5, %v983_v4  ;;  %v921_v16 = vadd.f32 %v2261_v24, %v850_v6 }
 0x14d   :  { %v645_v13 = vpop.f32.mrf.mxu0 }
 0x14e   :  { %v851_v17 = vmul.f32 %v2255_v21, %v645_v13  ;;  %1735 = vmatprep.mubr.msk.bf16.mxu1 %vm1102_vm0, %v1039_v11  ;;  %v985_v31 = vmax.f32 %v921_v16, 0.0 }
 0x14f   :  { %v647_v20 = vpop.f32.mrf.mxu0 }
 0x150   :  { %v922_v25 = vadd.f32 %v2261_v24, %v851_v17 }
 0x151   :  { %v650_v28 = vpop.f32.mrf.mxu0 }
 0x152   :  { %v986_v32 = vmax.f32 %v922_v25, 0.0  ;;  %v852_v33 = vmul.f32 %v2255_v21, %v650_v28 }
 0x153   :  { %v652_v35 = vpop.f32.mrf.mxu0 }
 0x154   :  { %v1040_v37 = vpack.c.bf16 %v986_v32, %v985_v31  ;;  %v923_v42 = vadd.f32 %v2261_v24, %v852_v33 }
 0x155   :  { %v653_v39 = vpop.f32.mrf.mxu0 }
 0x156   :  { %v853_v44 = vmul.f32 %v2255_v21, %v653_v39  ;;  %1736 = vmatmul.mubr.msk.bf16.gmra.mxu1 %vm1102_vm0, %v1040_v37  ;;  %v987_v51 = vmax.f32 %v923_v42, 0.0 }
 0x157   :  { %v655_v45 = vpop.f32.mrf.mxu0 }
 0x158   :  { %v924_v47 = vadd.f32 %v2261_v24, %v853_v44 }
 0x159   :  { %v658_v48 = vpop.f32.mrf.mxu0 }
 0x15a   :  { %v988_v52 = vmax.f32 %v924_v47, 0.0  ;;  %v854_v53 = vmul.f32 %v2255_v21, %v658_v48 }
 0x15b   :  { %v660_v54 = vpop.f32.mrf.mxu0 }
 0x15c   :  { %v1041_v55 = vpack.c.bf16 %v988_v52, %v987_v51  ;;  %v925_v57 = vadd.f32 %v2261_v24, %v854_v53 }
 0x15d   :  { %v661_v56 = vpop.f32.mrf.mxu0 }
 0x15e   :  { %v855_v58 = vmul.f32 %v2255_v21, %v661_v56  ;;  %1739 = vmatprep.mubr.msk.bf16.mxu1 %vm1102_vm0, %v1041_v55  ;;  %v989_v62 = vmax.f32 %v925_v57, 0.0 }
 0x15f   :  { %v663_v59 = vpop.f32.mrf.mxu0 }
 0x160   :  { %v926_v60 = vadd.f32 %v2261_v24, %v855_v58 }
 0x161   :  { %v666_v61 = vpop.f32.mrf.mxu0 }
 0x162   :  { %v990_v63 = vmax.f32 %v926_v60, 0.0  ;;  %v856_v0 = vmul.f32 %v2255_v21, %v666_v61 }
 0x163   :  { %v668_v2 = vpop.f32.mrf.mxu0 }
 0x164   :  { %v1042_v3 = vpack.c.bf16 %v990_v63, %v989_v62  ;;  %v927_v5 = vadd.f32 %v2261_v24, %v856_v0 }
 0x165   :  { %v669_v4 = vpop.f32.mrf.mxu0 }
 0x166   :  { %v857_v6 = vmul.f32 %v2255_v21, %v669_v4  ;;  %1740 = vmatmul.mubr.msk.bf16.gmra.mxu1 %vm1102_vm0, %v1042_v3  ;;  %v991_v11 = vmax.f32 %v927_v5, 0.0 }
 0x167   :  { %v671_v7 = vpop.f32.mrf.mxu0 }
 0x168   :  { %v928_v8 = vadd.f32 %v2261_v24, %v857_v6 }
 0x169   :  { %v674_v10 = vpop.f32.mrf.mxu0 }
 0x16a   :  { %v992_v12 = vmax.f32 %v928_v8, 0.0  ;;  %v858_v13 = vmul.f32 %v2255_v21, %v674_v10 }
 0x16b   :  { %v676_v14 = vpop.f32.mrf.mxu0 }
 0x16c   :  { %v1043_v15 = vpack.c.bf16 %v992_v12, %v991_v11  ;;  %v929_v17 = vadd.f32 %v2261_v24, %v858_v13 }
 0x16d   :  { %v677_v16 = vpop.f32.mrf.mxu0 }
 0x16e   :  { %v859_v18 = vmul.f32 %v2255_v21, %v677_v16  ;;  %1743 = vmatprep.mubr.msk.bf16.mxu1 %vm1102_vm0, %v1043_v15  ;;  %v993_v25 = vmax.f32 %v929_v17, 0.0 }
 0x16f   :  { %v679_v20 = vpop.f32.mrf.mxu0 }
 0x170   :  { %v930_v22 = vadd.f32 %v2261_v24, %v859_v18 }
 0x171   :  { %v682_v23 = vpop.f32.mrf.mxu0 }
 0x172   :  { %v994_v27 = vmax.f32 %v930_v22, 0.0  ;;  %v860_v28 = vmul.f32 %v2255_v21, %v682_v23 }
 0x173   :  { %v684_v30 = vpop.f32.mrf.mxu0 }
 0x174   :  { %v1044_v31 = vpack.c.bf16 %v994_v27, %v993_v25  ;;  %v931_v33 = vadd.f32 %v2261_v24, %v860_v28 }
 0x175   :  { %v685_v32 = vpop.f32.mrf.mxu0 }
 0x176   :  { %v861_v34 = vmul.f32 %v2255_v21, %v685_v32  ;;  %1744 = vmatmul.mubr.msk.bf16.gmra.mxu1 %vm1102_vm0, %v1044_v31  ;;  %v995_v38 = vmax.f32 %v931_v33, 0.0 }
 0x177   :  { %v687_v35 = vpop.f32.mrf.mxu0 }
 0x178   :  { %v932_v36 = vadd.f32 %v2261_v24, %v861_v34 }
 0x179   :  { %v690_v37 = vpop.f32.mrf.mxu0 }
 0x17a   :  { %v996_v39 = vmax.f32 %v932_v36, 0.0  ;;  %v862_v40 = vmul.f32 %v2255_v21, %v690_v37 }
 0x17b   :  { %v692_v41 = vpop.f32.mrf.mxu0 }
 0x17c   :  { %v1045_v42 = vpack.c.bf16 %v996_v39, %v995_v38  ;;  %v933_v45 = vadd.f32 %v2261_v24, %v862_v40 }
 0x17d   :  { %v693_v44 = vpop.f32.mrf.mxu0 }
 0x17e   :  { %v863_v46 = vmul.f32 %v2255_v21, %v693_v44  ;;  %1747 = vmatprep.mubr.msk.bf16.mxu1 %vm1102_vm0, %v1045_v42  ;;  %v997_v52 = vmax.f32 %v933_v45, 0.0 }
 0x17f   :  { %v695_v47 = vpop.f32.mrf.mxu0 }
 0x180   :  { %v934_v48 = vadd.f32 %v2261_v24, %v863_v46 }
 0x181   :  { %v698_v51 = vpop.f32.mrf.mxu0 }
 0x182   :  { %v998_v53 = vmax.f32 %v934_v48, 0.0  ;;  %v864_v54 = vmul.f32 %v2255_v21, %v698_v51 }
 0x183   :  { %v700_v55 = vpop.f32.mrf.mxu0 }
 0x184   :  { %v1046_v56 = vpack.c.bf16 %v998_v53, %v997_v52  ;;  %v935_v58 = vadd.f32 %v2261_v24, %v864_v54 }
 0x185   :  { %v701_v57 = vpop.f32.mrf.mxu0 }
 0x186   :  { %v865_v59 = vmul.f32 %v2255_v21, %v701_v57  ;;  %1748 = vmatmul.mubr.msk.bf16.gmra.mxu1 %vm1102_vm0, %v1046_v56  ;;  %v999_v63 = vmax.f32 %v935_v58, 0.0 }
 0x187   :  { %v703_v60 = vpop.f32.mrf.mxu0 }
 0x188   :  { %v936_v61 = vadd.f32 %v2261_v24, %v865_v59 }
 0x189   :  { %v706_v62 = vpop.f32.mrf.mxu0 }
 0x18a   :  { %v1000_v0 = vmax.f32 %v936_v61, 0.0  ;;  %v866_v2 = vmul.f32 %v2255_v21, %v706_v62 }
 0x18b   :  { %v708_v3 = vpop.f32.mrf.mxu0 }
 0x18c   :  { %v1047_v4 = vpack.c.bf16 %v1000_v0, %v999_v63  ;;  %v937_v6 = vadd.f32 %v2261_v24, %v866_v2 }
 0x18d   :  { %v709_v5 = vpop.f32.mrf.mxu0 }
 0x18e   :  { %v867_v7 = vmul.f32 %v2255_v21, %v709_v5  ;;  %1751 = vmatprep.mubr.msk.bf16.mxu1 %vm1102_vm0, %v1047_v4  ;;  %v1001_v12 = vmax.f32 %v937_v6, 0.0 }
 0x18f   :  { %v711_v8 = vpop.f32.mrf.mxu0 }
 0x190   :  { %v938_v10 = vadd.f32 %v2261_v24, %v867_v7 }
 0x191   :  { %v714_v11 = vpop.f32.mrf.mxu0 }
 0x192   :  { %v1002_v13 = vmax.f32 %v938_v10, 0.0  ;;  %v868_v14 = vmul.f32 %v2255_v21, %v714_v11 }
 0x193   :  { %v716_v15 = vpop.f32.mrf.mxu0 }
 0x194   :  { %v1048_v16 = vpack.c.bf16 %v1002_v13, %v1001_v12  ;;  %v939_v18 = vadd.f32 %v2261_v24, %v868_v14 }
 0x195   :  { %v717_v17 = vpop.f32.mrf.mxu0 }
 0x196   :  { %v869_v20 = vmul.f32 %v2255_v21, %v717_v17  ;;  %1752 = vmatmul.mubr.msk.bf16.gmra.mxu1 %vm1102_vm0, %v1048_v16  ;;  %v1003_v27 = vmax.f32 %v939_v18, 0.0 }
 0x197   :  { %v719_v22 = vpop.f32.mrf.mxu0 }
 0x198   :  { %v940_v23 = vadd.f32 %v2261_v24, %v869_v20 }
 0x199   :  { %v722_v25 = vpop.f32.mrf.mxu0 }
 0x19a   :  { %v1004_v28 = vmax.f32 %v940_v23, 0.0  ;;  %v870_v30 = vmul.f32 %v2255_v21, %v722_v25 }
 0x19b   :  { %v724_v31 = vpop.f32.mrf.mxu0 }
 0x19c   :  { %v1049_v32 = vpack.c.bf16 %v1004_v28, %v1003_v27  ;;  %v941_v34 = vadd.f32 %v2261_v24, %v870_v30 }
 0x19d   :  { %v725_v33 = vpop.f32.mrf.mxu0 }
 0x19e   :  { %v871_v35 = vmul.f32 %v2255_v21, %v725_v33  ;;  %1755 = vmatprep.mubr.msk.bf16.mxu1 %vm1102_vm0, %v1049_v32  ;;  %v1005_v39 = vmax.f32 %v941_v34, 0.0 }
 0x19f   :  { %v727_v36 = vpop.f32.mrf.mxu0 }
 0x1a0   :  { %v942_v37 = vadd.f32 %v2261_v24, %v871_v35 }
 0x1a1   :  { %v730_v38 = vpop.f32.mrf.mxu0 }
 0x1a2   :  { %v1006_v40 = vmax.f32 %v942_v37, 0.0  ;;  %v872_v41 = vmul.f32 %v2255_v21, %v730_v38 }
 0x1a3   :  { %v732_v42 = vpop.f32.mrf.mxu0 }
 0x1a4   :  { %v1050_v44 = vpack.c.bf16 %v1006_v40, %v1005_v39  ;;  %v943_v46 = vadd.f32 %v2261_v24, %v872_v41 }
 0x1a5   :  { %v733_v45 = vpop.f32.mrf.mxu0 }
 0x1a6   :  { %v873_v47 = vmul.f32 %v2255_v21, %v733_v45  ;;  %1756 = vmatmul.mubr.msk.bf16.gmra.mxu1 %vm1102_vm0, %v1050_v44  ;;  %v1007_v53 = vmax.f32 %v943_v46, 0.0 }
 0x1a7   :  { %v735_v48 = vpop.f32.mrf.mxu0 }
 0x1a8   :  { %v944_v51 = vadd.f32 %v2261_v24, %v873_v47 }
 0x1a9   :  { %v738_v52 = vpop.f32.mrf.mxu0 }
 0x1aa   :  { %v1008_v54 = vmax.f32 %v944_v51, 0.0  ;;  %v874_v55 = vmul.f32 %v2255_v21, %v738_v52 }
 0x1ab   :  { %v740_v56 = vpop.f32.mrf.mxu0 }
 0x1ac   :  { %v1051_v57 = vpack.c.bf16 %v1008_v54, %v1007_v53  ;;  %v945_v59 = vadd.f32 %v2261_v24, %v874_v55 }
 0x1ad   :  { %v741_v58 = vpop.f32.mrf.mxu0 }
 0x1ae   :  { %v875_v60 = vmul.f32 %v2255_v21, %v741_v58  ;;  %1759 = vmatprep.mubr.msk.bf16.mxu1 %vm1102_vm0, %v1051_v57  ;;  %v1009_v0 = vmax.f32 %v945_v59, 0.0 }
 0x1af   :  { %v743_v61 = vpop.f32.mrf.mxu0 }
 0x1b0   :  { %v946_v62 = vadd.f32 %v2261_v24, %v875_v60 }
 0x1b1   :  { %v746_v63 = vpop.f32.mrf.mxu0 }
 0x1b2   :  { %v1010_v2 = vmax.f32 %v946_v62, 0.0  ;;  %v876_v3 = vmul.f32 %v2255_v21, %v746_v63 }
 0x1b3   :  { %v748_v4 = vpop.f32.mrf.mxu0 }
 0x1b4   :  { %v1052_v5 = vpack.c.bf16 %v1010_v2, %v1009_v0  ;;  %v947_v7 = vadd.f32 %v2261_v24, %v876_v3 }
 0x1b5   :  { %v749_v6 = vpop.f32.mrf.mxu0 }
 0x1b6   :  { %v877_v8 = vmul.f32 %v2255_v21, %v749_v6  ;;  %1760 = vmatmul.mubr.msk.bf16.gmra.mxu1 %vm1102_vm0, %v1052_v5  ;;  %v1011_v13 = vmax.f32 %v947_v7, 0.0 }
 0x1b7   :  { %v751_v10 = vpop.f32.mrf.mxu0 }
 0x1b8   :  { %v948_v11 = vadd.f32 %v2261_v24, %v877_v8 }
 0x1b9   :  { %v754_v12 = vpop.f32.mrf.mxu0 }
 0x1ba   :  { %v1012_v14 = vmax.f32 %v948_v11, 0.0  ;;  %v878_v15 = vmul.f32 %v2255_v21, %v754_v12 }
 0x1bb   :  { %v756_v16 = vpop.f32.mrf.mxu0 }
 0x1bc   :  { %v1053_v17 = vpack.c.bf16 %v1012_v14, %v1011_v13  ;;  %v949_v20 = vadd.f32 %v2261_v24, %v878_v15 }
 0x1bd   :  { %v757_v18 = vpop.f32.mrf.mxu0 }
 0x1be   :  { %v879_v22 = vmul.f32 %v2255_v21, %v757_v18  ;;  %1763 = vmatprep.mubr.msk.bf16.mxu1 %vm1102_vm0, %v1053_v17  ;;  %v1013_v27 = vmax.f32 %v949_v20, 0.0  ;;  %v2439_v21 = vld [vmem:[%s2712_s5] ss:$0 sm:$0xff] }
 0x1bf   :  { %v759_v23 = vpop.f32.mrf.mxu0 }
 0x1c0   :  { %v950_v25 = vadd.f32 %v2261_v24, %v879_v22 }
 0x1c2   :  { %v1014_v28 = vmax.f32 %v950_v25, 0.0 }
 0x1c4   :  { %v1054_v30 = vpack.c.bf16 %v1014_v28, %v1013_v27 }
 0x1c6   :  { %1764 = vmatmul.mubr.msk.bf16.gmra.mxu1 %vm1102_vm0, %v1054_v30 }
 0x1c7   :  { %1767 = vmatprep.mubr.msk.bf16.mxu1 %vm1102_vm0, %v2286_v19 }
 0x1ce   :  { %1768 = vmatmul.mubr.msk.bf16.gmra.mxu1 %vm1102_vm0, %v2297_v43 }
 0x1cf   :  { %1771 = vmatprep.mubr.msk.bf16.mxu1 %vm1102_vm0, %v2308_v1 }
 0x1d6   :  { %v1721_v24 = vpop.f32.mrf.mxu1  ;;  %1772 = vmatmul.mubr.msk.bf16.gmra.mxu1 %vm1102_vm0, %v2319_v26 }
 0x1d7   :  { %v1242_v31 = vadd.f32 %v1721_v24, %v2439_v21  ;;  %1775 = vmatprep.mubr.msk.bf16.mxu1 %vm1102_vm0, %v2330_v49 }
 0x1d8   :  { %v1233_v19 = vpop.f32.mrf.mxu1 }
 0x1d9   :  { %1490 = vst [vmem:[%s2713_s6 + $0x10] sm:$0xff] %v1242_v31  ;;  %v1234_v43 = vadd.f32 %v2439_v21, %v1233_v19 }
 0x1da   :  { %v1722_v1 = vpop.f32.mrf.mxu1 }
 0x1db   :  { %1488 = vst [vmem:[%s2713_s6] sm:$0xff] %v1234_v43  ;;  %v1245_v32 = vadd.f32 %v1722_v1, %v2439_v21 }
 0x1dc   :  { %v1236_v26 = vpop.f32.mrf.mxu1 }
 0x1dd   :  { %1491 = vst [vmem:[%s2713_s6 + $0x18] sm:$0xff] %v1245_v32  ;;  %v1237_v49 = vadd.f32 %v2439_v21, %v1236_v26 }
 0x1de   :  { %1776 = vmatmul.mubr.msk.bf16.gmra.mxu1 %vm1102_vm0, %v2343_v9 }
 0x1df   :  { %1489 = vst [vmem:[%s2713_s6 + $0x8] sm:$0xff] %v1237_v49  ;;  %1779 = vmatprep.mubr.msk.bf16.mxu1 %vm1102_vm0, %v2352_v29 }
 0x1e6   :  { %v1725_v33 = vpop.f32.mrf.mxu1  ;;  %1780 = vmatmul.mubr.msk.bf16.gmra.mxu1 %vm1102_vm0, %v2362_v50 }
 0x1e7   :  { %v1258_v34 = vadd.f32 %v1725_v33, %v2439_v21 }
 0x1e8   :  { %v1249_v35 = vpop.f32.mrf.mxu1 }
 0x1e9   :  { %1494 = vst [vmem:[%s2713_s6 + $0x30] sm:$0xff] %v1258_v34  ;;  %v1250_v9 = vadd.f32 %v2439_v21, %v1249_v35 }
 0x1ea   :  { %v1726_v36 = vpop.f32.mrf.mxu1 }
 0x1eb   :  { %1492 = vst [vmem:[%s2713_s6 + $0x20] sm:$0xff] %v1250_v9  ;;  %v1261_v29 = vadd.f32 %v1726_v36, %v2439_v21 }
 0x1ec   :  { %v1252_v37 = vpop.f32.mrf.mxu1 }
 0x1ed   :  { %1495 = vst [vmem:[%s2713_s6 + $0x38] sm:$0xff] %v1261_v29  ;;  %v1253_v50 = vadd.f32 %v2439_v21, %v1252_v37 }
 0x1ef   :  { %1493 = vst [vmem:[%s2713_s6 + $0x28] sm:$0xff] %v1253_v50 }
 0x1f6   :  { %v1729_v38 = vpop.f32.mrf.mxu1 }
 0x1f7   :  { %v1274_v39 = vadd.f32 %v1729_v38, %v2439_v21 }
 0x1f8   :  { %v1265_v40 = vpop.f32.mrf.mxu1 }
 0x1f9   :  { %1498 = vst [vmem:[%s2713_s6 + $0x50] sm:$0xff] %v1274_v39  ;;  %v1266_v41 = vadd.f32 %v2439_v21, %v1265_v40 }
 0x1fa   :  { %v1730_v42 = vpop.f32.mrf.mxu1 }
 0x1fb   :  { %1496 = vst [vmem:[%s2713_s6 + $0x40] sm:$0xff] %v1266_v41  ;;  %v1277_v44 = vadd.f32 %v1730_v42, %v2439_v21 }
 0x1fc   :  { %v1268_v45 = vpop.f32.mrf.mxu1 }
 0x1fd   :  { %1499 = vst [vmem:[%s2713_s6 + $0x58] sm:$0xff] %v1277_v44  ;;  %v1269_v46 = vadd.f32 %v2439_v21, %v1268_v45 }
 0x1ff   :  { %1497 = vst [vmem:[%s2713_s6 + $0x48] sm:$0xff] %v1269_v46 }
 0x206   :  { %v1733_v47 = vpop.f32.mrf.mxu1 }
 0x207   :  { %v1290_v48 = vadd.f32 %v1733_v47, %v2439_v21 }
 0x208   :  { %v1281_v51 = vpop.f32.mrf.mxu1 }
 0x209   :  { %1502 = vst [vmem:[%s2713_s6 + $0x70] sm:$0xff] %v1290_v48  ;;  %v1282_v52 = vadd.f32 %v2439_v21, %v1281_v51 }
 0x20a   :  { %v1734_v53 = vpop.f32.mrf.mxu1 }
 0x20b   :  { %1500 = vst [vmem:[%s2713_s6 + $0x60] sm:$0xff] %v1282_v52  ;;  %v1293_v54 = vadd.f32 %v1734_v53, %v2439_v21 }
 0x20c   :  { %v1284_v55 = vpop.f32.mrf.mxu1 }
 0x20d   :  { %1503 = vst [vmem:[%s2713_s6 + $0x78] sm:$0xff] %v1293_v54  ;;  %v1285_v56 = vadd.f32 %v2439_v21, %v1284_v55 }
 0x20f   :  { %1501 = vst [vmem:[%s2713_s6 + $0x68] sm:$0xff] %v1285_v56 }
 0x216   :  { %v1737_v57 = vpop.f32.mrf.mxu1 }
 0x217   :  { %v1306_v58 = vadd.f32 %v1737_v57, %v2439_v21 }
 0x218   :  { %v1297_v59 = vpop.f32.mrf.mxu1 }
 0x219   :  { %1506 = vst [vmem:[%s2713_s6 + $0x90] sm:$0xff] %v1306_v58  ;;  %v1298_v60 = vadd.f32 %v2439_v21, %v1297_v59 }
 0x21a   :  { %v1738_v61 = vpop.f32.mrf.mxu1 }
 0x21b   :  { %1504 = vst [vmem:[%s2713_s6 + $0x80] sm:$0xff] %v1298_v60  ;;  %v1309_v62 = vadd.f32 %v1738_v61, %v2439_v21 }
 0x21c   :  { %v1300_v63 = vpop.f32.mrf.mxu1 }
 0x21d   :  { %1507 = vst [vmem:[%s2713_s6 + $0x98] sm:$0xff] %v1309_v62  ;;  %v1301_v0 = vadd.f32 %v2439_v21, %v1300_v63 }
 0x21f   :  { %1505 = vst [vmem:[%s2713_s6 + $0x88] sm:$0xff] %v1301_v0 }
 0x226   :  { %v1741_v2 = vpop.f32.mrf.mxu1 }
 0x227   :  { %v1322_v3 = vadd.f32 %v1741_v2, %v2439_v21 }
 0x228   :  { %v1313_v4 = vpop.f32.mrf.mxu1 }
 0x229   :  { %1510 = vst [vmem:[%s2713_s6 + $0xb0] sm:$0xff] %v1322_v3  ;;  %v1314_v5 = vadd.f32 %v2439_v21, %v1313_v4 }
 0x22a   :  { %v1742_v6 = vpop.f32.mrf.mxu1 }
 0x22b   :  { %1508 = vst [vmem:[%s2713_s6 + $0xa0] sm:$0xff] %v1314_v5  ;;  %v1325_v7 = vadd.f32 %v1742_v6, %v2439_v21 }
 0x22c   :  { %v1316_v8 = vpop.f32.mrf.mxu1 }
 0x22d   :  { %1511 = vst [vmem:[%s2713_s6 + $0xb8] sm:$0xff] %v1325_v7  ;;  %v1317_v10 = vadd.f32 %v2439_v21, %v1316_v8 }
 0x22f   :  { %1509 = vst [vmem:[%s2713_s6 + $0xa8] sm:$0xff] %v1317_v10 }
 0x236   :  { %v1745_v11 = vpop.f32.mrf.mxu1 }
 0x237   :  { %v1338_v12 = vadd.f32 %v1745_v11, %v2439_v21 }
 0x238   :  { %v1329_v13 = vpop.f32.mrf.mxu1 }
 0x239   :  { %1514 = vst [vmem:[%s2713_s6 + $0xd0] sm:$0xff] %v1338_v12  ;;  %v1330_v14 = vadd.f32 %v2439_v21, %v1329_v13 }
 0x23a   :  { %v1746_v15 = vpop.f32.mrf.mxu1 }
 0x23b   :  { %1512 = vst [vmem:[%s2713_s6 + $0xc0] sm:$0xff] %v1330_v14  ;;  %v1341_v16 = vadd.f32 %v1746_v15, %v2439_v21 }
 0x23c   :  { %v1332_v17 = vpop.f32.mrf.mxu1 }
 0x23d   :  { %1515 = vst [vmem:[%s2713_s6 + $0xd8] sm:$0xff] %v1341_v16  ;;  %v1333_v18 = vadd.f32 %v2439_v21, %v1332_v17 }
 0x23f   :  { %1513 = vst [vmem:[%s2713_s6 + $0xc8] sm:$0xff] %v1333_v18 }
 0x246   :  { %v1749_v20 = vpop.f32.mrf.mxu1 }
 0x247   :  { %v1354_v22 = vadd.f32 %v1749_v20, %v2439_v21 }
 0x248   :  { %v1345_v23 = vpop.f32.mrf.mxu1 }
 0x249   :  { %1518 = vst [vmem:[%s2713_s6 + $0xf0] sm:$0xff] %v1354_v22  ;;  %v1346_v25 = vadd.f32 %v2439_v21, %v1345_v23 }
 0x24a   :  { %v1750_v27 = vpop.f32.mrf.mxu1 }
 0x24b   :  { %1516 = vst [vmem:[%s2713_s6 + $0xe0] sm:$0xff] %v1346_v25  ;;  %v1357_v28 = vadd.f32 %v1750_v27, %v2439_v21 }
 0x24c   :  { %v1348_v30 = vpop.f32.mrf.mxu1 }
 0x24d   :  { %1519 = vst [vmem:[%s2713_s6 + $0xf8] sm:$0xff] %v1357_v28  ;;  %v1349_v24 = vadd.f32 %v2439_v21, %v1348_v30 }
 0x24f   :  { %1517 = vst [vmem:[%s2713_s6 + $0xe8] sm:$0xff] %v1349_v24 }
 0x256   :  { %v1753_v31 = vpop.f32.mrf.mxu1 }
 0x257   :  { %v1370_v19 = vadd.f32 %v1753_v31, %v2439_v21 }
 0x258   :  { %v1361_v43 = vpop.f32.mrf.mxu1 }
 0x259   :  { %1522 = vst [vmem:[%s2713_s6 + $0x110] sm:$0xff] %v1370_v19  ;;  %v1362_v1 = vadd.f32 %v2439_v21, %v1361_v43 }
 0x25a   :  { %v1754_v32 = vpop.f32.mrf.mxu1 }
 0x25b   :  { %1520 = vst [vmem:[%s2713_s6 + $0x100] sm:$0xff] %v1362_v1  ;;  %v1373_v26 = vadd.f32 %v1754_v32, %v2439_v21 }
 0x25c   :  { %v1364_v49 = vpop.f32.mrf.mxu1 }
 0x25d   :  { %1523 = vst [vmem:[%s2713_s6 + $0x118] sm:$0xff] %v1373_v26  ;;  %v1365_v33 = vadd.f32 %v2439_v21, %v1364_v49 }
 0x25f   :  { %1521 = vst [vmem:[%s2713_s6 + $0x108] sm:$0xff] %v1365_v33 }
 0x266   :  { %v1757_v34 = vpop.f32.mrf.mxu1 }
 0x267   :  { %v1386_v35 = vadd.f32 %v1757_v34, %v2439_v21 }
 0x268   :  { %v1377_v9 = vpop.f32.mrf.mxu1 }
 0x269   :  { %1526 = vst [vmem:[%s2713_s6 + $0x130] sm:$0xff] %v1386_v35  ;;  %v1378_v36 = vadd.f32 %v2439_v21, %v1377_v9 }
 0x26a   :  { %v1758_v29 = vpop.f32.mrf.mxu1 }
 0x26b   :  { %1524 = vst [vmem:[%s2713_s6 + $0x120] sm:$0xff] %v1378_v36  ;;  %v1389_v37 = vadd.f32 %v1758_v29, %v2439_v21 }
 0x26c   :  { %v1380_v50 = vpop.f32.mrf.mxu1 }
 0x26d   :  { %1527 = vst [vmem:[%s2713_s6 + $0x138] sm:$0xff] %v1389_v37  ;;  %v1381_v38 = vadd.f32 %v2439_v21, %v1380_v50 }
 0x26f   :  { %1525 = vst [vmem:[%s2713_s6 + $0x128] sm:$0xff] %v1381_v38 }
 0x276   :  { %v1761_v39 = vpop.f32.mrf.mxu1 }
 0x277   :  { %v1402_v40 = vadd.f32 %v1761_v39, %v2439_v21 }
 0x278   :  { %v1393_v41 = vpop.f32.mrf.mxu1 }
 0x279   :  { %1530 = vst [vmem:[%s2713_s6 + $0x150] sm:$0xff] %v1402_v40  ;;  %v1394_v42 = vadd.f32 %v2439_v21, %v1393_v41 }
 0x27a   :  { %v1762_v44 = vpop.f32.mrf.mxu1 }
 0x27b   :  { %1528 = vst [vmem:[%s2713_s6 + $0x140] sm:$0xff] %v1394_v42  ;;  %v1405_v45 = vadd.f32 %v1762_v44, %v2439_v21 }
 0x27c   :  { %v1396_v46 = vpop.f32.mrf.mxu1 }
 0x27d   :  { %1531 = vst [vmem:[%s2713_s6 + $0x158] sm:$0xff] %v1405_v45  ;;  %v1397_v47 = vadd.f32 %v2439_v21, %v1396_v46 }
 0x27f   :  { %1529 = vst [vmem:[%s2713_s6 + $0x148] sm:$0xff] %v1397_v47 }
 0x286   :  { %v1765_v48 = vpop.f32.mrf.mxu1 }
 0x287   :  { %v1418_v51 = vadd.f32 %v1765_v48, %v2439_v21 }
 0x288   :  { %v1409_v52 = vpop.f32.mrf.mxu1 }
 0x289   :  { %1534 = vst [vmem:[%s2713_s6 + $0x170] sm:$0xff] %v1418_v51  ;;  %v1410_v53 = vadd.f32 %v2439_v21, %v1409_v52 }
 0x28a   :  { %v1766_v54 = vpop.f32.mrf.mxu1 }
 0x28b   :  { %1532 = vst [vmem:[%s2713_s6 + $0x160] sm:$0xff] %v1410_v53  ;;  %v1421_v55 = vadd.f32 %v1766_v54, %v2439_v21 }
 0x28c   :  { %v1412_v56 = vpop.f32.mrf.mxu1 }
 0x28d   :  { %1535 = vst [vmem:[%s2713_s6 + $0x178] sm:$0xff] %v1421_v55  ;;  %v1413_v57 = vadd.f32 %v2439_v21, %v1412_v56 }
 0x28e   :  { %v1769_v58 = vpop.f32.mrf.mxu1 }
 0x28f   :  { %1533 = vst [vmem:[%s2713_s6 + $0x168] sm:$0xff] %v1413_v57  ;;  %v1434_v59 = vadd.f32 %v1769_v58, %v2439_v21 }
 0x290   :  { %v1425_v60 = vpop.f32.mrf.mxu1 }
 0x291   :  { %1538 = vst [vmem:[%s2713_s6 + $0x190] sm:$0xff] %v1434_v59  ;;  %v1426_v61 = vadd.f32 %v2439_v21, %v1425_v60 }
 0x292   :  { %v1770_v62 = vpop.f32.mrf.mxu1 }
 0x293   :  { %1536 = vst [vmem:[%s2713_s6 + $0x180] sm:$0xff] %v1426_v61  ;;  %v1437_v63 = vadd.f32 %v1770_v62, %v2439_v21 }
 0x294   :  { %v1428_v0 = vpop.f32.mrf.mxu1 }
 0x295   :  { %1539 = vst [vmem:[%s2713_s6 + $0x198] sm:$0xff] %v1437_v63  ;;  %v1429_v2 = vadd.f32 %v2439_v21, %v1428_v0 }
 0x296   :  { %v1773_v3 = vpop.f32.mrf.mxu1 }
 0x297   :  { %1537 = vst [vmem:[%s2713_s6 + $0x188] sm:$0xff] %v1429_v2  ;;  %v1450_v4 = vadd.f32 %v1773_v3, %v2439_v21 }
 0x298   :  { %v1441_v5 = vpop.f32.mrf.mxu1 }
 0x299   :  { %1542 = vst [vmem:[%s2713_s6 + $0x1b0] sm:$0xff] %v1450_v4  ;;  %v1442_v6 = vadd.f32 %v2439_v21, %v1441_v5 }
 0x29a   :  { %v1774_v7 = vpop.f32.mrf.mxu1 }
 0x29b   :  { %1540 = vst [vmem:[%s2713_s6 + $0x1a0] sm:$0xff] %v1442_v6  ;;  %v1453_v8 = vadd.f32 %v1774_v7, %v2439_v21 }
 0x29c   :  { %v1444_v10 = vpop.f32.mrf.mxu1 }
 0x29d   :  { %1543 = vst [vmem:[%s2713_s6 + $0x1b8] sm:$0xff] %v1453_v8  ;;  %v1445_v11 = vadd.f32 %v2439_v21, %v1444_v10 }
 0x29e   :  { %v1777_v12 = vpop.f32.mrf.mxu1 }
 0x29f   :  { %1541 = vst [vmem:[%s2713_s6 + $0x1a8] sm:$0xff] %v1445_v11  ;;  %v1466_v13 = vadd.f32 %v1777_v12, %v2439_v21 }
 0x2a0   :  { %v1457_v14 = vpop.f32.mrf.mxu1 }
 0x2a1   :  { %1546 = vst [vmem:[%s2713_s6 + $0x1d0] sm:$0xff] %v1466_v13  ;;  %v1458_v15 = vadd.f32 %v2439_v21, %v1457_v14 }
 0x2a2   :  { %v1778_v16 = vpop.f32.mrf.mxu1 }
 0x2a3   :  { %1544 = vst [vmem:[%s2713_s6 + $0x1c0] sm:$0xff] %v1458_v15  ;;  %v1469_v17 = vadd.f32 %v1778_v16, %v2439_v21 }
 0x2a4   :  { %v1460_v18 = vpop.f32.mrf.mxu1 }
 0x2a5   :  { %1547 = vst [vmem:[%s2713_s6 + $0x1d8] sm:$0xff] %v1469_v17  ;;  %v1461_v20 = vadd.f32 %v2439_v21, %v1460_v18 }
 0x2a6   :  { %v1781_v22 = vpop.f32.mrf.mxu1 }
 0x2a7   :  { %1545 = vst [vmem:[%s2713_s6 + $0x1c8] sm:$0xff] %v1461_v20  ;;  %v1482_v23 = vadd.f32 %v1781_v22, %v2439_v21 }
 0x2a8   :  { %v1473_v25 = vpop.f32.mrf.mxu1 }
 0x2a9   :  { %1550 = vst [vmem:[%s2713_s6 + $0x1f0] sm:$0xff] %v1482_v23  ;;  %v1474_v27 = vadd.f32 %v2439_v21, %v1473_v25 }
 0x2aa   :  { %v1782_v28 = vpop.f32.mrf.mxu1 }
 0x2ab   :  { %1548 = vst [vmem:[%s2713_s6 + $0x1e0] sm:$0xff] %v1474_v27  ;;  %v1485_v30 = vadd.f32 %v1782_v28, %v2439_v21 }
 0x2ac   :  { %v1476_v24 = vpop.f32.mrf.mxu1 }
 0x2ad   :  { %1551 = vst [vmem:[%s2713_s6 + $0x1f8] sm:$0xff] %v1485_v30  ;;  %v1477_v31 = vadd.f32 %v2439_v21, %v1476_v24 }
 0x2af   :  { %1549 = vst [vmem:[%s2713_s6 + $0x1e8] sm:$0xff] %v1477_v31 }

</bundles_post_ra>
